<compile_context>
chip_gen: v5e
topology: v5e:2x2
jax: 0.10.0
libtpu: 0.0.40
codegen_flags: <defaults>
</compile_context>

<pallas_src>
import functools

import jax
import jax.numpy as jnp
import numpy as np
from jax import lax
from jax.experimental import pallas as pl
from jax.experimental.pallas import tpu as pltpu

EPS = 1e-5


def _mm(a, b):
    """MXU matmul: bf16 operands, f32 accumulation."""
    return jnp.dot(a.astype(jnp.bfloat16), b.astype(jnp.bfloat16),
                   preferred_element_type=jnp.float32)


def _bn(y, gamma, beta, *, relu):
    """Training-mode BatchNorm on a (rows, channels) tensor.

    Centered two-pass variance (numerically stable vs E[x^2]-E[x]^2), biased
    variance, eps=1e-5, affine gamma/beta, all math in f32.  Applied once over
    the full channel width -- per-channel stats make group-wise vs full-width
    application identical, so no per-group calls are needed.
    """
    inv_n = 1.0 / y.shape[0]
    m = jnp.sum(y, axis=0, keepdims=True) * inv_n
    yc = y - m
    v = jnp.sum(yc * yc, axis=0, keepdims=True) * inv_n
    out = yc * (gamma * lax.rsqrt(v + EPS)) + beta
    return jnp.maximum(out, 0.0) if relu else out


def resnext_kernel(x_ref,
                   w1s_ref, g1_ref, be1_ref,
                   w2_ref, g2_ref, be2_ref,
                   w3_ref, g3_ref, be3_ref,
                   gs_ref, bes_ref,
                   o_ref, *, N, H, W):
    GW = g1_ref.shape[-1]           # group_width = d * C
    R = N * H * W

    xf = x_ref[...]                                          # (R, Cin) bf16

    # ---- conv1 + shortcut fused into one 1x1 channel matmul ----
    # (conv biases folded away: bias + training-mode BN == BN)
    y = _mm(xf, w1s_ref[...])                                # (R, GW + Cout) f32

    # ---- shortcut branch: BN, no ReLU ----
    sc = _bn(y[:, GW:], gs_ref[...], bes_ref[...], relu=False)

    # ---- conv1 BN + ReLU (full width, single call) ----
    h1 = _bn(y[:, :GW], g1_ref[...], be1_ref[...], relu=True)

    # ---- 3x3 grouped conv (stride=1, pad=1) as ONE im2col matmul ----
    # Build the zero-padded activation once (2 concats, 2 small zero blocks),
    # then the 9 taps are static slices of it.
    h1_4d = h1.reshape(N, H, W, GW)
    zw = jnp.zeros((N, H, 1, GW), jnp.float32)
    h1_w = jnp.concatenate([zw, h1_4d, zw], axis=2)          # (N, H, W+2, GW)
    zh = jnp.zeros((N, 1, W + 2, GW), jnp.float32)
    h1_p = jnp.concatenate([zh, h1_w, zh], axis=1)           # (N, H+2, W+2, GW)

    taps = [h1_p[:, dy:dy + H, dx:dx + W, :].reshape(R, GW)
            for dy in range(3) for dx in range(3)]
    im2col = jnp.concatenate(taps, axis=-1)                  # (R, 9*GW)

    # Single matmul against the im2col-reshaped block-diagonal weight:
    # K = 9*GW (144) instead of 9*C matmuls with K = ig.
    h2 = _bn(_mm(im2col, w2_ref[...]), g2_ref[...], be2_ref[...], relu=True)

    # ---- conv3 (1x1, GW -> Cout) as one matmul, then BN (no ReLU) ----
    h3 = _bn(_mm(h2, w3_ref[...]), g3_ref[...], be3_ref[...], relu=False)

    # ---- residual add + final ReLU ----
    o_ref[...] = jnp.maximum(h3 + sc, 0.0)


def resnext_block(x_nchw, p):
    N, Cin, H, W = x_nchw.shape
    GW = p["w1"].shape[1]
    Cout = p["w3"].shape[1]

    x_nhwc = jnp.transpose(x_nchw, (0, 2, 3, 1))
    xf = x_nhwc.reshape(N * H * W, Cin).astype(jnp.bfloat16)

    # Kernel-layout parameter packing (plain JAX glue, done once).
    # conv1 and shortcut weights fused; 3x3 grouped weight flattened to the
    # im2col layout (rows ordered (dy, dx, cin) to match the tap concat order).
    w1s = jnp.concatenate([p["w1"], p["ws"]], axis=1).astype(jnp.bfloat16)
    w2k = p["w2"].reshape(9 * GW, GW).astype(jnp.bfloat16)
    w3k = p["w3"].astype(jnp.bfloat16)

    args = (xf, w1s, p["g1"], p["be1"], w2k, p["g2"], p["be2"],
            w3k, p["g3"], p["be3"], p["gs"], p["bes"])

    out_flat = pl.pallas_call(
        functools.partial(resnext_kernel, N=N, H=H, W=W),
        out_shape=jax.ShapeDtypeStruct((N * H * W, Cout), jnp.float32),
        in_specs=[pl.BlockSpec(memory_space=pltpu.MemorySpace.VMEM)
                  for _ in args],
        out_specs=pl.BlockSpec(memory_space=pltpu.MemorySpace.VMEM),
        # Explicit VMEM budget (tiny here); realistic sizes need row tiling.
        compiler_params=pltpu.CompilerParams(
            vmem_limit_bytes=32 * 1024 * 1024),
    )(*args)

    out_nhwc = out_flat.reshape(N, H, W, Cout)
    return jnp.transpose(out_nhwc, (0, 3, 1, 2))             # back to NCHW


def make_params(key, in_channels, out_channels, d, C):
    group_width = d * C
    ig = group_width // C
    og = group_width // C
    ks = jax.random.split(key, 16)

    def nrm(k, shape, scale=0.1):
        return scale * jax.random.normal(k, shape, dtype=jnp.float32)

    # Grouped 3x3 weight; also embedded as a block-diagonal dense HWIO weight
    # (used both by the independent lax.conv reference and, reshaped, as the
    # kernel's im2col weight -- the structural zeros are free at GW <= MXU
    # lane width).
    w2_groups = nrm(ks[4], (C, 3, 3, ig, og))
    w2_dense = jnp.zeros((3, 3, group_width, group_width), jnp.float32)
    for g in range(C):
        w2_dense = w2_dense.at[:, :, g * ig:(g + 1) * ig,
                               g * og:(g + 1) * og].set(w2_groups[g])

    return dict(
        # conv1 (Cin -> GW, 1x1)
        w1=nrm(ks[0], (in_channels, group_width)),
        b1=nrm(ks[1], (1, group_width)),
        g1=1.0 + nrm(ks[2], (1, group_width)),
        be1=nrm(ks[3], (1, group_width)),
        # conv2 (GW -> GW, 3x3, groups=C)
        w2_groups=w2_groups,
        w2=w2_dense,
        b2=nrm(ks[5], (1, group_width)),
        g2=1.0 + nrm(ks[6], (1, group_width)),
        be2=nrm(ks[7], (1, group_width)),
        # conv3 (GW -> Cout, 1x1)
        w3=nrm(ks[8], (group_width, out_channels)),
        b3=nrm(ks[9], (1, out_channels)),
        g3=1.0 + nrm(ks[10], (1, out_channels)),
        be3=nrm(ks[11], (1, out_channels)),
        # shortcut (Cin -> Cout, 1x1)
        ws=nrm(ks[12], (in_channels, out_channels)),
        bs=nrm(ks[13], (1, out_channels)),
        gs=1.0 + nrm(ks[14], (1, out_channels)),
        bes=nrm(ks[15], (1, out_channels)),
    )


def ref_forward(x_nchw, p):
    # Independent pure-JAX reference using lax.conv (NHWC / HWIO), WITH the
    # conv biases (the kernel folds them into BN -- must match numerically),
    # all in f32.
    dn = ("NHWC", "HWIO", "NHWC")
    x = jnp.transpose(x_nchw, (0, 2, 3, 1))

    def bn(y, g, b):
        m = y.mean(axis=(0, 1, 2), keepdims=True)
        v = ((y - m) ** 2).mean(axis=(0, 1, 2), keepdims=True)
        return (y - m) / jnp.sqrt(v + EPS) * g.reshape(1, 1, 1, -1) \
            + b.reshape(1, 1, 1, -1)

    def conv1x1(inp, w, b):
        wh = w.reshape(1, 1, *w.shape)
        return lax.conv_general_dilated(inp, wh, (1, 1), "VALID",
                                        dimension_numbers=dn) \
            + b.reshape(1, 1, 1, -1)

    h1 = jax.nn.relu(bn(conv1x1(x, p["w1"], p["b1"]), p["g1"], p["be1"]))
    h2 = lax.conv_general_dilated(h1, p["w2"], (1, 1), "SAME",
                                  dimension_numbers=dn) \
        + p["b2"].reshape(1, 1, 1, -1)
    h2 = jax.nn.relu(bn(h2, p["g2"], p["be2"]))
    h3 = bn(conv1x1(h2, p["w3"], p["b3"]), p["g3"], p["be3"])
    sc = bn(conv1x1(x, p["ws"], p["bs"]), p["gs"], p["bes"])
    out = jax.nn.relu(h3 + sc)
    return jnp.transpose(out, (0, 3, 1, 2))


if __name__ == "__main__":
    # Small ResNeXt block: in=4, out=8, d=8, C=2 (group_width=16), stride=1.
    N, Cin, H, W = 2, 4, 16, 16
    Cout, d, C = 8, 8, 2

    key = jax.random.PRNGKey(0)
    kx, kp = jax.random.split(key)
    x = jax.random.normal(kx, (N, Cin, H, W), dtype=jnp.float32)
    params = make_params(kp, Cin, Cout, d, C)

    out = resnext_block(x, params)
    out = jax.block_until_ready(out)

    ref = jax.block_until_ready(ref_forward(x, params))
    assert out.shape == (N, Cout, H, W)
    # bf16 matmul operands (f32 accumulation) vs. an all-f32 reference:
    # tolerance widened from the previous all-f32 2e-4 accordingly.
    np.testing.assert_allclose(np.asarray(out), np.asarray(ref),
                               rtol=4e-2, atol=4e-2)
    print("KERNEL_OK")
</pallas_src>

<mosaic_0001>
module attributes {stable_mosaic.version = 11 : i64} {
  func.func @resnext_kernel(%arg0: memref<512x4xbf16, #tpu.memory_space<vmem>>, %arg1: memref<4x24xbf16, #tpu.memory_space<vmem>>, %arg2: memref<1x16xf32, #tpu.memory_space<vmem>>, %arg3: memref<1x16xf32, #tpu.memory_space<vmem>>, %arg4: memref<144x16xbf16, #tpu.memory_space<vmem>>, %arg5: memref<1x16xf32, #tpu.memory_space<vmem>>, %arg6: memref<1x16xf32, #tpu.memory_space<vmem>>, %arg7: memref<16x8xbf16, #tpu.memory_space<vmem>>, %arg8: memref<1x8xf32, #tpu.memory_space<vmem>>, %arg9: memref<1x8xf32, #tpu.memory_space<vmem>>, %arg10: memref<1x8xf32, #tpu.memory_space<vmem>>, %arg11: memref<1x8xf32, #tpu.memory_space<vmem>>, %arg12: memref<512x8xf32, #tpu.memory_space<vmem>>) attributes {dimension_semantics = [], scalar_prefetch = 0 : i64, scratch_operands = 0 : i64, tpu.core_type = #tpu.core_type<tc>} {
    %c0 = arith.constant 0 : index
    %c0_0 = arith.constant 0 : index
    %0 = vector.load %arg0[%c0, %c0_0] : memref<512x4xbf16, #tpu.memory_space<vmem>>, vector<512x4xbf16>
    %c0_1 = arith.constant 0 : index
    %c0_2 = arith.constant 0 : index
    %1 = vector.load %arg1[%c0_1, %c0_2] : memref<4x24xbf16, #tpu.memory_space<vmem>>, vector<4x24xbf16>
    %cst = arith.constant dense<0.000000e+00> : vector<512x24xf32>
    %2 = tpu.matmul %0, %1, %cst {dimension_numbers = #tpu.dot_dimension_numbers<[1], [0], [0], [1], [0, 0, 1, 1], [], []>} : vector<512x4xbf16>, vector<4x24xbf16>, vector<512x24xf32> -> vector<512x24xf32>
    %3 = vector.extract_strided_slice %2 {offsets = [0, 16], sizes = [512, 8], strides = [1, 1]} : vector<512x24xf32> to vector<512x8xf32>
    %c0_3 = arith.constant 0 : index
    %c0_4 = arith.constant 0 : index
    %4 = vector.load %arg10[%c0_3, %c0_4] : memref<1x8xf32, #tpu.memory_space<vmem>>, vector<1x8xf32>
    %c0_5 = arith.constant 0 : index
    %c0_6 = arith.constant 0 : index
    %5 = vector.load %arg11[%c0_5, %c0_6] : memref<1x8xf32, #tpu.memory_space<vmem>>, vector<1x8xf32>
    %cst_7 = arith.constant dense<0.000000e+00> : vector<8xf32>
    %6 = vector.multi_reduction <add>, %3, %cst_7 [0] : vector<512x8xf32> to vector<8xf32>
    %7 = vector.shape_cast %6 : vector<8xf32> to vector<1x8xf32>
    %cst_8 = arith.constant 0.001953125 : f32
    %8 = vector.broadcast %cst_8 : f32 to vector<1x8xf32>
    %9 = arith.mulf %7, %8 : vector<1x8xf32>
    %10 = vector.broadcast %9 : vector<1x8xf32> to vector<512x8xf32>
    %11 = arith.subf %3, %10 : vector<512x8xf32>
    %12 = arith.mulf %11, %11 : vector<512x8xf32>
    %cst_9 = arith.constant dense<0.000000e+00> : vector<8xf32>
    %13 = vector.multi_reduction <add>, %12, %cst_9 [0] : vector<512x8xf32> to vector<8xf32>
    %14 = vector.shape_cast %13 : vector<8xf32> to vector<1x8xf32>
    %cst_10 = arith.constant 0.001953125 : f32
    %15 = vector.broadcast %cst_10 : f32 to vector<1x8xf32>
    %16 = arith.mulf %14, %15 : vector<1x8xf32>
    %cst_11 = arith.constant 9.99999974E-6 : f32
    %17 = vector.broadcast %cst_11 : f32 to vector<1x8xf32>
    %18 = arith.addf %16, %17 : vector<1x8xf32>
    %19 = math.rsqrt %18 : vector<1x8xf32>
    %20 = arith.mulf %4, %19 : vector<1x8xf32>
    %21 = vector.broadcast %20 : vector<1x8xf32> to vector<512x8xf32>
    %22 = arith.mulf %11, %21 : vector<512x8xf32>
    %23 = vector.broadcast %5 : vector<1x8xf32> to vector<512x8xf32>
    %24 = arith.addf %22, %23 : vector<512x8xf32>
    %25 = vector.extract_strided_slice %2 {offsets = [0, 0], sizes = [512, 16], strides = [1, 1]} : vector<512x24xf32> to vector<512x16xf32>
    %c0_12 = arith.constant 0 : index
    %c0_13 = arith.constant 0 : index
    %26 = vector.load %arg2[%c0_12, %c0_13] : memref<1x16xf32, #tpu.memory_space<vmem>>, vector<1x16xf32>
    %c0_14 = arith.constant 0 : index
    %c0_15 = arith.constant 0 : index
    %27 = vector.load %arg3[%c0_14, %c0_15] : memref<1x16xf32, #tpu.memory_space<vmem>>, vector<1x16xf32>
    %cst_16 = arith.constant dense<0.000000e+00> : vector<16xf32>
    %28 = vector.multi_reduction <add>, %25, %cst_16 [0] : vector<512x16xf32> to vector<16xf32>
    %29 = vector.shape_cast %28 : vector<16xf32> to vector<1x16xf32>
    %cst_17 = arith.constant 0.001953125 : f32
    %30 = vector.broadcast %cst_17 : f32 to vector<1x16xf32>
    %31 = arith.mulf %29, %30 : vector<1x16xf32>
    %32 = vector.broadcast %31 : vector<1x16xf32> to vector<512x16xf32>
    %33 = arith.subf %25, %32 : vector<512x16xf32>
    %34 = arith.mulf %33, %33 : vector<512x16xf32>
    %cst_18 = arith.constant dense<0.000000e+00> : vector<16xf32>
    %35 = vector.multi_reduction <add>, %34, %cst_18 [0] : vector<512x16xf32> to vector<16xf32>
    %36 = vector.shape_cast %35 : vector<16xf32> to vector<1x16xf32>
    %cst_19 = arith.constant 0.001953125 : f32
    %37 = vector.broadcast %cst_19 : f32 to vector<1x16xf32>
    %38 = arith.mulf %36, %37 : vector<1x16xf32>
    %cst_20 = arith.constant 9.99999974E-6 : f32
    %39 = vector.broadcast %cst_20 : f32 to vector<1x16xf32>
    %40 = arith.addf %38, %39 : vector<1x16xf32>
    %41 = math.rsqrt %40 : vector<1x16xf32>
    %42 = arith.mulf %26, %41 : vector<1x16xf32>
    %43 = vector.broadcast %42 : vector<1x16xf32> to vector<512x16xf32>
    %44 = arith.mulf %33, %43 : vector<512x16xf32>
    %45 = vector.broadcast %27 : vector<1x16xf32> to vector<512x16xf32>
    %46 = arith.addf %44, %45 : vector<512x16xf32>
    %cst_21 = arith.constant 0.000000e+00 : f32
    %47 = vector.broadcast %cst_21 : f32 to vector<512x16xf32>
    %48 = arith.maximumf %46, %47 : vector<512x16xf32>
    %49 = vector.shape_cast %48 : vector<512x16xf32> to vector<2x16x16x16xf32>
    %cst_22 = arith.constant 0.000000e+00 : f32
    %50 = vector.broadcast %cst_22 : f32 to vector<2x16x1x16xf32>
    %51 = tpu.concatenate %50, %49, %50 in 2 : vector<2x16x1x16xf32>, vector<2x16x16x16xf32>, vector<2x16x1x16xf32> -> vector<2x16x18x16xf32>
    %cst_23 = arith.constant 0.000000e+00 : f32
    %52 = vector.broadcast %cst_23 : f32 to vector<2x1x18x16xf32>
    %53 = tpu.concatenate %52, %51, %52 in 1 : vector<2x1x18x16xf32>, vector<2x16x18x16xf32>, vector<2x1x18x16xf32> -> vector<2x18x18x16xf32>
    %54 = vector.extract_strided_slice %53 {offsets = [0, 0, 0, 0], sizes = [2, 16, 16, 16], strides = [1, 1, 1, 1]} : vector<2x18x18x16xf32> to vector<2x16x16x16xf32>
    %55 = vector.shape_cast %54 : vector<2x16x16x16xf32> to vector<512x16xf32>
    %56 = vector.extract_strided_slice %53 {offsets = [0, 0, 1, 0], sizes = [2, 16, 16, 16], strides = [1, 1, 1, 1]} : vector<2x18x18x16xf32> to vector<2x16x16x16xf32>
    %57 = vector.shape_cast %56 : vector<2x16x16x16xf32> to vector<512x16xf32>
    %58 = vector.extract_strided_slice %53 {offsets = [0, 0, 2, 0], sizes = [2, 16, 16, 16], strides = [1, 1, 1, 1]} : vector<2x18x18x16xf32> to vector<2x16x16x16xf32>
    %59 = vector.shape_cast %58 : vector<2x16x16x16xf32> to vector<512x16xf32>
    %60 = vector.extract_strided_slice %53 {offsets = [0, 1, 0, 0], sizes = [2, 16, 16, 16], strides = [1, 1, 1, 1]} : vector<2x18x18x16xf32> to vector<2x16x16x16xf32>
    %61 = vector.shape_cast %60 : vector<2x16x16x16xf32> to vector<512x16xf32>
    %62 = vector.extract_strided_slice %53 {offsets = [0, 1, 1, 0], sizes = [2, 16, 16, 16], strides = [1, 1, 1, 1]} : vector<2x18x18x16xf32> to vector<2x16x16x16xf32>
    %63 = vector.shape_cast %62 : vector<2x16x16x16xf32> to vector<512x16xf32>
    %64 = vector.extract_strided_slice %53 {offsets = [0, 1, 2, 0], sizes = [2, 16, 16, 16], strides = [1, 1, 1, 1]} : vector<2x18x18x16xf32> to vector<2x16x16x16xf32>
    %65 = vector.shape_cast %64 : vector<2x16x16x16xf32> to vector<512x16xf32>
    %66 = vector.extract_strided_slice %53 {offsets = [0, 2, 0, 0], sizes = [2, 16, 16, 16], strides = [1, 1, 1, 1]} : vector<2x18x18x16xf32> to vector<2x16x16x16xf32>
    %67 = vector.shape_cast %66 : vector<2x16x16x16xf32> to vector<512x16xf32>
    %68 = vector.extract_strided_slice %53 {offsets = [0, 2, 1, 0], sizes = [2, 16, 16, 16], strides = [1, 1, 1, 1]} : vector<2x18x18x16xf32> to vector<2x16x16x16xf32>
    %69 = vector.shape_cast %68 : vector<2x16x16x16xf32> to vector<512x16xf32>
    %70 = vector.extract_strided_slice %53 {offsets = [0, 2, 2, 0], sizes = [2, 16, 16, 16], strides = [1, 1, 1, 1]} : vector<2x18x18x16xf32> to vector<2x16x16x16xf32>
    %71 = vector.shape_cast %70 : vector<2x16x16x16xf32> to vector<512x16xf32>
    %72 = tpu.concatenate %55, %57, %59, %61, %63, %65, %67, %69, %71 in 1 : vector<512x16xf32>, vector<512x16xf32>, vector<512x16xf32>, vector<512x16xf32>, vector<512x16xf32>, vector<512x16xf32>, vector<512x16xf32>, vector<512x16xf32>, vector<512x16xf32> -> vector<512x144xf32>
    %c0_24 = arith.constant 0 : index
    %c0_25 = arith.constant 0 : index
    %73 = vector.load %arg4[%c0_24, %c0_25] : memref<144x16xbf16, #tpu.memory_space<vmem>>, vector<144x16xbf16>
    %74 = arith.truncf %72 : vector<512x144xf32> to vector<512x144xbf16>
    %cst_26 = arith.constant dense<0.000000e+00> : vector<512x16xf32>
    %75 = tpu.matmul %74, %73, %cst_26 {dimension_numbers = #tpu.dot_dimension_numbers<[1], [0], [0], [1], [0, 0, 1, 1], [], []>} : vector<512x144xbf16>, vector<144x16xbf16>, vector<512x16xf32> -> vector<512x16xf32>
    %c0_27 = arith.constant 0 : index
    %c0_28 = arith.constant 0 : index
    %76 = vector.load %arg5[%c0_27, %c0_28] : memref<1x16xf32, #tpu.memory_space<vmem>>, vector<1x16xf32>
    %c0_29 = arith.constant 0 : index
    %c0_30 = arith.constant 0 : index
    %77 = vector.load %arg6[%c0_29, %c0_30] : memref<1x16xf32, #tpu.memory_space<vmem>>, vector<1x16xf32>
    %cst_31 = arith.constant dense<0.000000e+00> : vector<16xf32>
    %78 = vector.multi_reduction <add>, %75, %cst_31 [0] : vector<512x16xf32> to vector<16xf32>
    %79 = vector.shape_cast %78 : vector<16xf32> to vector<1x16xf32>
    %cst_32 = arith.constant 0.001953125 : f32
    %80 = vector.broadcast %cst_32 : f32 to vector<1x16xf32>
    %81 = arith.mulf %79, %80 : vector<1x16xf32>
    %82 = vector.broadcast %81 : vector<1x16xf32> to vector<512x16xf32>
    %83 = arith.subf %75, %82 : vector<512x16xf32>
    %84 = arith.mulf %83, %83 : vector<512x16xf32>
    %cst_33 = arith.constant dense<0.000000e+00> : vector<16xf32>
    %85 = vector.multi_reduction <add>, %84, %cst_33 [0] : vector<512x16xf32> to vector<16xf32>
    %86 = vector.shape_cast %85 : vector<16xf32> to vector<1x16xf32>
    %cst_34 = arith.constant 0.001953125 : f32
    %87 = vector.broadcast %cst_34 : f32 to vector<1x16xf32>
    %88 = arith.mulf %86, %87 : vector<1x16xf32>
    %cst_35 = arith.constant 9.99999974E-6 : f32
    %89 = vector.broadcast %cst_35 : f32 to vector<1x16xf32>
    %90 = arith.addf %88, %89 : vector<1x16xf32>
    %91 = math.rsqrt %90 : vector<1x16xf32>
    %92 = arith.mulf %76, %91 : vector<1x16xf32>
    %93 = vector.broadcast %92 : vector<1x16xf32> to vector<512x16xf32>
    %94 = arith.mulf %83, %93 : vector<512x16xf32>
    %95 = vector.broadcast %77 : vector<1x16xf32> to vector<512x16xf32>
    %96 = arith.addf %94, %95 : vector<512x16xf32>
    %cst_36 = arith.constant 0.000000e+00 : f32
    %97 = vector.broadcast %cst_36 : f32 to vector<512x16xf32>
    %98 = arith.maximumf %96, %97 : vector<512x16xf32>
    %c0_37 = arith.constant 0 : index
    %c0_38 = arith.constant 0 : index
    %99 = vector.load %arg7[%c0_37, %c0_38] : memref<16x8xbf16, #tpu.memory_space<vmem>>, vector<16x8xbf16>
    %100 = arith.truncf %98 : vector<512x16xf32> to vector<512x16xbf16>
    %cst_39 = arith.constant dense<0.000000e+00> : vector<512x8xf32>
    %101 = tpu.matmul %100, %99, %cst_39 {dimension_numbers = #tpu.dot_dimension_numbers<[1], [0], [0], [1], [0, 0, 1, 1], [], []>} : vector<512x16xbf16>, vector<16x8xbf16>, vector<512x8xf32> -> vector<512x8xf32>
    %c0_40 = arith.constant 0 : index
    %c0_41 = arith.constant 0 : index
    %102 = vector.load %arg8[%c0_40, %c0_41] : memref<1x8xf32, #tpu.memory_space<vmem>>, vector<1x8xf32>
    %c0_42 = arith.constant 0 : index
    %c0_43 = arith.constant 0 : index
    %103 = vector.load %arg9[%c0_42, %c0_43] : memref<1x8xf32, #tpu.memory_space<vmem>>, vector<1x8xf32>
    %cst_44 = arith.constant dense<0.000000e+00> : vector<8xf32>
    %104 = vector.multi_reduction <add>, %101, %cst_44 [0] : vector<512x8xf32> to vector<8xf32>
    %105 = vector.shape_cast %104 : vector<8xf32> to vector<1x8xf32>
    %cst_45 = arith.constant 0.001953125 : f32
    %106 = vector.broadcast %cst_45 : f32 to vector<1x8xf32>
    %107 = arith.mulf %105, %106 : vector<1x8xf32>
    %108 = vector.broadcast %107 : vector<1x8xf32> to vector<512x8xf32>
    %109 = arith.subf %101, %108 : vector<512x8xf32>
    %110 = arith.mulf %109, %109 : vector<512x8xf32>
    %cst_46 = arith.constant dense<0.000000e+00> : vector<8xf32>
    %111 = vector.multi_reduction <add>, %110, %cst_46 [0] : vector<512x8xf32> to vector<8xf32>
    %112 = vector.shape_cast %111 : vector<8xf32> to vector<1x8xf32>
    %cst_47 = arith.constant 0.001953125 : f32
    %113 = vector.broadcast %cst_47 : f32 to vector<1x8xf32>
    %114 = arith.mulf %112, %113 : vector<1x8xf32>
    %cst_48 = arith.constant 9.99999974E-6 : f32
    %115 = vector.broadcast %cst_48 : f32 to vector<1x8xf32>
    %116 = arith.addf %114, %115 : vector<1x8xf32>
    %117 = math.rsqrt %116 : vector<1x8xf32>
    %118 = arith.mulf %102, %117 : vector<1x8xf32>
    %119 = vector.broadcast %118 : vector<1x8xf32> to vector<512x8xf32>
    %120 = arith.mulf %109, %119 : vector<512x8xf32>
    %121 = vector.broadcast %103 : vector<1x8xf32> to vector<512x8xf32>
    %122 = arith.addf %120, %121 : vector<512x8xf32>
    %123 = arith.addf %122, %24 : vector<512x8xf32>
    %cst_49 = arith.constant 0.000000e+00 : f32
    %124 = vector.broadcast %cst_49 : f32 to vector<512x8xf32>
    %125 = arith.maximumf %123, %124 : vector<512x8xf32>
    %c0_50 = arith.constant 0 : index
    %c0_51 = arith.constant 0 : index
    %126 = vector.load %arg12[%c0_50, %c0_51] : memref<512x8xf32, #tpu.memory_space<vmem>>, vector<512x8xf32>
    tpu.vector_store %arg12[%c0_50, %c0_51], %125 {strides = array<i32>} : memref<512x8xf32, #tpu.memory_space<vmem>>, vector<512x8xf32>,
    return
  }
}

</mosaic_0001>

<bundles_post_ra>
// kernel: tpu_custom_call.1
= control target key start
LH: loop header
LB: loop body
LE: loop exit
PB: predicated region body
PF: predicated region fallthrough
CT: control target
= control target key end

     0   :  { %vm364_vm0 = vcmask 1041408   ;;  %vm267_vm1 = vcmask 31744   ;;  %vm1092_vm2 = vcmask 130048   ;;  %vm1763_vm6 = vcmask 1040384   ;;  %s8119_s18 = smov 80   ;;  %s8120_s19 = smov 16   ;;  %s15619_s1 = inlined_call_operand.vmem [shape: bf16[4,24], index: 1, kind: input, shape index: {}]   ;;  %s15620_s0 = inlined_call_operand.vmem [shape: bf16[512,4], index: 0, kind: input, shape index: {}]   ;;  %s15621_s3 = inlined_call_operand.vmem [shape: f32[1,16], index: 3, kind: input, shape index: {}]   ;;  %s15622_s4 = inlined_call_operand.vmem [shape: bf16[144,16], index: 4, kind: input, shape index: {}]   ;;  %s15623_s2 = inlined_call_operand.vmem [shape: f32[1,16], index: 2, kind: input, shape index: {}]   ;;  %s15624_s6 = inlined_call_operand.vmem [shape: f32[1,16], index: 6, kind: input, shape index: {}]   ;;  %s15625_s11 = inlined_call_operand.vmem [shape: f32[1,8], index: 11, kind: input, shape index: {}]   ;;  %s15626_s10 = inlined_call_operand.vmem [shape: f32[1,8], index: 10, kind: input, shape index: {}]   ;;  %s15627_s5 = inlined_call_operand.vmem [shape: f32[1,16], index: 5, kind: input, shape index: {}]   ;;  %s15628_s7 = inlined_call_operand.vmem [shape: bf16[16,8], index: 7, kind: input, shape index: {}]   ;;  %s15629_s9 = inlined_call_operand.vmem [shape: f32[1,8], index: 9, kind: input, shape index: {}]   ;;  %s15630_s8 = inlined_call_operand.vmem [shape: f32[1,8], index: 8, kind: input, shape index: {}]   ;;  %s15631_s12 = inlined_call_operand.vmem [shape: f32[512,8], index: 12, kind: output, shape index: {}]  }
   0x1   :  { %v106_v0 = vld [vmem:[%s15619_s1] sm:$0x3]  ;;  %v6967_v3 = vld [vmem:[%s15620_s0 + $0x8] sm:$0xff]  ;;  %v6968_v4 = vld [vmem:[%s15620_s0 + $0x10] sm:$0xff]  ;;  %vm539_vm7 = vcmask 195712   ;;  %vm2232_vm8 = vcmask 1045504  }
   0x2   :  { %v366_v1 = vsel %vm364_vm0, %v106_v0, 0  ;;  %v6966_v2 = vld [vmem:[%s15620_s0] sm:$0xff]  ;;  %v6969_v5 = vld [vmem:[%s15620_s0 + $0x18] sm:$0xff]  ;;  %v6971_v7 = vld [vmem:[%s15620_s0 + $0x28] sm:$0xff]  ;;  %vm2079_vm9 = vcmask 1046528   ;;  %s8121_s20 = smov 64  }
   0x3   :  { %375 = vmatpush.bf16.msra.mxu0 %v366_v1  ;;  %v6970_v6 = vld [vmem:[%s15620_s0 + $0x20] sm:$0xff]  ;;  %v6972_v8 = vld [vmem:[%s15620_s0 + $0x30] sm:$0xff]  ;;  %v6973_v9 = vld [vmem:[%s15620_s0 + $0x38] sm:$0xff]  ;;  %s8122_s21 = smov 32   ;;  %s8123_s24 = smov 112   ;;  %vm3839_vm10 = vcmask 261120  }
   0x4   :  { %v6974_v10 = vld [vmem:[%s15620_s0 + $0x40] sm:$0xff]  ;;  %v6975_v13 = vld [vmem:[%s15620_s0 + $0x48] sm:$0xff]  ;;  %v6976_v16 = vld [vmem:[%s15620_s0 + $0x50] sm:$0xff]  ;;  %vm3901_vm11 = vcmask 392192   ;;  %vm3966_vm12 = vcmask 523264   ;;  %vm4031_vm13 = vcmask 654336  }
   0x5   :  { %v6977_v19 = vld [vmem:[%s15620_s0 + $0x58] sm:$0xff]  ;;  %v6978_v22 = vld [vmem:[%s15620_s0 + $0x60] sm:$0xff]  ;;  %v6979_v25 = vld [vmem:[%s15620_s0 + $0x68] sm:$0xff]  ;;  %vm4096_vm14 = vcmask 785408   ;;  %vm4161_vm15 = vcmask 916480  }
   0x6   :  { %6830 = vmatmul.msk.bf16.vlgmr.msra.gmra.mxu0 %vm267_vm1, %v6966_v2  ;;  %v6980_v28 = vld [vmem:[%s15620_s0 + $0x70] sm:$0xff]  ;;  %v6981_v31 = vld [vmem:[%s15620_s0 + $0x78] sm:$0xff]  ;;  %v6982_v34 = vld [vmem:[%s15620_s0 + $0x80] sm:$0xff] }
   0x7   :  { %v6983_v37 = vld [vmem:[%s15620_s0 + $0x88] sm:$0xff]  ;;  %v6984_v40 = vld [vmem:[%s15620_s0 + $0x90] sm:$0xff]  ;;  %v6985_v43 = vld [vmem:[%s15620_s0 + $0x98] sm:$0xff] }
   0x8   :  { %v6986_v46 = vld [vmem:[%s15620_s0 + $0xa0] sm:$0xff]  ;;  %v6987_v49 = vld [vmem:[%s15620_s0 + $0xa8] sm:$0xff]  ;;  %v6988_v52 = vld [vmem:[%s15620_s0 + $0xb0] sm:$0xff] }
   0x9   :  { %v6989_v55 = vld [vmem:[%s15620_s0 + $0xb8] sm:$0xff]  ;;  %v6990_v57 = vld [vmem:[%s15620_s0 + $0xc0] sm:$0xff]  ;;  %v6991_v60 = vld [vmem:[%s15620_s0 + $0xc8] sm:$0xff] }
   0xa   :  { %v6992_v63 = vld [vmem:[%s15620_s0 + $0xd0] sm:$0xff]  ;;  %v6993_v1 = vld [vmem:[%s15620_s0 + $0xd8] sm:$0xff] }
  0x16   :  { %6831 = vmatmul.msk.bf16.gmra.mxu0 %vm267_vm1, %v6967_v3 }
  0x26   :  { %6832 = vmatmul.msk.bf16.gmra.mxu0 %vm267_vm1, %v6968_v4  ;;  %v6994_v4 = vld [vmem:[%s15620_s0 + $0xe0] sm:$0xff] }
  0x36   :  { %6833 = vmatmul.msk.bf16.gmra.mxu0 %vm267_vm1, %v6969_v5 }
  0x46   :  { %6834 = vmatmul.msk.bf16.gmra.mxu0 %vm267_vm1, %v6970_v6  ;;  %v6995_v6 = vld [vmem:[%s15620_s0 + $0xe8] sm:$0xff] }
  0x56   :  { %6835 = vmatmul.msk.bf16.gmra.mxu0 %vm267_vm1, %v6971_v7 }
  0x66   :  { %6836 = vmatmul.msk.bf16.gmra.mxu0 %vm267_vm1, %v6972_v8 }
  0x76   :  { %6837 = vmatmul.msk.bf16.gmra.mxu0 %vm267_vm1, %v6973_v9  ;;  %v6996_v9 = vld [vmem:[%s15620_s0 + $0xf0] sm:$0xff] }
  0x83   :  { %v8227_v11 = vpop.f32.mrf.mxu0 }
  0x84   :  { %16222 = vst [vmem:[#allocation2_spill] sm:$0xff] %v8227_v11 }
  0x86   :  { %6838 = vmatmul.msk.bf16.gmra.mxu0 %vm267_vm1, %v6974_v10 }
  0x8b   :  { %v8230_v12 = vpop.f32.mrf.mxu0 }
  0x8c   :  { %16223 = vst [vmem:[#allocation3_spill] sm:$0xff] %v8230_v12 }
  0x93   :  { %v8235_v14 = vpop.f32.mrf.mxu0 }
  0x94   :  { %16224 = vst [vmem:[#allocation4_spill] sm:$0xff] %v8235_v14 }
  0x96   :  { %6839 = vmatmul.msk.bf16.gmra.mxu0 %vm267_vm1, %v6975_v13 }
  0x9b   :  { %v8238_v15 = vpop.f32.mrf.mxu0 }
  0x9c   :  { %16225 = vst [vmem:[#allocation5_spill] sm:$0xff] %v8238_v15 }
  0xa3   :  { %v8243_v17 = vpop.f32.mrf.mxu0 }
  0xa4   :  { %16226 = vst [vmem:[#allocation6_spill] sm:$0xff] %v8243_v17 }
  0xa6   :  { %6840 = vmatmul.msk.bf16.gmra.mxu0 %vm267_vm1, %v6976_v16  ;;  %v6997_v16 = vld [vmem:[%s15620_s0 + $0xf8] sm:$0xff] }
  0xab   :  { %v8246_v18 = vpop.f32.mrf.mxu0 }
  0xac   :  { %16227 = vst [vmem:[#allocation7_spill] sm:$0xff] %v8246_v18 }
  0xb3   :  { %v8251_v20 = vpop.f32.mrf.mxu0 }
  0xb4   :  { %16228 = vst [vmem:[#allocation8_spill] sm:$0xff] %v8251_v20 }
  0xb6   :  { %6841 = vmatmul.msk.bf16.gmra.mxu0 %vm267_vm1, %v6977_v19 }
  0xbb   :  { %v8254_v21 = vpop.f32.mrf.mxu0 }
  0xbc   :  { %16229 = vst [vmem:[#allocation9_spill] sm:$0xff] %v8254_v21 }
  0xc3   :  { %v8259_v23 = vpop.f32.mrf.mxu0 }
  0xc4   :  { %16230 = vst [vmem:[#allocation10_spill] sm:$0xff] %v8259_v23 }
  0xc6   :  { %6842 = vmatmul.msk.bf16.gmra.mxu0 %vm267_vm1, %v6978_v22 }
  0xcb   :  { %v8262_v24 = vpop.f32.mrf.mxu0 }
  0xcc   :  { %16231 = vst [vmem:[#allocation11_spill] sm:$0xff] %v8262_v24 }
  0xd3   :  { %v8267_v26 = vpop.f32.mrf.mxu0 }
  0xd4   :  { %16232 = vst [vmem:[#allocation12_spill] sm:$0xff] %v8267_v26 }
  0xd6   :  { %6843 = vmatmul.msk.bf16.gmra.mxu0 %vm267_vm1, %v6979_v25 }
  0xdb   :  { %v8270_v27 = vpop.f32.mrf.mxu0 }
  0xdc   :  { %16233 = vst [vmem:[#allocation13_spill] sm:$0xff] %v8270_v27 }
  0xe3   :  { %v8275_v29 = vpop.f32.mrf.mxu0 }
  0xe4   :  { %16234 = vst [vmem:[#allocation14_spill] sm:$0xff] %v8275_v29 }
  0xe6   :  { %6844 = vmatmul.msk.bf16.gmra.mxu0 %vm267_vm1, %v6980_v28 }
  0xeb   :  { %v8278_v30 = vpop.f32.mrf.mxu0 }
  0xec   :  { %16235 = vst [vmem:[#allocation15_spill] sm:$0xff] %v8278_v30 }
  0xf3   :  { %v8283_v32 = vpop.f32.mrf.mxu0 }
  0xf4   :  { %16236 = vst [vmem:[#allocation16_spill] sm:$0xff] %v8283_v32 }
  0xf6   :  { %6845 = vmatmul.msk.bf16.gmra.mxu0 %vm267_vm1, %v6981_v31 }
  0xfb   :  { %v8286_v33 = vpop.f32.mrf.mxu0 }
  0xfc   :  { %16237 = vst [vmem:[#allocation17_spill] sm:$0xff] %v8286_v33 }
 0x103   :  { %v8291_v35 = vpop.f32.mrf.mxu0 }
 0x104   :  { %16238 = vst [vmem:[#allocation18_spill] sm:$0xff] %v8291_v35 }
 0x106   :  { %6846 = vmatmul.msk.bf16.gmra.mxu0 %vm267_vm1, %v6982_v34 }
 0x10b   :  { %v8294_v36 = vpop.f32.mrf.mxu0 }
 0x10c   :  { %16239 = vst [vmem:[#allocation19_spill] sm:$0xff] %v8294_v36 }
 0x113   :  { %v8299_v38 = vpop.f32.mrf.mxu0 }
 0x114   :  { %16240 = vst [vmem:[#allocation20_spill] sm:$0xff] %v8299_v38 }
 0x116   :  { %6847 = vmatmul.msk.bf16.gmra.mxu0 %vm267_vm1, %v6983_v37 }
 0x11b   :  { %v8302_v39 = vpop.f32.mrf.mxu0 }
 0x11c   :  { %16241 = vst [vmem:[#allocation21_spill] sm:$0xff] %v8302_v39 }
 0x123   :  { %v8307_v41 = vpop.f32.mrf.mxu0 }
 0x124   :  { %16242 = vst [vmem:[#allocation22_spill] sm:$0xff] %v8307_v41 }
 0x126   :  { %6848 = vmatmul.msk.bf16.gmra.mxu0 %vm267_vm1, %v6984_v40 }
 0x12b   :  { %v8310_v42 = vpop.f32.mrf.mxu0 }
 0x12c   :  { %16243 = vst [vmem:[#allocation23_spill] sm:$0xff] %v8310_v42 }
 0x133   :  { %v8315_v44 = vpop.f32.mrf.mxu0 }
 0x134   :  { %16244 = vst [vmem:[#allocation24_spill] sm:$0xff] %v8315_v44 }
 0x136   :  { %6849 = vmatmul.msk.bf16.gmra.mxu0 %vm267_vm1, %v6985_v43  ;;  %v1094_v43 = vsel %vm1092_vm2, %v8230_v12, 0.0 }
 0x13b   :  { %v8318_v45 = vpop.f32.mrf.mxu0 }
 0x13c   :  { %16245 = vst [vmem:[#allocation25_spill] sm:$0xff] %v8318_v45 }
 0x143   :  { %v8323_v47 = vpop.f32.mrf.mxu0 }
 0x144   :  { %16246 = vst [vmem:[#allocation26_spill] sm:$0xff] %v8323_v47 }
 0x146   :  { %6850 = vmatmul.msk.bf16.gmra.mxu0 %vm267_vm1, %v6986_v46 }
 0x14b   :  { %v8326_v48 = vpop.f32.mrf.mxu0 }
 0x14c   :  { %16247 = vst [vmem:[#allocation27_spill] sm:$0xff] %v8326_v48 }
 0x153   :  { %v8331_v50 = vpop.f32.mrf.mxu0 }
 0x154   :  { %16248 = vst [vmem:[#allocation28_spill] sm:$0xff] %v8331_v50 }
 0x156   :  { %6851 = vmatmul.msk.bf16.gmra.mxu0 %vm267_vm1, %v6987_v49  ;;  %v1093_v49 = vsel %vm1092_vm2, %v8227_v11, 0.0 }
 0x15b   :  { %v8334_v51 = vpop.f32.mrf.mxu0 }
 0x15c   :  { %16249 = vst [vmem:[#allocation29_spill] sm:$0xff] %v8334_v51 }
 0x163   :  { %v8339_v53 = vpop.f32.mrf.mxu0 }
 0x164   :  { %16250 = vst [vmem:[#allocation30_spill] sm:$0xff] %v8339_v53 }
 0x166   :  { %6852 = vmatmul.msk.bf16.gmra.mxu0 %vm267_vm1, %v6988_v52  ;;  %v1096_v52 = vsel %vm1092_vm2, %v8235_v14, 0.0 }
 0x16b   :  { %v8342_v54 = vpop.f32.mrf.mxu0 }
 0x16c   :  { %16251 = vst [vmem:[#allocation31_spill] sm:$0xff] %v8342_v54 }
 0x173   :  { %v8348_v56 = vpop.f32.mrf.mxu0 }
 0x174   :  { %16252 = vst [vmem:[#allocation32_spill] sm:$0xff] %v8348_v56 }
 0x176   :  { %6853 = vmatmul.msk.bf16.gmra.mxu0 %vm267_vm1, %v6989_v55  ;;  %v1095_v55 = vadd.f32 %v1094_v43, %v1093_v49  ;;  %v1106_v43 = vsel %vm1092_vm2, %v8254_v21, 0.0 }
 0x17b   :  { %v8353_v58 = vpop.f32.mrf.mxu0 }
 0x17c   :  { %16253 = vst [vmem:[#allocation33_spill] sm:$0xff] %v8353_v58 }
 0x183   :  { %v8356_v59 = vpop.f32.mrf.mxu0 }
 0x184   :  { %16254 = vst [vmem:[#allocation34_spill] sm:$0xff] %v8356_v59 }
 0x186   :  { %6854 = vmatmul.msk.bf16.gmra.mxu0 %vm267_vm1, %v6990_v57  ;;  %v1098_v57 = vsel %vm1092_vm2, %v8238_v15, 0.0 }
 0x18b   :  { %v8362_v61 = vpop.f32.mrf.mxu0 }
 0x18c   :  { %16255 = vst [vmem:[#allocation35_spill] sm:$0xff] %v8362_v61 }
 0x193   :  { %v8364_v62 = vpop.f32.mrf.mxu0 }
 0x194   :  { %16256 = vst [vmem:[#allocation36_spill] sm:$0xff] %v8364_v62 }
 0x196   :  { %6855 = vmatmul.msk.bf16.gmra.mxu0 %vm267_vm1, %v6991_v60  ;;  %v1097_v60 = vadd.f32 %v1096_v52, %v1095_v55  ;;  %v1108_v52 = vsel %vm1092_vm2, %v8259_v23, 0.0 }
 0x19b   :  { %v8370_v0 = vpop.f32.mrf.mxu0 }
 0x19c   :  { %16257 = vst [vmem:[#allocation37_spill] sm:$0xff] %v8370_v0 }
 0x1a3   :  { %v8375_v2 = vpop.f32.mrf.mxu0 }
 0x1a4   :  { %16258 = vst [vmem:[#allocation38_spill] sm:$0xff] %v8375_v2 }
 0x1a6   :  { %6856 = vmatmul.msk.bf16.gmra.mxu0 %vm267_vm1, %v6992_v63  ;;  %v1100_v63 = vsel %vm1092_vm2, %v8243_v17, 0.0 }
 0x1ab   :  { %v8378_v3 = vpop.f32.mrf.mxu0 }
 0x1ac   :  { %16259 = vst [vmem:[#allocation39_spill] sm:$0xff] %v8378_v3 }
 0x1b3   :  { %v8384_v5 = vpop.f32.mrf.mxu0 }
 0x1b4   :  { %16260 = vst [vmem:[#allocation40_spill] sm:$0xff] %v8384_v5 }
 0x1b6   :  { %6857 = vmatmul.msk.bf16.gmra.mxu0 %vm267_vm1, %v6993_v1  ;;  %v1099_v1 = vadd.f32 %v1098_v57, %v1097_v60  ;;  %v1110_v57 = vsel %vm1092_vm2, %v8262_v24, 0.0 }
 0x1bb   :  { %v8389_v7 = vpop.f32.mrf.mxu0 }
 0x1bc   :  { %16261 = vst [vmem:[#allocation41_spill] sm:$0xff] %v8389_v7 }
 0x1c3   :  { %v8392_v8 = vpop.f32.mrf.mxu0 }
 0x1c4   :  { %16262 = vst [vmem:[#allocation42_spill] sm:$0xff] %v8392_v8 }
 0x1c6   :  { %6858 = vmatmul.msk.bf16.gmra.mxu0 %vm267_vm1, %v6994_v4  ;;  %v1102_v4 = vsel %vm1092_vm2, %v8246_v18, 0.0 }
 0x1cb   :  { %v8398_v10 = vpop.f32.mrf.mxu0 }
 0x1cc   :  { %16263 = vst [vmem:[#allocation43_spill] sm:$0xff] %v8398_v10 }
 0x1d3   :  { %v8400_v13 = vpop.f32.mrf.mxu0 }
 0x1d4   :  { %16264 = vst [vmem:[#allocation44_spill] sm:$0xff] %v8400_v13 }
 0x1d6   :  { %6859 = vmatmul.msk.bf16.gmra.mxu0 %vm267_vm1, %v6995_v6  ;;  %v1101_v6 = vadd.f32 %v1100_v63, %v1099_v1  ;;  %v1112_v63 = vsel %vm1092_vm2, %v8267_v26, 0.0 }
 0x1db   :  { %v8406_v19 = vpop.f32.mrf.mxu0 }
 0x1dc   :  { %16265 = vst [vmem:[#allocation45_spill] sm:$0xff] %v8406_v19 }
 0x1e3   :  { %v8408_v22 = vpop.f32.mrf.mxu0 }
 0x1e4   :  { %16266 = vst [vmem:[#allocation46_spill] sm:$0xff] %v8408_v22 }
 0x1e6   :  { %6860 = vmatmul.msk.bf16.gmra.mxu0 %vm267_vm1, %v6996_v9  ;;  %v1104_v9 = vsel %vm1092_vm2, %v8251_v20, 0.0 }
 0x1eb   :  { %v8410_v25 = vpop.f32.mrf.mxu0 }
 0x1ec   :  { %16267 = vst [vmem:[#allocation47_spill] sm:$0xff] %v8410_v25 }
 0x1f3   :  { %v8412_v28 = vpop.f32.mrf.mxu0 }
 0x1f4   :  { %16268 = vst [vmem:[#allocation48_spill] sm:$0xff] %v8412_v28 }
 0x1f6   :  { %6861 = vmatmul.msk.bf16.gmra.mxu0 %vm267_vm1, %v6997_v16  ;;  %v1103_v16 = vadd.f32 %v1102_v4, %v1101_v6  ;;  %v1114_v4 = vsel %vm1092_vm2, %v8270_v27, 0.0 }
 0x1f8   :  { %v1105_v49 = vadd.f32 %v1104_v9, %v1103_v16  ;;  %v1116_v9 = vsel %vm1092_vm2, %v8275_v29, 0.0 }
 0x1fa   :  { %v1107_v55 = vadd.f32 %v1106_v43, %v1105_v49  ;;  %v1118_v43 = vsel %vm1092_vm2, %v8278_v30, 0.0 }
 0x1fb   :  { %v8414_v31 = vpop.f32.mrf.mxu0 }
 0x1fc   :  { %16269 = vst [vmem:[#allocation49_spill] sm:$0xff] %v8414_v31  ;;  %v1109_v60 = vadd.f32 %v1108_v52, %v1107_v55  ;;  %v1120_v52 = vsel %vm1092_vm2, %v8283_v32, 0.0 }
 0x1fe   :  { %v1111_v1 = vadd.f32 %v1110_v57, %v1109_v60  ;;  %v1122_v57 = vsel %vm1092_vm2, %v8286_v33, 0.0 }
 0x200   :  { %v1113_v6 = vadd.f32 %v1112_v63, %v1111_v1  ;;  %v1124_v63 = vsel %vm1092_vm2, %v8291_v35, 0.0 }
 0x202   :  { %v1115_v16 = vadd.f32 %v1114_v4, %v1113_v6  ;;  %v1126_v4 = vsel %vm1092_vm2, %v8294_v36, 0.0 }
 0x203   :  { %v8416_v34 = vpop.f32.mrf.mxu0 }
 0x204   :  { %16270 = vst [vmem:[#allocation50_spill] sm:$0xff] %v8416_v34  ;;  %v1117_v49 = vadd.f32 %v1116_v9, %v1115_v16  ;;  %v1128_v9 = vsel %vm1092_vm2, %v8299_v38, 0.0 }
 0x206   :  { %v1119_v55 = vadd.f32 %v1118_v43, %v1117_v49  ;;  %v1130_v43 = vsel %vm1092_vm2, %v8302_v39, 0.0 }
 0x208   :  { %v1121_v60 = vadd.f32 %v1120_v52, %v1119_v55  ;;  %v1132_v52 = vsel %vm1092_vm2, %v8307_v41, 0.0 }
 0x20a   :  { %v1123_v1 = vadd.f32 %v1122_v57, %v1121_v60  ;;  %v1134_v57 = vsel %vm1092_vm2, %v8310_v42, 0.0 }
 0x20b   :  { %v8418_v37 = vpop.f32.mrf.mxu0 }
 0x20c   :  { %16271 = vst [vmem:[#allocation51_spill] sm:$0xff] %v8418_v37  ;;  %v1125_v6 = vadd.f32 %v1124_v63, %v1123_v1  ;;  %v1136_v63 = vsel %vm1092_vm2, %v8315_v44, 0.0 }
 0x20e   :  { %v1127_v16 = vadd.f32 %v1126_v4, %v1125_v6  ;;  %v1138_v4 = vsel %vm1092_vm2, %v8318_v45, 0.0 }
 0x210   :  { %v1129_v49 = vadd.f32 %v1128_v9, %v1127_v16  ;;  %v1140_v9 = vsel %vm1092_vm2, %v8323_v47, 0.0 }
 0x212   :  { %v1131_v55 = vadd.f32 %v1130_v43, %v1129_v49  ;;  %v1142_v43 = vsel %vm1092_vm2, %v8326_v48, 0.0 }
 0x213   :  { %v8420_v40 = vpop.f32.mrf.mxu0 }
 0x214   :  { %16272 = vst [vmem:[#allocation52_spill] sm:$0xff] %v8420_v40  ;;  %v1133_v60 = vadd.f32 %v1132_v52, %v1131_v55  ;;  %v1144_v52 = vsel %vm1092_vm2, %v8331_v50, 0.0 }
 0x216   :  { %v1135_v1 = vadd.f32 %v1134_v57, %v1133_v60  ;;  %v1146_v57 = vsel %vm1092_vm2, %v8334_v51, 0.0 }
 0x218   :  { %v1137_v6 = vadd.f32 %v1136_v63, %v1135_v1  ;;  %v1148_v63 = vsel %vm1092_vm2, %v8339_v53, 0.0 }
 0x21a   :  { %v1139_v16 = vadd.f32 %v1138_v4, %v1137_v6  ;;  %v1150_v4 = vsel %vm1092_vm2, %v8342_v54, 0.0 }
 0x21b   :  { %v8424_v46 = vpop.f32.mrf.mxu0 }
 0x21c   :  { %16273 = vst [vmem:[#allocation53_spill] sm:$0xff] %v8424_v46  ;;  %v1141_v49 = vadd.f32 %v1140_v9, %v1139_v16  ;;  %v1152_v9 = vsel %vm1092_vm2, %v8348_v56, 0.0 }
 0x21e   :  { %v1143_v55 = vadd.f32 %v1142_v43, %v1141_v49  ;;  %v1154_v43 = vsel %vm1092_vm2, %v8353_v58, 0.0 }
 0x220   :  { %v1145_v60 = vadd.f32 %v1144_v52, %v1143_v55  ;;  %v1156_v52 = vsel %vm1092_vm2, %v8356_v59, 0.0 }
 0x222   :  { %v1147_v1 = vadd.f32 %v1146_v57, %v1145_v60  ;;  %v1158_v57 = vsel %vm1092_vm2, %v8362_v61, 0.0 }
 0x223   :  { %v8438_v12 = vpop.f32.mrf.mxu0 }
 0x224   :  { %16274 = vst [vmem:[#allocation54_spill] sm:$0xff] %v8438_v12  ;;  %v1149_v6 = vadd.f32 %v1148_v63, %v1147_v1  ;;  %v1160_v63 = vsel %vm1092_vm2, %v8364_v62, 0.0 }
 0x226   :  { %v1151_v16 = vadd.f32 %v1150_v4, %v1149_v6  ;;  %v1162_v4 = vsel %vm1092_vm2, %v8370_v0, 0.0 }
 0x228   :  { %v1153_v49 = vadd.f32 %v1152_v9, %v1151_v16  ;;  %v1164_v9 = vsel %vm1092_vm2, %v8375_v2, 0.0 }
 0x22a   :  { %v1155_v55 = vadd.f32 %v1154_v43, %v1153_v49  ;;  %v1166_v43 = vsel %vm1092_vm2, %v8378_v3, 0.0 }
 0x22b   :  { %v8450_v20 = vpop.f32.mrf.mxu0 }
 0x22c   :  { %16275 = vst [vmem:[#allocation55_spill] sm:$0xff] %v8450_v20  ;;  %v1157_v60 = vadd.f32 %v1156_v52, %v1155_v55  ;;  %v1168_v52 = vsel %vm1092_vm2, %v8384_v5, 0.0 }
 0x22e   :  { %v1159_v1 = vadd.f32 %v1158_v57, %v1157_v60  ;;  %v1170_v57 = vsel %vm1092_vm2, %v8389_v7, 0.0 }
 0x230   :  { %v1161_v6 = vadd.f32 %v1160_v63, %v1159_v1  ;;  %v1172_v63 = vsel %vm1092_vm2, %v8392_v8, 0.0 }
 0x232   :  { %v1163_v16 = vadd.f32 %v1162_v4, %v1161_v6  ;;  %v1174_v4 = vsel %vm1092_vm2, %v8398_v10, 0.0 }
 0x233   :  { %v8462_v27 = vpop.f32.mrf.mxu0 }
 0x234   :  { %16276 = vst [vmem:[#allocation56_spill] sm:$0xff] %v8462_v27  ;;  %v1165_v49 = vadd.f32 %v1164_v9, %v1163_v16  ;;  %v1176_v9 = vsel %vm1092_vm2, %v8400_v13, 0.0 }
 0x236   :  { %v1167_v55 = vadd.f32 %v1166_v43, %v1165_v49  ;;  %v1178_v43 = vsel %vm1092_vm2, %v8406_v19, 0.0 }
 0x238   :  { %v1169_v60 = vadd.f32 %v1168_v52, %v1167_v55  ;;  %v1180_v52 = vsel %vm1092_vm2, %v8408_v22, 0.0 }
 0x23a   :  { %v1171_v1 = vadd.f32 %v1170_v57, %v1169_v60  ;;  %v1182_v57 = vsel %vm1092_vm2, %v8410_v25, 0.0 }
 0x23b   :  { %v8474_v35 = vpop.f32.mrf.mxu0 }
 0x23c   :  { %16277 = vst [vmem:[#allocation57_spill] sm:$0xff] %v8474_v35  ;;  %v1173_v6 = vadd.f32 %v1172_v63, %v1171_v1  ;;  %v1184_v63 = vsel %vm1092_vm2, %v8412_v28, 0.0 }
 0x23e   :  { %v1175_v16 = vadd.f32 %v1174_v4, %v1173_v6  ;;  %v1186_v4 = vsel %vm1092_vm2, %v8414_v31, 0.0 }
 0x240   :  { %v1177_v49 = vadd.f32 %v1176_v9, %v1175_v16  ;;  %v1188_v9 = vsel %vm1092_vm2, %v8416_v34, 0.0 }
 0x242   :  { %v1179_v55 = vadd.f32 %v1178_v43, %v1177_v49  ;;  %v1190_v43 = vsel %vm1092_vm2, %v8418_v37, 0.0 }
 0x243   :  { %v8486_v42 = vpop.f32.mrf.mxu0 }
 0x244   :  { %16278 = vst [vmem:[#allocation58_spill] sm:$0xff] %v8486_v42  ;;  %v1181_v60 = vadd.f32 %v1180_v52, %v1179_v55  ;;  %v1192_v52 = vsel %vm1092_vm2, %v8420_v40, 0.0 }
 0x246   :  { %v1183_v1 = vadd.f32 %v1182_v57, %v1181_v60  ;;  %v1194_v57 = vsel %vm1092_vm2, %v8424_v46, 0.0 }
 0x248   :  { %v1185_v6 = vadd.f32 %v1184_v63, %v1183_v1  ;;  %v1196_v63 = vsel %vm1092_vm2, %v8438_v12, 0.0 }
 0x24a   :  { %v1187_v16 = vadd.f32 %v1186_v4, %v1185_v6  ;;  %v1198_v4 = vsel %vm1092_vm2, %v8450_v20, 0.0 }
 0x24b   :  { %v8498_v50 = vpop.f32.mrf.mxu0 }
 0x24c   :  { %16279 = vst [vmem:[#allocation59_spill] sm:$0xff] %v8498_v50  ;;  %v1189_v49 = vadd.f32 %v1188_v9, %v1187_v16  ;;  %v1200_v9 = vsel %vm1092_vm2, %v8462_v27, 0.0 }
 0x24e   :  { %v1191_v55 = vadd.f32 %v1190_v43, %v1189_v49  ;;  %v1202_v43 = vsel %vm1092_vm2, %v8474_v35, 0.0 }
 0x250   :  { %v1193_v60 = vadd.f32 %v1192_v52, %v1191_v55  ;;  %v1204_v52 = vsel %vm1092_vm2, %v8486_v42, 0.0 }
 0x252   :  { %v1195_v1 = vadd.f32 %v1194_v57, %v1193_v60  ;;  %v1206_v57 = vsel %vm1092_vm2, %v8498_v50, 0.0 }
 0x253   :  { %v8510_v58 = vpop.f32.mrf.mxu0 }
 0x254   :  { %16280 = vst [vmem:[#allocation60_spill] sm:$0xff] %v8510_v58  ;;  %v1197_v6 = vadd.f32 %v1196_v63, %v1195_v1  ;;  %v1208_v63 = vsel %vm1092_vm2, %v8510_v58, 0.0 }
 0x256   :  { %v1199_v16 = vadd.f32 %v1198_v4, %v1197_v6 }
 0x258   :  { %v1201_v49 = vadd.f32 %v1200_v9, %v1199_v16 }
 0x25a   :  { %v1203_v55 = vadd.f32 %v1202_v43, %v1201_v49 }
 0x25b   :  { %v8522_v2 = vpop.f32.mrf.mxu0 }
 0x25c   :  { %16281 = vst [vmem:[#allocation61_spill] sm:$0xff] %v8522_v2  ;;  %v1205_v60 = vadd.f32 %v1204_v52, %v1203_v55  ;;  %v1210_v4 = vsel %vm1092_vm2, %v8522_v2, 0.0 }
 0x25e   :  { %v1207_v1 = vadd.f32 %v1206_v57, %v1205_v60 }
 0x260   :  { %v1209_v6 = vadd.f32 %v1208_v63, %v1207_v1 }
 0x262   :  { %v1211_v16 = vadd.f32 %v1210_v4, %v1209_v6 }
 0x263   :  { %v8534_v10 = vpop.f32.mrf.mxu0 }
 0x264   :  { %16282 = vst [vmem:[#allocation62_spill] sm:$0xff] %v8534_v10  ;;  %v1212_v9 = vsel %vm1092_vm2, %v8534_v10, 0.0 }
 0x265   :  { %v1213_v49 = vadd.f32 %v1212_v9, %v1211_v16  ;;  %v16286_v16 = vld [vmem:[#allocation3_spill] sm:$0xff] }
 0x26b   :  { %v8546_v28 = vpop.f32.mrf.mxu0 }
 0x26c   :  { %16283 = vst [vmem:[#allocation63_spill] sm:$0xff] %v8546_v28  ;;  %v1214_v43 = vsel %vm1092_vm2, %v8546_v28, 0.0 }
 0x26d   :  { %v1215_v55 = vadd.f32 %v1214_v43, %v1213_v49 }
 0x273   :  { %v8558_v46 = vpop.f32.mrf.mxu0 }
 0x274   :  { %16284 = vst [vmem:[#allocation64_spill] sm:$0xff] %v8558_v46  ;;  %v1216_v52 = vsel %vm1092_vm2, %v8558_v46, 0.0 }
 0x275   :  { %v1217_v60 = vadd.f32 %v1216_v52, %v1215_v55 }
 0x27b   :  { %v8570_v42 = vpop.f32.mrf.mxu0 }
 0x27c   :  { %16285 = vst [vmem:[#allocation65_spill] sm:$0xff] %v8570_v42  ;;  %v1218_v57 = vsel %vm1092_vm2, %v8570_v42, 0.0 }
 0x27d   :  { %v1219_v2 = vadd.f32 %v1218_v57, %v1217_v60 }
 0x27f   :  { %v1220_v63 = vrot.slane %v1219_v2, 4 }
 0x281   :  { %v1221_v1 = vadd.f32 %v1220_v63, %v1219_v2 }
 0x283   :  { %v1222_v58 = vrot.slane %v1221_v1, 2 }
 0x285   :  { %v1223_v10 = vadd.f32 %v1222_v58, %v1221_v1 }
 0x287   :  { %v1224_v4 = vrot.slane %v1223_v10, 1 }
 0x289   :  { %v1225_v6 = vadd.f32 %v1224_v4, %v1223_v10 }
 0x28b   :  { %v8576_v50 = vmul.f32 0.001953125, %v1225_v6  ;;  %v16289_v6 = vld [vmem:[#allocation8_spill] sm:$0xff] }
 0x28d   :  { %v8580_v9 = vsub.f32 %v8227_v11, %v8576_v50  ;;  %v8584_v43 = vsub.f32 %v16286_v16, %v8576_v50  ;;  %v8588_v49 = vsub.f32 %v8235_v14, %v8576_v50  ;;  %v8592_v2 = vsub.f32 %v8238_v15, %v8576_v50 }
 0x28e   :  { %v8600_v52 = vsub.f32 %v8243_v17, %v8576_v50  ;;  %v8606_v57 = vsub.f32 %v8246_v18, %v8576_v50  ;;  %v8614_v15 = vsub.f32 %v16289_v6, %v8576_v50  ;;  %v8621_v18 = vsub.f32 %v8254_v21, %v8576_v50 }
 0x28f   :  { %16287 = vst [vmem:[#allocation66_spill] sm:$0xff] %v8588_v49  ;;  %v1291_v58 = vmul.f32 %v8580_v9, %v8580_v9  ;;  %v1292_v10 = vmul.f32 %v8584_v43, %v8584_v43  ;;  %v1293_v55 = vmul.f32 %v8588_v49, %v8588_v49  ;;  %v1294_v60 = vmul.f32 %v8592_v2, %v8592_v2 }
 0x290   :  { %16288 = vst [vmem:[#allocation67_spill] sm:$0xff] %v8592_v2  ;;  %v1295_v17 = vmul.f32 %v8600_v52, %v8600_v52  ;;  %v1297_v2 = vmul.f32 %v8614_v15, %v8614_v15  ;;  %v1298_v21 = vmul.f32 %v8621_v18, %v8621_v18 }
 0x291   :  { %v1355_v63 = vsel %vm1092_vm2, %v1291_v58, 0.0  ;;  %v1356_v1 = vsel %vm1092_vm2, %v1292_v10, 0.0  ;;  %16290 = vst [vmem:[#allocation68_spill] sm:$0xff] %v8614_v15  ;;  %v1358_v49 = vsel %vm1092_vm2, %v1293_v55, 0.0  ;;  %v1296_v58 = vmul.f32 %v8606_v57, %v8606_v57 }
 0x292   :  { %v1357_v4 = vadd.f32 %v1356_v1, %v1355_v63  ;;  %16291 = vst [vmem:[#allocation69_spill] sm:$0xff] %v8621_v18  ;;  %v1360_v10 = vsel %vm1092_vm2, %v1294_v60, 0.0  ;;  %v8628_v1 = vsub.f32 %v8259_v23, %v8576_v50  ;;  %v1362_v55 = vsel %vm1092_vm2, %v1295_v17, 0.0 }
 0x293   :  { %v1364_v60 = vsel %vm1092_vm2, %v1296_v58, 0.0  ;;  %v1366_v17 = vsel %vm1092_vm2, %v1297_v2, 0.0  ;;  %v1368_v58 = vsel %vm1092_vm2, %v1298_v21, 0.0 }
 0x294   :  { %v1359_v14 = vadd.f32 %v1358_v49, %v1357_v4  ;;  %16292 = vst [vmem:[#allocation70_spill] sm:$0xff] %v8628_v1  ;;  %v8635_v4 = vsub.f32 %v8262_v24, %v8576_v50  ;;  %v1299_v15 = vmul.f32 %v8628_v1, %v8628_v1 }
 0x296   :  { %v1361_v63 = vadd.f32 %v1360_v10, %v1359_v14  ;;  %16293 = vst [vmem:[#allocation71_spill] sm:$0xff] %v8635_v4  ;;  %v8642_v10 = vsub.f32 %v8267_v26, %v8576_v50  ;;  %v1300_v18 = vmul.f32 %v8635_v4, %v8635_v4  ;;  %v1370_v2 = vsel %vm1092_vm2, %v1299_v15, 0.0 }
 0x298   :  { %v1363_v49 = vadd.f32 %v1362_v55, %v1361_v63  ;;  %16294 = vst [vmem:[#allocation72_spill] sm:$0xff] %v8642_v10  ;;  %v16295_v55 = vld [vmem:[#allocation13_spill] sm:$0xff]  ;;  %v1301_v26 = vmul.f32 %v8642_v10, %v8642_v10  ;;  %v1372_v21 = vsel %vm1092_vm2, %v1300_v18, 0.0 }
 0x299   :  { %v8649_v24 = vsub.f32 %v16295_v55, %v8576_v50 }
 0x29a   :  { %v1365_v14 = vadd.f32 %v1364_v60, %v1363_v49  ;;  %v8656_v60 = vsub.f32 %v8275_v29, %v8576_v50  ;;  %v1374_v15 = vsel %vm1092_vm2, %v1301_v26, 0.0 }
 0x29b   :  { %16296 = vst [vmem:[#allocation73_spill] sm:$0xff] %v8649_v24  ;;  %v1302_v55 = vmul.f32 %v8649_v24, %v8649_v24 }
 0x29c   :  { %v1367_v63 = vadd.f32 %v1366_v17, %v1365_v14  ;;  %16297 = vst [vmem:[#allocation74_spill] sm:$0xff] %v8656_v60  ;;  %v8663_v17 = vsub.f32 %v8278_v30, %v8576_v50  ;;  %v1303_v29 = vmul.f32 %v8656_v60, %v8656_v60 }
 0x29d   :  { %v1376_v18 = vsel %vm1092_vm2, %v1302_v55, 0.0 }
 0x29e   :  { %v1369_v49 = vadd.f32 %v1368_v58, %v1367_v63  ;;  %16298 = vst [vmem:[#allocation75_spill] sm:$0xff] %v8663_v17  ;;  %v8670_v58 = vsub.f32 %v8283_v32, %v8576_v50  ;;  %v1304_v30 = vmul.f32 %v8663_v17, %v8663_v17  ;;  %v1378_v26 = vsel %vm1092_vm2, %v1303_v29, 0.0 }
 0x2a0   :  { %v1371_v14 = vadd.f32 %v1370_v2, %v1369_v49  ;;  %16299 = vst [vmem:[#allocation76_spill] sm:$0xff] %v8670_v58  ;;  %v8677_v2 = vsub.f32 %v8286_v33, %v8576_v50  ;;  %v1305_v60 = vmul.f32 %v8670_v58, %v8670_v58  ;;  %v1380_v55 = vsel %vm1092_vm2, %v1304_v30, 0.0 }
 0x2a2   :  { %v1373_v63 = vadd.f32 %v1372_v21, %v1371_v14  ;;  %16300 = vst [vmem:[#allocation77_spill] sm:$0xff] %v8677_v2  ;;  %v16301_v21 = vld [vmem:[#allocation18_spill] sm:$0xff]  ;;  %v1306_v33 = vmul.f32 %v8677_v2, %v8677_v2  ;;  %v1382_v29 = vsel %vm1092_vm2, %v1305_v60, 0.0 }
 0x2a3   :  { %v8684_v32 = vsub.f32 %v16301_v21, %v8576_v50 }
 0x2a4   :  { %v1375_v49 = vadd.f32 %v1374_v15, %v1373_v63  ;;  %v8691_v15 = vsub.f32 %v8294_v36, %v8576_v50  ;;  %v1384_v30 = vsel %vm1092_vm2, %v1306_v33, 0.0 }
 0x2a5   :  { %16302 = vst [vmem:[#allocation78_spill] sm:$0xff] %v8684_v32  ;;  %v1307_v21 = vmul.f32 %v8684_v32, %v8684_v32 }
 0x2a6   :  { %v1377_v14 = vadd.f32 %v1376_v18, %v1375_v49  ;;  %16303 = vst [vmem:[#allocation79_spill] sm:$0xff] %v8691_v15  ;;  %v8698_v18 = vsub.f32 %v8299_v38, %v8576_v50  ;;  %v1308_v36 = vmul.f32 %v8691_v15, %v8691_v15 }
 0x2a7   :  { %v1386_v60 = vsel %vm1092_vm2, %v1307_v21, 0.0 }
 0x2a8   :  { %v1379_v63 = vadd.f32 %v1378_v26, %v1377_v14  ;;  %v8705_v26 = vsub.f32 %v8302_v39, %v8576_v50  ;;  %v1309_v38 = vmul.f32 %v8698_v18, %v8698_v18  ;;  %v1388_v33 = vsel %vm1092_vm2, %v1308_v36, 0.0 }
 0x2aa   :  { %v1381_v49 = vadd.f32 %v1380_v55, %v1379_v63  ;;  %v8712_v55 = vsub.f32 %v8307_v41, %v8576_v50  ;;  %v1310_v15 = vmul.f32 %v8705_v26, %v8705_v26  ;;  %v1390_v21 = vsel %vm1092_vm2, %v1309_v38, 0.0 }
 0x2ac   :  { %v1383_v14 = vadd.f32 %v1382_v29, %v1381_v49  ;;  %v16304_v29 = vld [vmem:[#allocation23_spill] sm:$0xff]  ;;  %v1311_v41 = vmul.f32 %v8712_v55, %v8712_v55  ;;  %v1392_v36 = vsel %vm1092_vm2, %v1310_v15, 0.0 }
 0x2ad   :  { %v8719_v39 = vsub.f32 %v16304_v29, %v8576_v50 }
 0x2ae   :  { %v1385_v63 = vadd.f32 %v1384_v30, %v1383_v14  ;;  %v8726_v30 = vsub.f32 %v8315_v44, %v8576_v50  ;;  %v1394_v38 = vsel %vm1092_vm2, %v1311_v41, 0.0 }
 0x2af   :  { %v1312_v29 = vmul.f32 %v8719_v39, %v8719_v39 }
 0x2b0   :  { %v1387_v49 = vadd.f32 %v1386_v60, %v1385_v63  ;;  %v8733_v60 = vsub.f32 %v8318_v45, %v8576_v50  ;;  %v1313_v44 = vmul.f32 %v8726_v30, %v8726_v30 }
 0x2b1   :  { %v1396_v15 = vsel %vm1092_vm2, %v1312_v29, 0.0 }
 0x2b2   :  { %v1389_v14 = vadd.f32 %v1388_v33, %v1387_v49  ;;  %v8740_v33 = vsub.f32 %v8323_v47, %v8576_v50  ;;  %v1314_v45 = vmul.f32 %v8733_v60, %v8733_v60  ;;  %v1398_v41 = vsel %vm1092_vm2, %v1313_v44, 0.0 }
 0x2b4   :  { %v1391_v63 = vadd.f32 %v1390_v21, %v1389_v14  ;;  %v8747_v21 = vsub.f32 %v8326_v48, %v8576_v50  ;;  %v1315_v32 = vmul.f32 %v8740_v33, %v8740_v33  ;;  %v1400_v29 = vsel %vm1092_vm2, %v1314_v45, 0.0 }
 0x2b6   :  { %v1393_v49 = vadd.f32 %v1392_v36, %v1391_v63  ;;  %v16305_v36 = vld [vmem:[#allocation28_spill] sm:$0xff]  ;;  %v1316_v48 = vmul.f32 %v8747_v21, %v8747_v21  ;;  %v1402_v44 = vsel %vm1092_vm2, %v1315_v32, 0.0 }
 0x2b7   :  { %v8754_v47 = vsub.f32 %v16305_v36, %v8576_v50 }
 0x2b8   :  { %v1395_v14 = vadd.f32 %v1394_v38, %v1393_v49  ;;  %v8761_v38 = vsub.f32 %v8334_v51, %v8576_v50  ;;  %v1404_v45 = vsel %vm1092_vm2, %v1316_v48, 0.0 }
 0x2b9   :  { %v1317_v36 = vmul.f32 %v8754_v47, %v8754_v47 }
 0x2ba   :  { %v1397_v63 = vadd.f32 %v1396_v15, %v1395_v14  ;;  %v8768_v15 = vsub.f32 %v8339_v53, %v8576_v50  ;;  %v1318_v51 = vmul.f32 %v8761_v38, %v8761_v38 }
 0x2bb   :  { %v1406_v32 = vsel %vm1092_vm2, %v1317_v36, 0.0 }
 0x2bc   :  { %v1399_v49 = vadd.f32 %v1398_v41, %v1397_v63  ;;  %v8775_v41 = vsub.f32 %v8342_v54, %v8576_v50  ;;  %v1319_v53 = vmul.f32 %v8768_v15, %v8768_v15  ;;  %v1408_v48 = vsel %vm1092_vm2, %v1318_v51, 0.0 }
 0x2be   :  { %v1401_v14 = vadd.f32 %v1400_v29, %v1399_v49  ;;  %v8782_v29 = vsub.f32 %v8348_v56, %v8576_v50  ;;  %v1320_v2 = vmul.f32 %v8775_v41, %v8775_v41  ;;  %v1410_v36 = vsel %vm1092_vm2, %v1319_v53, 0.0 }
 0x2c0   :  { %v1403_v63 = vadd.f32 %v1402_v44, %v1401_v14  ;;  %v16306_v44 = vld [vmem:[#allocation33_spill] sm:$0xff]  ;;  %v1321_v56 = vmul.f32 %v8782_v29, %v8782_v29  ;;  %v1412_v51 = vsel %vm1092_vm2, %v1320_v2, 0.0 }
 0x2c1   :  { %v8789_v54 = vsub.f32 %v16306_v44, %v8576_v50 }
 0x2c2   :  { %v1405_v49 = vadd.f32 %v1404_v45, %v1403_v63  ;;  %v8796_v45 = vsub.f32 %v8356_v59, %v8576_v50  ;;  %v1414_v53 = vsel %vm1092_vm2, %v1321_v56, 0.0 }
 0x2c3   :  { %v1322_v44 = vmul.f32 %v8789_v54, %v8789_v54 }
 0x2c4   :  { %v1407_v14 = vadd.f32 %v1406_v32, %v1405_v49  ;;  %v8803_v32 = vsub.f32 %v8362_v61, %v8576_v50  ;;  %v1323_v59 = vmul.f32 %v8796_v45, %v8796_v45 }
 0x2c5   :  { %v1416_v2 = vsel %vm1092_vm2, %v1322_v44, 0.0 }
 0x2c6   :  { %v1409_v63 = vadd.f32 %v1408_v48, %v1407_v14  ;;  %v8810_v48 = vsub.f32 %v8364_v62, %v8576_v50  ;;  %v1324_v61 = vmul.f32 %v8803_v32, %v8803_v32  ;;  %v1418_v56 = vsel %vm1092_vm2, %v1323_v59, 0.0 }
 0x2c8   :  { %v1411_v49 = vadd.f32 %v1410_v36, %v1409_v63  ;;  %v8817_v36 = vsub.f32 %v8370_v0, %v8576_v50  ;;  %v1325_v58 = vmul.f32 %v8810_v48, %v8810_v48  ;;  %v1420_v44 = vsel %vm1092_vm2, %v1324_v61, 0.0 }
 0x2ca   :  { %v1413_v14 = vadd.f32 %v1412_v51, %v1411_v49  ;;  %v16307_v51 = vld [vmem:[#allocation38_spill] sm:$0xff]  ;;  %v1326_v0 = vmul.f32 %v8817_v36, %v8817_v36  ;;  %v1422_v59 = vsel %vm1092_vm2, %v1325_v58, 0.0 }
 0x2cb   :  { %v8824_v62 = vsub.f32 %v16307_v51, %v8576_v50 }
 0x2cc   :  { %v1415_v63 = vadd.f32 %v1414_v53, %v1413_v14  ;;  %v8831_v53 = vsub.f32 %v8378_v3, %v8576_v50  ;;  %v1424_v61 = vsel %vm1092_vm2, %v1326_v0, 0.0 }
 0x2cd   :  { %v1327_v51 = vmul.f32 %v8824_v62, %v8824_v62 }
 0x2ce   :  { %v1417_v49 = vadd.f32 %v1416_v2, %v1415_v63  ;;  %v8838_v2 = vsub.f32 %v8384_v5, %v8576_v50  ;;  %v1328_v3 = vmul.f32 %v8831_v53, %v8831_v53 }
 0x2cf   :  { %v1426_v58 = vsel %vm1092_vm2, %v1327_v51, 0.0 }
 0x2d0   :  { %v1419_v14 = vadd.f32 %v1418_v56, %v1417_v49  ;;  %v8845_v56 = vsub.f32 %v8389_v7, %v8576_v50  ;;  %v1329_v5 = vmul.f32 %v8838_v2, %v8838_v2  ;;  %v1428_v0 = vsel %vm1092_vm2, %v1328_v3, 0.0 }
 0x2d2   :  { %v1421_v63 = vadd.f32 %v1420_v44, %v1419_v14  ;;  %v8852_v44 = vsub.f32 %v8392_v8, %v8576_v50  ;;  %v1330_v17 = vmul.f32 %v8845_v56, %v8845_v56  ;;  %v1430_v51 = vsel %vm1092_vm2, %v1329_v5, 0.0 }
 0x2d4   :  { %v1423_v49 = vadd.f32 %v1422_v59, %v1421_v63  ;;  %v16308_v59 = vld [vmem:[#allocation43_spill] sm:$0xff]  ;;  %v1331_v8 = vmul.f32 %v8852_v44, %v8852_v44  ;;  %v1432_v3 = vsel %vm1092_vm2, %v1330_v17, 0.0 }
 0x2d5   :  { %v8859_v7 = vsub.f32 %v16308_v59, %v8576_v50 }
 0x2d6   :  { %v1425_v14 = vadd.f32 %v1424_v61, %v1423_v49  ;;  %v8866_v61 = vsub.f32 %v8400_v13, %v8576_v50  ;;  %v1434_v5 = vsel %vm1092_vm2, %v1331_v8, 0.0 }
 0x2d7   :  { %v1332_v59 = vmul.f32 %v8859_v7, %v8859_v7 }
 0x2d8   :  { %v1427_v63 = vadd.f32 %v1426_v58, %v1425_v14  ;;  %v8873_v58 = vsub.f32 %v8406_v19, %v8576_v50  ;;  %v1333_v13 = vmul.f32 %v8866_v61, %v8866_v61 }
 0x2d9   :  { %v1436_v17 = vsel %vm1092_vm2, %v1332_v59, 0.0 }
 0x2da   :  { %v1429_v49 = vadd.f32 %v1428_v0, %v1427_v63  ;;  %v8880_v0 = vsub.f32 %v8408_v22, %v8576_v50  ;;  %v1334_v19 = vmul.f32 %v8873_v58, %v8873_v58  ;;  %v1438_v8 = vsel %vm1092_vm2, %v1333_v13, 0.0 }
 0x2dc   :  { %v1431_v14 = vadd.f32 %v1430_v51, %v1429_v49  ;;  %v8887_v51 = vsub.f32 %v8410_v25, %v8576_v50  ;;  %v1335_v24 = vmul.f32 %v8880_v0, %v8880_v0  ;;  %v1440_v59 = vsel %vm1092_vm2, %v1334_v19, 0.0 }
 0x2de   :  { %v1433_v63 = vadd.f32 %v1432_v3, %v1431_v14  ;;  %v16309_v3 = vld [vmem:[#allocation48_spill] sm:$0xff]  ;;  %v1336_v25 = vmul.f32 %v8887_v51, %v8887_v51  ;;  %v1442_v13 = vsel %vm1092_vm2, %v1335_v24, 0.0 }
 0x2df   :  { %v8894_v22 = vsub.f32 %v16309_v3, %v8576_v50 }
 0x2e0   :  { %v1435_v49 = vadd.f32 %v1434_v5, %v1433_v63  ;;  %v8901_v5 = vsub.f32 %v8414_v31, %v8576_v50  ;;  %v1444_v19 = vsel %vm1092_vm2, %v1336_v25, 0.0 }
 0x2e1   :  { %v1337_v3 = vmul.f32 %v8894_v22, %v8894_v22 }
 0x2e2   :  { %v1437_v14 = vadd.f32 %v1436_v17, %v1435_v49  ;;  %v8908_v17 = vsub.f32 %v8416_v34, %v8576_v50  ;;  %v1338_v31 = vmul.f32 %v8901_v5, %v8901_v5 }
 0x2e3   :  { %v1446_v24 = vsel %vm1092_vm2, %v1337_v3, 0.0 }
 0x2e4   :  { %v1439_v63 = vadd.f32 %v1438_v8, %v1437_v14  ;;  %v8915_v8 = vsub.f32 %v8418_v37, %v8576_v50  ;;  %v1339_v34 = vmul.f32 %v8908_v17, %v8908_v17  ;;  %v1448_v25 = vsel %vm1092_vm2, %v1338_v31, 0.0 }
 0x2e6   :  { %v1441_v49 = vadd.f32 %v1440_v59, %v1439_v63  ;;  %v8922_v59 = vsub.f32 %v8420_v40, %v8576_v50  ;;  %v1340_v10 = vmul.f32 %v8915_v8, %v8915_v8  ;;  %v1450_v3 = vsel %vm1092_vm2, %v1339_v34, 0.0 }
 0x2e8   :  { %v1443_v14 = vadd.f32 %v1442_v13, %v1441_v49  ;;  %v16310_v13 = vld [vmem:[#allocation53_spill] sm:$0xff]  ;;  %v1341_v40 = vmul.f32 %v8922_v59, %v8922_v59  ;;  %v1452_v31 = vsel %vm1092_vm2, %v1340_v10, 0.0 }
 0x2e9   :  { %v8929_v37 = vsub.f32 %v16310_v13, %v8576_v50 }
 0x2ea   :  { %v1445_v63 = vadd.f32 %v1444_v19, %v1443_v14  ;;  %v8936_v19 = vsub.f32 %v8438_v12, %v8576_v50  ;;  %v1454_v34 = vsel %vm1092_vm2, %v1341_v40, 0.0 }
 0x2eb   :  { %v1342_v13 = vmul.f32 %v8929_v37, %v8929_v37 }
 0x2ec   :  { %v1447_v49 = vadd.f32 %v1446_v24, %v1445_v63  ;;  %v8943_v24 = vsub.f32 %v8450_v20, %v8576_v50  ;;  %v1343_v12 = vmul.f32 %v8936_v19, %v8936_v19 }
 0x2ed   :  { %v1456_v10 = vsel %vm1092_vm2, %v1342_v13, 0.0 }
 0x2ee   :  { %v1449_v14 = vadd.f32 %v1448_v25, %v1447_v49  ;;  %v8950_v25 = vsub.f32 %v8462_v27, %v8576_v50  ;;  %v1344_v20 = vmul.f32 %v8943_v24, %v8943_v24  ;;  %v1458_v40 = vsel %vm1092_vm2, %v1343_v12, 0.0 }
 0x2f0   :  { %v1451_v63 = vadd.f32 %v1450_v3, %v1449_v14  ;;  %v8957_v3 = vsub.f32 %v8474_v35, %v8576_v50  ;;  %v1345_v4 = vmul.f32 %v8950_v25, %v8950_v25  ;;  %v1460_v13 = vsel %vm1092_vm2, %v1344_v20, 0.0 }
 0x2f2   :  { %v1453_v49 = vadd.f32 %v1452_v31, %v1451_v63  ;;  %16311 = vst [vmem:[#allocation80_spill] sm:$0xff] %v8957_v3  ;;  %v16312_v31 = vld [vmem:[#allocation58_spill] sm:$0xff]  ;;  %v1346_v1 = vmul.f32 %v8957_v3, %v8957_v3  ;;  %v1462_v12 = vsel %vm1092_vm2, %v1345_v4, 0.0 }
 0x2f3   :  { %v8964_v27 = vsub.f32 %v16312_v31, %v8576_v50 }
 0x2f4   :  { %v1455_v14 = vadd.f32 %v1454_v34, %v1453_v49  ;;  %v16314_v34 = vld [vmem:[#allocation59_spill] sm:$0xff]  ;;  %v1464_v20 = vsel %vm1092_vm2, %v1346_v1, 0.0 }
 0x2f5   :  { %16313 = vst [vmem:[#allocation81_spill] sm:$0xff] %v8964_v27  ;;  %v8971_v35 = vsub.f32 %v16314_v34, %v8576_v50  ;;  %v1347_v23 = vmul.f32 %v8964_v27, %v8964_v27 }
 0x2f6   :  { %v1457_v63 = vadd.f32 %v1456_v10, %v1455_v14  ;;  %v16316_v10 = vld [vmem:[#allocation60_spill] sm:$0xff] }
 0x2f7   :  { %16315 = vst [vmem:[#allocation82_spill] sm:$0xff] %v8971_v35  ;;  %v8978_v31 = vsub.f32 %v16316_v10, %v8576_v50  ;;  %v1348_v6 = vmul.f32 %v8971_v35, %v8971_v35  ;;  %v1466_v4 = vsel %vm1092_vm2, %v1347_v23, 0.0 }
 0x2f8   :  { %v1459_v49 = vadd.f32 %v1458_v40, %v1457_v63  ;;  %v16318_v40 = vld [vmem:[#allocation61_spill] sm:$0xff] }
 0x2f9   :  { %16317 = vst [vmem:[#allocation83_spill] sm:$0xff] %v8978_v31  ;;  %v8985_v34 = vsub.f32 %v16318_v40, %v8576_v50  ;;  %v1349_v11 = vmul.f32 %v8978_v31, %v8978_v31  ;;  %v1468_v1 = vsel %vm1092_vm2, %v1348_v6, 0.0 }
 0x2fa   :  { %v1461_v14 = vadd.f32 %v1460_v13, %v1459_v49  ;;  %v16320_v13 = vld [vmem:[#allocation62_spill] sm:$0xff] }
 0x2fb   :  { %16319 = vst [vmem:[#allocation84_spill] sm:$0xff] %v8985_v34  ;;  %v8992_v10 = vsub.f32 %v16320_v13, %v8576_v50  ;;  %v1350_v40 = vmul.f32 %v8985_v34, %v8985_v34  ;;  %v1470_v16 = vsel %vm1092_vm2, %v1349_v11, 0.0 }
 0x2fc   :  { %v1463_v63 = vadd.f32 %v1462_v12, %v1461_v14  ;;  %v8999_v12 = vsub.f32 %v8546_v28, %v8576_v50 }
 0x2fd   :  { %16321 = vst [vmem:[#allocation85_spill] sm:$0xff] %v8992_v10  ;;  %v1351_v13 = vmul.f32 %v8992_v10, %v8992_v10  ;;  %v1472_v28 = vsel %vm1092_vm2, %v1350_v40, 0.0 }
 0x2fe   :  { %v1465_v49 = vadd.f32 %v1464_v20, %v1463_v63  ;;  %16322 = vst [vmem:[#allocation86_spill] sm:$0xff] %v8999_v12  ;;  %v1289_v20 = vsub.f32 %v8558_v46, %v8576_v50 }
 0x300   :  { %v1467_v14 = vadd.f32 %v1466_v4, %v1465_v49  ;;  %v1290_v49 = vsub.f32 %v8570_v42, %v8576_v50  ;;  %v1352_v4 = vmul.f32 %v8999_v12, %v8999_v12  ;;  %v1353_v6 = vmul.f32 %v1289_v20, %v1289_v20 }
 0x302   :  { %v1469_v63 = vadd.f32 %v1468_v1, %v1467_v14  ;;  %v1474_v14 = vsel %vm1092_vm2, %v1351_v13, 0.0  ;;  %v1354_v46 = vmul.f32 %v1290_v49, %v1290_v49  ;;  %v1476_v31 = vsel %vm1092_vm2, %v1352_v4, 0.0 }
 0x303   :  { %v1478_v11 = vsel %vm1092_vm2, %v1353_v6, 0.0  ;;  %v9027_v6 = vld [vmem:[%s15621_s3] ss:$0 sm:$0xff]  ;;  %s8117_s3 = smov 96  }
 0x304   :  { %v1471_v23 = vadd.f32 %v1470_v16, %v1469_v63  ;;  %v1480_v63 = vsel %vm1092_vm2, %v1354_v46, 0.0 }
 0x306   :  { %v1473_v34 = vadd.f32 %v1472_v28, %v1471_v23 }
 0x308   :  { %v1475_v1 = vadd.f32 %v1474_v14, %v1473_v34 }
 0x30a   :  { %v1477_v10 = vadd.f32 %v1476_v31, %v1475_v1  ;;  %v7006_v31 = vld [vmem:[%s15622_s4 + $0x40] sm:$0xff] }
 0x30b   :  { %4630 = vmatpush.bf16.msra.mxu2 %v7006_v31 }
 0x30c   :  { %v1479_v16 = vadd.f32 %v1478_v11, %v1477_v10 }
 0x30e   :  { %v1481_v50 = vadd.f32 %v1480_v63, %v1479_v16 }
 0x310   :  { %v1482_v42 = vrot.slane %v1481_v50, 4 }
 0x312   :  { %v1483_v35 = vadd.f32 %v1482_v42, %v1481_v50 }
 0x314   :  { %v1484_v12 = vrot.slane %v1483_v35, 2 }
 0x316   :  { %v1485_v27 = vadd.f32 %v1484_v12, %v1483_v35  ;;  %v1090_v35 = vld [vmem:[%s15623_s2] sm:$0x1]  ;;  %s8116_s2 = smov 48  }
 0x318   :  { %v1486_v40 = vrot.slane %v1485_v27, 1 }
 0x31a   :  { %v1487_v28 = vadd.f32 %v1486_v40, %v1485_v27 }
 0x31c   :  { %v1488_v23 = vmul.f32 0.001953125, %v1487_v28 }
 0x31e   :  { %v1489_v3 = vadd.f32 1e-05, %v1488_v23 }
 0x320   :  { %8108 = vrsqrt.f32 %v1489_v3  ;;  %vm1496_vm4 = vweird.f32 %v1489_v3 }
 0x326   :  { %v8109_v34 = vpop.eup %8108 }
 0x327   :  { %v1491_v13 = vmul.f32 %v8109_v34, %v1489_v3  ;;  %vm1497_vm3 = vweird.f32 %v8109_v34 }
 0x328   :  { %vm1498_vm5 = vmor %vm1496_vm4, %vm1497_vm3 }
 0x329   :  { %v1492_v4 = vmul.f32 %v8109_v34, %v1491_v13 }
 0x32b   :  { %v1493_v10 = vmul.f32 0.5, %v1492_v4 }
 0x32d   :  { %v1494_v46 = vsub.f32 1.5, %v1493_v10 }
 0x32f   :  { %v1495_v42 = vmul.f32 %v8109_v34, %v1494_v46 }
 0x331   :  { %v1499_v27 = vsel %vm1498_vm5, %v8109_v34, %v1495_v42 }
 0x332   :  { %v1500_v12 = vmul.f32 %v1499_v27, %v1090_v35  ;;  %v16326_v35 = vld [vmem:[#allocation80_spill] sm:$0xff]  ;;  %v16327_v27 = vld [vmem:[#allocation81_spill] sm:$0xff] }
 0x334   :  { %v9029_v14 = vperm.slane %v1500_v12, 0  ;;  %v16328_v12 = vld [vmem:[#allocation82_spill] sm:$0xff] }
 0x336   :  { %v1566_v1 = vmul.f32 %v9029_v14, %v1289_v20  ;;  %v1567_v11 = vmul.f32 %v9029_v14, %v1290_v49  ;;  %v1504_v20 = vmul.f32 %v9029_v14, %v8580_v9  ;;  %v1505_v49 = vmul.f32 %v9029_v14, %v8584_v43 }
 0x337   :  { %v1508_v34 = vmul.f32 %v9029_v14, %v8600_v52  ;;  %v1509_v13 = vmul.f32 %v9029_v14, %v8606_v57  ;;  %v1522_v31 = vmul.f32 %v9029_v14, %v8698_v18  ;;  %v1523_v4 = vmul.f32 %v9029_v14, %v8705_v26 }
 0x338   :  { %v1633_v16 = vadd.f32 %v9027_v6, %v1566_v1  ;;  %v1634_v63 = vadd.f32 %v9027_v6, %v1567_v11  ;;  %v1524_v10 = vmul.f32 %v9029_v14, %v8712_v55  ;;  %v1525_v9 = vmul.f32 %v9029_v14, %v8719_v39  ;;  %v16329_v1 = vld [vmem:[#allocation83_spill] sm:$0xff]  ;;  %v16330_v11 = vld [vmem:[#allocation84_spill] sm:$0xff] }
 0x339   :  { %v1526_v43 = vmul.f32 %v9029_v14, %v8726_v30  ;;  %v1527_v52 = vmul.f32 %v9029_v14, %v8733_v60  ;;  %v1528_v57 = vmul.f32 %v9029_v14, %v8740_v33  ;;  %v1529_v18 = vmul.f32 %v9029_v14, %v8747_v21 }
 0x33a   :  { %v1697_v50 = vmax.f32 %v1633_v16, 0.0  ;;  %v1698_v3 = vmax.f32 %v1634_v63, 0.0  ;;  %v1530_v26 = vmul.f32 %v9029_v14, %v8754_v47  ;;  %v1531_v55 = vmul.f32 %v9029_v14, %v8761_v38  ;;  %v16331_v16 = vld [vmem:[#allocation85_spill] sm:$0xff]  ;;  %v16332_v63 = vld [vmem:[#allocation86_spill] sm:$0xff] }
 0x33b   :  { %v1532_v39 = vmul.f32 %v9029_v14, %v8768_v15  ;;  %v1533_v30 = vmul.f32 %v9029_v14, %v8775_v41  ;;  %v1534_v60 = vmul.f32 %v9029_v14, %v8782_v29  ;;  %v1535_v33 = vmul.f32 %v9029_v14, %v8789_v54 }
 0x33c   :  { %v9035_v40 = vrot.slane %v1697_v50, 7  ;;  %v9037_v28 = vrot.slane %v1698_v3, 7  ;;  %v1536_v21 = vmul.f32 %v9029_v14, %v8796_v45  ;;  %v1537_v47 = vmul.f32 %v9029_v14, %v8803_v32 }
 0x33d   :  { %v1538_v38 = vmul.f32 %v9029_v14, %v8810_v48  ;;  %v1539_v15 = vmul.f32 %v9029_v14, %v8817_v36  ;;  %v1540_v41 = vmul.f32 %v9029_v14, %v8824_v62  ;;  %v1541_v29 = vmul.f32 %v9029_v14, %v8831_v53 }
 0x33e   :  { %16323 = vst [vmem:[#allocation87_spill] sm:$0xff] %v9035_v40  ;;  %v9042_v23 = vsel %vm1763_vm6, %v9035_v40, %v9037_v28  ;;  %v1542_v54 = vmul.f32 %v9029_v14, %v8838_v2  ;;  %v1543_v45 = vmul.f32 %v9029_v14, %v8845_v56  ;;  %v1544_v32 = vmul.f32 %v9029_v14, %v8852_v44 }
 0x33f   :  { %16324 = vst [vmem:[#allocation88_spill] sm:$0xff] %v9037_v28  ;;  %v1545_v48 = vmul.f32 %v9029_v14, %v8859_v7  ;;  %v1546_v36 = vmul.f32 %v9029_v14, %v8866_v61  ;;  %v1547_v62 = vmul.f32 %v9029_v14, %v8873_v58  ;;  %v1548_v53 = vmul.f32 %v9029_v14, %v8880_v0  ;;  %v16351_v28 = vld [vmem:[#allocation6_spill] sm:$0xff] }
 0x340   :  { %16325 = vst [vmem:[#allocation89_spill] sm:$0xff] %v9042_v23  ;;  %v1549_v2 = vmul.f32 %v9029_v14, %v8887_v51  ;;  %v1550_v56 = vmul.f32 %v9029_v14, %v8894_v22  ;;  %v1551_v44 = vmul.f32 %v9029_v14, %v8901_v5  ;;  %v1552_v7 = vmul.f32 %v9029_v14, %v8908_v17 }
 0x341   :  { %v9115_v61 = vadd.f32 %v9027_v6, %v1504_v20  ;;  %v9118_v58 = vadd.f32 %v9027_v6, %v1505_v49  ;;  %v1553_v0 = vmul.f32 %v9029_v14, %v8915_v8  ;;  %v1554_v51 = vmul.f32 %v9029_v14, %v8922_v59 }
 0x342   :  { %v1555_v22 = vmul.f32 %v9029_v14, %v8929_v37  ;;  %v1556_v5 = vmul.f32 %v9029_v14, %v8936_v19  ;;  %v1557_v17 = vmul.f32 %v9029_v14, %v8943_v24  ;;  %v1558_v46 = vmul.f32 %v9029_v14, %v8950_v25 }
 0x343   :  { %v1559_v42 = vmul.f32 %v9029_v14, %v16326_v35  ;;  %v1560_v8 = vmul.f32 %v9029_v14, %v16327_v27  ;;  %v1561_v59 = vmul.f32 %v9029_v14, %v16328_v12  ;;  %v1562_v37 = vmul.f32 %v9029_v14, %v16329_v1 }
 0x344   :  { %v1563_v19 = vmul.f32 %v9029_v14, %v16330_v11  ;;  %v1564_v24 = vmul.f32 %v9029_v14, %v16331_v16  ;;  %v1565_v25 = vmul.f32 %v9029_v14, %v16332_v63  ;;  %v1575_v50 = vadd.f32 %v9027_v6, %v1508_v34 }
 0x345   :  { %v1576_v3 = vadd.f32 %v9027_v6, %v1509_v13  ;;  %v9149_v20 = vadd.f32 %v9027_v6, %v1522_v31  ;;  %v9152_v49 = vadd.f32 %v9027_v6, %v1523_v4  ;;  %v9155_v35 = vadd.f32 %v9027_v6, %v1524_v10 }
 0x346   :  { %v9158_v27 = vadd.f32 %v9027_v6, %v1525_v9  ;;  %v9161_v12 = vadd.f32 %v9027_v6, %v1526_v43  ;;  %v9164_v1 = vadd.f32 %v9027_v6, %v1527_v52  ;;  %v9167_v34 = vadd.f32 %v9027_v6, %v1528_v57 }
 0x347   :  { %v9170_v13 = vadd.f32 %v9027_v6, %v1529_v18  ;;  %v9173_v31 = vadd.f32 %v9027_v6, %v1530_v26  ;;  %v9176_v4 = vadd.f32 %v9027_v6, %v1531_v55  ;;  %v9179_v10 = vadd.f32 %v9027_v6, %v1532_v39 }
 0x348   :  { %v9182_v9 = vadd.f32 %v9027_v6, %v1533_v30  ;;  %v9185_v43 = vadd.f32 %v9027_v6, %v1534_v60  ;;  %v9188_v52 = vadd.f32 %v9027_v6, %v1535_v33  ;;  %v9191_v57 = vadd.f32 %v9027_v6, %v1536_v21 }
 0x349   :  { %v9194_v18 = vadd.f32 %v9027_v6, %v1537_v47  ;;  %v9197_v26 = vadd.f32 %v9027_v6, %v1538_v38  ;;  %v9200_v55 = vadd.f32 %v9027_v6, %v1539_v15  ;;  %v9203_v39 = vadd.f32 %v9027_v6, %v1540_v41 }
 0x34a   :  { %v9206_v30 = vadd.f32 %v9027_v6, %v1541_v29  ;;  %v9209_v60 = vadd.f32 %v9027_v6, %v1542_v54  ;;  %v9212_v33 = vadd.f32 %v9027_v6, %v1543_v45  ;;  %v9215_v21 = vadd.f32 %v9027_v6, %v1544_v32 }
 0x34b   :  { %v9218_v47 = vadd.f32 %v9027_v6, %v1545_v48  ;;  %v9221_v38 = vadd.f32 %v9027_v6, %v1546_v36  ;;  %v9224_v15 = vadd.f32 %v9027_v6, %v1547_v62  ;;  %v9227_v41 = vadd.f32 %v9027_v6, %v1548_v53 }
 0x34c   :  { %v9230_v29 = vadd.f32 %v9027_v6, %v1549_v2  ;;  %v9233_v54 = vadd.f32 %v9027_v6, %v1550_v56  ;;  %v9236_v45 = vadd.f32 %v9027_v6, %v1551_v44  ;;  %v9239_v32 = vadd.f32 %v9027_v6, %v1552_v7 }
 0x34d   :  { %16333 = vst [vmem:[#allocation80_spill] sm:$0xff] %v9221_v38  ;;  %v9242_v48 = vadd.f32 %v9027_v6, %v1553_v0  ;;  %v9245_v36 = vadd.f32 %v9027_v6, %v1554_v51  ;;  %v9248_v62 = vadd.f32 %v9027_v6, %v1555_v22  ;;  %v9251_v53 = vadd.f32 %v9027_v6, %v1556_v5 }
 0x34e   :  { %16334 = vst [vmem:[#allocation81_spill] sm:$0xff] %v9224_v15  ;;  %v9254_v2 = vadd.f32 %v9027_v6, %v1557_v17  ;;  %v1625_v56 = vadd.f32 %v9027_v6, %v1558_v46  ;;  %v1626_v44 = vadd.f32 %v9027_v6, %v1559_v42  ;;  %v1627_v7 = vadd.f32 %v9027_v6, %v1560_v8 }
 0x34f   :  { %16335 = vst [vmem:[#allocation82_spill] sm:$0xff] %v9227_v41  ;;  %v1628_v0 = vadd.f32 %v9027_v6, %v1561_v59  ;;  %v1629_v51 = vadd.f32 %v9027_v6, %v1562_v37  ;;  %v1630_v11 = vadd.f32 %v9027_v6, %v1563_v19  ;;  %v1631_v22 = vadd.f32 %v9027_v6, %v1564_v24  ;;  %v16347_v59 = vld [vmem:[#allocation3_spill] sm:$0xff]  ;;  %v16348_v19 = vld [vmem:[#allocation2_spill] sm:$0xff] }
 0x350   :  { %16336 = vst [vmem:[#allocation83_spill] sm:$0xff] %v9230_v29  ;;  %v1632_v5 = vadd.f32 %v9027_v6, %v1565_v25  ;;  %v1639_v16 = vmax.f32 %v1575_v50, 0.0  ;;  %v1640_v63 = vmax.f32 %v1576_v3, 0.0  ;;  %v541_v37 = vsel %vm539_vm7, %v16347_v59, 0.0  ;;  %v16349_v25 = vld [vmem:[#allocation4_spill] sm:$0xff] }
 0x351   :  { %16337 = vst [vmem:[#allocation84_spill] sm:$0xff] %v9233_v54  ;;  %v540_v24 = vsel %vm539_vm7, %v16348_v19, 0.0  ;;  %v543_v50 = vsel %vm539_vm7, %v16349_v25, 0.0  ;;  %v547_v40 = vsel %vm539_vm7, %v16351_v28, 0.0  ;;  %v1694_v25 = vmax.f32 %v1630_v11, 0.0 }
 0x352   :  { %16338 = vst [vmem:[#allocation85_spill] sm:$0xff] %v9236_v45  ;;  %v1770_v17 = vrot.slane %v1639_v16, 7  ;;  %v9264_v23 = vrot.slane %v1640_v63, 7  ;;  %v542_v3 = vadd.f32 %v541_v37, %v540_v24  ;;  %v16350_v16 = vld [vmem:[#allocation5_spill] sm:$0xff]  ;;  %v1695_v29 = vmax.f32 %v1631_v22, 0.0 }
 0x353   :  { %16339 = vst [vmem:[#allocation86_spill] sm:$0xff] %v9239_v32  ;;  %v545_v63 = vsel %vm539_vm7, %v16350_v16, 0.0  ;;  %v16352_v32 = vld [vmem:[#allocation7_spill] sm:$0xff]  ;;  %v16354_v37 = vld [vmem:[#allocation9_spill] sm:$0xff] }
 0x354   :  { %16340 = vst [vmem:[#allocation90_spill] sm:$0xff] %v9242_v48  ;;  %v9267_v46 = vsel %vm1763_vm6, 0.0, %v1770_v17  ;;  %v9271_v42 = vsel %vm1763_vm6, %v1770_v17, %v9264_v23  ;;  %v544_v17 = vadd.f32 %v543_v50, %v542_v3  ;;  %v549_v59 = vsel %vm539_vm7, %v16352_v32, 0.0  ;;  %v16355_v50 = vld [vmem:[#allocation66_spill] sm:$0xff] }
 0x355   :  { %16341 = vst [vmem:[#allocation91_spill] sm:$0xff] %v9245_v36  ;;  %v7034_v8 = vpack.i.bf16 %v9271_v42, %v9267_v46  ;;  %v553_v24 = vsel %vm539_vm7, %v16354_v37, 0.0  ;;  %v1506_v3 = vmul.f32 %v9029_v14, %v16355_v50  ;;  %v16360_v37 = vld [vmem:[#allocation70_spill] sm:$0xff]  ;;  %v1690_v50 = vmax.f32 %v1626_v44, 0.0 }
 0x356   :  { %16342 = vst [vmem:[#allocation92_spill] sm:$0xff] %v9248_v62  ;;  %v546_v48 = vadd.f32 %v545_v63, %v544_v17  ;;  %v16356_v63 = vld [vmem:[#allocation10_spill] sm:$0xff]  ;;  %v1693_v32 = vmax.f32 %v1629_v51, 0.0 }
 0x357   :  { %16343 = vst [vmem:[#allocation93_spill] sm:$0xff] %v9251_v53  ;;  %7035 = vrot.lane.b32.xlu0 %v7034_v8, %s8116_s2  ;;  %7030 = vrot.lane.b32.xlu2 %v7034_v8, %s8117_s3  ;;  %v9299_v17 = vsel %vm539_vm7, %v16356_v63, 0.0  ;;  %v16359_v8 = vld [vmem:[#allocation69_spill] sm:$0xff]  ;;  %v1573_v63 = vadd.f32 %v9027_v6, %v1506_v3  ;;  %v1696_v53 = vmax.f32 %v1632_v5, 0.0  ;;  %v16364_v44 = vld [vmem:[#allocation74_spill] sm:$0xff]  ;;  %v9323_v22 = vrot.slane %v1690_v50, 7 }
 0x358   :  { %16344 = vst [vmem:[#allocation94_spill] sm:$0xff] %v9254_v2  ;;  %v548_v45 = vadd.f32 %v547_v40, %v546_v48  ;;  %v16353_v2 = vld [vmem:[#allocation8_spill] sm:$0xff]  ;;  %v16357_v40 = vld [vmem:[#allocation67_spill] sm:$0xff]  ;;  %v9329_v3 = vrot.slane %v1693_v32, 7 }
 0x359   :  { %16345 = vst [vmem:[#allocation95_spill] sm:$0xff] %v9267_v46  ;;  %v551_v54 = vsel %vm539_vm7, %v16353_v2, 0.0  ;;  %v1507_v48 = vmul.f32 %v9029_v14, %v16357_v40  ;;  %v1511_v2 = vmul.f32 %v9029_v14, %v16359_v8  ;;  %v16361_v40 = vld [vmem:[#allocation71_spill] sm:$0xff]  ;;  %v16363_v8 = vld [vmem:[#allocation73_spill] sm:$0xff] }
 0x35a   :  { %16346 = vst [vmem:[#allocation96_spill] sm:$0xff] %v9271_v42  ;;  %v550_v19 = vadd.f32 %v549_v59, %v548_v45  ;;  %v16358_v45 = vld [vmem:[#allocation68_spill] sm:$0xff]  ;;  %v1513_v62 = vmul.f32 %v9029_v14, %v16361_v40  ;;  %v1515_v41 = vmul.f32 %v9029_v14, %v16363_v8  ;;  %v9331_v40 = vrot.slane %v1694_v25, 7 }
 0x35b   :  { %v1510_v59 = vmul.f32 %v9029_v14, %v16358_v45  ;;  %v16362_v45 = vld [vmem:[#allocation72_spill] sm:$0xff]  ;;  %v1578_v51 = vadd.f32 %v9027_v6, %v1511_v2  ;;  %16366 = vst [vmem:[#allocation67_spill] sm:$0xff] %v9323_v22  ;;  %v1637_v8 = vmax.f32 %v1573_v63, 0.0 }
 0x35c   :  { %v552_v16 = vadd.f32 %v551_v54, %v550_v19  ;;  %v1512_v54 = vmul.f32 %v9029_v14, %v16360_v37  ;;  %v1689_v19 = vmax.f32 %v1625_v56, 0.0  ;;  %v1514_v36 = vmul.f32 %v9029_v14, %v16362_v45  ;;  %16369 = vst [vmem:[#allocation70_spill] sm:$0xff] %v9329_v3 }
 0x35d   :  { %v1574_v56 = vadd.f32 %v9027_v6, %v1507_v48  ;;  %16370 = vst [vmem:[#allocation71_spill] sm:$0xff] %v9331_v40  ;;  %v9333_v48 = vrot.slane %v1695_v29, 7  ;;  %v9335_v45 = vrot.slane %v1696_v53, 7  ;;  %v1580_v25 = vadd.f32 %v9027_v6, %v1513_v62 }
 0x35e   :  { %v9295_v28 = vadd.f32 %v553_v24, %v552_v16  ;;  %v1691_v16 = vmax.f32 %v1627_v7, 0.0  ;;  %v1692_v24 = vmax.f32 %v1628_v0, 0.0  ;;  %v1516_v7 = vmul.f32 %v9029_v14, %v16364_v44 }
 0x35f   :  { %v1577_v0 = vadd.f32 %v9027_v6, %v1510_v59  ;;  %v9321_v11 = vrot.slane %v1689_v19, 7  ;;  %16371 = vst [vmem:[#allocation72_spill] sm:$0xff] %v9333_v48  ;;  %v1579_v59 = vadd.f32 %v9027_v6, %v1512_v54  ;;  %v1638_v2 = vmax.f32 %v1574_v56, 0.0  ;;  %v16377_v54 = vld [vmem:[#allocation75_spill] sm:$0xff]  ;;  %v16379_v56 = vld [vmem:[#allocation77_spill] sm:$0xff] }
 0x360   :  { %v9325_v5 = vrot.slane %v1691_v16, 7  ;;  %v9327_v37 = vrot.slane %v1692_v24, 7  ;;  %16372 = vst [vmem:[#allocation73_spill] sm:$0xff] %v9335_v45  ;;  %v1767_v29 = vrot.slane %v1637_v8, 7  ;;  %v9352_v53 = vsel %vm1763_vm6, %v9329_v3, %v9331_v40  ;;  %v16378_v16 = vld [vmem:[#allocation76_spill] sm:$0xff]  ;;  %v16380_v8 = vld [vmem:[#allocation78_spill] sm:$0xff] }
 0x361   :  { %16365 = vst [vmem:[#allocation66_spill] sm:$0xff] %v9321_v11  ;;  %v9341_v19 = vsel %vm1763_vm6, %v9321_v11, %v9323_v22  ;;  %v9357_v63 = vsel %vm1763_vm6, %v9333_v48, %v9335_v45  ;;  %v1517_v50 = vmul.f32 %v9029_v14, %v16377_v54  ;;  %v1518_v24 = vmul.f32 %v9029_v14, %v16378_v16  ;;  %v16381_v40 = vld [vmem:[#allocation79_spill] sm:$0xff] }
 0x362   :  { %16367 = vst [vmem:[#allocation68_spill] sm:$0xff] %v9325_v5  ;;  %v9346_v32 = vsel %vm1763_vm6, %v9325_v5, %v9327_v37  ;;  %v1519_v62 = vmul.f32 %v9029_v14, %v16379_v56  ;;  %v1768_v44 = vrot.slane %v1638_v2, 7  ;;  %v1581_v3 = vadd.f32 %v9027_v6, %v1514_v36 }
 0x363   :  { %16368 = vst [vmem:[#allocation69_spill] sm:$0xff] %v9327_v37  ;;  %v9371_v45 = vsel %vm1763_vm6, 0.0, %v1767_v29  ;;  %v1582_v54 = vadd.f32 %v9027_v6, %v1515_v41  ;;  %v1641_v16 = vmax.f32 %v1577_v0, 0.0  ;;  %v1642_v2 = vmax.f32 %v1578_v51, 0.0 }
 0x364   :  { %16373 = vst [vmem:[#allocation74_spill] sm:$0xff] %v9341_v19  ;;  %v9378_v56 = vsel %vm1763_vm6, %v1767_v29, %v1768_v44  ;;  %v1643_v48 = vmax.f32 %v1579_v59, 0.0  ;;  %v9383_v36 = vsel %vm1763_vm6, %v1768_v44, 0.0  ;;  %v1585_v0 = vadd.f32 %v9027_v6, %v1518_v24 }
 0x365   :  { %16374 = vst [vmem:[#allocation97_spill] sm:$0xff] %v9346_v32  ;;  %v1520_v32 = vmul.f32 %v9029_v14, %v16380_v8  ;;  %v1644_v8 = vmax.f32 %v1580_v25, 0.0  ;;  %v2241_v41 = vrot.slane %v9378_v56, 2  ;;  %v1586_v29 = vadd.f32 %v9027_v6, %v1519_v62 }
 0x366   :  { %16375 = vst [vmem:[#allocation98_spill] sm:$0xff] %v9352_v53  ;;  %v1521_v53 = vmul.f32 %v9029_v14, %v16381_v40  ;;  %v7024_v14 = vpack.i.bf16 %v9378_v56, %v9371_v45  ;;  %v2240_v40 = vrot.slane %v9371_v45, 2  ;;  %v2243_v51 = vrot.slane %v9383_v36, 2 }
 0x367   :  { %16376 = vst [vmem:[#allocation99_spill] sm:$0xff] %v9357_v63  ;;  %v9375_v63 = vadd.f32 %v9027_v6, %v1516_v7  ;;  %v1584_v7 = vadd.f32 %v9027_v6, %v1517_v50  ;;  %v9393_v59 = vadd.f32 %v9027_v6, %v1520_v32  ;;  %v1773_v44 = vrot.slane %v1641_v16, 7 }
 0x368   :  { %16382 = vst [vmem:[#allocation75_spill] sm:$0xff] %v9371_v45  ;;  %7025 = vrot.lane.b32.xlu1 %v7024_v14, %s8116_s2  ;;  %v9396_v25 = vadd.f32 %v9027_v6, %v1521_v53  ;;  %v9399_v37 = vsel %vm2232_vm8, %v2240_v40, %v2241_v41  ;;  %v9401_v5 = vrot.slane %v1642_v2, 7  ;;  %v1776_v50 = vrot.slane %v1643_v48, 7 }
 0x369   :  { %16383 = vst [vmem:[#allocation76_spill] sm:$0xff] %v9378_v56  ;;  %v9403_v24 = vrot.slane %v1644_v8, 7  ;;  %v9406_v62 = vsel %vm2232_vm8, %v2241_v41, %v2243_v51  ;;  %v1645_v14 = vmax.f32 %v1581_v3, 0.0  ;;  %v1646_v19 = vmax.f32 %v1582_v54, 0.0 }
 0x36a   :  { %16384 = vst [vmem:[#allocation77_spill] sm:$0xff] %v9383_v36  ;;  %v1647_v32 = vmax.f32 %v9375_v63, 0.0  ;;  %v4245_v6 = vpack.c.bf16 %v9406_v62, %v9399_v37  ;;  %v1648_v53 = vmax.f32 %v1584_v7, 0.0  ;;  %v1649_v16 = vmax.f32 %v1585_v0, 0.0  ;;  %v16406_v36 = vld [vmem:[#allocation13_spill] sm:$0xff] }
 0x36b   :  { %v1653_v40 = vmax.f32 %v9149_v20, 0.0  ;;  %v1654_v2 = vmax.f32 %v9152_v49, 0.0  ;;  %v1655_v48 = vmax.f32 %v9155_v35, 0.0  ;;  %v1656_v8 = vmax.f32 %v9158_v27, 0.0 }
 0x36c   :  { %v1657_v41 = vmax.f32 %v9161_v12, 0.0  ;;  %v1658_v3 = vmax.f32 %v9164_v1, 0.0  ;;  %6898 = vmatmul.msk.bf16.vlgmr.msra.gmra.mxu2 %vm1092_vm2, %v4245_v6  ;;  %v9420_v63 = vsel %vm1763_vm6, %v1773_v44, %v9401_v5  ;;  %v9423_v54 = vsel %vm1763_vm6, 0.0, %v1773_v44 }
 0x36d   :  { %16385 = vst [vmem:[#allocation78_spill] sm:$0xff] %v9420_v63  ;;  %v9427_v20 = vsel %vm1763_vm6, %v1776_v50, %v9403_v24  ;;  %v9430_v49 = vsel %vm1763_vm6, 0.0, %v1776_v50  ;;  %v1779_v35 = vrot.slane %v1645_v14, 7  ;;  %v9432_v27 = vrot.slane %v1646_v19, 7 }
 0x36e   :  { %16386 = vst [vmem:[#allocation79_spill] sm:$0xff] %v9423_v54  ;;  %v7039_v12 = vpack.i.bf16 %v9420_v63, %v9423_v54  ;;  %v7054_v1 = vpack.i.bf16 %v9427_v20, %v9430_v49  ;;  %v1650_v7 = vmax.f32 %v1586_v29, 0.0  ;;  %v1659_v0 = vmax.f32 %v9167_v34, 0.0 }
 0x36f   :  { %16387 = vst [vmem:[#allocation100_spill] sm:$0xff] %v9427_v20  ;;  %v1660_v51 = vmax.f32 %v9170_v13, 0.0  ;;  %v1661_v44 = vmax.f32 %v9173_v31, 0.0  ;;  %v1662_v6 = vmax.f32 %v9176_v4, 0.0  ;;  %v1663_v50 = vmax.f32 %v9179_v10, 0.0 }
 0x370   :  { %16388 = vst [vmem:[#allocation101_spill] sm:$0xff] %v9430_v49  ;;  %7040 = vrot.lane.b32.xlu0 %v7039_v12, %s8117_s3  ;;  %7055 = vrot.lane.b32.xlu2 %v7054_v1, %s8116_s2  ;;  %v9447_v19 = vsel %vm1763_vm6, %v9264_v23, 0.0  ;;  %v1664_v29 = vmax.f32 %v9182_v9, 0.0  ;;  %v9450_v14 = vrot.slane %v1653_v40, 7  ;;  %v9452_v34 = vrot.slane %v1654_v2, 7 }
 0x371   :  { %16389 = vst [vmem:[#allocation102_spill] sm:$0xff] %v9447_v19  ;;  %v9454_v13 = vrot.slane %v1655_v48, 7  ;;  %7045 = vrot.lane.b32.xlu1 %v7039_v12, %s8116_s2  ;;  %v9457_v31 = vrot.slane %v1656_v8, 7  ;;  %v9459_v4 = vrot.slane %v1657_v41, 7  ;;  %v9461_v10 = vrot.slane %v1658_v3, 7 }
 0x372   :  { %v9465_v23 = vsel %vm1763_vm6, %v1779_v35, %v9432_v27  ;;  %v9468_v9 = vsel %vm1763_vm6, 0.0, %v1779_v35  ;;  %v2245_v40 = vrot.slane %v9267_v46, 2  ;;  %v2246_v2 = vrot.slane %v9271_v42, 2 }
 0x373   :  { %16390 = vst [vmem:[#allocation103_spill] sm:$0xff] %v9468_v9  ;;  %v2248_v48 = vrot.slane %v9447_v19, 2  ;;  %v1782_v12 = vrot.slane %v1647_v32, 7  ;;  %v9473_v8 = vrot.slane %v1648_v53, 7  ;;  %v1785_v41 = vrot.slane %v1649_v16, 7 }
 0x374   :  { %v9475_v22 = vrot.slane %v1650_v7, 7  ;;  %v9477_v3 = vrot.slane %v1659_v0, 7  ;;  %v9479_v11 = vrot.slane %v1660_v51, 7  ;;  %v9481_v15 = vrot.slane %v1661_v44, 7 }
 0x375   :  { %v9486_v35 = vsel %vm1763_vm6, %v9450_v14, %v9452_v34  ;;  %v7064_v38 = vpack.i.bf16 %v9465_v23, %v9468_v9  ;;  %v9493_v32 = vsel %vm1763_vm6, %v9454_v13, %v9457_v31  ;;  %v9498_v53 = vsel %vm1763_vm6, %v9459_v4, %v9461_v10 }
 0x376   :  { %16391 = vst [vmem:[#allocation104_spill] sm:$0xff] %v9479_v11  ;;  %v9500_v16 = vrot.slane %v1662_v6, 7  ;;  %v9503_v7 = vsel %vm2232_vm8, %v2245_v40, %v2246_v2  ;;  %v9506_v0 = vsel %vm2232_vm8, %v2246_v2, %v2248_v48  ;;  %v1669_v51 = vmax.f32 %v9197_v26, 0.0  ;;  %v16397_v40 = vld [vmem:[#allocation11_spill] sm:$0xff] }
 0x377   :  { %16392 = vst [vmem:[#allocation105_spill] sm:$0xff] %v9486_v35  ;;  %v1670_v44 = vmax.f32 %v9200_v55, 0.0  ;;  %v9510_v19 = vrot.slane %v1663_v50, 7  ;;  %v9512_v42 = vrot.slane %v1664_v29, 7  ;;  %v556_v6 = vadd.f32 %v9299_v17, %v9295_v28 }
 0x378   :  { %16393 = vst [vmem:[#allocation106_spill] sm:$0xff] %v9493_v32  ;;  %7065 = vrot.lane.b32.xlu0 %v7064_v38, %s8116_s2  ;;  %7060 = vrot.lane.b32.xlu2 %v7064_v38, %s8117_s3  ;;  %v557_v46 = vsel %vm539_vm7, %v16397_v40, 0.0  ;;  %v1651_v2 = vmax.f32 %v9393_v59, 0.0  ;;  %v1652_v26 = vmax.f32 %v9396_v25, 0.0  ;;  %v1665_v55 = vmax.f32 %v9185_v43, 0.0 }
 0x379   :  { %16394 = vst [vmem:[#allocation107_spill] sm:$0xff] %v9498_v53  ;;  %7050 = vrot.lane.b32.xlu1 %v7054_v1, %s8117_s3  ;;  %v4247_v50 = vpack.c.bf16 %v9506_v0, %v9503_v7  ;;  %v9528_v38 = vsel %vm1763_vm6, %v1782_v12, %v9473_v8  ;;  %v9533_v28 = vsel %vm1763_vm6, %v9477_v3, %v9479_v11  ;;  %v9536_v17 = vsel %vm1763_vm6, 0.0, %v1782_v12  ;;  %v16402_v1 = vld [vmem:[#allocation12_spill] sm:$0xff] }
 0x37a   :  { %16395 = vst [vmem:[#allocation108_spill] sm:$0xff] %v9500_v16  ;;  %v9540_v59 = vsel %vm1763_vm6, %v1785_v41, %v9475_v22  ;;  %v9543_v43 = vsel %vm1763_vm6, 0.0, %v1785_v41  ;;  %v9548_v25 = vsel %vm1763_vm6, %v9481_v15, %v9500_v16  ;;  %v559_v29 = vsel %vm539_vm7, %v16402_v1, 0.0 }
 0x37b   :  { %16396 = vst [vmem:[#allocation109_spill] sm:$0xff] %v9512_v42  ;;  %v9552_v48 = vrot.slane %v1669_v51, 7  ;;  %v9554_v40 = vrot.slane %v1670_v44, 7  ;;  %v9560_v12 = vsel %vm1763_vm6, %v9510_v19, %v9512_v42  ;;  %v558_v41 = vadd.f32 %v557_v46, %v556_v6 }
 0x37c   :  { %16398 = vst [vmem:[#allocation110_spill] sm:$0xff] %v9533_v28  ;;  %6899 = vmatmul.msk.bf16.gmra.mxu2 %vm1092_vm2, %v4247_v50  ;;  %v561_v56 = vsel %vm539_vm7, %v16406_v36, 0.0  ;;  %v1788_v16 = vrot.slane %v1651_v2, 7  ;;  %v9564_v45 = vrot.slane %v1652_v26, 7  ;;  %v7069_v51 = vpack.i.bf16 %v9528_v38, %v9536_v17 }
 0x37d   :  { %16399 = vst [vmem:[#allocation111_spill] sm:$0xff] %v9540_v59  ;;  %v7084_v44 = vpack.i.bf16 %v9540_v59, %v9543_v43  ;;  %v560_v1 = vadd.f32 %v559_v29, %v558_v41  ;;  %v1666_v50 = vmax.f32 %v9188_v52, 0.0  ;;  %v9571_v11 = vrot.slane %v1665_v55, 7 }
 0x37e   :  { %16400 = vst [vmem:[#allocation112_spill] sm:$0xff] %v9543_v43  ;;  %v1635_v42 = vmax.f32 %v9115_v61, 0.0  ;;  %v9578_v46 = vsel %vm1763_vm6, %v9401_v5, 0.0  ;;  %v9583_v6 = vsel %vm1763_vm6, %v9552_v48, %v9554_v40  ;;  %v1671_v52 = vmax.f32 %v9203_v39, 0.0  ;;  %v16410_v61 = vld [vmem:[#allocation14_spill] sm:$0xff] }
 0x37f   :  { %16401 = vst [vmem:[#allocation113_spill] sm:$0xff] %v9548_v25  ;;  %v562_v2 = vadd.f32 %v561_v56, %v560_v1  ;;  %v9587_v26 = vrot.slane %v1666_v50, 7  ;;  %v563_v55 = vsel %vm539_vm7, %v16410_v61, 0.0  ;;  %v1672_v29 = vmax.f32 %v9206_v30, 0.0  ;;  %v16414_v50 = vld [vmem:[#allocation15_spill] sm:$0xff] }
 0x380   :  { %16403 = vst [vmem:[#allocation114_spill] sm:$0xff] %v9552_v48  ;;  %7070 = vrot.lane.b32.xlu0 %v7069_v51, %s8117_s3  ;;  %7085 = vrot.lane.b32.xlu2 %v7084_v44, %s8116_s2  ;;  %v9594_v5 = vsel %vm1763_vm6, %v1788_v16, %v9564_v45  ;;  %v9597_v41 = vsel %vm1763_vm6, 0.0, %v1788_v16  ;;  %v2250_v56 = vrot.slane %v9423_v54, 2  ;;  %v2251_v39 = vrot.slane %v9420_v63, 2 }
 0x381   :  { %16404 = vst [vmem:[#allocation115_spill] sm:$0xff] %v9554_v40  ;;  %7075 = vrot.lane.b32.xlu1 %v7069_v51, %s8116_s2  ;;  %v2253_v1 = vrot.slane %v9578_v46, 2  ;;  %v9605_v51 = vsel %vm1763_vm6, %v9571_v11, %v9587_v26  ;;  %v565_v30 = vsel %vm539_vm7, %v16414_v50, 0.0  ;;  %v1764_v61 = vrot.slane %v1635_v42, 7  ;;  %v16415_v40 = vld [vmem:[#allocation16_spill] sm:$0xff] }
 0x382   :  { %16405 = vst [vmem:[#allocation116_spill] sm:$0xff] %v9560_v12  ;;  %v564_v36 = vadd.f32 %v563_v55, %v562_v2  ;;  %v567_v16 = vsel %vm539_vm7, %v16415_v40, 0.0  ;;  %v9613_v54 = vrot.slane %v1672_v29, 7  ;;  %v9619_v63 = vpack.i.bf16 %v9406_v62, %v9399_v37  ;;  %v16417_v29 = vld [vmem:[#allocation17_spill] sm:$0xff] }
 0x383   :  { %16407 = vst [vmem:[#allocation117_spill] sm:$0xff] %v9578_v46  ;;  %v7094_v46 = vpack.i.bf16 %v9594_v5, %v9597_v41  ;;  %v9622_v48 = vsel %vm2232_vm8, %v2250_v56, %v2251_v39  ;;  %v9625_v42 = vsel %vm2232_vm8, %v2251_v39, %v2253_v1  ;;  %v9628_v2 = vsel %vm1763_vm6, 0.0, %v1764_v61 }
 0x384   :  { %16408 = vst [vmem:[#allocation118_spill] sm:$0xff] %v9583_v6  ;;  %v9611_v6 = vrot.slane %v1671_v52, 7  ;;  %v1636_v52 = vmax.f32 %v9118_v58, 0.0  ;;  %v569_v37 = vsel %vm539_vm7, %v16417_v29, 0.0  ;;  %v4249_v62 = vpack.c.bf16 %v9625_v42, %v9622_v48 }
 0x385   :  { %16409 = vst [vmem:[#allocation119_spill] sm:$0xff] %v9587_v26  ;;  %v566_v26 = vadd.f32 %v565_v30, %v564_v36  ;;  %v1673_v36 = vmax.f32 %v9209_v60, 0.0  ;;  %v9646_v58 = vsel %vm1763_vm6, 0.0, %v9450_v14  ;;  %v2235_v60 = vrot.slane %v9628_v2, 2 }
 0x386   :  { %16411 = vst [vmem:[#allocation120_spill] sm:$0xff] %v9594_v5  ;;  %v1765_v56 = vrot.slane %v1636_v52, 7  ;;  %v9642_v39 = vsel %vm1763_vm6, %v9611_v6, %v9613_v54  ;;  %v1674_v29 = vmax.f32 %v9212_v33, 0.0  ;;  %v7099_v40 = vpack.i.bf16 %v9486_v35, %v9646_v58 }
 0x387   :  { %16412 = vst [vmem:[#allocation121_spill] sm:$0xff] %v9597_v41  ;;  %v568_v55 = vadd.f32 %v567_v16, %v566_v26  ;;  %v7005_v26 = vld [vmem:[%s15622_s4 + $0x38] sm:$0xff]  ;;  %v9681_v33 = vsel %vm1763_vm6, %v9403_v24, 0.0  ;;  %v2255_v24 = vrot.slane %v9430_v49, 2 }
 0x388   :  { %16413 = vst [vmem:[#allocation122_spill] sm:$0xff] %v9605_v51  ;;  %7095 = vrot.lane.b32.xlu0 %v7094_v46, %s8116_s2  ;;  %7090 = vrot.lane.b32.xlu2 %v7094_v46, %s8117_s3  ;;  %v9650_v46 = vsel %vm1763_vm6, 0.0, %v9454_v13  ;;  %v9659_v1 = vsel %vm1763_vm6, %v1764_v61, %v1765_v56  ;;  %v1986_v14 = vsel %vm1763_vm6, %v1765_v56, 0.0  ;;  %v9664_v13 = vpack.i.bf16 %v9506_v0, %v9503_v7 }
 0x389   :  { %16416 = vst [vmem:[#allocation123_spill] sm:$0xff] %v9628_v2  ;;  %7080 = vrot.lane.b32.xlu1 %v7084_v44, %s8117_s3  ;;  %v2082_v44 = vrot.slane %v9628_v2, 1  ;;  %v2083_v30 = vrot.slane %v9659_v1, 1  ;;  %v2085_v16 = vrot.slane %v1986_v14, 1  ;;  %v2236_v52 = vrot.slane %v9659_v1, 2  ;;  %4454 = vmatpush.bf16.msrb.mxu0 %v7005_v26 }
 0x38a   :  { %16418 = vst [vmem:[#allocation124_spill] sm:$0xff] %v9642_v39  ;;  %v7114_v61 = vpack.i.bf16 %v9493_v32, %v9650_v46  ;;  %7008 = vmatpush.bf16.msra.mxu1 %v7005_v26  ;;  %v570_v26 = vadd.f32 %v569_v37, %v568_v55  ;;  %v16427_v37 = vld [vmem:[#allocation19_spill] sm:$0xff] }
 0x38b   :  { %16419 = vst [vmem:[#allocation125_spill] sm:$0xff] %v9646_v58  ;;  %v2084_v56 = vsel %vm2079_vm9, %v2082_v44, %v2083_v30  ;;  %v2086_v7 = vsel %vm2079_vm9, %v2083_v30, %v2085_v16  ;;  %v2237_v0 = vsel %vm2232_vm8, %v2235_v60, %v2236_v52  ;;  %v16424_v44 = vld [vmem:[#allocation18_spill] sm:$0xff]  ;;  %v9690_v30 = vrot.slane %v1673_v36, 7 }
 0x38c   :  { %16420 = vst [vmem:[#allocation126_spill] sm:$0xff] %v9650_v46  ;;  %6900 = vmatmul.msk.bf16.gmra.mxu2 %vm1092_vm2, %v4249_v62  ;;  %v2238_v62 = vrot.slane %v1986_v14, 2  ;;  %v9683_v14 = vpack.i.bf16 %v2086_v7, %v2084_v56  ;;  %v571_v60 = vsel %vm539_vm7, %v16424_v44, 0.0  ;;  %v9692_v16 = vrot.slane %v1674_v29, 7 }
 0x38d   :  { %16421 = vst [vmem:[#allocation127_spill] sm:$0xff] %v9659_v1  ;;  %v572_v55 = vadd.f32 %v571_v60, %v570_v26  ;;  %v573_v36 = vsel %vm539_vm7, %v16427_v37, 0.0  ;;  %v2261_v56 = vrot.slane %v9465_v23, 2  ;;  %v16429_v60 = vld [vmem:[#allocation20_spill] sm:$0xff]  ;;  %v16430_v1 = vld [vmem:[#allocation21_spill] sm:$0xff] }
 0x38e   :  { %v2239_v50 = vsel %vm2232_vm8, %v2236_v52, %v2238_v62  ;;  %16422 = vst [vmem:[#allocation128_spill] sm:$0xff] %v9683_v14  ;;  %v9696_v52 = vsel %vm1763_vm6, 0.0, %v9459_v4  ;;  %v2256_v62 = vrot.slane %v9427_v20, 2  ;;  %v2260_v4 = vrot.slane %v9468_v9, 2 }
 0x38f   :  { %v9685_v2 = vpack.i.bf16 %v2239_v50, %v2237_v0  ;;  %16425 = vst [vmem:[#allocation130_spill] sm:$0xff] %v9696_v52  ;;  %v2258_v50 = vrot.slane %v9681_v33, 2  ;;  %v7124_v29 = vpack.i.bf16 %v9498_v53, %v9696_v52  ;;  %v574_v26 = vadd.f32 %v573_v36, %v572_v55 }
 0x390   :  { %7100 = vrot.lane.b32.xlu0 %v7099_v40, %s8117_s3  ;;  %7115 = vrot.lane.b32.xlu2 %v7114_v61, %s8116_s2  ;;  %v2257_v0 = vsel %vm2232_vm8, %v2255_v24, %v2256_v62  ;;  %v575_v37 = vsel %vm539_vm7, %v16429_v60, 0.0  ;;  %v577_v9 = vsel %vm539_vm7, %v16430_v1, 0.0  ;;  %v9728_v24 = vsel %vm1763_vm6, 0.0, %v9477_v3 }
 0x391   :  { %16423 = vst [vmem:[#allocation129_spill] sm:$0xff] %v9685_v2  ;;  %7105 = vrot.lane.b32.xlu1 %v7099_v40, %s8116_s2  ;;  %v9703_v40 = vsel %vm1763_vm6, %v9432_v27, 0.0  ;;  %v2259_v44 = vsel %vm2232_vm8, %v2256_v62, %v2258_v50  ;;  %v9717_v27 = vsel %vm1763_vm6, %v9690_v30, %v9692_v16  ;;  %v9732_v62 = vsel %vm1763_vm6, 0.0, %v9481_v15 }
 0x392   :  { %16426 = vst [vmem:[#allocation131_spill] sm:$0xff] %v9703_v40  ;;  %v2263_v7 = vrot.slane %v9703_v40, 2  ;;  %v9736_v50 = vsel %vm1763_vm6, %v9473_v8, 0.0  ;;  %v9740_v55 = vpack.i.bf16 %v9625_v42, %v9622_v48  ;;  %v4251_v36 = vpack.c.bf16 %v2259_v44, %v2257_v0 }
 0x393   :  { %16428 = vst [vmem:[#allocation132_spill] sm:$0xff] %v9717_v27  ;;  %v2265_v3 = vrot.slane %v9536_v17, 2  ;;  %v2266_v1 = vrot.slane %v9528_v38, 2  ;;  %v9746_v60 = vpack.i.bf16 %v2259_v44, %v2257_v0  ;;  %v576_v15 = vadd.f32 %v575_v37, %v574_v26 }
 0x394   :  { %16431 = vst [vmem:[#allocation133_spill] sm:$0xff] %v9728_v24  ;;  %v2268_v8 = vrot.slane %v9736_v50, 2  ;;  %v1675_v40 = vmax.f32 %v9215_v21, 0.0  ;;  %v1676_v48 = vmax.f32 %v9218_v47, 0.0  ;;  %v9754_v42 = vsel %vm1763_vm6, %v9475_v22, 0.0 }
 0x395   :  { %16432 = vst [vmem:[#allocation134_spill] sm:$0xff] %v9732_v62  ;;  %v7144_v44 = vpack.i.bf16 %v9548_v25, %v9732_v62  ;;  %v9765_v21 = vsel %vm2232_vm8, %v2265_v3, %v2266_v1  ;;  %v2270_v22 = vrot.slane %v9543_v43, 2  ;;  %v2273_v26 = vrot.slane %v9754_v42, 2 }
 0x396   :  { %16433 = vst [vmem:[#allocation135_spill] sm:$0xff] %v9754_v42  ;;  %v9770_v47 = vsel %vm2232_vm8, %v2266_v1, %v2268_v8  ;;  %v1667_v1 = vmax.f32 %v9191_v57, 0.0  ;;  %v9787_v8 = vsel %vm1763_vm6, 0.0, %v9510_v19  ;;  %v2275_v57 = vrot.slane %v9597_v41, 2  ;;  %v16442_v41 = vld [vmem:[#allocation25_spill] sm:$0xff] }
 0x397   :  { %16436 = vst [vmem:[#allocation137_spill] sm:$0xff] %v9787_v8  ;;  %v2276_v19 = vrot.slane %v9594_v5, 2  ;;  %v585_v5 = vsel %vm539_vm7, %v16442_v41, 0.0 }
 0x398   :  { %7125 = vrot.lane.b32.xlu0 %v7124_v29, %s8116_s2  ;;  %7120 = vrot.lane.b32.xlu2 %v7124_v29, %s8117_s3  ;;  %v2262_v29 = vsel %vm2232_vm8, %v2260_v4, %v2261_v56  ;;  %v578_v4 = vadd.f32 %v577_v9, %v576_v15  ;;  %v2271_v9 = vrot.slane %v9540_v59, 2  ;;  %v9777_v15 = vrot.slane %v1676_v48, 7  ;;  %v16438_v48 = vld [vmem:[#allocation23_spill] sm:$0xff] }
 0x399   :  { %7110 = vrot.lane.b32.xlu1 %v7114_v61, %s8117_s3  ;;  %v2264_v61 = vsel %vm2232_vm8, %v2261_v56, %v2263_v7  ;;  %v7129_v56 = vpack.i.bf16 %v9533_v28, %v9728_v24  ;;  %v16434_v7 = vld [vmem:[#allocation22_spill] sm:$0xff]  ;;  %v1668_v59 = vmax.f32 %v9194_v18, 0.0 }
 0x39a   :  { %v9760_v37 = vpack.i.bf16 %v2264_v61, %v2262_v29  ;;  %v579_v0 = vsel %vm539_vm7, %v16434_v7, 0.0  ;;  %v9782_v7 = vsel %vm1763_vm6, %v9564_v45, 0.0  ;;  %v9800_v45 = vsel %vm2232_vm8, %v2271_v9, %v2273_v26 }
 0x39b   :  { %v580_v3 = vadd.f32 %v579_v0, %v578_v4  ;;  %16435 = vst [vmem:[#allocation136_spill] sm:$0xff] %v9782_v7  ;;  %v9797_v4 = vsel %vm2232_vm8, %v2270_v22, %v2271_v9  ;;  %v2278_v0 = vrot.slane %v9782_v7, 2  ;;  %v7154_v22 = vpack.i.bf16 %v9560_v12, %v9787_v8 }
 0x39c   :  { %6901 = vmatmul.msk.bf16.gmra.mxu2 %vm1092_vm2, %v4251_v36  ;;  %v9775_v36 = vrot.slane %v1675_v40, 7  ;;  %v9792_v40 = vpack.i.bf16 %v9770_v47, %v9765_v21  ;;  %v1812_v9 = vrot.slane %v1667_v1, 7  ;;  %v9814_v26 = vrot.slane %v1668_v59, 7 }
 0x39d   :  { %v9822_v7 = vpack.i.bf16 %v9800_v45, %v9797_v4  ;;  %v9829_v59 = vsel %vm2232_vm8, %v2276_v19, %v2278_v0  ;;  %v2281_v0 = vrot.slane %v9486_v35, 2 }
 0x39e   :  { %16437 = vst [vmem:[#allocation138_spill] sm:$0xff] %v9792_v40  ;;  %v9808_v18 = vsel %vm1763_vm6, %v9775_v36, %v9777_v15  ;;  %v16440_v40 = vld [vmem:[#allocation24_spill] sm:$0xff] }
 0x39f   :  { %16439 = vst [vmem:[#allocation139_spill] sm:$0xff] %v9808_v18 }
 0x3a0   :  { %7130 = vrot.lane.b32.xlu0 %v7129_v56, %s8117_s3  ;;  %7145 = vrot.lane.b32.xlu2 %v7144_v44, %s8116_s2  ;;  %16441 = vst [vmem:[#allocation140_spill] sm:$0xff] %v9814_v26 }
 0x3a1   :  { %7135 = vrot.lane.b32.xlu1 %v7129_v56, %s8116_s2  ;;  %v581_v56 = vsel %vm539_vm7, %v16438_v48, 0.0  ;;  %v583_v48 = vsel %vm539_vm7, %v16440_v40, 0.0  ;;  %16443 = vst [vmem:[#allocation141_spill] sm:$0xff] %v9822_v7  ;;  %v9826_v40 = vsel %vm2232_vm8, %v2275_v57, %v2276_v19  ;;  %v9861_v19 = vsel %vm1763_vm6, %v9457_v31, 0.0  ;;  %v16454_v31 = vld [vmem:[#allocation114_spill] sm:$0xff] }
 0x3a2   :  { %v582_v42 = vadd.f32 %v581_v56, %v580_v3  ;;  %v16444_v3 = vld [vmem:[#allocation26_spill] sm:$0xff]  ;;  %v4253_v56 = vpack.c.bf16 %v2264_v61, %v2262_v29  ;;  %16451 = vst [vmem:[#allocation147_spill] sm:$0xff] %v9861_v19  ;;  %v2295_v7 = vrot.slane %v9728_v24, 2  ;;  %v16468_v24 = vld [vmem:[#allocation108_spill] sm:$0xff] }
 0x3a3   :  { %v587_v1 = vsel %vm539_vm7, %v16444_v3, 0.0  ;;  %v9876_v3 = vsel %vm1763_vm6, 0.0, %v16454_v31 }
 0x3a4   :  { %v584_v43 = vadd.f32 %v583_v48, %v582_v42  ;;  %v9839_v42 = vsel %vm1763_vm6, %v1812_v9, %v9814_v26  ;;  %v9847_v48 = vsel %vm1763_vm6, %v9452_v34, 0.0  ;;  %v2280_v34 = vrot.slane %v9646_v58, 2  ;;  %16455 = vst [vmem:[#allocation114_spill] sm:$0xff] %v9876_v3 }
 0x3a5   :  { %16446 = vst [vmem:[#allocation143_spill] sm:$0xff] %v9839_v42  ;;  %v9880_v26 = vsel %vm1763_vm6, 0.0, %v9611_v6 }
 0x3a6   :  { %v586_v41 = vadd.f32 %v585_v5, %v584_v43  ;;  %16448 = vst [vmem:[#allocation145_spill] sm:$0xff] %v9847_v48  ;;  %v9851_v43 = vpack.i.bf16 %v9829_v59, %v9826_v40 }
 0x3a7   :  { %16456 = vst [vmem:[#allocation149_spill] sm:$0xff] %v9880_v26 }
 0x3a8   :  { %7155 = vrot.lane.b32.xlu0 %v7154_v22, %s8116_s2  ;;  %7150 = vrot.lane.b32.xlu2 %v7154_v22, %s8117_s3  ;;  %v9835_v22 = vsel %vm1763_vm6, 0.0, %v9571_v11  ;;  %16449 = vst [vmem:[#allocation146_spill] sm:$0xff] %v9851_v43  ;;  %v588_v5 = vadd.f32 %v587_v1, %v586_v41  ;;  %v16450_v11 = vld [vmem:[#allocation27_spill] sm:$0xff]  ;;  %v9868_v41 = vsel %vm1763_vm6, %v9461_v10, 0.0  ;;  %v2285_v10 = vrot.slane %v9650_v46, 2 }
 0x3a9   :  { %7140 = vrot.lane.b32.xlu1 %v7144_v44, %s8117_s3  ;;  %16445 = vst [vmem:[#allocation142_spill] sm:$0xff] %v9835_v22  ;;  %v9842_v44 = vsel %vm1763_vm6, 0.0, %v1812_v9  ;;  %v589_v29 = vsel %vm539_vm7, %v16450_v11, 0.0  ;;  %v7159_v61 = vpack.i.bf16 %v9605_v51, %v9835_v22  ;;  %v2283_v9 = vrot.slane %v9847_v48, 2  ;;  %v16458_v48 = vld [vmem:[#allocation30_spill] sm:$0xff] }
 0x3aa   :  { %16447 = vst [vmem:[#allocation144_spill] sm:$0xff] %v9842_v44  ;;  %v7174_v57 = vpack.i.bf16 %v9839_v42, %v9842_v44  ;;  %v590_v1 = vadd.f32 %v589_v29, %v588_v5  ;;  %v2286_v5 = vrot.slane %v9493_v32, 2  ;;  %v2288_v29 = vrot.slane %v9861_v19, 2  ;;  %v16459_v19 = vld [vmem:[#allocation118_spill] sm:$0xff] }
 0x3ab   :  { %16452 = vst [vmem:[#allocation148_spill] sm:$0xff] %v9868_v41  ;;  %v2293_v42 = vrot.slane %v9868_v41, 2  ;;  %v9890_v44 = vsel %vm2232_vm8, %v2280_v34, %v2281_v0  ;;  %v9893_v6 = vsel %vm2232_vm8, %v2281_v0, %v2283_v9  ;;  %v595_v32 = vsel %vm539_vm7, %v16458_v48, 0.0  ;;  %v16460_v9 = vld [vmem:[#allocation104_spill] sm:$0xff]  ;;  %v16462_v48 = vld [vmem:[#allocation75_spill] sm:$0xff] }
 0x3ac   :  { %6902 = vmatmul.msk.bf16.gmra.mxu2 %vm1092_vm2, %v4253_v56  ;;  %v16453_v56 = vld [vmem:[#allocation28_spill] sm:$0xff]  ;;  %v15856_v41 = vmov 0.0   ;;  %v9906_v34 = vsel %vm2232_vm8, %v2285_v10, %v2286_v5  ;;  %v9909_v0 = vsel %vm2232_vm8, %v2286_v5, %v2288_v29  ;;  %v16465_v5 = vld [vmem:[#allocation77_spill] sm:$0xff] }
 0x3ad   :  { %v591_v11 = vsel %vm539_vm7, %v16453_v56, 0.0  ;;  %v2290_v56 = vrot.slane %v9696_v52, 2  ;;  %v7184_v52 = vpack.i.bf16 %v16459_v19, %v9876_v3  ;;  %v16464_v10 = vld [vmem:[#allocation76_spill] sm:$0xff]  ;;  %v2090_v29 = vrot.slane %v16465_v5, 1 }
 0x3ae   :  { %v592_v31 = vadd.f32 %v591_v11, %v590_v1  ;;  %v7169_v11 = vpack.i.bf16 %v9876_v3, %v15856_v41  ;;  %v9913_v1 = vsel %vm1763_vm6, %v16460_v9, 0.0  ;;  %v9924_v41 = vpack.i.bf16 %v9893_v6, %v9890_v44 }
 0x3af   :  { %16461 = vst [vmem:[#allocation104_spill] sm:$0xff] %v9913_v1  ;;  %v2088_v43 = vrot.slane %v16464_v10, 1  ;;  %v2298_v9 = vrot.slane %v9913_v1, 2  ;;  %v16470_v1 = vld [vmem:[#allocation31_spill] sm:$0xff] }
 0x3b0   :  { %7160 = vrot.lane.b32.xlu0 %v7159_v61, %s8117_s3  ;;  %7175 = vrot.lane.b32.xlu2 %v7174_v57, %s8116_s2  ;;  %v2291_v57 = vrot.slane %v9498_v53, 2  ;;  %v7179_v53 = vpack.i.bf16 %v9880_v26, %v16459_v19  ;;  %16463 = vst [vmem:[#allocation150_spill] sm:$0xff] %v9924_v41  ;;  %v597_v41 = vsel %vm539_vm7, %v16470_v1, 0.0  ;;  %v16476_v1 = vld [vmem:[#allocation33_spill] sm:$0xff] }
 0x3b1   :  { %7165 = vrot.lane.b32.xlu1 %v7159_v61, %s8116_s2  ;;  %v16457_v61 = vld [vmem:[#allocation29_spill] sm:$0xff] }
 0x3b2   :  { %v593_v46 = vsel %vm539_vm7, %v16457_v61, 0.0  ;;  %v2087_v61 = vrot.slane %v16462_v48, 1  ;;  %v9917_v35 = vsel %vm2232_vm8, %v2290_v56, %v2291_v57  ;;  %v9920_v58 = vsel %vm2232_vm8, %v2291_v57, %v2293_v42  ;;  %v16517_v48 = vld [vmem:[#allocation94_spill] sm:$0xff] }
 0x3b3   :  { %v2296_v56 = vrot.slane %v9533_v28, 2  ;;  %v9935_v42 = vpack.i.bf16 %v9909_v0, %v9906_v34  ;;  %v594_v57 = vadd.f32 %v593_v46, %v592_v31  ;;  %v9940_v5 = vpack.i.bf16 %v9920_v58, %v9917_v35 }
 0x3b4   :  { %v9952_v46 = vsel %vm2079_vm9, %v2087_v61, %v2088_v43  ;;  %v9955_v31 = vsel %vm2079_vm9, %v2088_v43, %v2090_v29  ;;  %v16475_v61 = vld [vmem:[#allocation32_spill] sm:$0xff] }
 0x3b5   :  { %16466 = vst [vmem:[#allocation77_spill] sm:$0xff] %v9935_v42  ;;  %v596_v28 = vadd.f32 %v595_v32, %v594_v57  ;;  %v2301_v32 = vrot.slane %v9548_v25, 2  ;;  %v16473_v57 = vld [vmem:[#allocation109_spill] sm:$0xff]  ;;  %v599_v43 = vsel %vm539_vm7, %v16475_v61, 0.0  ;;  %v16482_v25 = vld [vmem:[#allocation95_spill] sm:$0xff] }
 0x3b6   :  { %16467 = vst [vmem:[#allocation151_spill] sm:$0xff] %v9940_v5  ;;  %v16511_v42 = vld [vmem:[#allocation91_spill] sm:$0xff] }
 0x3b7   :  { %16471 = vst [vmem:[#allocation152_spill] sm:$0xff] %v9952_v46  ;;  %v598_v29 = vadd.f32 %v597_v41, %v596_v28  ;;  %v9986_v28 = vpop.permute.xlu2 %7030  ;;  %v2305_v41 = vrot.slane %v9787_v8, 2  ;;  %v16479_v8 = vld [vmem:[#allocation35_spill] sm:$0xff] }
 0x3b8   :  { %7185 = vrot.lane.b32.xlu0 %v7184_v52, %s8116_s2  ;;  %7180 = vrot.lane.b32.xlu2 %v7179_v53, %s8117_s3  ;;  %v4255_v52 = vpack.c.bf16 %v9770_v47, %v9765_v21  ;;  %v9946_v53 = vsel %vm1763_vm6, %v16468_v24, 0.0  ;;  %16472 = vst [vmem:[#allocation153_spill] sm:$0xff] %v9955_v31  ;;  %v9961_v21 = vsel %vm2232_vm8, %v2296_v56, %v2298_v9  ;;  %v2300_v24 = vrot.slane %v9732_v62, 2  ;;  %v16484_v62 = vld [vmem:[#allocation102_spill] sm:$0xff] }
 0x3b9   :  { %7170 = vrot.lane.b32.xlu1 %v7169_v11, %s8117_s3  ;;  %16469 = vst [vmem:[#allocation108_spill] sm:$0xff] %v9946_v53  ;;  %v9958_v11 = vsel %vm2232_vm8, %v2295_v7, %v2296_v56  ;;  %v2303_v47 = vrot.slane %v9946_v53, 2  ;;  %v601_v7 = vsel %vm539_vm7, %v16476_v1, 0.0  ;;  %v9976_v56 = vpack.i.bf16 %v9955_v31, %v9952_v46 }
 0x3ba   :  { %v9980_v9 = vpack.i.bf16 %v9961_v21, %v9958_v11  ;;  %v600_v46 = vadd.f32 %v599_v43, %v598_v29  ;;  %v9994_v1 = vsel %vm2232_vm8, %v2300_v24, %v2301_v32 }
 0x3bb   :  { %v9997_v61 = vsel %vm2232_vm8, %v2301_v32, %v2303_v47  ;;  %v16481_v32 = vld [vmem:[#allocation36_spill] sm:$0xff] }
 0x3bc   :  { %6903 = vmatmul.msk.bf16.gmra.mxu2 %vm1092_vm2, %v4255_v52  ;;  %v9968_v52 = vsel %vm1763_vm6, %v16473_v57, 0.0  ;;  %16477 = vst [vmem:[#allocation154_spill] sm:$0xff] %v9980_v9  ;;  %v2306_v57 = vrot.slane %v9560_v12, 2  ;;  %v602_v53 = vadd.f32 %v601_v7, %v600_v46  ;;  %v605_v12 = vsel %vm539_vm7, %v16479_v8, 0.0  ;;  %v16483_v46 = vld [vmem:[#allocation96_spill] sm:$0xff] }
 0x3bd   :  { %16474 = vst [vmem:[#allocation109_spill] sm:$0xff] %v9968_v52  ;;  %v2308_v31 = vrot.slane %v9968_v52, 2  ;;  %v10011_v24 = vpack.i.bf16 %v9997_v61, %v9994_v1  ;;  %v607_v47 = vsel %vm539_vm7, %v16481_v32, 0.0  ;;  %v2093_v7 = vrot.slane %v16483_v46, 1 }
 0x3be   :  { %v10004_v52 = vsel %vm2232_vm8, %v2305_v41, %v2306_v57  ;;  %v2095_v8 = vrot.slane %v16484_v62, 1  ;;  %v7219_v41 = vpack.i.bf16 %v9642_v39, %v9880_v26 }
 0x3bf   :  { %v10007_v43 = vsel %vm2232_vm8, %v2306_v57, %v2308_v31  ;;  %16480 = vst [vmem:[#allocation155_spill] sm:$0xff] %v10011_v24  ;;  %v16485_v31 = vld [vmem:[#allocation119_spill] sm:$0xff] }
 0x3c0   :  { %7205 = vrot.lane.b32.xlu2 %v9619_v63, %s8119_s18  ;;  %7190 = vrot.lane.b32.xlu0 %v9683_v14, %s8120_s19  ;;  %v16478_v14 = vld [vmem:[#allocation34_spill] sm:$0xff]  ;;  %v10022_v57 = vsel %vm1763_vm6, %v16485_v31, 0.0  ;;  %v2400_v31 = vrot.slane %v9605_v51, 2  ;;  %v2096_v24 = vsel %vm2079_vm9, %v2093_v7, %v2095_v8 }
 0x3c1   :  { %7200 = vrot.lane.b32.xlu1 %v9976_v56, %s8121_s20  ;;  %v603_v9 = vsel %vm539_vm7, %v16478_v14, 0.0  ;;  %v2092_v14 = vrot.slane %v16482_v25, 1  ;;  %16486 = vst [vmem:[#allocation102_spill] sm:$0xff] %v10022_v57  ;;  %v16513_v25 = vld [vmem:[#allocation93_spill] sm:$0xff] }
 0x3c2   :  { %v604_v29 = vadd.f32 %v603_v9, %v602_v53  ;;  %v10026_v53 = vpack.i.bf16 %v10007_v43, %v10004_v52  ;;  %v1687_v46 = vmax.f32 %v16513_v25, 0.0 }
 0x3c4   :  { %v606_v5 = vadd.f32 %v605_v12, %v604_v29  ;;  %16487 = vst [vmem:[#allocation119_spill] sm:$0xff] %v10026_v53  ;;  %v16488_v12 = vld [vmem:[#allocation37_spill] sm:$0xff]  ;;  %v2399_v29 = vrot.slane %v9835_v22, 2  ;;  %v4257_v53 = vpack.c.bf16 %v9800_v45, %v9797_v4  ;;  %v16492_v22 = vld [vmem:[#allocation38_spill] sm:$0xff]  ;;  %v7004_v4 = vld [vmem:[%s15622_s4 + $0x30] sm:$0xff] }
 0x3c5   :  { %v609_v9 = vsel %vm539_vm7, %v16488_v12, 0.0  ;;  %v611_v51 = vsel %vm539_vm7, %v16492_v22, 0.0  ;;  %v16493_v45 = vld [vmem:[#allocation39_spill] sm:$0xff]  ;;  %4455 = vmatpush.bf16.msrb.mxu0 %v7004_v4  ;;  %7009 = vmatpush.bf16.msra.mxu1 %v7004_v4  ;;  %v16496_v22 = vld [vmem:[#allocation40_spill] sm:$0xff]  ;;  %v16501_v4 = vld [vmem:[#allocation41_spill] sm:$0xff] }
 0x3c6   :  { %v608_v62 = vadd.f32 %v607_v47, %v606_v5  ;;  %v2402_v5 = vrot.slane %v10022_v57, 2  ;;  %v16490_v47 = vld [vmem:[#allocation115_spill] sm:$0xff]  ;;  %v615_v57 = vsel %vm539_vm7, %v16496_v22, 0.0  ;;  %v16505_v22 = vld [vmem:[#allocation81_spill] sm:$0xff] }
 0x3c8   :  { %7230 = vrot.lane.b32.xlu2 %v9619_v63, %s8122_s21  ;;  %7195 = vrot.lane.b32.xlu0 %v9685_v2, %s8122_s21  ;;  %v2094_v63 = vsel %vm2079_vm9, %v2092_v14, %v2093_v7  ;;  %v10046_v2 = vsel %vm1763_vm6, %v16490_v47, 0.0  ;;  %v610_v12 = vadd.f32 %v609_v9, %v608_v62  ;;  %v613_v14 = vsel %vm539_vm7, %v16493_v45, 0.0 }
 0x3c9   :  { %7220 = vrot.lane.b32.xlu1 %v7219_v41, %s8116_s2  ;;  %16491 = vst [vmem:[#allocation115_spill] sm:$0xff] %v10046_v2  ;;  %v7209_v8 = vpack.i.bf16 %v2096_v24, %v2094_v63  ;;  %v10057_v7 = vsel %vm2232_vm8, %v2399_v29, %v2400_v31  ;;  %v10060_v41 = vsel %vm2232_vm8, %v2400_v31, %v2402_v5  ;;  %v2315_v62 = vrot.slane %v9876_v3, 2  ;;  %v16509_v3 = vld [vmem:[#allocation117_spill] sm:$0xff] }
 0x3ca   :  { %v10037_v32 = vpop.permute.xlu2 %7055  ;;  %16494 = vst [vmem:[#allocation157_spill] sm:$0xff] %v10057_v7  ;;  %v2318_v9 = vrot.slane %v10046_v2, 2  ;;  %v612_v47 = vadd.f32 %v611_v51, %v610_v12  ;;  %v10074_v29 = vsel %vm1763_vm6, 0.0, %v9690_v30  ;;  %v10094_v30 = vsel %vm1763_vm6, %v9613_v54, 0.0  ;;  %v16504_v51 = vld [vmem:[#allocation80_spill] sm:$0xff]  ;;  %v16508_v2 = vld [vmem:[#allocation78_spill] sm:$0xff] }
 0x3cb   :  { %16489 = vst [vmem:[#allocation156_spill] sm:$0xff] %v10037_v32  ;;  %v1678_v45 = vmax.f32 %v16505_v22, 0.0  ;;  %v2323_v54 = vrot.slane %v10094_v30, 2  ;;  %v2326_v22 = vrot.slane %v9717_v27, 2  ;;  %v2320_v32 = vrot.slane %v9880_v26, 2  ;;  %v16516_v7 = vld [vmem:[#allocation84_spill] sm:$0xff] }
 0x3cc   :  { %6904 = vmatmul.msk.bf16.gmra.mxu2 %vm1092_vm2, %v4257_v53  ;;  %16495 = vst [vmem:[#allocation158_spill] sm:$0xff] %v10060_v41  ;;  %v2316_v53 = vrot.slane %v16459_v19, 2  ;;  %v614_v24 = vadd.f32 %v613_v14, %v612_v47  ;;  %v16503_v14 = vld [vmem:[#allocation42_spill] sm:$0xff]  ;;  %v2098_v19 = vrot.slane %v16508_v2, 1  ;;  %v16515_v41 = vld [vmem:[#allocation83_spill] sm:$0xff]  ;;  %v1688_v26 = vmax.f32 %v16517_v48, 0.0 }
 0x3cd   :  { %16497 = vst [vmem:[#allocation159_spill] sm:$0xff] %v10074_v29  ;;  %v10098_v47 = vsel %vm539_vm7, %v16503_v14, 0.0  ;;  %v10111_v14 = vsel %vm1763_vm6, %v9692_v16, 0.0  ;;  %v10124_v16 = vpop.permute.xlu0 %7035  ;;  %v1680_v2 = vmax.f32 %v16515_v41, 0.0  ;;  %v10148_v41 = vsel %vm1763_vm6, 0.0, %v9775_v36 }
 0x3ce   :  { %v10081_v31 = vsel %vm2232_vm8, %v2315_v62, %v2316_v53  ;;  %v10084_v63 = vsel %vm2232_vm8, %v2316_v53, %v2318_v9  ;;  %v10086_v5 = vadd.f32 %v615_v57, %v614_v24  ;;  %16502 = vst [vmem:[#allocation163_spill] sm:$0xff] %v10094_v30  ;;  %v1677_v62 = vmax.f32 %v16504_v51, 0.0  ;;  %v16506_v53 = vld [vmem:[#allocation79_spill] sm:$0xff] }
 0x3cf   :  { %16499 = vst [vmem:[#allocation161_spill] sm:$0xff] %v10081_v31  ;;  %v7214_v57 = vpack.i.bf16 %v10074_v29, %v9642_v39  ;;  %v2097_v9 = vrot.slane %v16506_v53, 1  ;;  %v2321_v24 = vrot.slane %v9642_v39, 2  ;;  %v2325_v51 = vrot.slane %v10074_v29, 2  ;;  %v16510_v39 = vld [vmem:[#allocation82_spill] sm:$0xff]  ;;  %v16512_v31 = vld [vmem:[#allocation92_spill] sm:$0xff] }
 0x3d0   :  { %7240 = vrot.lane.b32.xlu2 %v9664_v13, %s8119_s18  ;;  %7210 = vrot.lane.b32.xlu0 %v7209_v8, %s8123_s24  ;;  %16500 = vst [vmem:[#allocation162_spill] sm:$0xff] %v10084_v63  ;;  %v1679_v53 = vmax.f32 %v16510_v39, 0.0  ;;  %v1686_v30 = vmax.f32 %v16512_v31, 0.0  ;;  %v16518_v31 = vld [vmem:[#allocation85_spill] sm:$0xff]  ;;  %v10168_v36 = vsel %vm1763_vm6, %v9777_v15, 0.0  ;;  %v1827_v15 = vrot.slane %v1677_v62, 7 }
 0x3d1   :  { %7225 = vrot.lane.b32.xlu1 %v9976_v56, %s8120_s19  ;;  %v10090_v56 = vsel %vm539_vm7, %v16501_v4, 0.0  ;;  %16507 = vst [vmem:[#allocation80_spill] sm:$0xff] %v10111_v14  ;;  %v1685_v4 = vmax.f32 %v16511_v42, 0.0  ;;  %v2328_v42 = vrot.slane %v10111_v14, 2  ;;  %v1682_v25 = vmax.f32 %v16518_v31, 0.0  ;;  %v16524_v14 = vld [vmem:[#allocation86_spill] sm:$0xff] }
 0x3d2   :  { %v10078_v12 = vpop.permute.xlu2 %7060  ;;  %16514 = vst [vmem:[#allocation81_spill] sm:$0xff] %v10124_v16  ;;  %v10139_v16 = vsel %vm2232_vm8, %v2321_v24, %v2323_v54  ;;  %v2099_v48 = vsel %vm2079_vm9, %v2097_v9, %v2098_v19  ;;  %v10151_v31 = vsel %vm2232_vm8, %v2320_v32, %v2321_v24  ;;  %v10158_v54 = vrot.slane %v1687_v46, 7 }
 0x3d3   :  { %16498 = vst [vmem:[#allocation160_spill] sm:$0xff] %v10078_v12  ;;  %v2100_v12 = vrot.slane %v16509_v3, 1  ;;  %v1681_v3 = vmax.f32 %v16516_v7, 0.0  ;;  %v10142_v7 = vsel %vm2232_vm8, %v2325_v51, %v2326_v22  ;;  %v10161_v9 = vrot.slane %v1688_v26, 7 }
 0x3d4   :  { %16520 = vst [vmem:[#allocation82_spill] sm:$0xff] %v10139_v16  ;;  %v2331_v46 = vrot.slane %v9808_v18, 2  ;;  %v2105_v24 = vrot.slane %v9681_v33, 1  ;;  %v1828_v51 = vrot.slane %v1678_v45, 7 }
 0x3d5   :  { %16521 = vst [vmem:[#allocation91_spill] sm:$0xff] %v10142_v7  ;;  %v10195_v45 = vsel %vm1763_vm6, %v10158_v54, %v10161_v9  ;;  %v1833_v62 = vrot.slane %v1681_v3, 7 }
 0x3d6   :  { %16522 = vst [vmem:[#allocation92_spill] sm:$0xff] %v10148_v41  ;;  %v10215_v7 = vsel %vm1763_vm6, %v1828_v51, 0.0 }
 0x3d7   :  { %16523 = vst [vmem:[#allocation93_spill] sm:$0xff] %v10151_v31 }
 0x3d8   :  { %7255 = vrot.lane.b32.xlu2 %v7209_v8, %s8120_s19  ;;  %7215 = vrot.lane.b32.xlu0 %v7214_v57, %s8117_s3  ;;  %v4259_v57 = vpack.c.bf16 %v9829_v59, %v9826_v40  ;;  %v10154_v40 = vrot.slane %v1685_v4, 7  ;;  %v10156_v59 = vrot.slane %v1686_v30, 7  ;;  %16526 = vst [vmem:[#allocation84_spill] sm:$0xff] %v10168_v36  ;;  %v2330_v4 = vrot.slane %v10148_v41, 2 }
 0x3d9   :  { %7235 = vrot.lane.b32.xlu1 %v7209_v8, %s8121_s20  ;;  %v2101_v8 = vsel %vm2079_vm9, %v2098_v19, %v2100_v12  ;;  %v10164_v19 = vsel %vm2232_vm8, %v2326_v22, %v2328_v42  ;;  %v2102_v30 = vrot.slane %v9430_v49, 1  ;;  %v2333_v22 = vrot.slane %v10168_v36, 2  ;;  %16527 = vst [vmem:[#allocation94_spill] sm:$0xff] %v10195_v45  ;;  %v16531_v42 = vld [vmem:[#allocation90_spill] sm:$0xff] }
 0x3da   :  { %v10130_v39 = vpop.permute.xlu1 %7025  ;;  %v10134_v10 = vpop.permute.xlu2 %7085  ;;  %16525 = vst [vmem:[#allocation83_spill] sm:$0xff] %v10164_v19  ;;  %v10172_v12 = vpack.i.bf16 %v2101_v8, %v2099_v48  ;;  %v1831_v48 = vrot.slane %v1680_v2, 7  ;;  %v10207_v2 = vsel %vm1763_vm6, %v10154_v40, %v10156_v59  ;;  %v1684_v33 = vmax.f32 %v16531_v42, 0.0 }
 0x3db   :  { %16519 = vst [vmem:[#allocation117_spill] sm:$0xff] %v10134_v10  ;;  %v1683_v10 = vmax.f32 %v16524_v14, 0.0  ;;  %v2103_v14 = vrot.slane %v9427_v20, 1  ;;  %v10224_v16 = vsel %vm2232_vm8, %v2331_v46, %v2333_v22  ;;  %v7249_v22 = vpack.i.bf16 %v10148_v41, %v9717_v27 }
 0x3dc   :  { %6905 = vmatmul.msk.bf16.gmra.mxu2 %vm1092_vm2, %v4259_v57  ;;  %v1830_v57 = vrot.slane %v1679_v53, 7  ;;  %v10202_v53 = vsel %vm2232_vm8, %v2330_v4, %v2331_v46  ;;  %16530 = vst [vmem:[#allocation164_spill] sm:$0xff] %v10207_v2  ;;  %v10218_v4 = vsel %vm1763_vm6, 0.0, %v1827_v15  ;;  %v10243_v46 = vsel %vm1763_vm6, 0.0, %v1833_v62 }
 0x3dd   :  { %16529 = vst [vmem:[#allocation86_spill] sm:$0xff] %v10202_v53  ;;  %v1836_v26 = vrot.slane %v1683_v10, 7  ;;  %v2104_v3 = vsel %vm2079_vm9, %v2102_v30, %v2103_v14  ;;  %v10227_v10 = vsel %vm1763_vm6, %v1831_v48, 0.0  ;;  %v1837_v19 = vrot.slane %v1684_v33, 7 }
 0x3de   :  { %16532 = vst [vmem:[#allocation90_spill] sm:$0xff] %v10215_v7  ;;  %v10230_v42 = vsel %vm1763_vm6, 0.0, %v1830_v57  ;;  %v10233_v30 = vsel %vm1763_vm6, %v1830_v57, %v1831_v48  ;;  %v2335_v57 = vrot.slane %v10218_v4, 2  ;;  %v2343_v31 = vrot.slane %v10227_v10, 2 }
 0x3df   :  { %16533 = vst [vmem:[#allocation165_spill] sm:$0xff] %v10218_v4  ;;  %v2345_v33 = vrot.slane %v10243_v46, 2  ;;  %v4261_v20 = vpack.c.bf16 %v9893_v6, %v9890_v44  ;;  %v16546_v6 = vld [vmem:[#allocation43_spill] sm:$0xff] }
 0x3e0   :  { %7265 = vrot.lane.b32.xlu2 %v10172_v12, %s8121_s20  ;;  %7260 = vrot.lane.b32.xlu0 %v9664_v13, %s8122_s21  ;;  %v1834_v13 = vrot.slane %v1682_v25, 7  ;;  %v2106_v25 = vsel %vm2079_vm9, %v2103_v14, %v2105_v24  ;;  %16535 = vst [vmem:[#allocation167_spill] sm:$0xff] %v10227_v10 }
 0x3e1   :  { %7245 = vrot.lane.b32.xlu1 %v10172_v12, %s8123_s24  ;;  %16536 = vst [vmem:[#allocation168_spill] sm:$0xff] %v10230_v42 }
 0x3e2   :  { %v10197_v8 = vpop.permute.xlu0 %7040  ;;  %v10199_v32 = vpop.permute.xlu2 %7090  ;;  %16537 = vst [vmem:[#allocation169_spill] sm:$0xff] %v10233_v30  ;;  %v10238_v24 = vsel %vm1763_vm6, %v1834_v13, 0.0 }
 0x3e3   :  { %16528 = vst [vmem:[#allocation85_spill] sm:$0xff] %v10199_v32  ;;  %v10210_v36 = vpop.permute.xlu1 %7045  ;;  %v10221_v32 = vsel %vm1763_vm6, %v1827_v15, %v1828_v51  ;;  %v10240_v15 = vpack.i.bf16 %v2106_v25, %v2104_v3  ;;  %v10246_v51 = vsel %vm1763_vm6, %v1833_v62, %v1834_v13  ;;  %v2338_v3 = vrot.slane %v10215_v7, 2 }
 0x3e4   :  { %16534 = vst [vmem:[#allocation166_spill] sm:$0xff] %v10221_v32  ;;  %v2336_v48 = vrot.slane %v10221_v32, 2  ;;  %v2340_v62 = vrot.slane %v10230_v42, 2  ;;  %v2341_v13 = vrot.slane %v10233_v30, 2  ;;  %v618_v25 = vadd.f32 %v10090_v56, %v10086_v5 }
 0x3e5   :  { %16538 = vst [vmem:[#allocation170_spill] sm:$0xff] %v10238_v24  ;;  %v2346_v14 = vrot.slane %v10246_v51, 2  ;;  %v2348_v7 = vrot.slane %v10238_v24, 2  ;;  %v10285_v24 = vsel %vm1763_vm6, %v1836_v26, %v1837_v19 }
 0x3e6   :  { %16539 = vst [vmem:[#allocation171_spill] sm:$0xff] %v10243_v46  ;;  %v620_v63 = vadd.f32 %v10098_v47, %v618_v25  ;;  %v10278_v56 = vsel %vm2232_vm8, %v2335_v57, %v2336_v48  ;;  %v10288_v10 = vsel %vm2232_vm8, %v2336_v48, %v2338_v3  ;;  %v10291_v44 = vsel %vm2232_vm8, %v2340_v62, %v2341_v13  ;;  %v16553_v3 = vld [vmem:[#allocation45_spill] sm:$0xff] }
 0x3e7   :  { %16540 = vst [vmem:[#allocation172_spill] sm:$0xff] %v10246_v51  ;;  %v621_v47 = vsel %vm539_vm7, %v16546_v6, 0.0  ;;  %v10296_v57 = vsel %vm1763_vm6, %v1837_v19, 0.0  ;;  %v10302_v25 = vsel %vm2232_vm8, %v2345_v33, %v2346_v14  ;;  %v10307_v48 = vsel %vm2232_vm8, %v2346_v14, %v2348_v7  ;;  %v16552_v33 = vld [vmem:[#allocation44_spill] sm:$0xff] }
 0x3e8   :  { %7275 = vrot.lane.b32.xlu2 %v10240_v15, %s8123_s24  ;;  %7270 = vrot.lane.b32.xlu0 %v9740_v55, %s8119_s18  ;;  %16543 = vst [vmem:[#allocation175_spill] sm:$0xff] %v10285_v24  ;;  %v2351_v6 = vrot.slane %v10285_v24, 2  ;;  %v622_v14 = vadd.f32 %v621_v47, %v620_v63 }
 0x3e9   :  { %7250 = vrot.lane.b32.xlu1 %v7249_v22, %s8117_s3  ;;  %v10282_v22 = vsel %vm1763_vm6, 0.0, %v1836_v26  ;;  %16544 = vst [vmem:[#allocation176_spill] sm:$0xff] %v10288_v10  ;;  %v7279_v26 = vpack.i.bf16 %v9717_v27, %v10074_v29  ;;  %v16558_v27 = vld [vmem:[#allocation47_spill] sm:$0xff]  ;;  %v2115_v10 = vrot.slane %v9736_v50, 1 }
 0x3ea   :  { %v10268_v53 = vpop.permute.xlu0 %7065  ;;  %v10270_v49 = vpop.permute.xlu2 %7115  ;;  %16542 = vst [vmem:[#allocation174_spill] sm:$0xff] %v10282_v22  ;;  %v2350_v19 = vrot.slane %v10282_v22, 2  ;;  %v16563_v29 = vld [vmem:[#allocation131_spill] sm:$0xff] }
 0x3eb   :  { %16541 = vst [vmem:[#allocation173_spill] sm:$0xff] %v10270_v49  ;;  %v10275_v5 = vpop.permute.xlu1 %7050  ;;  %v623_v49 = vsel %vm539_vm7, %v16552_v33, 0.0 }
 0x3ec   :  { %6906 = vmatmul.msk.bf16.gmra.mxu2 %vm1092_vm2, %v4261_v20  ;;  %16545 = vst [vmem:[#allocation177_spill] sm:$0xff] %v10291_v44  ;;  %v10299_v20 = vsel %vm2232_vm8, %v2341_v13, %v2343_v31  ;;  %v625_v13 = vsel %vm539_vm7, %v16553_v3, 0.0  ;;  %v624_v7 = vadd.f32 %v623_v49, %v622_v14  ;;  %v10346_v47 = vsel %vm2232_vm8, %v2350_v19, %v2351_v6  ;;  %v16557_v31 = vld [vmem:[#allocation46_spill] sm:$0xff]  ;;  %v16579_v44 = vld [vmem:[#allocation68_spill] sm:$0xff] }
 0x3ed   :  { %16547 = vst [vmem:[#allocation178_spill] sm:$0xff] %v10296_v57  ;;  %v2356_v14 = vrot.slane %v10207_v2, 2  ;;  %v10385_v19 = vsel %vm1763_vm6, %v10161_v9, 0.0 }
 0x3ee   :  { %16548 = vst [vmem:[#allocation179_spill] sm:$0xff] %v10299_v20  ;;  %v626_v3 = vadd.f32 %v625_v13, %v624_v7  ;;  %v16562_v13 = vld [vmem:[#allocation103_spill] sm:$0xff] }
 0x3ef   :  { %16549 = vst [vmem:[#allocation180_spill] sm:$0xff] %v10302_v25  ;;  %v10311_v62 = vpop.f32.mrf.mxu2  ;;  %v2107_v7 = vrot.slane %v16562_v13, 1 }
 0x3f0   :  { %16550 = vst [vmem:[#allocation181_spill] sm:$0xff] %v10307_v48  ;;  %7280 = vrot.lane.b32.xlu2 %v7279_v26, %s8116_s2  ;;  %7285 = vrot.lane.b32.xlu0 %v10172_v12, %s8120_s19  ;;  %v10354_v12 = vsel %vm1763_vm6, %v10156_v59, 0.0  ;;  %v2110_v59 = vrot.slane %v16563_v29, 1  ;;  %v16575_v48 = vld [vmem:[#allocation67_spill] sm:$0xff] }
 0x3f1   :  { %16551 = vst [vmem:[#allocation182_spill] sm:$0xff] %v10311_v62  ;;  %7290 = vrot.lane.b32.xlu1 %v9740_v55, %s8122_s21  ;;  %v2353_v62 = vrot.slane %v10296_v57, 2  ;;  %v10343_v55 = vsel %vm1763_vm6, 0.0, %v10154_v40  ;;  %v627_v57 = vsel %vm539_vm7, %v16557_v31, 0.0  ;;  %v2358_v20 = vrot.slane %v10354_v12, 2 }
 0x3f2   :  { %v10333_v33 = vpop.permute.xlu0 %7070  ;;  %v10335_v26 = vpop.permute.xlu2 %7120  ;;  %16555 = vst [vmem:[#allocation184_spill] sm:$0xff] %v10343_v55  ;;  %v2355_v40 = vrot.slane %v10343_v55, 2  ;;  %v628_v25 = vadd.f32 %v627_v57, %v626_v3  ;;  %v16565_v3 = vld [vmem:[#allocation48_spill] sm:$0xff]  ;;  %v10427_v55 = vsel %vm1763_vm6, 0.0, %v16579_v44 }
 0x3f3   :  { %16554 = vst [vmem:[#allocation183_spill] sm:$0xff] %v10335_v26  ;;  %v10339_v63 = vpop.permute.xlu1 %7075  ;;  %v629_v26 = vsel %vm539_vm7, %v16558_v27, 0.0  ;;  %v10357_v49 = vsel %vm2232_vm8, %v2351_v6, %v2353_v62  ;;  %v2108_v27 = vrot.slane %v9465_v23, 1  ;;  %v10375_v6 = vsel %vm1763_vm6, 0.0, %v10158_v54 }
 0x3f4   :  { %16556 = vst [vmem:[#allocation185_spill] sm:$0xff] %v10346_v47  ;;  %v630_v57 = vadd.f32 %v629_v26, %v628_v25  ;;  %v631_v62 = vsel %vm539_vm7, %v16565_v3, 0.0  ;;  %v4263_v54 = vpack.c.bf16 %v9909_v0, %v9906_v34  ;;  %v16569_v25 = vld [vmem:[#allocation66_spill] sm:$0xff]  ;;  %v2360_v2 = vrot.slane %v10375_v6, 2  ;;  %v16572_v47 = vld [vmem:[#allocation49_spill] sm:$0xff]  ;;  %v16573_v0 = vld [vmem:[#allocation87_spill] sm:$0xff] }
 0x3f5   :  { %16559 = vst [vmem:[#allocation186_spill] sm:$0xff] %v10354_v12  ;;  %v10395_v26 = vsel %vm1763_vm6, 0.0, %v16569_v25  ;;  %v2109_v29 = vsel %vm2079_vm9, %v2107_v7, %v2108_v27  ;;  %v2111_v9 = vsel %vm2079_vm9, %v2108_v27, %v2110_v59  ;;  %v633_v34 = vsel %vm539_vm7, %v16572_v47, 0.0 }
 0x3f6   :  { %16560 = vst [vmem:[#allocation187_spill] sm:$0xff] %v10357_v49  ;;  %v10410_v25 = vsel %vm1763_vm6, 0.0, %v16573_v0  ;;  %v10418_v7 = vsel %vm2232_vm8, %v2356_v14, %v2358_v20  ;;  %v2363_v27 = vrot.slane %v10385_v19, 2  ;;  %v2365_v59 = vrot.slane %v10395_v26, 2 }
 0x3f7   :  { %v10363_v31 = vpop.f32.mrf.mxu2  ;;  %16564 = vst [vmem:[#allocation103_spill] sm:$0xff] %v10375_v6  ;;  %v632_v0 = vadd.f32 %v631_v62, %v630_v57  ;;  %v2404_v44 = vrot.slane %v10410_v25, 2  ;;  %v16585_v57 = vld [vmem:[#allocation50_spill] sm:$0xff] }
 0x3f8   :  { %16561 = vst [vmem:[#allocation188_spill] sm:$0xff] %v10363_v31  ;;  %7315 = vrot.lane.b32.xlu2 %v9746_v60, %s8122_s21  ;;  %7295 = vrot.lane.b32.xlu0 %v10240_v15, %s8121_s20  ;;  %v635_v62 = vsel %vm539_vm7, %v16585_v57, 0.0  ;;  %v16592_v57 = vld [vmem:[#allocation89_spill] sm:$0xff] }
 0x3f9   :  { %7300 = vrot.lane.b32.xlu1 %v9746_v60, %s8119_s18  ;;  %16566 = vst [vmem:[#allocation131_spill] sm:$0xff] %v10385_v19  ;;  %v10398_v60 = vsel %vm2232_vm8, %v2355_v40, %v2356_v14  ;;  %v10414_v40 = vsel %vm1763_vm6, %v16575_v48, 0.0  ;;  %v7304_v48 = vpack.i.bf16 %v2111_v9, %v2109_v29  ;;  %v16583_v19 = vld [vmem:[#allocation69_spill] sm:$0xff]  ;;  %v2370_v14 = vrot.slane %v10427_v55, 2 }
 0x3fa   :  { %v10387_v31 = vpop.permute.xlu0 %7095  ;;  %v10389_v12 = vpop.permute.xlu2 %7145  ;;  %16570 = vst [vmem:[#allocation66_spill] sm:$0xff] %v10395_v26  ;;  %v10439_v47 = vsel %vm1763_vm6, %v16583_v19, 0.0 }
 0x3fb   :  { %16567 = vst [vmem:[#allocation189_spill] sm:$0xff] %v10387_v31  ;;  %v10400_v3 = vpop.permute.xlu1 %7080  ;;  %v2373_v26 = vrot.slane %v10439_v47, 2 }
 0x3fc   :  { %16568 = vst [vmem:[#allocation190_spill] sm:$0xff] %v10389_v12  ;;  %v2361_v12 = vrot.slane %v10195_v45, 2  ;;  %6907 = vmatmul.msk.bf16.gmra.mxu2 %vm1092_vm2, %v4263_v54  ;;  %v16578_v45 = vld [vmem:[#allocation74_spill] sm:$0xff]  ;;  %v2368_v54 = vrot.slane %v10414_v40, 2 }
 0x3fd   :  { %16571 = vst [vmem:[#allocation191_spill] sm:$0xff] %v10398_v60  ;;  %v2366_v6 = vrot.slane %v16578_v45, 2  ;;  %v634_v45 = vadd.f32 %v633_v34, %v632_v0  ;;  %v2405_v60 = vrot.slane %v16592_v57, 2 }
 0x3fe   :  { %16574 = vst [vmem:[#allocation87_spill] sm:$0xff] %v10410_v25  ;;  %v10433_v20 = vsel %vm2232_vm8, %v2360_v2, %v2361_v12  ;;  %v16586_v2 = vld [vmem:[#allocation88_spill] sm:$0xff]  ;;  %v10454_v19 = vsel %vm2232_vm8, %v2361_v12, %v2363_v27  ;;  %v16594_v27 = vld [vmem:[#allocation70_spill] sm:$0xff] }
 0x3ff   :  { %16576 = vst [vmem:[#allocation67_spill] sm:$0xff] %v10414_v40  ;;  %v10430_v31 = vpop.f32.mrf.mxu2  ;;  %v10449_v29 = vsel %vm1763_vm6, %v16586_v2, 0.0  ;;  %v10457_v9 = vsel %vm2232_vm8, %v2365_v59, %v2366_v6  ;;  %v10472_v59 = vsel %vm1763_vm6, 0.0, %v16594_v27  ;;  %v16600_v2 = vld [vmem:[#allocation71_spill] sm:$0xff] }
 0x400   :  { %16577 = vst [vmem:[#allocation192_spill] sm:$0xff] %v10418_v7  ;;  %7325 = vrot.lane.b32.xlu2 %v9760_v37, %s8119_s18  ;;  %7305 = vrot.lane.b32.xlu0 %v7304_v48, %s8123_s24  ;;  %v10486_v7 = vsel %vm1763_vm6, %v16600_v2, 0.0  ;;  %v2407_v27 = vrot.slane %v10449_v29, 2 }
 0x401   :  { %16580 = vst [vmem:[#allocation68_spill] sm:$0xff] %v10427_v55  ;;  %7310 = vrot.lane.b32.xlu1 %v10240_v15, %s8120_s19  ;;  %v16593_v15 = vld [vmem:[#allocation51_spill] sm:$0xff]  ;;  %v10478_v55 = vsel %vm2232_vm8, %v2366_v6, %v2368_v54 }
 0x402   :  { %16581 = vst [vmem:[#allocation193_spill] sm:$0xff] %v10430_v31  ;;  %v10459_v34 = vpop.permute.xlu0 %7100  ;;  %v10461_v0 = vpop.permute.xlu2 %7150  ;;  %v16591_v31 = vld [vmem:[#allocation97_spill] sm:$0xff]  ;;  %v637_v12 = vsel %vm539_vm7, %v16593_v15, 0.0  ;;  %v10489_v15 = vsel %vm2232_vm8, %v2404_v44, %v2405_v60  ;;  %v10501_v54 = vsel %vm2232_vm8, %v2405_v60, %v2407_v27  ;;  %v2375_v60 = vrot.slane %v10472_v59, 2  ;;  %v16607_v27 = vld [vmem:[#allocation98_spill] sm:$0xff] }
 0x403   :  { %16582 = vst [vmem:[#allocation194_spill] sm:$0xff] %v10433_v20  ;;  %v2371_v40 = vrot.slane %v16591_v31, 2  ;;  %v10475_v49 = vpop.permute.xlu1 %7105  ;;  %v16598_v31 = vld [vmem:[#allocation72_spill] sm:$0xff]  ;;  %v2376_v44 = vrot.slane %v16607_v27, 2 }
 0x404   :  { %16584 = vst [vmem:[#allocation69_spill] sm:$0xff] %v10439_v47  ;;  %v2112_v47 = vrot.slane %v9536_v17, 1 }
 0x405   :  { %16587 = vst [vmem:[#allocation88_spill] sm:$0xff] %v10454_v19  ;;  %v2378_v19 = vrot.slane %v10486_v7, 2 }
 0x406   :  { %16588 = vst [vmem:[#allocation195_spill] sm:$0xff] %v10457_v9 }
 0x407   :  { %16589 = vst [vmem:[#allocation196_spill] sm:$0xff] %v10459_v34  ;;  %v10505_v2 = vpop.f32.mrf.mxu2  ;;  %v2113_v34 = vrot.slane %v9528_v38, 1 }
 0x408   :  { %16590 = vst [vmem:[#allocation197_spill] sm:$0xff] %v10461_v0  ;;  %v10482_v0 = vsel %vm1763_vm6, 0.0, %v16598_v31  ;;  %v10498_v31 = vsel %vm2232_vm8, %v2370_v14, %v2371_v40  ;;  %v636_v14 = vadd.f32 %v635_v62, %v634_v45  ;;  %7335 = vrot.lane.b32.xlu2 %v7304_v48, %s8120_s19  ;;  %7340 = vrot.lane.b32.xlu0 %v9760_v37, %s8122_s21  ;;  %v16614_v62 = vld [vmem:[#allocation53_spill] sm:$0xff] }
 0x409   :  { %16595 = vst [vmem:[#allocation70_spill] sm:$0xff] %v10472_v59  ;;  %7320 = vrot.lane.b32.xlu1 %v7304_v48, %s8121_s20  ;;  %v2114_v45 = vsel %vm2079_vm9, %v2112_v47, %v2113_v34  ;;  %v16617_v48 = vld [vmem:[#allocation54_spill] sm:$0xff] }
 0x40a   :  { %16596 = vst [vmem:[#allocation198_spill] sm:$0xff] %v10475_v49  ;;  %v10510_v49 = vsel %vm2232_vm8, %v2371_v40, %v2373_v26  ;;  %v2380_v26 = vrot.slane %v10482_v0, 2  ;;  %v16609_v40 = vld [vmem:[#allocation99_spill] sm:$0xff]  ;;  %v638_v6 = vadd.f32 %v637_v12, %v636_v14  ;;  %v10531_v59 = vpop.permute.xlu0 %7125  ;;  %v10533_v27 = vpop.permute.xlu2 %7175  ;;  %v2116_v12 = vsel %vm2079_vm9, %v2113_v34, %v2115_v10 }
 0x40b   :  { %16597 = vst [vmem:[#allocation199_spill] sm:$0xff] %v10478_v55  ;;  %v643_v47 = vsel %vm539_vm7, %v16617_v48, 0.0  ;;  %v16618_v34 = vrot.slane %v16609_v40, 2 }
 0x40c   :  { %16599 = vst [vmem:[#allocation72_spill] sm:$0xff] %v10482_v0  ;;  %v10539_v0 = vpop.permute.xlu1 %7110 }
 0x40d   :  { %16601 = vst [vmem:[#allocation71_spill] sm:$0xff] %v10486_v7  ;;  %v16610_v7 = vld [vmem:[#allocation73_spill] sm:$0xff] }
 0x40e   :  { %16602 = vst [vmem:[#allocation200_spill] sm:$0xff] %v10489_v15  ;;  %v10529_v37 = vsel %vm1763_vm6, %v16610_v7, 0.0  ;;  %v641_v7 = vsel %vm539_vm7, %v16614_v62, 0.0  ;;  %v16620_v62 = vld [vmem:[#allocation112_spill] sm:$0xff] }
 0x40f   :  { %16603 = vst [vmem:[#allocation201_spill] sm:$0xff] %v10498_v31  ;;  %v2230_v10 = vrot.slane %v10529_v37, 1  ;;  %v16621_v31 = vld [vmem:[#allocation111_spill] sm:$0xff] }
 0x410   :  { %16604 = vst [vmem:[#allocation202_spill] sm:$0xff] %v10501_v54  ;;  %v2118_v55 = vrot.slane %v16621_v31, 1 }
 0x411   :  { %16605 = vst [vmem:[#allocation203_spill] sm:$0xff] %v10505_v2  ;;  %v16608_v2 = vld [vmem:[#allocation52_spill] sm:$0xff] }
 0x412   :  { %16606 = vst [vmem:[#allocation204_spill] sm:$0xff] %v10510_v49  ;;  %v639_v50 = vsel %vm539_vm7, %v16608_v2, 0.0  ;;  %v4265_v2 = vpack.c.bf16 %v9920_v58, %v9917_v35  ;;  %v10550_v35 = vsel %vm2232_vm8, %v2375_v60, %v2376_v44  ;;  %v10553_v58 = vsel %vm2232_vm8, %v2376_v44, %v2378_v19  ;;  %v10569_v44 = vpop.f32.mrf.mxu2 }
 0x413   :  { %16611 = vst [vmem:[#allocation73_spill] sm:$0xff] %v10529_v37  ;;  %v640_v14 = vadd.f32 %v639_v50, %v638_v6  ;;  %v10561_v6 = vsel %vm2232_vm8, %v2380_v26, %v16618_v34  ;;  %v10564_v50 = vpack.i.bf16 %v2116_v12, %v2114_v45  ;;  %v2117_v60 = vrot.slane %v16620_v62, 1  ;;  %v16623_v37 = vld [vmem:[#allocation135_spill] sm:$0xff]  ;;  %v16624_v12 = vld [vmem:[#allocation138_spill] sm:$0xff] }
 0x414   :  { %16612 = vst [vmem:[#allocation205_spill] sm:$0xff] %v10531_v59  ;;  %6908 = vmatmul.msk.bf16.gmra.mxu2 %vm1092_vm2, %v4265_v2  ;;  %v2394_v19 = vrot.slane %v10410_v25, 1  ;;  %v2120_v48 = vrot.slane %v16623_v37, 1  ;;  %7350 = vrot.lane.b32.xlu0 %v16624_v12, %s8119_s18  ;;  %v2395_v2 = vrot.slane %v16592_v57, 1  ;;  %v16626_v34 = vrot.slane %v16609_v40, 1  ;;  %v10593_v25 = vpop.permute.xlu0 %7130  ;;  %v10604_v40 = vpop.permute.xlu1 %7135  ;;  %v7002_v57 = vld [vmem:[%s15622_s4 + $0x20] sm:$0xff] }
 0x415   :  { %16613 = vst [vmem:[#allocation206_spill] sm:$0xff] %v10533_v27  ;;  %v7003_v27 = vld [vmem:[%s15622_s4 + $0x28] sm:$0xff]  ;;  %v642_v45 = vadd.f32 %v641_v7, %v640_v14  ;;  %7345 = vrot.lane.b32.xlu2 %v10564_v50, %s8121_s20  ;;  %7330 = vrot.lane.b32.xlu1 %v10564_v50, %s8123_s24  ;;  %v2397_v7 = vrot.slane %v10449_v29, 1 }
 0x416   :  { %16615 = vst [vmem:[#allocation207_spill] sm:$0xff] %v10550_v35  ;;  %4456 = vmatpush.bf16.msrb.mxu0 %v7003_v27  ;;  %7010 = vmatpush.bf16.msra.mxu1 %v7003_v27  ;;  %v10590_v14 = vsel %vm2079_vm9, %v16626_v34, %v2230_v10  ;;  %v10595_v35 = vpop.permute.xlu2 %7180  ;;  %v10598_v27 = vsel %vm2079_vm9, %v2394_v19, %v2395_v2  ;;  %v16634_v19 = vld [vmem:[#allocation57_spill] sm:$0xff] }
 0x417   :  { %16616 = vst [vmem:[#allocation208_spill] sm:$0xff] %v10553_v58  ;;  %v644_v26 = vadd.f32 %v643_v47, %v642_v45  ;;  %v2119_v10 = vsel %vm2079_vm9, %v2117_v60, %v2118_v55  ;;  %v2121_v29 = vsel %vm2079_vm9, %v2118_v55, %v2120_v48  ;;  %v10611_v45 = vsel %vm2079_vm9, %v2395_v2, %v2397_v7  ;;  %v16635_v48 = vld [vmem:[#allocation58_spill] sm:$0xff]  ;;  %v16637_v7 = vld [vmem:[#allocation59_spill] sm:$0xff]  ;;  %v16641_v34 = vld [vmem:[#allocation61_spill] sm:$0xff] }
 0x418   :  { %16619 = vst [vmem:[#allocation209_spill] sm:$0xff] %v10561_v6  ;;  %v16631_v6 = vld [vmem:[#allocation56_spill] sm:$0xff]  ;;  %v10620_v54 = vpack.i.bf16 %v2121_v29, %v2119_v10  ;;  %v7364_v55 = vpack.i.bf16 %v9808_v18, %v10148_v41  ;;  %v651_v2 = vsel %vm539_vm7, %v16635_v48, 0.0  ;;  %v7001_v10 = vld [vmem:[%s15622_s4 + $0x18] sm:$0xff] }
 0x419   :  { %16622 = vst [vmem:[#allocation112_spill] sm:$0xff] %v10569_v44  ;;  %v16625_v44 = vld [vmem:[#allocation55_spill] sm:$0xff] }
 0x41a   :  { %v645_v37 = vsel %vm539_vm7, %v16625_v44, 0.0  ;;  %16627 = vst [vmem:[#allocation111_spill] sm:$0xff] %v10590_v14  ;;  %v647_v44 = vsel %vm539_vm7, %v16631_v6, 0.0  ;;  %7011 = vmatpush.bf16.msra.mxu1 %v7002_v57  ;;  %4457 = vmatpush.bf16.msrb.mxu0 %v7002_v57  ;;  %v7394_v6 = vpack.i.bf16 %v10230_v42, %v10221_v32 }
 0x41b   :  { %16628 = vst [vmem:[#allocation135_spill] sm:$0xff] %v10593_v25  ;;  %v646_v47 = vadd.f32 %v645_v37, %v644_v26  ;;  %v10626_v26 = vpop.f32.mrf.mxu2 }
 0x41c   :  { %16629 = vst [vmem:[#allocation138_spill] sm:$0xff] %v10595_v35  ;;  %v649_v35 = vsel %vm539_vm7, %v16634_v19, 0.0  ;;  %7365 = vrot.lane.b32.xlu0 %v7364_v55, %s8116_s2  ;;  %v10646_v15 = vpop.permute.xlu1 %7140  ;;  %v16653_v19 = vld [vmem:[#allocation136_spill] sm:$0xff] }
 0x41d   :  { %16630 = vst [vmem:[#allocation210_spill] sm:$0xff] %v10598_v27  ;;  %v648_v60 = vadd.f32 %v647_v44, %v646_v47  ;;  %7355 = vrot.lane.b32.xlu2 %v10620_v54, %s8123_s24  ;;  %v653_v44 = vsel %vm539_vm7, %v16637_v7, 0.0  ;;  %7375 = vrot.lane.b32.xlu1 %v16624_v12, %s8122_s21  ;;  %v10638_v47 = vpop.permute.xlu0 %7155 }
 0x41e   :  { %16632 = vst [vmem:[#allocation211_spill] sm:$0xff] %v10604_v40  ;;  %v10640_v57 = vpop.permute.xlu2 %7205  ;;  %7012 = vmatpush.bf16.msra.mxu1 %v7001_v10  ;;  %4458 = vmatpush.bf16.msrb.mxu0 %v7001_v10 }
 0x41f   :  { %16633 = vst [vmem:[#allocation212_spill] sm:$0xff] %v10611_v45  ;;  %v650_v37 = vadd.f32 %v649_v35, %v648_v60  ;;  %v4267_v35 = vpack.c.bf16 %v9961_v21, %v9958_v11  ;;  %v16639_v60 = vld [vmem:[#allocation60_spill] sm:$0xff]  ;;  %v16642_v21 = vld [vmem:[#allocation62_spill] sm:$0xff] }
 0x420   :  { %16636 = vst [vmem:[#allocation213_spill] sm:$0xff] %v10626_v26  ;;  %v655_v55 = vsel %vm539_vm7, %v16639_v60, 0.0  ;;  %v7359_v26 = vpack.i.bf16 %v10218_v4, %v9808_v18  ;;  %v7000_v11 = vld [vmem:[%s15622_s4 + $0x10] sm:$0xff]  ;;  %v659_v45 = vsel %vm539_vm7, %v16642_v21, 0.0  ;;  %v16649_v21 = vld [vmem:[#allocation65_spill] sm:$0xff]  ;;  %v16690_v18 = vld [vmem:[#allocation95_spill] sm:$0xff] }
 0x421   :  { %v652_v29 = vadd.f32 %v651_v2, %v650_v37  ;;  %16638 = vst [vmem:[#allocation214_spill] sm:$0xff] %v10638_v47  ;;  %v657_v2 = vsel %vm539_vm7, %v16641_v34, 0.0  ;;  %v665_v34 = vsel %vm539_vm7, %v16649_v21, 0.0  ;;  %v16657_v21 = vld [vmem:[#allocation146_spill] sm:$0xff] }
 0x422   :  { %16640 = vst [vmem:[#allocation215_spill] sm:$0xff] %v10646_v15  ;;  %7013 = vmatpush.bf16.msra.mxu1 %v7000_v11  ;;  %4459 = vmatpush.bf16.msrb.mxu0 %v7000_v11  ;;  %v16652_v11 = vld [vmem:[#allocation120_spill] sm:$0xff]  ;;  %v16667_v15 = vld [vmem:[#allocation123_spill] sm:$0xff] }
 0x423   :  { %v654_v12 = vadd.f32 %v653_v44, %v652_v29  ;;  %v10658_v14 = vpop.f32.mrf.mxu2  ;;  %v16644_v44 = vld [vmem:[#allocation63_spill] sm:$0xff]  ;;  %v2123_v48 = vrot.slane %v16652_v11, 1 }
 0x424   :  { %6909 = vmatmul.msk.bf16.gmra.mxu2 %vm1092_vm2, %v4267_v35  ;;  %16643 = vst [vmem:[#allocation216_spill] sm:$0xff] %v10658_v14  ;;  %7370 = vrot.lane.b32.xlu0 %v10564_v50, %s8120_s19  ;;  %v661_v29 = vsel %vm539_vm7, %v16644_v44, 0.0  ;;  %v16645_v35 = vld [vmem:[#allocation141_spill] sm:$0xff] }
 0x425   :  { %v656_v37 = vadd.f32 %v655_v55, %v654_v12  ;;  %7360 = vrot.lane.b32.xlu2 %v7359_v26, %s8117_s3  ;;  %7385 = vrot.lane.b32.xlu1 %v16645_v35, %s8119_s18  ;;  %v6999_v55 = vld [vmem:[%s15622_s4 + $0x8] sm:$0xff]  ;;  %v10670_v27 = vpop.permute.xlu0 %7160  ;;  %v16647_v26 = vld [vmem:[#allocation64_spill] sm:$0xff] }
 0x426   :  { %16646 = vst [vmem:[#allocation141_spill] sm:$0xff] %v10670_v27  ;;  %v663_v50 = vsel %vm539_vm7, %v16647_v26, 0.0  ;;  %7014 = vmatpush.bf16.msra.mxu1 %v6999_v55  ;;  %4460 = vmatpush.bf16.msrb.mxu0 %v6999_v55  ;;  %v2125_v26 = vrot.slane %v16653_v19, 1  ;;  %v4269_v19 = vpack.c.bf16 %v9997_v61, %v9994_v1 }
 0x427   :  { %v658_v10 = vadd.f32 %v657_v2, %v656_v37  ;;  %v10672_v2 = vpop.permute.xlu2 %7230  ;;  %v10676_v37 = vpop.permute.xlu1 %7165 }
 0x428   :  { %16648 = vst [vmem:[#allocation217_spill] sm:$0xff] %v10676_v37  ;;  %v16662_v37 = vld [vmem:[#allocation126_spill] sm:$0xff] }
 0x429   :  { %v660_v12 = vadd.f32 %v659_v45, %v658_v10  ;;  %v7399_v45 = vpack.i.bf16 %v10221_v32, %v10218_v4  ;;  %v16651_v10 = vld [vmem:[#allocation121_spill] sm:$0xff]  ;;  %v2132_v27 = vrot.slane %v16662_v37, 1  ;;  %v16687_v37 = vld [vmem:[#allocation107_spill] sm:$0xff] }
 0x42a   :  { %v2122_v7 = vrot.slane %v16651_v10, 1 }
 0x42b   :  { %v662_v14 = vadd.f32 %v661_v29, %v660_v12  ;;  %v10680_v60 = vpop.f32.mrf.mxu2  ;;  %v6998_v29 = vld [vmem:[%s15622_s4] sm:$0xff] }
 0x42c   :  { %16650 = vst [vmem:[#allocation218_spill] sm:$0xff] %v10680_v60  ;;  %7380 = vrot.lane.b32.xlu0 %v10620_v54, %s8121_s20  ;;  %7015 = vmatpush.bf16.msra.mxu1 %v6998_v29  ;;  %v2124_v60 = vsel %vm2079_vm9, %v2122_v7, %v2123_v48 }
 0x42d   :  { %v664_v44 = vadd.f32 %v663_v50, %v662_v14  ;;  %7410 = vrot.lane.b32.xlu2 %v16645_v35, %s8122_s21  ;;  %7400 = vrot.lane.b32.xlu1 %v7399_v45, %s8116_s2  ;;  %v10695_v55 = vpop.permute.xlu0 %7185  ;;  %v2126_v35 = vsel %vm2079_vm9, %v2123_v48, %v2125_v26  ;;  %v16658_v48 = vld [vmem:[#allocation125_spill] sm:$0xff] }
 0x42e   :  { %16654 = vst [vmem:[#allocation121_spill] sm:$0xff] %v10695_v55  ;;  %4461 = vmatpush.bf16.msrb.mxu0 %v6998_v29  ;;  %v2127_v26 = vrot.slane %v16658_v48, 1  ;;  %v16659_v29 = vld [vmem:[#allocation105_spill] sm:$0xff] }
 0x42f   :  { %v666_v14 = vadd.f32 %v665_v34, %v664_v44  ;;  %v10697_v12 = vpop.permute.xlu2 %7240  ;;  %v10701_v50 = vpop.permute.xlu1 %7170  ;;  %v7389_v44 = vpack.i.bf16 %v2126_v35, %v2124_v60  ;;  %v16660_v60 = vld [vmem:[#allocation145_spill] sm:$0xff] }
 0x430   :  { %16655 = vst [vmem:[#allocation120_spill] sm:$0xff] %v10701_v50  ;;  %v2130_v35 = vrot.slane %v16660_v60, 1  ;;  %v4271_v60 = vpack.c.bf16 %v10007_v43, %v10004_v52  ;;  %v7027_v52 = vunpack.i.l.bf16 %v10130_v39  ;;  %v16666_v43 = vld [vmem:[#allocation127_spill] sm:$0xff] }
 0x431   :  { %v667_v34 = vrot.slane %v666_v14, 4 }
 0x433   :  { %v10706_v45 = vpop.f32.mrf.mxu2  ;;  %v668_v55 = vadd.f32 %v667_v34, %v666_v14 }
 0x434   :  { %6910 = vmatmul.msk.bf16.gmra.mxu2 %vm1092_vm2, %v4269_v19  ;;  %16656 = vst [vmem:[#allocation136_spill] sm:$0xff] %v10706_v45  ;;  %7390 = vrot.lane.b32.xlu0 %v7389_v44, %s8123_s24  ;;  %v2128_v19 = vrot.slane %v16659_v29, 1 }
 0x435   :  { %7420 = vrot.lane.b32.xlu2 %v16657_v21, %s8119_s18  ;;  %7405 = vrot.lane.b32.xlu1 %v10620_v54, %s8120_s19  ;;  %v7191_v61 = vpop.permute.xlu0 %7190  ;;  %v669_v45 = vrot.slane %v668_v55, 2 }
 0x436   :  { %v2129_v14 = vsel %vm2079_vm9, %v2127_v26, %v2128_v19  ;;  %v2131_v54 = vsel %vm2079_vm9, %v2128_v19, %v2130_v35  ;;  %v7193_v34 = vunpack.i.h.bf16 %v7191_v61  ;;  %v7192_v50 = vunpack.i.l.bf16 %v7191_v61  ;;  %v16663_v19 = vld [vmem:[#allocation106_spill] sm:$0xff]  ;;  %v16664_v35 = vld [vmem:[#allocation147_spill] sm:$0xff] }
 0x437   :  { %v10713_v1 = vpop.permute.xlu2 %7255  ;;  %v7201_v7 = vpop.permute.xlu1 %7200  ;;  %v670_v49 = vadd.f32 %v669_v45, %v668_v55  ;;  %v2133_v61 = vrot.slane %v16663_v19, 1  ;;  %v2135_v9 = vrot.slane %v16664_v35, 1  ;;  %v2138_v19 = vrot.slane %v16687_v37, 1 }
 0x438   :  { %v3780_v20 = vsel %vm1092_vm2, %v16666_v43, %v7193_v34  ;;  %v7202_v35 = vunpack.i.l.bf16 %v7201_v7  ;;  %v7207_v34 = vunpack.i.l.bf16 %v10640_v57 }
 0x43b   :  { %v10720_v58 = vpop.f32.mrf.mxu2 }
 0x43c   :  { %16661 = vst [vmem:[#allocation146_spill] sm:$0xff] %v10720_v58  ;;  %7395 = vrot.lane.b32.xlu0 %v7394_v6, %s8117_s3  ;;  %v10732_v58 = vpack.i.bf16 %v2131_v54, %v2129_v14  ;;  %v7028_v6 = vunpack.i.h.bf16 %v10130_v39  ;;  %v3779_v14 = vsel %vm1092_vm2, %v16667_v15, %v7192_v50  ;;  %v7203_v54 = vunpack.i.h.bf16 %v7201_v7 }
 0x43d   :  { %7435 = vrot.lane.b32.xlu2 %v7389_v44, %s8120_s19  ;;  %7415 = vrot.lane.b32.xlu1 %v7389_v44, %s8121_s20  ;;  %v7196_v26 = vpop.permute.xlu0 %7195  ;;  %v7208_v39 = vunpack.i.h.bf16 %v10640_v57  ;;  %v7033_v7 = vunpack.i.h.bf16 %v9986_v28 }
 0x43e   :  { %v7198_v44 = vunpack.i.h.bf16 %v7196_v26  ;;  %v7197_v45 = vunpack.i.l.bf16 %v7196_v26 }
 0x43f   :  { %v10730_v47 = vpop.permute.xlu2 %7265  ;;  %v10737_v55 = vpop.permute.xlu1 %7220 }
 0x440   :  { %16665 = vst [vmem:[#allocation105_spill] sm:$0xff] %v10737_v55  ;;  %v3841_v40 = vsel %vm3839_vm10, %v3779_v14, %v7197_v45  ;;  %v3842_v55 = vsel %vm3839_vm10, %v3780_v20, %v7198_v44  ;;  %v671_v20 = vrot.slane %v670_v49, 1  ;;  %v2136_v14 = vsel %vm2079_vm9, %v2133_v61, %v2135_v9  ;;  %v16670_v9 = vld [vmem:[#allocation76_spill] sm:$0xff] }
 0x441   :  { %v3904_v32 = vsel %vm3901_vm11, %v3841_v40, %v7027_v52  ;;  %v3905_v26 = vsel %vm3901_vm11, %v3842_v55, %v7028_v6  ;;  %v2134_v52 = vsel %vm2079_vm9, %v2132_v27, %v2133_v61  ;;  %v7429_v27 = vpack.i.bf16 %v10243_v46, %v10233_v30 }
 0x442   :  { %v3969_v50 = vsel %vm3966_vm12, %v3904_v32, %v7202_v35  ;;  %v7032_v32 = vunpack.i.l.bf16 %v9986_v28 }
 0x443   :  { %v10751_v4 = vpop.f32.mrf.mxu2  ;;  %v4034_v40 = vsel %vm4031_vm13, %v3969_v50, %v7207_v34  ;;  %v672_v34 = vadd.f32 %v671_v20, %v670_v49  ;;  %v16672_v49 = vld [vmem:[#allocation150_spill] sm:$0xff] }
 0x444   :  { %6911 = vmatmul.msk.bf16.gmra.mxu2 %vm1092_vm2, %v4271_v60  ;;  %16668 = vst [vmem:[#allocation145_spill] sm:$0xff] %v10751_v4  ;;  %v3970_v60 = vsel %vm3966_vm12, %v3905_v26, %v7203_v54  ;;  %7440 = vrot.lane.b32.xlu0 %v16657_v21, %s8122_s21  ;;  %v4099_v26 = vsel %vm4096_vm14, %v4034_v40, %v7032_v32 }
 0x445   :  { %7445 = vrot.lane.b32.xlu2 %v10732_v58, %s8121_s20  ;;  %7425 = vrot.lane.b32.xlu1 %v10732_v58, %s8123_s24  ;;  %v4035_v57 = vsel %vm4031_vm13, %v3970_v60, %v7208_v39  ;;  %v7211_v55 = vpop.permute.xlu0 %7210  ;;  %v10773_v60 = vpack.i.bf16 %v2136_v14, %v2134_v52  ;;  %v10787_v20 = vmul.f32 0.001953125, %v672_v34 }
 0x446   :  { %v7213_v45 = vunpack.i.h.bf16 %v7211_v55  ;;  %v7212_v21 = vunpack.i.l.bf16 %v7211_v55  ;;  %v4100_v39 = vsel %vm4096_vm14, %v4035_v57, %v7033_v7  ;;  %v16671_v55 = vld [vmem:[#allocation75_spill] sm:$0xff]  ;;  %v7233_v57 = vunpack.i.h.bf16 %v10672_v2 }
 0x447   :  { %v10765_v6 = vpop.permute.xlu2 %7275  ;;  %v7226_v44 = vpop.permute.xlu1 %7225  ;;  %v7232_v7 = vunpack.i.l.bf16 %v10672_v2 }
 0x448   :  { %v7228_v54 = vunpack.i.h.bf16 %v7226_v44  ;;  %v7227_v35 = vunpack.i.l.bf16 %v7226_v44  ;;  %v4164_v28 = vsel %vm4161_vm15, %v4099_v26, %v7212_v21  ;;  %v4165_v50 = vsel %vm4161_vm15, %v4100_v39, %v7213_v45  ;;  %v16675_v45 = vld [vmem:[#allocation157_spill] sm:$0xff]  ;;  %v16676_v21 = vld [vmem:[#allocation158_spill] sm:$0xff] }
 0x449   :  { %v4246_v4 = vpack.c.bf16 %v4165_v50, %v4164_v28  ;;  %v4273_v52 = vpack.c.bf16 %v16676_v21, %v16675_v45  ;;  %v16677_v26 = vld [vmem:[#allocation81_spill] sm:$0xff] }
 0x44a   :  { %v3782_v61 = vsel %vm1092_vm2, %v16670_v9, %v7228_v54  ;;  %v3781_v40 = vsel %vm1092_vm2, %v16671_v55, %v7227_v35  ;;  %v7038_v39 = vunpack.i.h.bf16 %v16677_v26  ;;  %v7037_v34 = vunpack.i.l.bf16 %v16677_v26 }
 0x44b   :  { %v10775_v25 = vpop.f32.mrf.mxu2  ;;  %4467 = vmatmul.bf16.vlgmr.msra.gmra.mxu1 %v4246_v4  ;;  %v3844_v14 = vsel %vm3839_vm10, %v3782_v61, %v7233_v57  ;;  %v3843_v54 = vsel %vm3839_vm10, %v3781_v40, %v7232_v7  ;;  %v16678_v4 = vld [vmem:[#allocation2_spill] sm:$0xff]  ;;  %v7459_v57 = vpack.i.bf16 %v10233_v30, %v10230_v42  ;;  %v7243_v26 = vunpack.i.h.bf16 %v10697_v12 }
 0x44c   :  { %16669 = vst [vmem:[#allocation147_spill] sm:$0xff] %v10775_v25  ;;  %7450 = vrot.lane.b32.xlu0 %v16672_v49, %s8119_s18  ;;  %v10805_v50 = vsub.f32 %v16678_v4, %v10787_v20  ;;  %v3906_v61 = vsel %vm3901_vm11, %v3843_v54, %v7037_v34  ;;  %v3907_v40 = vsel %vm3901_vm11, %v3844_v14, %v7038_v39  ;;  %v7242_v4 = vunpack.i.l.bf16 %v10697_v12  ;;  %v16683_v14 = vld [vmem:[#allocation4_spill] sm:$0xff]  ;;  %v16686_v30 = vld [vmem:[#allocation130_spill] sm:$0xff] }
 0x44d   :  { %7455 = vrot.lane.b32.xlu2 %v10773_v60, %s8123_s24  ;;  %7430 = vrot.lane.b32.xlu1 %v7429_v27, %s8117_s3  ;;  %v10794_v44 = vpop.permute.xlu0 %7215  ;;  %v16680_v27 = vld [vmem:[#allocation3_spill] sm:$0xff]  ;;  %v10826_v54 = vsub.f32 %v16683_v14, %v10787_v20  ;;  %v7258_v12 = vunpack.i.h.bf16 %v10713_v1  ;;  %v7043_v14 = vunpack.i.h.bf16 %v10197_v8  ;;  %v2137_v42 = vrot.slane %v16686_v30, 1 }
 0x44e   :  { %16674 = vst [vmem:[#allocation123_spill] sm:$0xff] %v10794_v44  ;;  %v10809_v25 = vsub.f32 %v16680_v27, %v10787_v20  ;;  %v738_v39 = vmul.f32 %v10805_v50, %v10805_v50 }
 0x44f   :  { %v10792_v32 = vpop.permute.xlu2 %7280  ;;  %v7236_v35 = vpop.permute.xlu1 %7235  ;;  %16679 = vst [vmem:[#allocation76_spill] sm:$0xff] %v10805_v50  ;;  %v7042_v50 = vunpack.i.l.bf16 %v10197_v8 }
 0x450   :  { %16673 = vst [vmem:[#allocation127_spill] sm:$0xff] %v10792_v32  ;;  %v7238_v2 = vunpack.i.h.bf16 %v7236_v35  ;;  %v7237_v28 = vunpack.i.l.bf16 %v7236_v35  ;;  %v739_v34 = vmul.f32 %v10809_v25, %v10809_v25 }
 0x451   :  { %16681 = vst [vmem:[#allocation75_spill] sm:$0xff] %v10809_v25 }
 0x452   :  { %v3971_v7 = vsel %vm3966_vm12, %v3906_v61, %v7237_v28  ;;  %v3972_v35 = vsel %vm3966_vm12, %v3907_v40, %v7238_v2  ;;  %16684 = vst [vmem:[#allocation157_spill] sm:$0xff] %v10826_v54  ;;  %v16685_v2 = vmov 0.0  }
 0x453   :  { %v10833_v28 = vrot.slane %v16685_v2, 2  ;;  %v4036_v40 = vsel %vm4031_vm13, %v3971_v7, %v7242_v4  ;;  %v16688_v7 = vld [vmem:[#allocation148_spill] sm:$0xff] }
 0x454   :  { %6912 = vmatmul.msk.bf16.gmra.mxu2 %vm1092_vm2, %v4273_v52  ;;  %v10817_v52 = vpop.f32.mrf.mxu2  ;;  %7465 = vrot.lane.b32.xlu0 %v10732_v58, %s8120_s19  ;;  %v7257_v58 = vunpack.i.l.bf16 %v10713_v1  ;;  %v4101_v1 = vsel %vm4096_vm14, %v4036_v40, %v7042_v50  ;;  %v2140_v4 = vrot.slane %v16688_v7, 1  ;;  %v7047_v7 = vunpack.i.l.bf16 %v10210_v36 }
 0x455   :  { %16682 = vst [vmem:[#allocation150_spill] sm:$0xff] %v10817_v52  ;;  %7460 = vrot.lane.b32.xlu2 %v7459_v57, %s8116_s2  ;;  %7470 = vrot.lane.b32.xlu1 %v16672_v49, %s8122_s21  ;;  %v7261_v61 = vpop.permute.xlu0 %7260  ;;  %v4037_v57 = vsel %vm4031_vm13, %v3972_v35, %v7243_v26  ;;  %v16689_v35 = vld [vmem:[#allocation96_spill] sm:$0xff] }
 0x456   :  { %v7263_v52 = vunpack.i.h.bf16 %v7261_v61  ;;  %v7262_v32 = vunpack.i.l.bf16 %v7261_v61  ;;  %v4102_v59 = vsel %vm4096_vm14, %v4037_v57, %v7043_v14  ;;  %v3784_v26 = vsel %vm1092_vm2, %v16689_v35, %v7258_v12  ;;  %v16692_v12 = vld [vmem:[#allocation77_spill] sm:$0xff] }
 0x457   :  { %v10839_v27 = vpop.permute.xlu2 %7315  ;;  %v7246_v25 = vpop.permute.xlu1 %7245  ;;  %v3783_v8 = vsel %vm1092_vm2, %v16690_v18, %v7257_v58  ;;  %v7048_v14 = vunpack.i.h.bf16 %v10210_v36  ;;  %v10868_v18 = vpack.c.bf16 %v10833_v28, %v10833_v28  ;;  %v803_v36 = vsel %vm539_vm7, %v739_v34, 0.0 }
 0x458   :  { %v7248_v44 = vunpack.i.h.bf16 %v7246_v25  ;;  %v7247_v49 = vunpack.i.l.bf16 %v7246_v25  ;;  %v3846_v30 = vsel %vm3839_vm10, %v3784_v26, %v7263_v52  ;;  %v3845_v50 = vsel %vm3839_vm10, %v3783_v8, %v7262_v32 }
 0x459   :  { %16693 = vst [vmem:[#allocation81_spill] sm:$0xff] %v10868_v18  ;;  %v802_v52 = vsel %vm539_vm7, %v738_v39, 0.0  ;;  %v3909_v58 = vsel %vm3901_vm11, %v3846_v30, %v7048_v14  ;;  %v2139_v26 = vsel %vm2079_vm9, %v2137_v42, %v2138_v19  ;;  %v2141_v8 = vsel %vm2079_vm9, %v2138_v19, %v2140_v4  ;;  %v16697_v30 = vld [vmem:[#allocation6_spill] sm:$0xff] }
 0x45a   :  { %v4166_v61 = vsel %vm4161_vm15, %v4101_v1, %v7247_v49  ;;  %v4167_v25 = vsel %vm4161_vm15, %v4102_v59, %v7248_v44  ;;  %v16694_v59 = vld [vmem:[#allocation5_spill] sm:$0xff]  ;;  %v740_v44 = vmul.f32 %v10826_v54, %v10826_v54  ;;  %v3908_v49 = vsel %vm3901_vm11, %v3845_v50, %v7047_v7 }
 0x45b   :  { %v4248_v57 = vpack.c.bf16 %v4167_v25, %v4166_v61  ;;  %v10872_v32 = vsub.f32 %v16694_v59, %v10787_v20  ;;  %v7268_v61 = vunpack.i.h.bf16 %v10730_v47  ;;  %v7267_v39 = vunpack.i.l.bf16 %v10730_v47 }
 0x45c   :  { %v10858_v40 = vpop.f32.mrf.mxu2  ;;  %7475 = vrot.lane.b32.xlu0 %v10773_v60, %s8121_s20  ;;  %v10894_v50 = vsub.f32 %v16697_v30, %v10787_v20  ;;  %v7484_v47 = vpack.i.bf16 %v2141_v8, %v2139_v26  ;;  %v805_v59 = vsel %vm539_vm7, %v740_v44, 0.0  ;;  %v16699_v30 = vld [vmem:[#allocation151_spill] sm:$0xff] }
 0x45d   :  { %16691 = vst [vmem:[#allocation158_spill] sm:$0xff] %v10858_v40  ;;  %7495 = vrot.lane.b32.xlu2 %v16692_v12, %s8122_s21  ;;  %7480 = vrot.lane.b32.xlu1 %v16692_v12, %s8119_s18  ;;  %v7271_v35 = vpop.permute.xlu0 %7270  ;;  %v3973_v42 = vsel %vm3966_vm12, %v3908_v49, %v7267_v39  ;;  %v3974_v19 = vsel %vm3966_vm12, %v3909_v58, %v7268_v61  ;;  %v16700_v58 = vld [vmem:[#allocation7_spill] sm:$0xff]  ;;  %v7278_v61 = vunpack.i.h.bf16 %v10765_v6  ;;  %v7277_v39 = vunpack.i.l.bf16 %v10765_v6 }
 0x45e   :  { %16695 = vst [vmem:[#allocation2_spill] sm:$0xff] %v10872_v32  ;;  %4472 = vmatmul.bf16.gmra.mxu1 %v4248_v57  ;;  %v7273_v25 = vunpack.i.h.bf16 %v7271_v35  ;;  %v7272_v12 = vunpack.i.l.bf16 %v7271_v35  ;;  %v804_v57 = vadd.f32 %v803_v36, %v802_v52  ;;  %v741_v4 = vmul.f32 %v10872_v32, %v10872_v32 }
 0x45f   :  { %v10882_v1 = vpop.permute.xlu2 %7325  ;;  %v10888_v34 = vpop.permute.xlu1 %7250  ;;  %16698 = vst [vmem:[#allocation4_spill] sm:$0xff] %v10894_v50  ;;  %v7053_v52 = vunpack.i.h.bf16 %v10275_v5  ;;  %v7052_v36 = vunpack.i.l.bf16 %v10275_v5  ;;  %v10910_v49 = vsub.f32 %v16700_v58, %v10787_v20  ;;  %v742_v26 = vmul.f32 %v10894_v50, %v10894_v50 }
 0x460   :  { %16696 = vst [vmem:[#allocation3_spill] sm:$0xff] %v10888_v34  ;;  %v4038_v14 = vsel %vm4031_vm13, %v3973_v42, %v7272_v12  ;;  %v4039_v7 = vsel %vm4031_vm13, %v3974_v19, %v7273_v25  ;;  %v806_v35 = vadd.f32 %v805_v59, %v804_v57  ;;  %v807_v57 = vsel %vm539_vm7, %v741_v4, 0.0  ;;  %v16705_v4 = vld [vmem:[#allocation104_spill] sm:$0xff] }
 0x461   :  { %16701 = vst [vmem:[#allocation148_spill] sm:$0xff] %v10910_v49  ;;  %v4103_v5 = vsel %vm4096_vm14, %v4038_v14, %v7052_v36  ;;  %v4104_v44 = vsel %vm4096_vm14, %v4039_v7, %v7053_v52  ;;  %v743_v14 = vmul.f32 %v10910_v49, %v10910_v49  ;;  %v809_v7 = vsel %vm539_vm7, %v742_v26, 0.0  ;;  %v16703_v52 = vld [vmem:[#allocation133_spill] sm:$0xff]  ;;  %v16704_v36 = vld [vmem:[#allocation110_spill] sm:$0xff] }
 0x462   :  { %v808_v58 = vadd.f32 %v807_v57, %v806_v35  ;;  %v4168_v32 = vsel %vm4161_vm15, %v4103_v5, %v7277_v39  ;;  %v2142_v6 = vrot.slane %v16703_v52, 1  ;;  %v2143_v50 = vrot.slane %v16704_v36, 1  ;;  %v16710_v57 = vld [vmem:[#allocation9_spill] sm:$0xff]  ;;  %v16718_v36 = vld [vmem:[#allocation134_spill] sm:$0xff] }
 0x463   :  { %v2145_v40 = vrot.slane %v16705_v4, 1 }
 0x464   :  { %6913 = vmatmul.msk.bf16.gmra.mxu2 %vm1092_vm2, %v10868_v18  ;;  %7485 = vrot.lane.b32.xlu0 %v7484_v47, %s8123_s24  ;;  %v10914_v8 = vpop.f32.mrf.mxu2  ;;  %v16706_v18 = vld [vmem:[#allocation78_spill] sm:$0xff]  ;;  %v810_v26 = vadd.f32 %v809_v7, %v808_v58  ;;  %v16712_v7 = vld [vmem:[#allocation161_spill] sm:$0xff] }
 0x465   :  { %7505 = vrot.lane.b32.xlu2 %v16699_v30, %s8119_s18  ;;  %16702 = vst [vmem:[#allocation96_spill] sm:$0xff] %v10914_v8  ;;  %7490 = vrot.lane.b32.xlu1 %v10773_v60, %s8120_s19  ;;  %v7286_v12 = vpop.permute.xlu0 %7285  ;;  %v4169_v60 = vsel %vm4161_vm15, %v4104_v44, %v7278_v61  ;;  %v16708_v61 = vld [vmem:[#allocation8_spill] sm:$0xff] }
 0x466   :  { %v7288_v19 = vunpack.i.h.bf16 %v7286_v12  ;;  %v7287_v59 = vunpack.i.l.bf16 %v7286_v12  ;;  %v16707_v12 = vld [vmem:[#allocation79_spill] sm:$0xff]  ;;  %v4250_v44 = vpack.c.bf16 %v4169_v60, %v4168_v32  ;;  %v10939_v39 = vsub.f32 %v16708_v61, %v10787_v20  ;;  %v16714_v61 = vld [vmem:[#allocation156_spill] sm:$0xff] }
 0x467   :  { %v10922_v25 = vpop.permute.xlu2 %7335  ;;  %v7291_v42 = vpop.permute.xlu1 %7290  ;;  %v2144_v32 = vsel %vm2079_vm9, %v2142_v6, %v2143_v50 }
 0x468   :  { %v7293_v54 = vunpack.i.h.bf16 %v7291_v42  ;;  %v7292_v8 = vunpack.i.l.bf16 %v7291_v42  ;;  %v3786_v35 = vsel %vm1092_vm2, %v16706_v18, %v7288_v19  ;;  %v3785_v5 = vsel %vm1092_vm2, %v16707_v12, %v7287_v59  ;;  %16709 = vst [vmem:[#allocation95_spill] sm:$0xff] %v10939_v39 }
 0x469   :  { %v10946_v42 = vsub.f32 %v16710_v57, %v10787_v20  ;;  %v811_v18 = vsel %vm539_vm7, %v743_v14, 0.0  ;;  %v2146_v12 = vsel %vm2079_vm9, %v2143_v50, %v2145_v40  ;;  %v7058_v57 = vunpack.i.h.bf16 %v16714_v61 }
 0x46a   :  { %v3848_v19 = vsel %vm3839_vm10, %v3786_v35, %v7293_v54  ;;  %v3847_v59 = vsel %vm3839_vm10, %v3785_v5, %v7292_v8  ;;  %v7057_v14 = vunpack.i.l.bf16 %v16714_v61  ;;  %v16716_v54 = vld [vmem:[#allocation10_spill] sm:$0xff]  ;;  %v744_v35 = vmul.f32 %v10939_v39, %v10939_v39 }
 0x46b   :  { %16711 = vst [vmem:[#allocation77_spill] sm:$0xff] %v10946_v42  ;;  %v10964_v8 = vsub.f32 %v16716_v54, %v10787_v20  ;;  %v812_v5 = vadd.f32 %v811_v18, %v810_v26  ;;  %v3911_v61 = vsel %vm3901_vm11, %v3848_v19, %v7058_v57  ;;  %v10975_v52 = vpack.i.bf16 %v2146_v12, %v2144_v32  ;;  %v16719_v26 = vld [vmem:[#allocation113_spill] sm:$0xff]  ;;  %v16721_v19 = vld [vmem:[#allocation154_spill] sm:$0xff] }
 0x46c   :  { %7520 = vrot.lane.b32.xlu0 %v16699_v30, %s8122_s21  ;;  %v16713_v30 = vld [vmem:[#allocation162_spill] sm:$0xff]  ;;  %v3910_v34 = vsel %vm3901_vm11, %v3847_v59, %v7057_v14  ;;  %v2147_v39 = vrot.slane %v16718_v36, 1  ;;  %v2148_v18 = vrot.slane %v16719_v26, 1 }
 0x46d   :  { %7515 = vrot.lane.b32.xlu2 %v7484_v47, %s8120_s19  ;;  %7500 = vrot.lane.b32.xlu1 %v7484_v47, %s8121_s20  ;;  %v7296_v60 = vpop.permute.xlu0 %7295  ;;  %v4277_v4 = vpack.c.bf16 %v16713_v30, %v16712_v7  ;;  %v10960_v47 = vpop.f32.mrf.mxu2  ;;  %16717 = vst [vmem:[#allocation6_spill] sm:$0xff] %v10964_v8  ;;  %v746_v57 = vmul.f32 %v10964_v8, %v10964_v8 }
 0x46e   :  { %4477 = vmatmul.bf16.gmra.mxu1 %v4250_v44  ;;  %16715 = vst [vmem:[#allocation5_spill] sm:$0xff] %v10960_v47  ;;  %v7298_v6 = vunpack.i.h.bf16 %v7296_v60  ;;  %v7297_v49 = vunpack.i.l.bf16 %v7296_v60  ;;  %v745_v47 = vmul.f32 %v10946_v42, %v10946_v42  ;;  %v2149_v36 = vsel %vm2079_vm9, %v2147_v39, %v2148_v18 }
 0x46f   :  { %v10953_v58 = vpop.permute.xlu2 %7345  ;;  %v7301_v44 = vpop.permute.xlu1 %7300  ;;  %v7544_v39 = vpack.i.bf16 %v10246_v51, %v10243_v46 }
 0x470   :  { %v7303_v40 = vunpack.i.h.bf16 %v7301_v44  ;;  %v7302_v50 = vunpack.i.l.bf16 %v7301_v44  ;;  %v3975_v60 = vsel %vm3966_vm12, %v3910_v34, %v7297_v49  ;;  %v3976_v54 = vsel %vm3966_vm12, %v3911_v61, %v7298_v6  ;;  %v16722_v34 = vld [vmem:[#allocation11_spill] sm:$0xff]  ;;  %v16724_v6 = vld [vmem:[#allocation160_spill] sm:$0xff] }
 0x471   :  { %v813_v44 = vsel %vm539_vm7, %v744_v35, 0.0  ;;  %v10987_v49 = vsub.f32 %v16722_v34, %v10787_v20  ;;  %v815_v14 = vsel %vm539_vm7, %v745_v47, 0.0  ;;  %v7063_v35 = vunpack.i.h.bf16 %v16724_v6 }
 0x472   :  { %v814_v32 = vadd.f32 %v813_v44, %v812_v5  ;;  %v4040_v59 = vsel %vm4031_vm13, %v3975_v60, %v7302_v50  ;;  %v4041_v12 = vsel %vm4031_vm13, %v3976_v54, %v7303_v40  ;;  %v7062_v61 = vunpack.i.l.bf16 %v16724_v6 }
 0x473   :  { %16723 = vst [vmem:[#allocation151_spill] sm:$0xff] %v10987_v49  ;;  %v4106_v47 = vsel %vm4096_vm14, %v4041_v12, %v7063_v35  ;;  %v16728_v12 = vld [vmem:[#allocation100_spill] sm:$0xff] }
 0x474   :  { %6914 = vmatmul.msk.bf16.gmra.mxu2 %vm1092_vm2, %v4277_v4  ;;  %v16720_v4 = vld [vmem:[#allocation108_spill] sm:$0xff]  ;;  %7530 = vrot.lane.b32.xlu0 %v16721_v19, %s8119_s18  ;;  %v4105_v54 = vsel %vm4096_vm14, %v4040_v59, %v7062_v61  ;;  %v816_v8 = vadd.f32 %v815_v14, %v814_v32  ;;  %v747_v59 = vmul.f32 %v10987_v49, %v10987_v49  ;;  %v817_v32 = vsel %vm539_vm7, %v746_v57, 0.0  ;;  %v16729_v14 = vld [vmem:[#allocation101_spill] sm:$0xff] }
 0x475   :  { %v2150_v37 = vrot.slane %v16720_v4, 1  ;;  %7525 = vrot.lane.b32.xlu2 %v10975_v52, %s8121_s20  ;;  %7510 = vrot.lane.b32.xlu1 %v10975_v52, %s8123_s24  ;;  %v7306_v34 = vpop.permute.xlu0 %7305  ;;  %v11004_v26 = vpop.f32.mrf.mxu2  ;;  %v7317_v57 = vunpack.i.l.bf16 %v10839_v27  ;;  %v7327_v49 = vunpack.i.l.bf16 %v10882_v1 }
 0x476   :  { %v7308_v44 = vunpack.i.h.bf16 %v7306_v34  ;;  %v7307_v42 = vunpack.i.l.bf16 %v7306_v34  ;;  %16725 = vst [vmem:[#allocation7_spill] sm:$0xff] %v11004_v26  ;;  %v818_v61 = vadd.f32 %v817_v32, %v816_v8  ;;  %v7078_v26 = vunpack.i.h.bf16 %v10339_v63 }
 0x477   :  { %v10998_v4 = vpop.permute.xlu2 %7355  ;;  %v7311_v5 = vpop.permute.xlu1 %7310  ;;  %v2151_v50 = vsel %vm2079_vm9, %v2148_v18, %v2150_v37  ;;  %v16726_v37 = vld [vmem:[#allocation12_spill] sm:$0xff] }
 0x478   :  { %v7313_v40 = vunpack.i.h.bf16 %v7311_v5  ;;  %v7312_v60 = vunpack.i.l.bf16 %v7311_v5  ;;  %v4170_v6 = vsel %vm4161_vm15, %v4105_v54, %v7307_v42  ;;  %v4171_v41 = vsel %vm4161_vm15, %v4106_v47, %v7308_v44 }
 0x479   :  { %v11008_v48 = vpack.i.bf16 %v2151_v50, %v2149_v36  ;;  %v4252_v34 = vpack.c.bf16 %v4171_v41, %v4170_v6  ;;  %v11014_v18 = vsub.f32 %v16726_v37, %v10787_v20  ;;  %v16730_v41 = vld [vmem:[#allocation13_spill] sm:$0xff]  ;;  %v7318_v5 = vunpack.i.h.bf16 %v10839_v27 }
 0x47a   :  { %v3788_v42 = vsel %vm1092_vm2, %v16728_v12, %v7313_v40  ;;  %v3787_v36 = vsel %vm1092_vm2, %v16729_v14, %v7312_v60  ;;  %v11028_v35 = vsub.f32 %v16730_v41, %v10787_v20  ;;  %v16733_v40 = vld [vmem:[#allocation93_spill] sm:$0xff]  ;;  %v16734_v60 = vld [vmem:[#allocation82_spill] sm:$0xff]  ;;  %v819_v6 = vsel %vm539_vm7, %v747_v59, 0.0 }
 0x47b   :  { %16727 = vst [vmem:[#allocation104_spill] sm:$0xff] %v11014_v18  ;;  %v4279_v54 = vpack.c.bf16 %v16734_v60, %v16733_v40  ;;  %v748_v47 = vmul.f32 %v11014_v18, %v11014_v18  ;;  %v3850_v8 = vsel %vm3839_vm10, %v3788_v42, %v7318_v5  ;;  %v7068_v37 = vunpack.i.h.bf16 %v10268_v53  ;;  %v16735_v12 = vld [vmem:[#allocation14_spill] sm:$0xff] }
 0x47c   :  { %7545 = vrot.lane.b32.xlu0 %v7544_v39, %s8116_s2  ;;  %16731 = vst [vmem:[#allocation78_spill] sm:$0xff] %v11028_v35  ;;  %v3849_v39 = vsel %vm3839_vm10, %v3787_v36, %v7317_v57  ;;  %v11048_v14 = vsub.f32 %v16735_v12, %v10787_v20  ;;  %v749_v59 = vmul.f32 %v11028_v35, %v11028_v35  ;;  %v7328_v12 = vunpack.i.h.bf16 %v10882_v1 }
 0x47d   :  { %7535 = vrot.lane.b32.xlu2 %v11008_v48, %s8123_s24  ;;  %7555 = vrot.lane.b32.xlu1 %v16721_v19, %s8122_s21  ;;  %v7341_v50 = vpop.permute.xlu0 %7340  ;;  %v7067_v19 = vunpack.i.l.bf16 %v10268_v53  ;;  %v820_v41 = vadd.f32 %v819_v6, %v818_v61  ;;  %v3913_v36 = vsel %vm3901_vm11, %v3850_v8, %v7068_v37  ;;  %v7539_v5 = vpack.i.bf16 %v10282_v22, %v10246_v51  ;;  %v11056_v53 = vpop.f32.mrf.mxu2  ;;  %v16738_v61 = vld [vmem:[#allocation15_spill] sm:$0xff] }
 0x47e   :  { %4482 = vmatmul.bf16.gmra.mxu1 %v4252_v34  ;;  %16736 = vst [vmem:[#allocation8_spill] sm:$0xff] %v11048_v14  ;;  %v11068_v6 = vsub.f32 %v16738_v61, %v10787_v20  ;;  %v750_v8 = vmul.f32 %v11048_v14, %v11048_v14  ;;  %v823_v37 = vsel %vm539_vm7, %v749_v59, 0.0  ;;  %v7338_v1 = vunpack.i.h.bf16 %v10922_v25 }
 0x47f   :  { %v11034_v44 = vpop.permute.xlu2 %7360  ;;  %v7321_v27 = vpop.permute.xlu1 %7320  ;;  %v3912_v42 = vsel %vm3901_vm11, %v3849_v39, %v7067_v19  ;;  %16737 = vst [vmem:[#allocation9_spill] sm:$0xff] %v11056_v53  ;;  %v7337_v19 = vunpack.i.l.bf16 %v10922_v25  ;;  %v7342_v59 = vunpack.i.l.bf16 %v7341_v50  ;;  %v7579_v18 = vpack.i.bf16 %v16666_v43, %v16667_v15  ;;  %v16741_v53 = vld [vmem:[#allocation137_spill] sm:$0xff] }
 0x480   :  { %16732 = vst [vmem:[#allocation79_spill] sm:$0xff] %v11034_v44  ;;  %v7323_v34 = vunpack.i.h.bf16 %v7321_v27  ;;  %v7322_v32 = vunpack.i.l.bf16 %v7321_v27  ;;  %v821_v27 = vsel %vm539_vm7, %v748_v47, 0.0  ;;  %v16740_v47 = vld [vmem:[#allocation155_spill] sm:$0xff]  ;;  %v7077_v44 = vunpack.i.l.bf16 %v10339_v63 }
 0x481   :  { %16739 = vst [vmem:[#allocation161_spill] sm:$0xff] %v11068_v6  ;;  %v822_v39 = vadd.f32 %v821_v27, %v820_v41  ;;  %v7072_v41 = vunpack.i.l.bf16 %v10333_v33  ;;  %v16747_v63 = vld [vmem:[#allocation91_spill] sm:$0xff] }
 0x482   :  { %v3977_v57 = vsel %vm3966_vm12, %v3912_v42, %v7322_v32 }
 0x483   :  { %v4042_v32 = vsel %vm4031_vm13, %v3977_v57, %v7327_v49  ;;  %v2152_v49 = vrot.slane %v16741_v53, 1  ;;  %v16742_v57 = vld [vmem:[#allocation116_spill] sm:$0xff] }
 0x484   :  { %6915 = vmatmul.msk.bf16.gmra.mxu2 %vm1092_vm2, %v4279_v54  ;;  %v3978_v54 = vsel %vm3966_vm12, %v3913_v36, %v7323_v34  ;;  %7550 = vrot.lane.b32.xlu0 %v10975_v52, %s8120_s19  ;;  %v7073_v36 = vunpack.i.h.bf16 %v10333_v33  ;;  %v4107_v25 = vsel %vm4096_vm14, %v4042_v32, %v7072_v41  ;;  %v3789_v33 = vsel %vm1092_vm2, %v16562_v13, %v7337_v19 }
 0x485   :  { %7540 = vrot.lane.b32.xlu2 %v7539_v5, %s8117_s3  ;;  %7565 = vrot.lane.b32.xlu1 %v16740_v47, %s8119_s18  ;;  %v4043_v42 = vsel %vm4031_vm13, %v3978_v54, %v7328_v12  ;;  %v7343_v5 = vunpack.i.h.bf16 %v7341_v50  ;;  %v2153_v54 = vrot.slane %v16742_v57, 1  ;;  %v3790_v12 = vsel %vm1092_vm2, %v9465_v23, %v7338_v1  ;;  %v16744_v23 = vld [vmem:[#allocation16_spill] sm:$0xff] }
 0x486   :  { %v7351_v52 = vpop.permute.xlu0 %7350  ;;  %v4108_v35 = vsel %vm4096_vm14, %v4043_v42, %v7073_v36  ;;  %v3851_v43 = vsel %vm3839_vm10, %v3789_v33, %v7342_v59  ;;  %v16743_v42 = vld [vmem:[#allocation109_spill] sm:$0xff]  ;;  %v824_v41 = vadd.f32 %v823_v37, %v822_v39  ;;  %v11106_v13 = vsub.f32 %v16744_v23, %v10787_v20  ;;  %v11111_v39 = vpop.f32.mrf.mxu2  ;;  %v16748_v37 = vld [vmem:[#allocation83_spill] sm:$0xff] }
 0x487   :  { %v11077_v34 = vpop.permute.xlu2 %7410  ;;  %v7331_v27 = vpop.permute.xlu1 %7330  ;;  %v3852_v15 = vsel %vm3839_vm10, %v3790_v12, %v7343_v5  ;;  %v2155_v36 = vrot.slane %v16743_v42, 1  ;;  %16746 = vst [vmem:[#allocation156_spill] sm:$0xff] %v11111_v39  ;;  %v3914_v19 = vsel %vm3901_vm11, %v3851_v43, %v7077_v44  ;;  %v7353_v5 = vunpack.i.h.bf16 %v7351_v52  ;;  %v16752_v23 = vld [vmem:[#allocation119_spill] sm:$0xff] }
 0x488   :  { %v7333_v61 = vunpack.i.h.bf16 %v7331_v27  ;;  %v7332_v14 = vunpack.i.l.bf16 %v7331_v27  ;;  %16745 = vst [vmem:[#allocation162_spill] sm:$0xff] %v11106_v13  ;;  %v3915_v1 = vsel %vm3901_vm11, %v3852_v15, %v7078_v26  ;;  %v7352_v59 = vunpack.i.l.bf16 %v7351_v52  ;;  %v16750_v26 = vld [vmem:[#allocation17_spill] sm:$0xff] }
 0x489   :  { %v7347_v12 = vunpack.i.l.bf16 %v10953_v58  ;;  %v11129_v44 = vsub.f32 %v16750_v26, %v10787_v20  ;;  %v752_v43 = vmul.f32 %v11106_v13, %v11106_v13  ;;  %v7083_v42 = vunpack.i.h.bf16 %v10400_v3  ;;  %v16771_v13 = vld [vmem:[#allocation144_spill] sm:$0xff] }
 0x48a   :  { %v4172_v50 = vsel %vm4161_vm15, %v4107_v25, %v7332_v14  ;;  %v4173_v27 = vsel %vm4161_vm15, %v4108_v35, %v7333_v61  ;;  %v751_v35 = vmul.f32 %v11068_v6, %v11068_v6  ;;  %v825_v14 = vsel %vm539_vm7, %v750_v8, 0.0 }
 0x48b   :  { %v4254_v32 = vpack.c.bf16 %v4173_v27, %v4172_v50  ;;  %v7348_v8 = vunpack.i.h.bf16 %v10953_v58  ;;  %v2156_v50 = vsel %vm2079_vm9, %v2153_v54, %v2155_v36  ;;  %v826_v27 = vadd.f32 %v825_v14, %v824_v41  ;;  %16751 = vst [vmem:[#allocation108_spill] sm:$0xff] %v11129_v44  ;;  %v16753_v14 = vld [vmem:[#allocation18_spill] sm:$0xff] }
 0x48c   :  { %7560 = vrot.lane.b32.xlu0 %v11008_v48, %s8121_s20  ;;  %v3979_v52 = vsel %vm3966_vm12, %v3914_v19, %v7347_v12  ;;  %v7082_v36 = vunpack.i.l.bf16 %v10400_v3  ;;  %v7358_v19 = vunpack.i.h.bf16 %v10998_v4  ;;  %v829_v12 = vsel %vm539_vm7, %v752_v43, 0.0 }
 0x48d   :  { %7590 = vrot.lane.b32.xlu2 %v16740_v47, %s8122_s21  ;;  %7580 = vrot.lane.b32.xlu1 %v7579_v18, %s8116_s2  ;;  %v4281_v47 = vpack.c.bf16 %v16748_v37, %v16747_v63  ;;  %v2154_v18 = vsel %vm2079_vm9, %v2152_v49, %v2153_v54  ;;  %v3980_v15 = vsel %vm3966_vm12, %v3915_v1, %v7348_v8  ;;  %v827_v54 = vsel %vm539_vm7, %v751_v35, 0.0 }
 0x48e   :  { %4487 = vmatmul.bf16.gmra.mxu1 %v4254_v32  ;;  %v11120_v25 = vpop.permute.xlu0 %7365  ;;  %v7569_v58 = vpack.i.bf16 %v2156_v50, %v2154_v18  ;;  %v4044_v32 = vsel %vm4031_vm13, %v3979_v52, %v7352_v59  ;;  %v4045_v49 = vsel %vm4031_vm13, %v3980_v15, %v7353_v5  ;;  %v828_v41 = vadd.f32 %v827_v54, %v826_v27  ;;  %v11158_v18 = vpop.f32.mrf.mxu2 }
 0x48f   :  { %v11118_v61 = vpop.permute.xlu2 %7420  ;;  %16749 = vst [vmem:[#allocation10_spill] sm:$0xff] %v11120_v25  ;;  %v7376_v33 = vpop.permute.xlu1 %7375  ;;  %v753_v1 = vmul.f32 %v11129_v44, %v11129_v44  ;;  %v4109_v35 = vsel %vm4096_vm14, %v4044_v32, %v7082_v36  ;;  %v4110_v3 = vsel %vm4096_vm14, %v4045_v49, %v7083_v42  ;;  %v7357_v5 = vunpack.i.l.bf16 %v10998_v4  ;;  %v16756_v32 = vld [vmem:[#allocation19_spill] sm:$0xff]  ;;  %v16758_v42 = vld [vmem:[#allocation142_spill] sm:$0xff] }
 0x490   :  { %16755 = vst [vmem:[#allocation11_spill] sm:$0xff] %v11158_v18  ;;  %v4175_v15 = vsel %vm4161_vm15, %v4110_v3, %v7358_v19  ;;  %v11166_v49 = vsub.f32 %v16756_v32, %v10787_v20  ;;  %v7574_v54 = vpack.i.bf16 %v16671_v55, %v10285_v24  ;;  %v2389_v36 = vrot.slane %v16758_v42, 1 }
 0x491   :  { %v4174_v52 = vsel %vm4161_vm15, %v4109_v35, %v7357_v5  ;;  %v831_v43 = vsel %vm539_vm7, %v753_v1, 0.0  ;;  %v7378_v44 = vunpack.i.h.bf16 %v7376_v33  ;;  %v7377_v55 = vunpack.i.l.bf16 %v7376_v33 }
 0x492   :  { %16757 = vst [vmem:[#allocation160_spill] sm:$0xff] %v11166_v49  ;;  %v4256_v5 = vpack.c.bf16 %v4175_v15, %v4174_v52 }
 0x494   :  { %6916 = vmatmul.msk.bf16.gmra.mxu2 %vm1092_vm2, %v4281_v47  ;;  %7570 = vrot.lane.b32.xlu0 %v7569_v58, %s8123_s24  ;;  %v11145_v47 = vsub.f32 %v16753_v14, %v10787_v20  ;;  %v16759_v14 = vld [vmem:[#allocation122_spill] sm:$0xff] }
 0x495   :  { %7600 = vrot.lane.b32.xlu2 %v16752_v23, %s8119_s18  ;;  %7585 = vrot.lane.b32.xlu1 %v11008_v48, %s8120_s19  ;;  %v830_v48 = vadd.f32 %v829_v12, %v828_v41  ;;  %v2390_v41 = vrot.slane %v16759_v14, 1  ;;  %v16761_v12 = vld [vmem:[#allocation20_spill] sm:$0xff] }
 0x496   :  { %16754 = vst [vmem:[#allocation154_spill] sm:$0xff] %v11145_v47  ;;  %v7371_v8 = vpop.permute.xlu0 %7370  ;;  %v754_v4 = vmul.f32 %v11145_v47, %v11145_v47  ;;  %v11182_v32 = vsub.f32 %v16761_v12, %v10787_v20 }
 0x497   :  { %v11155_v59 = vpop.permute.xlu2 %7435  ;;  %v11160_v50 = vpop.permute.xlu1 %7385  ;;  %v7373_v27 = vunpack.i.h.bf16 %v7371_v8  ;;  %v7372_v26 = vunpack.i.l.bf16 %v7371_v8  ;;  %v16760_v8 = vld [vmem:[#allocation102_spill] sm:$0xff]  ;;  %v832_v1 = vadd.f32 %v831_v43, %v830_v48  ;;  %v2391_v33 = vsel %vm2079_vm9, %v2389_v36, %v2390_v41  ;;  %v16764_v43 = vld [vmem:[#allocation117_spill] sm:$0xff] }
 0x498   :  { %v2392_v35 = vrot.slane %v16760_v8, 1  ;;  %16762 = vst [vmem:[#allocation12_spill] sm:$0xff] %v11182_v32  ;;  %v833_v42 = vsel %vm539_vm7, %v754_v4, 0.0  ;;  %v7087_v4 = vunpack.i.l.bf16 %v16764_v43  ;;  %v756_v36 = vmul.f32 %v11182_v32, %v11182_v32 }
 0x499   :  { %v3792_v3 = vsel %vm1092_vm2, %v9528_v38, %v7373_v27  ;;  %v3791_v19 = vsel %vm1092_vm2, %v9536_v17, %v7372_v26  ;;  %v16763_v38 = vld [vmem:[#allocation86_spill] sm:$0xff]  ;;  %v2310_v32 = vrot.slane %v16771_v13, 2 }
 0x49a   :  { %v4283_v17 = vpack.c.bf16 %v10224_v16, %v16763_v38  ;;  %v3854_v27 = vsel %vm3839_vm10, %v3792_v3, %v7378_v44  ;;  %v3853_v26 = vsel %vm3839_vm10, %v3791_v19, %v7377_v55  ;;  %v2393_v15 = vsel %vm2079_vm9, %v2390_v41, %v2392_v35  ;;  %v11209_v41 = vpop.f32.mrf.mxu2  ;;  %v16769_v55 = vld [vmem:[#allocation114_spill] sm:$0xff] }
 0x49b   :  { %v755_v3 = vmul.f32 %v11166_v49, %v11166_v49  ;;  %v834_v19 = vadd.f32 %v833_v42, %v832_v1  ;;  %16768 = vst [vmem:[#allocation13_spill] sm:$0xff] %v11209_v41  ;;  %v3916_v35 = vsel %vm3901_vm11, %v3853_v26, %v7087_v4  ;;  %v7619_v6 = vpack.i.bf16 %v2393_v15, %v2391_v33  ;;  %v16773_v26 = vld [vmem:[#allocation22_spill] sm:$0xff] }
 0x49c   :  { %7575 = vrot.lane.b32.xlu0 %v7574_v54, %s8117_s3  ;;  %v7088_v54 = vunpack.i.h.bf16 %v16764_v43  ;;  %v16770_v43 = vld [vmem:[#allocation118_spill] sm:$0xff]  ;;  %v7388_v1 = vunpack.i.h.bf16 %v11160_v50  ;;  %v7387_v42 = vunpack.i.l.bf16 %v11160_v50  ;;  %v837_v15 = vsel %vm539_vm7, %v756_v36, 0.0 }
 0x49d   :  { %7610 = vrot.lane.b32.xlu2 %v7569_v58, %s8120_s19  ;;  %7595 = vrot.lane.b32.xlu1 %v7569_v58, %s8121_s20  ;;  %v835_v4 = vsel %vm539_vm7, %v755_v3, 0.0 }
 0x49e   :  { %4492 = vmatmul.bf16.gmra.mxu1 %v4256_v5  ;;  %v7381_v48 = vpop.permute.xlu0 %7380  ;;  %v16766_v5 = vld [vmem:[#allocation21_spill] sm:$0xff]  ;;  %v3917_v12 = vsel %vm3901_vm11, %v3854_v27, %v7088_v54  ;;  %v11223_v27 = vsub.f32 %v16773_v26, %v10787_v20  ;;  %v836_v33 = vadd.f32 %v835_v4, %v834_v19 }
 0x49f   :  { %v11192_v52 = vpop.permute.xlu2 %7445  ;;  %v11198_v58 = vpop.permute.xlu1 %7400  ;;  %v7383_v14 = vunpack.i.h.bf16 %v7381_v48  ;;  %v7382_v8 = vunpack.i.l.bf16 %v7381_v48  ;;  %v11202_v44 = vsub.f32 %v16766_v5, %v10787_v20  ;;  %v2162_v48 = vrot.slane %v16769_v55, 1 }
 0x4a0   :  { %16765 = vst [vmem:[#allocation100_spill] sm:$0xff] %v11198_v58  ;;  %v11240_v5 = vrot.slane %v16685_v2, 1  ;;  %v838_v18 = vadd.f32 %v837_v15, %v836_v33 }
 0x4a1   :  { %16767 = vst [vmem:[#allocation101_spill] sm:$0xff] %v11202_v44  ;;  %v3981_v47 = vsel %vm3966_vm12, %v3916_v35, %v7382_v8  ;;  %v3982_v49 = vsel %vm3966_vm12, %v3917_v12, %v7383_v14  ;;  %v757_v54 = vmul.f32 %v11202_v44, %v11202_v44  ;;  %v16775_v8 = vld [vmem:[#allocation85_spill] sm:$0xff] }
 0x4a2   :  { %16774 = vst [vmem:[#allocation93_spill] sm:$0xff] %v11223_v27  ;;  %v4046_v50 = vsel %vm4031_vm13, %v3981_v47, %v7387_v42  ;;  %v4047_v14 = vsel %vm4031_vm13, %v3982_v49, %v7388_v1  ;;  %v7093_v35 = vunpack.i.h.bf16 %v16775_v8  ;;  %v7092_v12 = vunpack.i.l.bf16 %v16775_v8  ;;  %v16777_v1 = vld [vmem:[#allocation140_spill] sm:$0xff]  ;;  %v11264_v58 = vpop.f32.mrf.mxu2 }
 0x4a3   :  { %v11250_v42 = vsel %vm1763_vm6, %v16777_v1, 0.0  ;;  %16780 = vst [vmem:[#allocation14_spill] sm:$0xff] %v11264_v58 }
 0x4a4   :  { %6917 = vmatmul.msk.bf16.gmra.mxu2 %vm1092_vm2, %v4283_v17  ;;  %v16772_v17 = vld [vmem:[#allocation143_spill] sm:$0xff]  ;;  %7615 = vrot.lane.b32.xlu0 %v16752_v23, %s8122_s21  ;;  %v16776_v23 = vrot.slane %v16770_v43, 1  ;;  %v4111_v44 = vsel %vm4096_vm14, %v4046_v50, %v7092_v12  ;;  %v4112_v2 = vsel %vm4096_vm14, %v4047_v14, %v7093_v35  ;;  %v2313_v33 = vrot.slane %v11250_v42, 2 }
 0x4a5   :  { %v2311_v41 = vrot.slane %v16772_v17, 2  ;;  %7620 = vrot.lane.b32.xlu2 %v7619_v6, %s8121_s20  ;;  %7605 = vrot.lane.b32.xlu1 %v7619_v6, %s8123_s24  ;;  %v2158_v15 = vrot.slane %v16772_v17, 1  ;;  %v839_v14 = vsel %vm539_vm7, %v757_v54, 0.0 }
 0x4a6   :  { %v7391_v3 = vpop.permute.xlu0 %7390  ;;  %v11245_v36 = vsel %vm2079_vm9, %v2162_v48, %v16776_v23  ;;  %v16778_v23 = vld [vmem:[#allocation23_spill] sm:$0xff] }
 0x4a7   :  { %v11237_v26 = vpop.permute.xlu2 %7455  ;;  %v7406_v6 = vpop.permute.xlu1 %7405  ;;  %v7393_v19 = vunpack.i.h.bf16 %v7391_v3  ;;  %v7392_v47 = vunpack.i.l.bf16 %v7391_v3  ;;  %v2312_v49 = vsel %vm2232_vm8, %v2310_v32, %v2311_v41  ;;  %v11258_v3 = vsub.f32 %v16778_v23, %v10787_v20  ;;  %v16785_v23 = vld [vmem:[#allocation189_spill] sm:$0xff] }
 0x4a8   :  { %v7408_v4 = vunpack.i.h.bf16 %v7406_v6  ;;  %v7407_v8 = vunpack.i.l.bf16 %v7406_v6  ;;  %v758_v32 = vmul.f32 %v11223_v27, %v11223_v27  ;;  %v7629_v1 = vpack.i.bf16 %v11245_v36, %v11240_v5 }
 0x4a9   :  { %v4176_v39 = vsel %vm4161_vm15, %v4111_v44, %v7392_v47  ;;  %v4177_v48 = vsel %vm4161_vm15, %v4112_v2, %v7393_v19  ;;  %16779 = vst [vmem:[#allocation82_spill] sm:$0xff] %v11258_v3  ;;  %v7644_v50 = vpack.i.bf16 %v2312_v49, %v10833_v28  ;;  %v2157_v44 = vrot.slane %v16771_v13, 1 }
 0x4aa   :  { %v4258_v6 = vpack.c.bf16 %v4177_v48, %v4176_v39  ;;  %v3794_v35 = vsel %vm1092_vm2, %v16621_v31, %v7408_v4  ;;  %v3793_v12 = vsel %vm1092_vm2, %v16620_v62, %v7407_v8  ;;  %v16781_v28 = vpack.i.bf16 %v16676_v21, %v16675_v45  ;;  %v16784_v45 = vld [vmem:[#allocation176_spill] sm:$0xff] }
 0x4ab   :  { %v840_v39 = vadd.f32 %v839_v14, %v838_v18  ;;  %v7413_v19 = vunpack.i.h.bf16 %v11077_v34  ;;  %v7412_v47 = vunpack.i.l.bf16 %v11077_v34  ;;  %v759_v31 = vmul.f32 %v11258_v3, %v11258_v3  ;;  %v16786_v14 = vld [vmem:[#allocation24_spill] sm:$0xff] }
 0x4ac   :  { %7625 = vrot.lane.b32.xlu0 %v16781_v28, %s8119_s18  ;;  %v841_v62 = vsel %vm539_vm7, %v758_v32, 0.0  ;;  %v4285_v21 = vpack.c.bf16 %v16784_v45, %v10278_v56  ;;  %v2314_v2 = vsel %vm2232_vm8, %v2311_v41, %v2313_v33  ;;  %v2159_v48 = vsel %vm2079_vm9, %v2157_v44, %v2158_v15  ;;  %v16788_v33 = vld [vmem:[#allocation184_spill] sm:$0xff] }
 0x4ad   :  { %7630 = vrot.lane.b32.xlu2 %v7629_v1, %s8123_s24  ;;  %7645 = vrot.lane.b32.xlu1 %v7644_v50, %s8122_s21  ;;  %v3856_v18 = vsel %vm3839_vm10, %v3794_v35, %v7413_v19  ;;  %v3855_v8 = vsel %vm3839_vm10, %v3793_v12, %v7412_v47  ;;  %v7098_v1 = vunpack.i.h.bf16 %v16785_v23  ;;  %v7097_v32 = vunpack.i.l.bf16 %v16785_v23 }
 0x4ae   :  { %4497 = vmatmul.bf16.gmra.mxu1 %v4258_v6  ;;  %v11288_v4 = vpop.permute.xlu0 %7395  ;;  %v11301_v28 = vsub.f32 %v16786_v14, %v10787_v20  ;;  %v842_v35 = vadd.f32 %v841_v62, %v840_v39  ;;  %v2160_v12 = vrot.slane %v11250_v42, 1  ;;  %v7634_v44 = vpack.i.bf16 %v16788_v33, %v16670_v9  ;;  %v16789_v14 = vld [vmem:[#allocation25_spill] sm:$0xff] }
 0x4af   :  { %v11286_v54 = vpop.permute.xlu2 %7460  ;;  %16783 = vst [vmem:[#allocation155_spill] sm:$0xff] %v11288_v4  ;;  %v7416_v34 = vpop.permute.xlu1 %7415  ;;  %v3918_v19 = vsel %vm3901_vm11, %v3855_v8, %v7097_v32  ;;  %v3919_v41 = vsel %vm3901_vm11, %v3856_v18, %v7098_v1  ;;  %v7639_v47 = vpack.i.bf16 %v2159_v48, %v11240_v5  ;;  %v7654_v23 = vpack.i.bf16 %v2314_v2, %v2312_v49  ;;  %v16792_v8 = vld [vmem:[#allocation115_spill] sm:$0xff] }
 0x4b0   :  { %16782 = vst [vmem:[#allocation15_spill] sm:$0xff] %v11286_v54  ;;  %v7418_v6 = vunpack.i.h.bf16 %v7416_v34  ;;  %v7417_v50 = vunpack.i.l.bf16 %v7416_v34  ;;  %v11313_v3 = vsub.f32 %v16789_v14, %v10787_v20  ;;  %v843_v42 = vsel %vm539_vm7, %v759_v31, 0.0  ;;  %v11322_v18 = vpop.f32.mrf.mxu2 }
 0x4b1   :  { %16787 = vst [vmem:[#allocation137_spill] sm:$0xff] %v11301_v28  ;;  %v7423_v39 = vunpack.i.h.bf16 %v11118_v61  ;;  %v7422_v62 = vunpack.i.l.bf16 %v11118_v61  ;;  %v760_v9 = vmul.f32 %v11301_v28, %v11301_v28  ;;  %v844_v5 = vadd.f32 %v843_v42, %v842_v35  ;;  %v16793_v35 = vld [vmem:[#allocation196_spill] sm:$0xff] }
 0x4b2   :  { %v3983_v34 = vsel %vm3966_vm12, %v3918_v19, %v7417_v50  ;;  %16790 = vst [vmem:[#allocation116_spill] sm:$0xff] %v11313_v3  ;;  %v2161_v49 = vsel %vm2079_vm9, %v2158_v15, %v2160_v12  ;;  %v2165_v31 = vrot.slane %v16792_v8, 1  ;;  %v7438_v1 = vunpack.i.h.bf16 %v11155_v59  ;;  %v16794_v8 = vld [vmem:[#allocation149_spill] sm:$0xff] }
 0x4b3   :  { %16791 = vst [vmem:[#allocation109_spill] sm:$0xff] %v11322_v18  ;;  %v7437_v61 = vunpack.i.l.bf16 %v11155_v59  ;;  %v4048_v50 = vsel %vm4031_vm13, %v3983_v34, %v7422_v62  ;;  %v7674_v42 = vpack.i.bf16 %v16712_v7, %v2314_v2  ;;  %v2167_v59 = vrot.slane %v16794_v8, 1  ;;  %v16795_v62 = vld [vmem:[#allocation124_spill] sm:$0xff] }
 0x4b4   :  { %6918 = vmatmul.msk.bf16.gmra.mxu2 %vm1092_vm2, %v4285_v21  ;;  %v3984_v21 = vsel %vm3966_vm12, %v3919_v41, %v7418_v6  ;;  %7640 = vrot.lane.b32.xlu0 %v7639_v47, %s8120_s19  ;;  %v7103_v41 = vunpack.i.h.bf16 %v16793_v35  ;;  %v7649_v28 = vpack.i.bf16 %v2161_v49, %v2159_v48 }
 0x4b5   :  { %7635 = vrot.lane.b32.xlu2 %v7634_v44, %s8117_s3  ;;  %7655 = vrot.lane.b32.xlu1 %v7654_v23, %s8119_s18  ;;  %v4049_v19 = vsel %vm4031_vm13, %v3984_v21, %v7423_v39  ;;  %v7102_v44 = vunpack.i.l.bf16 %v16793_v35  ;;  %v3796_v39 = vsel %vm1092_vm2, %v16652_v11, %v7438_v1  ;;  %v3795_v35 = vsel %vm1092_vm2, %v16651_v10, %v7437_v61  ;;  %v16798_v1 = vld [vmem:[#allocation198_spill] sm:$0xff] }
 0x4b6   :  { %v7441_v6 = vpop.permute.xlu0 %7440  ;;  %v4114_v34 = vsel %vm4096_vm14, %v4049_v19, %v7103_v41  ;;  %v16796_v19 = vld [vmem:[#allocation26_spill] sm:$0xff]  ;;  %v845_v11 = vsel %vm539_vm7, %v760_v9, 0.0  ;;  %v7108_v21 = vunpack.i.h.bf16 %v16798_v1  ;;  %v7107_v10 = vunpack.i.l.bf16 %v16798_v1 }
 0x4b7   :  { %v11329_v32 = vpop.permute.xlu2 %7495  ;;  %v7426_v47 = vpop.permute.xlu1 %7425  ;;  %v7443_v23 = vunpack.i.h.bf16 %v7441_v6  ;;  %v7442_v15 = vunpack.i.l.bf16 %v7441_v6  ;;  %v4113_v27 = vsel %vm4096_vm14, %v4048_v50, %v7102_v44  ;;  %v7669_v50 = vpack.i.bf16 %v11245_v36, %v2161_v49 }
 0x4b8   :  { %v7428_v12 = vunpack.i.h.bf16 %v7426_v47  ;;  %v7427_v14 = vunpack.i.l.bf16 %v7426_v47  ;;  %v11351_v41 = vsub.f32 %v16796_v19, %v10787_v20  ;;  %v846_v61 = vadd.f32 %v845_v11, %v844_v5 }
 0x4b9   :  { %v3858_v2 = vsel %vm3839_vm10, %v3796_v39, %v7443_v23  ;;  %v3857_v48 = vsel %vm3839_vm10, %v3795_v35, %v7442_v15  ;;  %v16799_v49 = vrot.slane %v16770_v43, 1  ;;  %v16802_v39 = vrot.slane %v16795_v62, 1 }
 0x4ba   :  { %v4178_v6 = vsel %vm4161_vm15, %v4113_v27, %v7427_v14  ;;  %v4179_v47 = vsel %vm4161_vm15, %v4114_v34, %v7428_v12  ;;  %16797 = vst [vmem:[#allocation16_spill] sm:$0xff] %v11351_v41  ;;  %v761_v27 = vmul.f32 %v11313_v3, %v11313_v3  ;;  %v3921_v9 = vsel %vm3901_vm11, %v3858_v2, %v7108_v21 }
 0x4bb   :  { %v4260_v44 = vpack.c.bf16 %v4179_v47, %v4178_v6  ;;  %v2166_v23 = vsel %vm2079_vm9, %v16799_v49, %v2165_v31  ;;  %v3920_v15 = vsel %vm3901_vm11, %v3857_v48, %v7107_v10  ;;  %v11373_v5 = vsel %vm2079_vm9, %v2167_v59, %v16802_v39  ;;  %v11377_v31 = vpop.f32.mrf.mxu2  ;;  %v16805_v48 = vld [vmem:[#allocation27_spill] sm:$0xff] }
 0x4bc   :  { %7650 = vrot.lane.b32.xlu0 %v7649_v28, %s8121_s20  ;;  %v16801_v28 = vld [vmem:[#allocation179_spill] sm:$0xff]  ;;  %v7448_v35 = vunpack.i.h.bf16 %v11192_v52  ;;  %v7447_v6 = vunpack.i.l.bf16 %v11192_v52  ;;  %16803 = vst [vmem:[#allocation91_spill] sm:$0xff] %v11377_v31  ;;  %v762_v59 = vmul.f32 %v11351_v41, %v11351_v41  ;;  %v847_v52 = vsel %vm539_vm7, %v761_v27, 0.0 }
 0x4bd   :  { %7675 = vrot.lane.b32.xlu2 %v7674_v42, %s8122_s21  ;;  %7670 = vrot.lane.b32.xlu1 %v7669_v50, %s8120_s19  ;;  %v16800_v42 = vld [vmem:[#allocation177_spill] sm:$0xff]  ;;  %v11384_v50 = vsub.f32 %v16805_v48, %v10787_v20  ;;  %v7659_v11 = vpack.i.bf16 %v11373_v5, %v2166_v23  ;;  %v848_v49 = vadd.f32 %v847_v52, %v846_v61  ;;  %v16808_v27 = vld [vmem:[#allocation163_spill] sm:$0xff]  ;;  %v16811_v61 = vld [vmem:[#allocation28_spill] sm:$0xff] }
 0x4be   :  { %4502 = vmatmul.bf16.gmra.mxu1 %v4260_v44  ;;  %v7451_v14 = vpop.permute.xlu0 %7450  ;;  %v4287_v34 = vpack.c.bf16 %v16801_v28, %v16800_v42  ;;  %v3985_v44 = vsel %vm3966_vm12, %v3920_v15, %v7447_v6  ;;  %v3986_v19 = vsel %vm3966_vm12, %v3921_v9, %v7448_v35  ;;  %v7679_v39 = vpack.i.bf16 %v2166_v23, %v11245_v36  ;;  %v16809_v35 = vld [vmem:[#allocation159_spill] sm:$0xff] }
 0x4bf   :  { %v11366_v12 = vpop.permute.xlu2 %7505  ;;  %v11379_v21 = vpop.permute.xlu1 %7430  ;;  %v7453_v47 = vunpack.i.h.bf16 %v7451_v14  ;;  %v7452_v2 = vunpack.i.l.bf16 %v7451_v14  ;;  %16806 = vst [vmem:[#allocation17_spill] sm:$0xff] %v11384_v50  ;;  %v7113_v14 = vunpack.i.h.bf16 %v10539_v0  ;;  %v16807_v15 = vpack.i.bf16 %v16713_v30, %v16712_v7 }
 0x4c0   :  { %16804 = vst [vmem:[#allocation83_spill] sm:$0xff] %v11379_v21  ;;  %v2170_v9 = vrot.slane %v16808_v27, 1  ;;  %v2172_v6 = vrot.slane %v16809_v35, 1  ;;  %v11407_v48 = vsub.f32 %v16811_v61, %v10787_v20  ;;  %v849_v23 = vsel %vm539_vm7, %v762_v59, 0.0  ;;  %v16867_v35 = vld [vmem:[#allocation130_spill] sm:$0xff] }
 0x4c1   :  { %v4050_v1 = vsel %vm4031_vm13, %v3985_v44, %v7452_v2  ;;  %v4051_v10 = vsel %vm4031_vm13, %v3986_v19, %v7453_v47  ;;  %v16810_v2 = vld [vmem:[#allocation132_spill] sm:$0xff]  ;;  %v7458_v44 = vunpack.i.h.bf16 %v11237_v26  ;;  %v7457_v19 = vunpack.i.l.bf16 %v11237_v26 }
 0x4c2   :  { %16812 = vst [vmem:[#allocation119_spill] sm:$0xff] %v11407_v48  ;;  %v4116_v36 = vsel %vm4096_vm14, %v4051_v10, %v7113_v14  ;;  %v850_v27 = vadd.f32 %v849_v23, %v848_v49  ;;  %v764_v14 = vmul.f32 %v11407_v48, %v11407_v48 }
 0x4c3   :  { %v4181_v26 = vsel %vm4161_vm15, %v4116_v36, %v7458_v44 }
 0x4c4   :  { %6919 = vmatmul.msk.bf16.gmra.mxu2 %vm1092_vm2, %v4287_v34  ;;  %v7112_v34 = vunpack.i.l.bf16 %v10539_v0  ;;  %7660 = vrot.lane.b32.xlu0 %v7659_v11, %s8123_s24  ;;  %v763_v0 = vmul.f32 %v11384_v50, %v11384_v50  ;;  %v16813_v50 = vrot.slane %v16795_v62, 1 }
 0x4c5   :  { %7685 = vrot.lane.b32.xlu2 %v16807_v15, %s8119_s18  ;;  %7680 = vrot.lane.b32.xlu1 %v7679_v39, %s8121_s20 }
 0x4c6   :  { %v4115_v7 = vsel %vm4096_vm14, %v4050_v1, %v7112_v34  ;;  %v7466_v15 = vpop.permute.xlu0 %7465  ;;  %v2171_v39 = vsel %vm2079_vm9, %v16813_v50, %v2170_v9  ;;  %v16814_v1 = vrot.slane %v16810_v2, 1  ;;  %v851_v49 = vsel %vm539_vm7, %v763_v0, 0.0  ;;  %v11432_v34 = vpop.f32.mrf.mxu2  ;;  %v16818_v0 = vld [vmem:[#allocation29_spill] sm:$0xff] }
 0x4c7   :  { %v11417_v52 = vpop.permute.xlu2 %7515  ;;  %v7471_v61 = vpop.permute.xlu1 %7470  ;;  %v7468_v47 = vunpack.i.h.bf16 %v7466_v15  ;;  %v7467_v41 = vunpack.i.l.bf16 %v7466_v15  ;;  %v4180_v59 = vsel %vm4161_vm15, %v4115_v7, %v7457_v19  ;;  %16815 = vst [vmem:[#allocation18_spill] sm:$0xff] %v11432_v34  ;;  %v7664_v50 = vpack.i.bf16 %v10285_v24, %v10282_v22 }
 0x4c8   :  { %v11425_v10 = vsel %vm2079_vm9, %v2172_v6, %v16814_v1  ;;  %v7473_v23 = vunpack.i.h.bf16 %v7471_v61  ;;  %v7472_v15 = vunpack.i.l.bf16 %v7471_v61  ;;  %v11434_v3 = vpop.f32.mrf.mxu1  ;;  %v16817_v6 = vld [vmem:[#allocation125_spill] sm:$0xff]  ;;  %v4262_v44 = vpack.c.bf16 %v4181_v26, %v4180_v59  ;;  %v16820_v1 = vld [vmem:[#allocation30_spill] sm:$0xff] }
 0x4c9   :  { %16816 = vst [vmem:[#allocation19_spill] sm:$0xff] %v11434_v3  ;;  %v3798_v9 = vsel %vm1092_vm2, %v16659_v29, %v7468_v47  ;;  %v3797_v7 = vsel %vm1092_vm2, %v16817_v6, %v7467_v41  ;;  %v11443_v36 = vpack.i.bf16 %v11425_v10, %v2171_v39  ;;  %v11447_v19 = vsub.f32 %v16818_v0, %v10787_v20  ;;  %v16823_v26 = vld [vmem:[#allocation181_spill] sm:$0xff] }
 0x4ca   :  { %v852_v61 = vadd.f32 %v851_v49, %v850_v27  ;;  %v11453_v48 = vsub.f32 %v16820_v1, %v10787_v20  ;;  %v853_v29 = vsel %vm539_vm7, %v764_v14, 0.0  ;;  %v3860_v41 = vsel %vm3839_vm10, %v3798_v9, %v7473_v23 }
 0x4cb   :  { %16819 = vst [vmem:[#allocation142_spill] sm:$0xff] %v11447_v19  ;;  %v3859_v47 = vsel %vm3839_vm10, %v3797_v7, %v7472_v15  ;;  %v765_v23 = vmul.f32 %v11447_v19, %v11447_v19  ;;  %v7704_v19 = vpack.i.bf16 %v2171_v39, %v11373_v5  ;;  %v16835_v39 = vpack.i.bf16 %v16747_v63, %v16734_v60 }
 0x4cc   :  { %7665 = vrot.lane.b32.xlu0 %v7664_v50, %s8116_s2  ;;  %16821 = vst [vmem:[#allocation122_spill] sm:$0xff] %v11453_v48  ;;  %v16824_v50 = vld [vmem:[#allocation173_spill] sm:$0xff]  ;;  %v854_v15 = vadd.f32 %v853_v29, %v852_v61  ;;  %v16829_v29 = vld [vmem:[#allocation80_spill] sm:$0xff] }
 0x4cd   :  { %7695 = vrot.lane.b32.xlu2 %v7659_v11, %s8120_s19  ;;  %7690 = vrot.lane.b32.xlu1 %v11443_v36, %s8123_s24  ;;  %v16822_v11 = vld [vmem:[#allocation180_spill] sm:$0xff]  ;;  %v7118_v6 = vunpack.i.h.bf16 %v16824_v50  ;;  %v7117_v0 = vunpack.i.l.bf16 %v16824_v50  ;;  %v766_v50 = vmul.f32 %v11453_v48, %v11453_v48 }
 0x4ce   :  { %4507 = vmatmul.bf16.gmra.mxu1 %v4262_v44  ;;  %v7476_v27 = vpop.permute.xlu0 %7475  ;;  %v4289_v49 = vpack.c.bf16 %v16823_v26, %v16822_v11  ;;  %v16825_v44 = vld [vmem:[#allocation31_spill] sm:$0xff]  ;;  %v11482_v61 = vpop.f32.mrf.mxu2 }
 0x4cf   :  { %v11460_v59 = vpop.permute.xlu2 %7525  ;;  %v7481_v1 = vpop.permute.xlu1 %7480  ;;  %v7478_v34 = vunpack.i.h.bf16 %v7476_v27  ;;  %v7477_v31 = vunpack.i.l.bf16 %v7476_v27  ;;  %v11468_v14 = vsub.f32 %v16825_v44, %v10787_v20  ;;  %v3922_v18 = vsel %vm3901_vm11, %v3859_v47, %v7117_v0  ;;  %16828 = vst [vmem:[#allocation86_spill] sm:$0xff] %v11482_v61  ;;  %v16831_v47 = vld [vmem:[#allocation139_spill] sm:$0xff] }
 0x4d0   :  { %v7483_v9 = vunpack.i.h.bf16 %v7481_v1  ;;  %v7482_v7 = vunpack.i.l.bf16 %v7481_v1  ;;  %v3923_v58 = vsel %vm3901_vm11, %v3860_v41, %v7118_v6  ;;  %v11479_v3 = vpop.f32.mrf.mxu1  ;;  %v16830_v1 = vld [vmem:[#allocation92_spill] sm:$0xff]  ;;  %v855_v41 = vsel %vm539_vm7, %v765_v23, 0.0  ;;  %v16836_v23 = vld [vmem:[#allocation183_spill] sm:$0xff] }
 0x4d1   :  { %16826 = vst [vmem:[#allocation102_spill] sm:$0xff] %v11468_v14  ;;  %v3987_v27 = vsel %vm3966_vm12, %v3922_v18, %v7477_v31  ;;  %v3988_v44 = vsel %vm3966_vm12, %v3923_v58, %v7478_v34  ;;  %v2177_v54 = vrot.slane %v16830_v1, 1  ;;  %v16832_v58 = vpack.i.bf16 %v16733_v40, %v16713_v30  ;;  %v16833_v18 = vld [vmem:[#allocation32_spill] sm:$0xff] }
 0x4d2   :  { %16827 = vst [vmem:[#allocation20_spill] sm:$0xff] %v11479_v3  ;;  %v11495_v5 = vsub.f32 %v16833_v18, %v10787_v20  ;;  %v856_v31 = vadd.f32 %v855_v41, %v854_v15  ;;  %v4052_v34 = vsel %vm4031_vm13, %v3987_v27, %v7482_v7  ;;  %v4053_v6 = vsel %vm4031_vm13, %v3988_v44, %v7483_v9 }
 0x4d3   :  { %v857_v30 = vsel %vm539_vm7, %v766_v50, 0.0  ;;  %v16838_v9 = vrot.slane %v16831_v47, 1 }
 0x4d4   :  { %6920 = vmatmul.msk.bf16.gmra.mxu2 %vm1092_vm2, %v4289_v49  ;;  %v2175_v49 = vrot.slane %v16829_v29, 1  ;;  %7700 = vrot.lane.b32.xlu0 %v16832_v58, %s8122_s21  ;;  %16834 = vst [vmem:[#allocation117_spill] sm:$0xff] %v11495_v5  ;;  %v7123_v29 = vunpack.i.h.bf16 %v16836_v23  ;;  %v7122_v58 = vunpack.i.l.bf16 %v16836_v23  ;;  %v858_v61 = vadd.f32 %v857_v30, %v856_v31 }
 0x4d5   :  { %7705 = vrot.lane.b32.xlu2 %v7704_v19, %s8121_s20  ;;  %7725 = vrot.lane.b32.xlu1 %v16835_v39, %s8122_s21  ;;  %v767_v19 = vmul.f32 %v11468_v14, %v11468_v14  ;;  %v16837_v39 = vrot.slane %v16810_v2, 1  ;;  %v11518_v27 = vsel %vm2079_vm9, %v2177_v54, %v16838_v9  ;;  %v16840_v54 = vld [vmem:[#allocation33_spill] sm:$0xff] }
 0x4d6   :  { %v7486_v15 = vpop.permute.xlu0 %7485  ;;  %v4117_v23 = vsel %vm4096_vm14, %v4052_v34, %v7122_v58  ;;  %v4118_v14 = vsel %vm4096_vm14, %v4053_v6, %v7123_v29  ;;  %v11532_v9 = vsub.f32 %v16840_v54, %v10787_v20  ;;  %v768_v34 = vmul.f32 %v11495_v5, %v11495_v5  ;;  %v16842_v6 = vld [vmem:[#allocation106_spill] sm:$0xff] }
 0x4d7   :  { %v11508_v18 = vpop.permute.xlu2 %7535  ;;  %v7491_v41 = vpop.permute.xlu1 %7490  ;;  %v7488_v0 = vunpack.i.h.bf16 %v7486_v15  ;;  %v7487_v48 = vunpack.i.l.bf16 %v7486_v15  ;;  %v11513_v7 = vsel %vm2079_vm9, %v16837_v39, %v2175_v49  ;;  %v859_v31 = vsel %vm539_vm7, %v767_v19, 0.0 }
 0x4d8   :  { %v7493_v50 = vunpack.i.h.bf16 %v7491_v41  ;;  %v7492_v44 = vunpack.i.l.bf16 %v7491_v41  ;;  %v11528_v49 = vpack.i.bf16 %v11518_v27, %v11513_v7  ;;  %16841 = vst [vmem:[#allocation114_spill] sm:$0xff] %v11532_v9  ;;  %v860_v30 = vadd.f32 %v859_v31, %v858_v61  ;;  %v11549_v19 = vpop.f32.mrf.mxu2 }
 0x4d9   :  { %v4182_v3 = vsel %vm4161_vm15, %v4117_v23, %v7487_v48  ;;  %v4183_v15 = vsel %vm4161_vm15, %v4118_v14, %v7488_v0  ;;  %v16843_v14 = vld [vmem:[#allocation126_spill] sm:$0xff]  ;;  %v7498_v29 = vunpack.i.h.bf16 %v11329_v32  ;;  %v7497_v58 = vunpack.i.l.bf16 %v11329_v32  ;;  %16845 = vst [vmem:[#allocation118_spill] sm:$0xff] %v11549_v19  ;;  %v16848_v23 = vld [vmem:[#allocation185_spill] sm:$0xff] }
 0x4da   :  { %v4264_v39 = vpack.c.bf16 %v4183_v15, %v4182_v3  ;;  %v3800_v48 = vsel %vm1092_vm2, %v16842_v6, %v7493_v50  ;;  %v3799_v0 = vsel %vm1092_vm2, %v16843_v14, %v7492_v44  ;;  %v16844_v3 = vpack.i.bf16 %v16734_v60, %v16733_v40  ;;  %v16849_v15 = vld [vmem:[#allocation187_spill] sm:$0xff]  ;;  %v16850_v6 = vld [vmem:[#allocation205_spill] sm:$0xff] }
 0x4db   :  { %v11524_v21 = vpop.f32.mrf.mxu1  ;;  %v16846_v41 = vpack.i.bf16 %v16748_v37, %v16747_v63  ;;  %v4291_v40 = vpack.c.bf16 %v16849_v15, %v16848_v23  ;;  %v769_v60 = vmul.f32 %v11532_v9, %v11532_v9  ;;  %v861_v61 = vsel %vm539_vm7, %v768_v34, 0.0 }
 0x4dc   :  { %16839 = vst [vmem:[#allocation21_spill] sm:$0xff] %v11524_v21  ;;  %7710 = vrot.lane.b32.xlu0 %v16844_v3, %s8119_s18  ;;  %v3862_v32 = vsel %vm3839_vm10, %v3800_v48, %v7498_v29  ;;  %v3861_v54 = vsel %vm3839_vm10, %v3799_v0, %v7497_v58  ;;  %v7128_v63 = vunpack.i.h.bf16 %v16850_v6  ;;  %v862_v9 = vadd.f32 %v861_v61, %v860_v30  ;;  %v16854_v0 = vld [vmem:[#allocation103_spill] sm:$0xff]  ;;  %v16855_v58 = vld [vmem:[#allocation94_spill] sm:$0xff] }
 0x4dd   :  { %7715 = vrot.lane.b32.xlu2 %v11528_v49, %s8123_s24  ;;  %7735 = vrot.lane.b32.xlu1 %v16846_v41, %s8119_s18  ;;  %v16851_v41 = vld [vmem:[#allocation34_spill] sm:$0xff]  ;;  %v7759_v19 = vpack.i.bf16 %v16855_v58, %v16854_v0  ;;  %v7508_v30 = vunpack.i.h.bf16 %v11366_v12  ;;  %v7507_v61 = vunpack.i.l.bf16 %v11366_v12  ;;  %v7518_v12 = vunpack.i.h.bf16 %v11417_v52 }
 0x4de   :  { %4512 = vmatmul.bf16.gmra.mxu1 %v4264_v39  ;;  %v7521_v44 = vpop.permute.xlu0 %7520  ;;  %v7127_v39 = vunpack.i.l.bf16 %v16850_v6  ;;  %v11569_v5 = vsub.f32 %v16851_v41, %v10787_v20  ;;  %v3925_v48 = vsel %vm3901_vm11, %v3862_v32, %v7128_v63  ;;  %v863_v41 = vsel %vm539_vm7, %v769_v60, 0.0  ;;  %v16857_v32 = vld [vmem:[#allocation35_spill] sm:$0xff]  ;;  %v16859_v63 = vld [vmem:[#allocation36_spill] sm:$0xff] }
 0x4df   :  { %v11555_v50 = vpop.permute.xlu2 %7540  ;;  %v7501_v31 = vpop.permute.xlu1 %7500  ;;  %v7729_v25 = vpack.i.bf16 %v11513_v7, %v11425_v10 }
 0x4e0   :  { %16847 = vst [vmem:[#allocation144_spill] sm:$0xff] %v11555_v50  ;;  %v7503_v14 = vunpack.i.h.bf16 %v7501_v31  ;;  %v7502_v3 = vunpack.i.l.bf16 %v7501_v31  ;;  %v3924_v34 = vsel %vm3901_vm11, %v3861_v54, %v7127_v39  ;;  %v11589_v54 = vsub.f32 %v16857_v32, %v10787_v20  ;;  %v16861_v32 = vld [vmem:[#allocation135_spill] sm:$0xff]  ;;  %v11606_v50 = vpop.f32.mrf.mxu2 }
 0x4e1   :  { %16852 = vst [vmem:[#allocation143_spill] sm:$0xff] %v11569_v5  ;;  %v11593_v39 = vsub.f32 %v16859_v63, %v10787_v20  ;;  %v770_v60 = vmul.f32 %v11569_v5, %v11569_v5  ;;  %v7133_v63 = vunpack.i.h.bf16 %v16861_v32 }
 0x4e2   :  { %v3989_v6 = vsel %vm3966_vm12, %v3924_v34, %v7502_v3  ;;  %v3990_v31 = vsel %vm3966_vm12, %v3925_v48, %v7503_v14  ;;  %16858 = vst [vmem:[#allocation85_spill] sm:$0xff] %v11589_v54  ;;  %v864_v14 = vadd.f32 %v863_v41, %v862_v9  ;;  %v7523_v9 = vunpack.i.h.bf16 %v7521_v44 }
 0x4e3   :  { %v11573_v29 = vpop.f32.mrf.mxu1  ;;  %16860 = vst [vmem:[#allocation140_spill] sm:$0xff] %v11593_v39  ;;  %v4054_v34 = vsel %vm4031_vm13, %v3989_v6, %v7507_v61  ;;  %v4055_v48 = vsel %vm4031_vm13, %v3990_v31, %v7508_v30  ;;  %v7522_v41 = vunpack.i.l.bf16 %v7521_v44  ;;  %v16864_v30 = vld [vmem:[#allocation84_spill] sm:$0xff] }
 0x4e4   :  { %6921 = vmatmul.msk.bf16.gmra.mxu2 %vm1092_vm2, %v4291_v40  ;;  %16853 = vst [vmem:[#allocation22_spill] sm:$0xff] %v11573_v29  ;;  %v16856_v40 = vld [vmem:[#allocation164_spill] sm:$0xff]  ;;  %7720 = vrot.lane.b32.xlu0 %v11443_v36, %s8120_s19  ;;  %v7132_v29 = vunpack.i.l.bf16 %v16861_v32  ;;  %v4120_v31 = vsel %vm4096_vm14, %v4055_v48, %v7133_v63  ;;  %v2180_v61 = vrot.slane %v16864_v30, 1  ;;  %v16865_v32 = vld [vmem:[#allocation165_spill] sm:$0xff]  ;;  %v16869_v48 = vld [vmem:[#allocation166_spill] sm:$0xff]  ;;  %v771_v30 = vmul.f32 %v11589_v54, %v11589_v54 }
 0x4e5   :  { %v7749_v21 = vpack.i.bf16 %v16856_v40, %v16788_v33  ;;  %7760 = vrot.lane.b32.xlu2 %v7759_v19, %s8116_s2  ;;  %v7517_v19 = vunpack.i.l.bf16 %v11417_v52  ;;  %16862 = vst [vmem:[#allocation23_spill] sm:$0xff] %v11606_v50  ;;  %v16863_v52 = vld [vmem:[#allocation66_spill] sm:$0xff]  ;;  %v2182_v2 = vrot.slane %v16865_v32, 1  ;;  %v16866_v50 = vld [vmem:[#allocation107_spill] sm:$0xff]  ;;  %v16081_v63 = vrot.slane %v16869_v48, 1 }
 0x4e6   :  { %v7531_v36 = vpop.permute.xlu0 %7530  ;;  %v7754_v4 = vpack.i.bf16 %v16863_v52, %v16855_v58  ;;  %v4119_v6 = vsel %vm4096_vm14, %v4054_v34, %v7132_v29  ;;  %v3802_v44 = vsel %vm1092_vm2, %v16866_v50, %v7518_v12  ;;  %v865_v50 = vsel %vm539_vm7, %v770_v60, 0.0  ;;  %v16870_v12 = vld [vmem:[#allocation211_spill] sm:$0xff] }
 0x4e7   :  { %7750 = vrot.lane.b32.xlu1 %v7749_v21, %s8116_s2  ;;  %v11600_v3 = vpop.permute.xlu2 %7590  ;;  %v7511_v21 = vpop.permute.xlu1 %7510  ;;  %v3864_v7 = vsel %vm3839_vm10, %v3802_v44, %v7523_v9  ;;  %v16873_v9 = vld [vmem:[#allocation192_spill] sm:$0xff]  ;;  %v7532_v44 = vunpack.i.l.bf16 %v7531_v36 }
 0x4e8   :  { %v7513_v5 = vunpack.i.h.bf16 %v7511_v21  ;;  %v7512_v1 = vunpack.i.l.bf16 %v7511_v21  ;;  %v3801_v21 = vsel %vm1092_vm2, %v16867_v35, %v7517_v19  ;;  %v7138_v35 = vunpack.i.h.bf16 %v16870_v12 }
 0x4e9   :  { %v3863_v29 = vsel %vm3839_vm10, %v3801_v21, %v7522_v41  ;;  %v7137_v19 = vunpack.i.l.bf16 %v16870_v12 }
 0x4ea   :  { %v4184_v62 = vsel %vm4161_vm15, %v4119_v6, %v7512_v1  ;;  %v4185_v10 = vsel %vm4161_vm15, %v4120_v31, %v7513_v5  ;;  %v16871_v1 = vpack.i.bf16 %v16763_v38, %v16748_v37  ;;  %v866_v5 = vadd.f32 %v865_v50, %v864_v14 }
 0x4eb   :  { %v11620_v8 = vpop.f32.mrf.mxu1  ;;  %v4266_v34 = vpack.c.bf16 %v4185_v10, %v4184_v62  ;;  %v16872_v62 = vld [vmem:[#allocation191_spill] sm:$0xff]  ;;  %v3927_v60 = vsel %vm3901_vm11, %v3864_v7, %v7138_v35  ;;  %v3926_v6 = vsel %vm3901_vm11, %v3863_v29, %v7137_v19  ;;  %v7533_v31 = vunpack.i.h.bf16 %v7531_v36  ;;  %v16876_v36 = vld [vmem:[#allocation37_spill] sm:$0xff]  ;;  %v11666_v35 = vpop.f32.mrf.mxu2 }
 0x4ec   :  { %16868 = vst [vmem:[#allocation176_spill] sm:$0xff] %v11620_v8  ;;  %7730 = vrot.lane.b32.xlu0 %v7729_v25, %s8121_s20  ;;  %v4293_v41 = vpack.c.bf16 %v16873_v9, %v16872_v62  ;;  %v7528_v37 = vunpack.i.h.bf16 %v11460_v59  ;;  %v7527_v25 = vunpack.i.l.bf16 %v11460_v59  ;;  %v11656_v7 = vsel %vm2079_vm9, %v2182_v2, %v16081_v63  ;;  %v16879_v2 = vld [vmem:[#allocation38_spill] sm:$0xff] }
 0x4ed   :  { %7770 = vrot.lane.b32.xlu2 %v16871_v1, %s8122_s21  ;;  %v11660_v29 = vsub.f32 %v16876_v36, %v10787_v20  ;;  %v772_v50 = vmul.f32 %v11593_v39, %v11593_v39  ;;  %v867_v59 = vsel %vm539_vm7, %v771_v30, 0.0  ;;  %16878 = vst [vmem:[#allocation25_spill] sm:$0xff] %v11666_v35  ;;  %v11672_v1 = vsub.f32 %v16879_v2, %v10787_v20 }
 0x4ee   :  { %4517 = vmatmul.bf16.gmra.mxu1 %v4266_v34  ;;  %v11644_v10 = vpop.permute.xlu0 %7545  ;;  %v868_v12 = vadd.f32 %v867_v59, %v866_v5  ;;  %v3992_v19 = vsel %vm3966_vm12, %v3927_v60, %v7528_v37  ;;  %v16883_v37 = vpack.i.bf16 %v10224_v16, %v16763_v38  ;;  %v7538_v38 = vunpack.i.h.bf16 %v11508_v18 }
 0x4ef   :  { %7755 = vrot.lane.b32.xlu1 %v7754_v4, %s8117_s3  ;;  %v11642_v21 = vpop.permute.xlu2 %7600  ;;  %16874 = vst [vmem:[#allocation189_spill] sm:$0xff] %v11644_v10  ;;  %v11648_v14 = vpop.permute.xlu1 %7555  ;;  %v16875_v4 = vrot.slane %v16831_v47, 1  ;;  %v4057_v30 = vsel %vm4031_vm13, %v3992_v19, %v7533_v31  ;;  %v869_v60 = vsel %vm539_vm7, %v772_v50, 0.0  ;;  %v774_v50 = vmul.f32 %v11672_v1, %v11672_v1 }
 0x4f0   :  { %16877 = vst [vmem:[#allocation24_spill] sm:$0xff] %v11660_v29  ;;  %v870_v31 = vadd.f32 %v869_v60, %v868_v12  ;;  %v7537_v2 = vunpack.i.l.bf16 %v11508_v18 }
 0x4f1   :  { %v2181_v34 = vsel %vm2079_vm9, %v16875_v4, %v2180_v61  ;;  %v3991_v61 = vsel %vm3966_vm12, %v3926_v6, %v7527_v25  ;;  %16880 = vst [vmem:[#allocation115_spill] sm:$0xff] %v11672_v1  ;;  %v773_v6 = vmul.f32 %v11660_v29, %v11660_v29  ;;  %v16888_v1 = vld [vmem:[#allocation41_spill] sm:$0xff]  ;;  %v16890_v29 = vld [vmem:[#allocation90_spill] sm:$0xff] }
 0x4f2   :  { %v7739_v36 = vpack.i.bf16 %v11656_v7, %v2181_v34  ;;  %v4056_v63 = vsel %vm4031_vm13, %v3991_v61, %v7532_v44  ;;  %v16884_v44 = vld [vmem:[#allocation39_spill] sm:$0xff]  ;;  %v11714_v18 = vsub.f32 %v16888_v1, %v10787_v20  ;;  %v16894_v1 = vld [vmem:[#allocation133_spill] sm:$0xff] }
 0x4f3   :  { %v11674_v4 = vpop.f32.mrf.mxu1  ;;  %v11691_v25 = vsub.f32 %v16884_v44, %v10787_v20 }
 0x4f4   :  { %6922 = vmatmul.msk.bf16.gmra.mxu2 %vm1092_vm2, %v4293_v41  ;;  %16881 = vst [vmem:[#allocation196_spill] sm:$0xff] %v11674_v4  ;;  %v16882_v41 = vld [vmem:[#allocation215_spill] sm:$0xff]  ;;  %7740 = vrot.lane.b32.xlu0 %v7739_v36, %s8123_s24 }
 0x4f5   :  { %v7143_v5 = vunpack.i.h.bf16 %v16882_v41  ;;  %v7142_v59 = vunpack.i.l.bf16 %v16882_v41  ;;  %7780 = vrot.lane.b32.xlu2 %v16883_v37, %s8119_s18  ;;  %16885 = vst [vmem:[#allocation26_spill] sm:$0xff] %v11691_v25  ;;  %v775_v54 = vmul.f32 %v11691_v25, %v11691_v25  ;;  %v7774_v25 = vpack.i.bf16 %v2181_v34, %v11518_v27 }
 0x4f6   :  { %v7551_v37 = vpop.permute.xlu0 %7550  ;;  %16889 = vst [vmem:[#allocation177_spill] sm:$0xff] %v11714_v18 }
 0x4f7   :  { %7765 = vrot.lane.b32.xlu1 %v11528_v49, %s8120_s19  ;;  %v4121_v61 = vsel %vm4096_vm14, %v4056_v63, %v7142_v59  ;;  %v4122_v19 = vsel %vm4096_vm14, %v4057_v30, %v7143_v5  ;;  %v11701_v41 = vpop.permute.xlu2 %7610  ;;  %v11703_v44 = vpop.permute.xlu1 %7565  ;;  %v7553_v12 = vunpack.i.h.bf16 %v7551_v37  ;;  %v7552_v60 = vunpack.i.l.bf16 %v7551_v37  ;;  %v16886_v5 = vld [vmem:[#allocation40_spill] sm:$0xff] }
 0x4f8   :  { %v871_v49 = vsel %vm539_vm7, %v773_v6, 0.0  ;;  %v4186_v63 = vsel %vm4161_vm15, %v4121_v61, %v7537_v2  ;;  %v4187_v30 = vsel %vm4161_vm15, %v4122_v19, %v7538_v38  ;;  %v11710_v59 = vsub.f32 %v16886_v5, %v10787_v20  ;;  %v11724_v19 = vpop.f32.mrf.mxu2  ;;  %v16893_v38 = vld [vmem:[#allocation110_spill] sm:$0xff] }
 0x4f9   :  { %v872_v39 = vadd.f32 %v871_v49, %v870_v31  ;;  %v873_v37 = vsel %vm539_vm7, %v774_v50, 0.0  ;;  %v2185_v6 = vrot.slane %v16890_v29, 1  ;;  %v7744_v61 = vpack.i.bf16 %v16854_v0, %v16856_v40  ;;  %16892 = vst [vmem:[#allocation27_spill] sm:$0xff] %v11724_v19  ;;  %v16895_v49 = vld [vmem:[#allocation168_spill] sm:$0xff]  ;;  %v16896_v19 = vld [vmem:[#allocation169_spill] sm:$0xff] }
 0x4fa   :  { %16887 = vst [vmem:[#allocation198_spill] sm:$0xff] %v11710_v59  ;;  %v3804_v2 = vsel %vm1092_vm2, %v16893_v38, %v7553_v12  ;;  %v3803_v5 = vsel %vm1092_vm2, %v16894_v1, %v7552_v60  ;;  %v4268_v31 = vpack.c.bf16 %v4187_v30, %v4186_v63  ;;  %v7558_v50 = vunpack.i.h.bf16 %v11648_v14  ;;  %v16897_v12 = vld [vmem:[#allocation42_spill] sm:$0xff]  ;;  %v16900_v30 = vld [vmem:[#allocation88_spill] sm:$0xff] }
 0x4fb   :  { %v11720_v35 = vpop.f32.mrf.mxu1  ;;  %v7557_v29 = vunpack.i.l.bf16 %v11648_v14  ;;  %v2188_v4 = vrot.slane %v16896_v19, 1  ;;  %v11739_v38 = vsub.f32 %v16897_v12, %v10787_v20  ;;  %v874_v60 = vadd.f32 %v873_v37, %v872_v39  ;;  %v16899_v63 = vld [vmem:[#allocation194_spill] sm:$0xff] }
 0x4fc   :  { %16891 = vst [vmem:[#allocation179_spill] sm:$0xff] %v11720_v35  ;;  %7745 = vrot.lane.b32.xlu0 %v7744_v61, %s8117_s3  ;;  %v2187_v35 = vrot.slane %v16895_v49, 1  ;;  %v3866_v27 = vsel %vm3839_vm10, %v3804_v2, %v7558_v50  ;;  %v4295_v61 = vpack.c.bf16 %v16900_v30, %v16899_v63  ;;  %v16901_v1 = vrot.slane %v16869_v48, 1  ;;  %v16902_v12 = vld [vmem:[#allocation190_spill] sm:$0xff] }
 0x4fd   :  { %7790 = vrot.lane.b32.xlu2 %v7739_v36, %s8120_s19  ;;  %16898 = vst [vmem:[#allocation163_spill] sm:$0xff] %v11739_v38  ;;  %v3865_v14 = vsel %vm3839_vm10, %v3803_v5, %v7557_v29  ;;  %v7148_v10 = vunpack.i.h.bf16 %v16902_v12  ;;  %v7147_v39 = vunpack.i.l.bf16 %v16902_v12  ;;  %v776_v5 = vmul.f32 %v11710_v59, %v11710_v59 }
 0x4fe   :  { %4522 = vmatmul.bf16.gmra.mxu1 %v4268_v31  ;;  %v7561_v36 = vpop.permute.xlu0 %7560  ;;  %v2186_v8 = vsel %vm2079_vm9, %v16901_v1, %v2185_v6  ;;  %v777_v31 = vmul.f32 %v11714_v18, %v11714_v18  ;;  %v875_v50 = vsel %vm539_vm7, %v775_v54, 0.0  ;;  %v11762_v6 = vsel %vm2079_vm9, %v2187_v35, %v2188_v4  ;;  %v16904_v1 = vld [vmem:[#allocation167_spill] sm:$0xff] }
 0x4ff   :  { %7775 = vrot.lane.b32.xlu1 %v7774_v25, %s8121_s20  ;;  %v11744_v34 = vpop.permute.xlu2 %7620  ;;  %v11753_v25 = vpop.permute.xlu1 %7580  ;;  %v7563_v37 = vunpack.i.h.bf16 %v7561_v36  ;;  %v7562_v2 = vunpack.i.l.bf16 %v7561_v36  ;;  %v876_v29 = vadd.f32 %v875_v50, %v874_v60  ;;  %v2190_v12 = vrot.slane %v16904_v1, 1 }
 0x500   :  { %16903 = vst [vmem:[#allocation28_spill] sm:$0xff] %v11753_v25  ;;  %v3928_v25 = vsel %vm3901_vm11, %v3865_v14, %v7147_v39  ;;  %v3929_v36 = vsel %vm3901_vm11, %v3866_v27, %v7148_v10  ;;  %v7799_v54 = vpack.i.bf16 %v2186_v8, %v11656_v7  ;;  %v7568_v35 = vunpack.i.h.bf16 %v11703_v44  ;;  %v16907_v7 = vld [vmem:[#allocation43_spill] sm:$0xff] }
 0x501   :  { %v3993_v19 = vsel %vm3966_vm12, %v3928_v25, %v7562_v2  ;;  %v3994_v59 = vsel %vm3966_vm12, %v3929_v36, %v7563_v37  ;;  %v7567_v60 = vunpack.i.l.bf16 %v11703_v44  ;;  %v11776_v50 = vpack.i.bf16 %v11762_v6, %v2186_v8  ;;  %v11789_v44 = vpop.f32.mrf.mxu2 }
 0x502   :  { %v877_v10 = vsel %vm539_vm7, %v776_v5, 0.0  ;;  %v16906_v27 = vpack.i.bf16 %v10278_v56, %v10224_v16  ;;  %v11787_v39 = vsub.f32 %v16907_v7, %v10787_v20  ;;  %16909 = vst [vmem:[#allocation30_spill] sm:$0xff] %v11789_v44  ;;  %v4059_v37 = vsel %vm4031_vm13, %v3994_v59, %v7568_v35  ;;  %v16910_v5 = vld [vmem:[#allocation197_spill] sm:$0xff] }
 0x503   :  { %v11769_v49 = vpop.f32.mrf.mxu1  ;;  %v878_v25 = vadd.f32 %v877_v10, %v876_v29  ;;  %v4058_v8 = vsel %vm4031_vm13, %v3993_v19, %v7567_v60  ;;  %v778_v2 = vmul.f32 %v11739_v38, %v11739_v38  ;;  %v879_v16 = vsel %vm539_vm7, %v777_v31, 0.0 }
 0x504   :  { %6923 = vmatmul.msk.bf16.gmra.mxu2 %vm1092_vm2, %v4295_v61  ;;  %16905 = vst [vmem:[#allocation125_spill] sm:$0xff] %v11769_v49  ;;  %v2192_v61 = vrot.slane %v10243_v46, 1  ;;  %7795 = vrot.lane.b32.xlu0 %v16906_v27, %s8122_s21  ;;  %v7153_v1 = vunpack.i.h.bf16 %v16910_v5  ;;  %v7152_v36 = vunpack.i.l.bf16 %v16910_v5  ;;  %v11803_v14 = vsel %vm2079_vm9, %v2188_v4, %v2190_v12 }
 0x505   :  { %7800 = vrot.lane.b32.xlu2 %v7799_v54, %s8121_s20  ;;  %16908 = vst [vmem:[#allocation29_spill] sm:$0xff] %v11787_v39  ;;  %v16911_v59 = vrot.slane %v10246_v51, 1  ;;  %v880_v18 = vadd.f32 %v879_v16, %v878_v25  ;;  %v881_v25 = vsel %vm539_vm7, %v778_v2, 0.0  ;;  %v7593_v2 = vunpack.i.h.bf16 %v11600_v3 }
 0x506   :  { %v7571_v29 = vpop.permute.xlu0 %7570  ;;  %v4123_v60 = vsel %vm4096_vm14, %v4058_v8, %v7152_v36  ;;  %v4124_v5 = vsel %vm4096_vm14, %v4059_v37, %v7153_v1  ;;  %v779_v8 = vmul.f32 %v11787_v39, %v11787_v39  ;;  %v16915_v37 = vld [vmem:[#allocation113_spill] sm:$0xff]  ;;  %v16916_v1 = vld [vmem:[#allocation134_spill] sm:$0xff]  ;;  %v7603_v49 = vunpack.i.h.bf16 %v11642_v21 }
 0x507   :  { %7785 = vrot.lane.b32.xlu1 %v11776_v50, %s8123_s24  ;;  %v11800_v54 = vpop.permute.xlu2 %7630  ;;  %v7586_v10 = vpop.permute.xlu1 %7585  ;;  %v7573_v27 = vunpack.i.h.bf16 %v7571_v29  ;;  %v7572_v7 = vunpack.i.l.bf16 %v7571_v29  ;;  %v11808_v19 = vsel %vm2079_vm9, %v2192_v61, %v16911_v59  ;;  %v16913_v61 = vld [vmem:[#allocation44_spill] sm:$0xff] }
 0x508   :  { %v7588_v35 = vunpack.i.h.bf16 %v7586_v10  ;;  %v7587_v31 = vunpack.i.l.bf16 %v7586_v10  ;;  %v11818_v4 = vpack.i.bf16 %v11808_v19, %v11803_v14  ;;  %v11822_v59 = vsub.f32 %v16913_v61, %v10787_v20 }
 0x509   :  { %v4188_v38 = vsel %vm4161_vm15, %v4123_v60, %v7572_v7  ;;  %v4189_v44 = vsel %vm4161_vm15, %v4124_v5, %v7573_v27  ;;  %v882_v27 = vadd.f32 %v881_v25, %v880_v18  ;;  %v7592_v7 = vunpack.i.l.bf16 %v11600_v3  ;;  %v16922_v5 = vld [vmem:[#allocation199_spill] sm:$0xff] }
 0x50a   :  { %v4270_v12 = vpack.c.bf16 %v4189_v44, %v4188_v38  ;;  %16914 = vst [vmem:[#allocation181_spill] sm:$0xff] %v11822_v59  ;;  %v3806_v16 = vsel %vm1092_vm2, %v16915_v37, %v7588_v35  ;;  %v3805_v36 = vsel %vm1092_vm2, %v16916_v1, %v7587_v31  ;;  %v16917_v38 = vpack.i.bf16 %v16784_v45, %v10278_v56  ;;  %v16918_v44 = vld [vmem:[#allocation45_spill] sm:$0xff]  ;;  %v16921_v56 = vld [vmem:[#allocation195_spill] sm:$0xff]  ;;  %v11856_v37 = vpop.f32.mrf.mxu2 }
 0x50b   :  { %v11814_v29 = vpop.f32.mrf.mxu1  ;;  %v11839_v10 = vsub.f32 %v16918_v44, %v10787_v20  ;;  %v16920_v35 = vpack.i.bf16 %v16800_v42, %v16784_v45  ;;  %v4297_v61 = vpack.c.bf16 %v16922_v5, %v16921_v56  ;;  %v780_v18 = vmul.f32 %v11822_v59, %v11822_v59  ;;  %16923 = vst [vmem:[#allocation31_spill] sm:$0xff] %v11856_v37 }
 0x50c   :  { %16912 = vst [vmem:[#allocation180_spill] sm:$0xff] %v11814_v29  ;;  %7805 = vrot.lane.b32.xlu0 %v16917_v38, %s8119_s18  ;;  %v883_v25 = vsel %vm539_vm7, %v779_v8, 0.0  ;;  %v3868_v3 = vsel %vm3839_vm10, %v3806_v16, %v7593_v2  ;;  %v3867_v45 = vsel %vm3839_vm10, %v3805_v36, %v7592_v7  ;;  %v16925_v29 = vld [vmem:[#allocation46_spill] sm:$0xff] }
 0x50d   :  { %7810 = vrot.lane.b32.xlu2 %v11818_v4, %s8123_s24  ;;  %16919 = vst [vmem:[#allocation173_spill] sm:$0xff] %v11839_v10  ;;  %v11865_v59 = vsub.f32 %v16925_v29, %v10787_v20  ;;  %v781_v8 = vmul.f32 %v11839_v10, %v11839_v10  ;;  %v884_v37 = vadd.f32 %v883_v25, %v882_v27  ;;  %v885_v29 = vsel %vm539_vm7, %v780_v18, 0.0 }
 0x50e   :  { %4527 = vmatmul.bf16.gmra.mxu1 %v4270_v12  ;;  %v11849_v60 = vpop.permute.xlu0 %7575  ;;  %v16924_v12 = vld [vmem:[#allocation214_spill] sm:$0xff]  ;;  %v7602_v27 = vunpack.i.l.bf16 %v11642_v21  ;;  %v16930_v25 = vpack.i.bf16 %v16822_v11, %v16801_v28  ;;  %v16932_v21 = vpack.i.bf16 %v16801_v28, %v16800_v42 }
 0x50f   :  { %7820 = vrot.lane.b32.xlu1 %v16920_v35, %s8122_s21  ;;  %v11847_v31 = vpop.permute.xlu2 %7635  ;;  %v7596_v1 = vpop.permute.xlu1 %7595  ;;  %v7158_v38 = vunpack.i.h.bf16 %v16924_v12  ;;  %v7157_v44 = vunpack.i.l.bf16 %v16924_v12  ;;  %16926 = vst [vmem:[#allocation80_spill] sm:$0xff] %v11865_v59  ;;  %v16934_v42 = vld [vmem:[#allocation178_spill] sm:$0xff] }
 0x510   :  { %v7598_v35 = vunpack.i.h.bf16 %v7596_v1  ;;  %v7597_v39 = vunpack.i.l.bf16 %v7596_v1  ;;  %v2200_v28 = vrot.slane %v16934_v42, 1 }
 0x511   :  { %v3930_v16 = vsel %vm3901_vm11, %v3867_v45, %v7157_v44  ;;  %v3931_v36 = vsel %vm3901_vm11, %v3868_v3, %v7158_v38  ;;  %v886_v3 = vadd.f32 %v885_v29, %v884_v37  ;;  %v887_v45 = vsel %vm539_vm7, %v781_v8, 0.0  ;;  %v16931_v38 = vld [vmem:[#allocation170_spill] sm:$0xff] }
 0x512   :  { %v3995_v7 = vsel %vm3966_vm12, %v3930_v16, %v7597_v39  ;;  %v3996_v1 = vsel %vm3966_vm12, %v3931_v36, %v7598_v35  ;;  %v782_v39 = vmul.f32 %v11865_v59, %v11865_v59  ;;  %v2195_v18 = vrot.slane %v16931_v38, 1 }
 0x513   :  { %v11871_v2 = vpop.f32.mrf.mxu1  ;;  %v7613_v44 = vunpack.i.h.bf16 %v11701_v41  ;;  %v7612_v35 = vunpack.i.l.bf16 %v11701_v41  ;;  %v4060_v36 = vsel %vm4031_vm13, %v3995_v7, %v7602_v27  ;;  %v4061_v37 = vsel %vm4031_vm13, %v3996_v1, %v7603_v49 }
 0x514   :  { %6924 = vmatmul.msk.bf16.gmra.mxu2 %vm1092_vm2, %v4297_v61  ;;  %16927 = vst [vmem:[#allocation139_spill] sm:$0xff] %v11871_v2  ;;  %v16928_v61 = vld [vmem:[#allocation47_spill] sm:$0xff]  ;;  %7815 = vrot.lane.b32.xlu0 %v11776_v50, %s8120_s19  ;;  %v7824_v41 = vpack.i.bf16 %v11803_v14, %v11762_v6  ;;  %v11907_v2 = vpop.f32.mrf.mxu2  ;;  %v2198_v1 = vrot.slane %v10285_v24, 1  ;;  %v2197_v27 = vrot.slane %v10282_v22, 1 }
 0x515   :  { %v11877_v12 = vsub.f32 %v16928_v61, %v10787_v20  ;;  %7845 = vrot.lane.b32.xlu2 %v16930_v25, %s8122_s21  ;;  %v16933_v61 = vld [vmem:[#allocation141_spill] sm:$0xff]  ;;  %16935 = vst [vmem:[#allocation183_spill] sm:$0xff] %v11907_v2  ;;  %v888_v2 = vadd.f32 %v887_v45, %v886_v3  ;;  %v16941_v45 = vrot.slane %v10246_v51, 1 }
 0x516   :  { %v7616_v50 = vpop.permute.xlu0 %7615  ;;  %v7163_v8 = vunpack.i.h.bf16 %v16933_v61  ;;  %v7162_v29 = vunpack.i.l.bf16 %v16933_v61  ;;  %v3807_v61 = vsel %vm1092_vm2, %v16741_v53, %v7612_v35  ;;  %v889_v35 = vsel %vm539_vm7, %v782_v39, 0.0  ;;  %v16943_v39 = vld [vmem:[#allocation204_spill] sm:$0xff] }
 0x517   :  { %16929 = vst [vmem:[#allocation32_spill] sm:$0xff] %v11877_v12  ;;  %7830 = vrot.lane.b32.xlu1 %v16932_v21, %s8119_s18  ;;  %v11898_v16 = vpop.permute.xlu2 %7675  ;;  %v7606_v25 = vpop.permute.xlu1 %7605  ;;  %v7618_v38 = vunpack.i.h.bf16 %v7616_v50  ;;  %v7617_v10 = vunpack.i.l.bf16 %v7616_v50  ;;  %v3808_v50 = vsel %vm1092_vm2, %v16742_v57, %v7613_v44  ;;  %v16939_v57 = vld [vmem:[#allocation217_spill] sm:$0xff]  ;;  %v11940_v3 = vsel %vm2079_vm9, %v2198_v1, %v2200_v28 }
 0x518   :  { %v7608_v21 = vunpack.i.h.bf16 %v7606_v25  ;;  %v7607_v59 = vunpack.i.l.bf16 %v7606_v25  ;;  %v4125_v7 = vsel %vm4096_vm14, %v4060_v36, %v7162_v29  ;;  %v4126_v49 = vsel %vm4096_vm14, %v4061_v37, %v7163_v8  ;;  %v16937_v29 = vld [vmem:[#allocation48_spill] sm:$0xff] }
 0x519   :  { %v3870_v36 = vsel %vm3839_vm10, %v3808_v50, %v7618_v38  ;;  %v3869_v37 = vsel %vm3839_vm10, %v3807_v61, %v7617_v10  ;;  %v11925_v42 = vsub.f32 %v16937_v29, %v10787_v20  ;;  %v7168_v44 = vunpack.i.h.bf16 %v16939_v57 }
 0x51a   :  { %v4190_v6 = vsel %vm4161_vm15, %v4125_v7, %v7607_v59  ;;  %v4191_v14 = vsel %vm4161_vm15, %v4126_v49, %v7608_v21  ;;  %v7167_v53 = vunpack.i.l.bf16 %v16939_v57  ;;  %v16940_v59 = vpack.i.bf16 %v16823_v26, %v16822_v11  ;;  %v16942_v49 = vld [vmem:[#allocation201_spill] sm:$0xff] }
 0x51b   :  { %v11917_v25 = vpop.f32.mrf.mxu1  ;;  %v4272_v8 = vpack.c.bf16 %v4191_v14, %v4190_v6  ;;  %16938 = vst [vmem:[#allocation106_spill] sm:$0xff] %v11925_v42  ;;  %v783_v10 = vmul.f32 %v11877_v12, %v11877_v12  ;;  %v2196_v38 = vsel %vm2079_vm9, %v16941_v45, %v2195_v18  ;;  %v3933_v11 = vsel %vm3901_vm11, %v3870_v36, %v7168_v44  ;;  %v16947_v44 = vld [vmem:[#allocation152_spill] sm:$0xff] }
 0x51c   :  { %16936 = vst [vmem:[#allocation33_spill] sm:$0xff] %v11917_v25  ;;  %7825 = vrot.lane.b32.xlu0 %v7824_v41, %s8121_s20  ;;  %v3932_v21 = vsel %vm3901_vm11, %v3869_v37, %v7167_v53  ;;  %v4299_v50 = vpack.c.bf16 %v16943_v39, %v16942_v49  ;;  %v7623_v28 = vunpack.i.h.bf16 %v11744_v34  ;;  %v7622_v61 = vunpack.i.l.bf16 %v11744_v34  ;;  %v16944_v37 = vld [vmem:[#allocation49_spill] sm:$0xff]  ;;  %v16948_v45 = vld [vmem:[#allocation120_spill] sm:$0xff] }
 0x51d   :  { %7855 = vrot.lane.b32.xlu2 %v16940_v59, %s8119_s18  ;;  %v890_v36 = vadd.f32 %v889_v35, %v888_v2  ;;  %v7859_v53 = vpack.i.bf16 %v16947_v44, %v11940_v3  ;;  %v784_v59 = vmul.f32 %v11925_v42, %v11925_v42  ;;  %v891_v35 = vsel %vm539_vm7, %v783_v10, 0.0  ;;  %v16967_v25 = vld [vmem:[#allocation53_spill] sm:$0xff] }
 0x51e   :  { %4532 = vmatmul.bf16.gmra.mxu1 %v4272_v8  ;;  %v7626_v7 = vpop.permute.xlu0 %7625  ;;  %v11961_v8 = vsub.f32 %v16944_v37, %v10787_v20  ;;  %v3997_v29 = vsel %vm3966_vm12, %v3932_v21, %v7622_v61  ;;  %v11978_v21 = vunpack.i.l.bf16 %v16948_v45  ;;  %v16951_v61 = vld [vmem:[#allocation50_spill] sm:$0xff] }
 0x51f   :  { %7840 = vrot.lane.b32.xlu1 %v11818_v4, %s8120_s19  ;;  %v11947_v41 = vpop.permute.xlu2 %7685  ;;  %v11952_v4 = vsel %vm2079_vm9, %v2197_v27, %v2198_v1  ;;  %v11956_v6 = vpop.permute.xlu1 %7645  ;;  %v7628_v18 = vunpack.i.h.bf16 %v7626_v7  ;;  %v7627_v14 = vunpack.i.l.bf16 %v7626_v7  ;;  %v3998_v1 = vsel %vm3966_vm12, %v3933_v11, %v7623_v28 }
 0x520   :  { %16945 = vst [vmem:[#allocation126_spill] sm:$0xff] %v11961_v8  ;;  %v11972_v2 = vpack.i.bf16 %v11952_v4, %v2196_v38  ;;  %v11980_v11 = vpop.f32.mrf.mxu2  ;;  %v7849_v7 = vpack.i.bf16 %v2196_v38, %v11808_v19  ;;  %v785_v19 = vmul.f32 %v11961_v8, %v11961_v8  ;;  %v11998_v38 = vunpack.i.l.bf16 %v11800_v54 }
 0x521   :  { %v4062_v27 = vsel %vm4031_vm13, %v3997_v29, %v7627_v14  ;;  %v4063_v57 = vsel %vm4031_vm13, %v3998_v1, %v7628_v18  ;;  %16949 = vst [vmem:[#allocation187_spill] sm:$0xff] %v11978_v21  ;;  %v11993_v18 = vsub.f32 %v16951_v61, %v10787_v20  ;;  %v893_v37 = vsel %vm539_vm7, %v784_v59, 0.0 }
 0x522   :  { %16950 = vst [vmem:[#allocation205_spill] sm:$0xff] %v11980_v11  ;;  %v4127_v28 = vsel %vm4096_vm14, %v4062_v27, %v11978_v21  ;;  %v4128_v10 = vsel %vm4096_vm14, %v4063_v57, %v11978_v21  ;;  %v895_v61 = vsel %vm539_vm7, %v785_v19, 0.0  ;;  %v16959_v19 = vld [vmem:[#allocation52_spill] sm:$0xff] }
 0x523   :  { %v11967_v34 = vpop.f32.mrf.mxu1  ;;  %16952 = vst [vmem:[#allocation34_spill] sm:$0xff] %v11993_v18  ;;  %v4192_v57 = vsel %vm4161_vm15, %v4127_v28, %v11998_v38  ;;  %v4193_v44 = vsel %vm4161_vm15, %v4128_v10, %v11998_v38  ;;  %v2202_v28 = vrot.slane %v16788_v33, 1  ;;  %v16964_v10 = vld [vmem:[#allocation207_spill] sm:$0xff]  ;;  %v16965_v11 = vld [vmem:[#allocation208_spill] sm:$0xff] }
 0x524   :  { %6925 = vmatmul.msk.bf16.gmra.mxu2 %vm1092_vm2, %v4299_v50  ;;  %16946 = vst [vmem:[#allocation185_spill] sm:$0xff] %v11967_v34  ;;  %v892_v50 = vadd.f32 %v891_v35, %v890_v36  ;;  %7835 = vrot.lane.b32.xlu0 %v11972_v2, %s8123_s24 }
 0x525   :  { %7860 = vrot.lane.b32.xlu2 %v7859_v53, %s8123_s24  ;;  %16953 = vst [vmem:[#allocation103_spill] sm:$0xff] %v11998_v38  ;;  %v16954_v53 = vld [vmem:[#allocation51_spill] sm:$0xff]  ;;  %v12061_v38 = vsub.f32 %v16967_v25, %v10787_v20 }
 0x526   :  { %v12002_v36 = vpop.permute.xlu0 %7640  ;;  %v894_v27 = vadd.f32 %v893_v37, %v892_v50  ;;  %v12012_v35 = vsub.f32 %v16954_v53, %v10787_v20  ;;  %v7647_v50 = vunpack.i.l.bf16 %v11956_v6  ;;  %v4274_v37 = vpack.c.bf16 %v4193_v44, %v4192_v57  ;;  %v16962_v44 = vld [vmem:[#allocation129_spill] sm:$0xff] }
 0x527   :  { %7850 = vrot.lane.b32.xlu1 %v7849_v7, %s8121_s20  ;;  %v12000_v14 = vpop.permute.xlu2 %7695  ;;  %v7656_v29 = vpop.permute.xlu1 %7655  ;;  %v7642_v1 = vunpack.i.l.bf16 %v12002_v36  ;;  %v786_v7 = vmul.f32 %v11993_v18, %v11993_v18  ;;  %v16957_v53 = vpack.i.bf16 %v16848_v23, %v16823_v26  ;;  %v16958_v18 = vld [vmem:[#allocation128_spill] sm:$0xff]  ;;  %16968 = vst [vmem:[#allocation135_spill] sm:$0xff] %v12061_v38 }
 0x528   :  { %16955 = vst [vmem:[#allocation94_spill] sm:$0xff] %v12012_v35  ;;  %v896_v42 = vadd.f32 %v895_v61, %v894_v27  ;;  %v12033_v8 = vpop.f32.mrf.mxu2  ;;  %v787_v26 = vmul.f32 %v12012_v35, %v12012_v35  ;;  %v16963_v61 = vld [vmem:[#allocation206_spill] sm:$0xff]  ;;  %v7658_v25 = vunpack.i.h.bf16 %v7656_v29 }
 0x529   :  { %v3778_v59 = vsel %vm1092_vm2, 0.0, %v7642_v1  ;;  %v12031_v1 = vsub.f32 %v16959_v19, %v10787_v20  ;;  %16961 = vst [vmem:[#allocation36_spill] sm:$0xff] %v12033_v8  ;;  %v897_v27 = vsel %vm539_vm7, %v786_v7, 0.0  ;;  %v4301_v8 = vpack.c.bf16 %v16965_v11, %v16964_v10 }
 0x52a   :  { %v12036_v57 = vsel %vm3839_vm10, %v3778_v59, %v7647_v50  ;;  %v7178_v59 = vunpack.i.h.bf16 %v16963_v61  ;;  %v898_v7 = vadd.f32 %v897_v27, %v896_v42 }
 0x52b   :  { %v12018_v12 = vpop.f32.mrf.mxu1  ;;  %16960 = vst [vmem:[#allocation35_spill] sm:$0xff] %v12031_v1 }
 0x52c   :  { %16956 = vst [vmem:[#allocation164_spill] sm:$0xff] %v12018_v12  ;;  %7865 = vrot.lane.b32.xlu0 %v16958_v18, %s8121_s20  ;;  %v7177_v18 = vunpack.i.l.bf16 %v16963_v61  ;;  %v7657_v61 = vunpack.i.l.bf16 %v7656_v29  ;;  %v3935_v21 = vsel %vm3901_vm11, %v12036_v57, %v7178_v59  ;;  %v7173_v59 = vunpack.i.h.bf16 %v16948_v45  ;;  %v16974_v45 = vld [vmem:[#allocation138_spill] sm:$0xff] }
 0x52d   :  { %7885 = vrot.lane.b32.xlu2 %v16957_v53, %s8122_s21 }
 0x52e   :  { %4537 = vmatmul.bf16.gmra.mxu1 %v4274_v37  ;;  %v7651_v19 = vpop.permute.xlu0 %7650  ;;  %v16966_v37 = vrot.slane %v16856_v40, 1  ;;  %v3934_v34 = vsel %vm3901_vm11, %v12036_v57, %v7177_v18  ;;  %v16970_v18 = vld [vmem:[#allocation153_spill] sm:$0xff] }
 0x52f   :  { %7870 = vrot.lane.b32.xlu1 %v16962_v44, %s8119_s18  ;;  %v12044_v53 = vpop.permute.xlu2 %7705  ;;  %v12049_v50 = vpop.permute.xlu1 %7670  ;;  %v7653_v12 = vunpack.i.h.bf16 %v7651_v19  ;;  %v7652_v44 = vunpack.i.l.bf16 %v7651_v19 }
 0x530   :  { %v12054_v35 = vsel %vm2079_vm9, %v2202_v28, %v16966_v37  ;;  %v788_v28 = vmul.f32 %v12031_v1, %v12031_v1  ;;  %v899_v37 = vsel %vm539_vm7, %v787_v26, 0.0  ;;  %v789_v26 = vmul.f32 %v12061_v38, %v12061_v38  ;;  %v16979_v1 = vld [vmem:[#allocation56_spill] sm:$0xff] }
 0x531   :  { %v3999_v19 = vsel %vm3966_vm12, %v3934_v34, %v7652_v44  ;;  %v4000_v42 = vsel %vm3966_vm12, %v3935_v21, %v7653_v12  ;;  %v900_v24 = vadd.f32 %v899_v37, %v898_v7  ;;  %v16971_v34 = vpack.i.bf16 %v16849_v15, %v16848_v23  ;;  %v16972_v12 = vld [vmem:[#allocation54_spill] sm:$0xff]  ;;  %v16975_v37 = vld [vmem:[#allocation73_spill] sm:$0xff] }
 0x532   :  { %v4064_v33 = vsel %vm4031_vm13, %v3999_v19, %v7657_v61  ;;  %v12083_v21 = vsub.f32 %v16972_v12, %v10787_v20  ;;  %v4065_v29 = vsel %vm4031_vm13, %v4000_v42, %v7658_v25  ;;  %v7182_v44 = vunpack.i.l.bf16 %v16974_v45  ;;  %v12101_v12 = vpop.f32.mrf.mxu2 }
 0x533   :  { %v12069_v27 = vpop.f32.mrf.mxu1  ;;  %v7643_v7 = vunpack.i.h.bf16 %v12002_v36  ;;  %v7672_v23 = vunpack.i.l.bf16 %v12049_v50  ;;  %16976 = vst [vmem:[#allocation165_spill] sm:$0xff] %v12101_v12  ;;  %v16977_v36 = vld [vmem:[#allocation55_spill] sm:$0xff] }
 0x534   :  { %6926 = vmatmul.msk.bf16.gmra.mxu2 %vm1092_vm2, %v4301_v8  ;;  %16969 = vst [vmem:[#allocation66_spill] sm:$0xff] %v12069_v27  ;;  %v7874_v8 = vpack.i.bf16 %v12054_v35, %v16970_v18  ;;  %v4129_v18 = vsel %vm4096_vm14, %v4064_v33, %v7173_v59  ;;  %v12106_v38 = vsub.f32 %v16977_v36, %v10787_v20  ;;  %v903_v59 = vsel %vm539_vm7, %v789_v26, 0.0 }
 0x535   :  { %7895 = vrot.lane.b32.xlu2 %v16971_v34, %s8119_s18  ;;  %16973 = vst [vmem:[#allocation84_spill] sm:$0xff] %v12083_v21  ;;  %v2383_v34 = vrot.slane %v16975_v37, 2  ;;  %v12110_v27 = vsub.f32 %v16979_v1, %v10787_v20  ;;  %v16981_v37 = vld [vmem:[#allocation186_spill] sm:$0xff]  ;;  %v3809_v51 = vsel %vm1092_vm2, %v16771_v13, %v7643_v7  ;;  %v3810_v36 = vsel %vm1092_vm2, %v16772_v17, %v7672_v23 }
 0x536   :  { %7875 = vrot.lane.b32.xlu0 %v7874_v8, %s8123_s24  ;;  %v12095_v19 = vpop.permute.xlu0 %7660  ;;  %v901_v8 = vsel %vm539_vm7, %v788_v28, 0.0  ;;  %16978 = vst [vmem:[#allocation107_spill] sm:$0xff] %v12106_v38  ;;  %v4130_v28 = vsel %vm4096_vm14, %v4065_v29, %v7182_v44  ;;  %v7677_v26 = vunpack.i.l.bf16 %v11898_v16  ;;  %v7648_v29 = vunpack.i.h.bf16 %v11956_v6 }
 0x537   :  { %7880 = vrot.lane.b32.xlu1 %v11972_v2, %s8120_s19  ;;  %v12093_v61 = vpop.permute.xlu2 %7715  ;;  %v7633_v2 = vunpack.i.h.bf16 %v11800_v54  ;;  %v7681_v42 = vpop.permute.xlu1 %7680  ;;  %v7662_v25 = vunpack.i.l.bf16 %v12095_v19  ;;  %16980 = vst [vmem:[#allocation130_spill] sm:$0xff] %v12110_v27  ;;  %v902_v33 = vadd.f32 %v901_v8, %v900_v24  ;;  %v2205_v54 = vrot.slane %v16981_v37, 1 }
 0x538   :  { %v7904_v24 = vpack.i.bf16 %v12054_v35, %v11940_v3  ;;  %v7889_v44 = vpack.i.bf16 %v11940_v3, %v11952_v4  ;;  %v790_v17 = vmul.f32 %v12083_v21, %v12083_v21  ;;  %v2207_v6 = vrot.slane %v16854_v0, 1 }
 0x539   :  { %v4194_v12 = vsel %vm4161_vm15, %v4129_v18, %v7633_v2  ;;  %v4195_v22 = vsel %vm4161_vm15, %v4130_v28, %v7662_v25  ;;  %v16983_v18 = vld [vmem:[#allocation99_spill] sm:$0xff]  ;;  %v904_v7 = vadd.f32 %v903_v59, %v902_v33  ;;  %v2208_v3 = vrot.slane %v16855_v58, 1  ;;  %v16987_v59 = vld [vmem:[#allocation209_spill] sm:$0xff] }
 0x53a   :  { %v4276_v1 = vpack.c.bf16 %v4195_v22, %v4194_v12  ;;  %v16984_v8 = vrot.slane %v16983_v18, 2  ;;  %v16985_v22 = vpack.i.bf16 %v16872_v62, %v16849_v15  ;;  %v3871_v4 = vsel %vm3839_vm10, %v3809_v51, %v7648_v29  ;;  %v16986_v12 = vld [vmem:[#allocation121_spill] sm:$0xff]  ;;  %v12174_v21 = vpop.f32.mrf.mxu2 }
 0x53b   :  { %v12121_v46 = vpop.f32.mrf.mxu1  ;;  %v3872_v23 = vsel %vm3839_vm10, %v3810_v36, %v7677_v26  ;;  %v7682_v2 = vunpack.i.l.bf16 %v7681_v42  ;;  %v7188_v25 = vunpack.i.h.bf16 %v16986_v12  ;;  %v7187_v33 = vunpack.i.l.bf16 %v16986_v12  ;;  %v16988_v51 = vld [vmem:[#allocation57_spill] sm:$0xff]  ;;  %16991 = vst [vmem:[#allocation191_spill] sm:$0xff] %v12174_v21 }
 0x53c   :  { %16982 = vst [vmem:[#allocation166_spill] sm:$0xff] %v12121_v46  ;;  %v12132_v13 = vsel %vm2232_vm8, %v16984_v8, %v2383_v34  ;;  %v7683_v34 = vunpack.i.h.bf16 %v7681_v42  ;;  %v791_v42 = vmul.f32 %v12106_v38, %v12106_v38  ;;  %v905_v29 = vsel %vm539_vm7, %v790_v17, 0.0  ;;  %v16992_v17 = vld [vmem:[#allocation131_spill] sm:$0xff] }
 0x53d   :  { %7905 = vrot.lane.b32.xlu2 %v7904_v24, %s8120_s19  ;;  %v4303_v37 = vpack.c.bf16 %v12132_v13, %v16987_v59  ;;  %v12156_v24 = vsub.f32 %v16988_v51, %v10787_v20  ;;  %v3937_v8 = vsel %vm3901_vm11, %v3872_v23, %v7188_v25  ;;  %v792_v12 = vmul.f32 %v12110_v27, %v12110_v27 }
 0x53e   :  { %7910 = vrot.lane.b32.xlu0 %v16985_v22, %s8122_s21  ;;  %4542 = vmatmul.bf16.gmra.mxu1 %v4276_v1  ;;  %v12150_v15 = vpop.permute.xlu0 %7665  ;;  %v16990_v1 = vrot.slane %v16856_v40, 1  ;;  %v12170_v22 = vsel %vm2079_vm9, %v2207_v6, %v2208_v3  ;;  %v906_v51 = vadd.f32 %v905_v29, %v904_v7  ;;  %v7687_v23 = vunpack.i.l.bf16 %v11947_v41 }
 0x53f   :  { %7890 = vrot.lane.b32.xlu1 %v7889_v44, %s8121_s20  ;;  %v12148_v28 = vpop.permute.xlu2 %7760  ;;  %16989 = vst [vmem:[#allocation211_spill] sm:$0xff] %v12156_v24  ;;  %v12160_v36 = vpop.permute.xlu1 %7690  ;;  %v3936_v44 = vsel %vm3901_vm11, %v3871_v4, %v7187_v33  ;;  %v7688_v4 = vunpack.i.h.bf16 %v11947_v41  ;;  %v907_v33 = vsel %vm539_vm7, %v791_v42, 0.0  ;;  %v16995_v41 = vpack.i.bf16 %v16873_v9, %v16872_v62 }
 0x540   :  { %v2206_v26 = vsel %vm2079_vm9, %v16990_v1, %v2205_v54  ;;  %v4001_v38 = vsel %vm3966_vm12, %v3936_v44, %v7682_v2  ;;  %v4002_v54 = vsel %vm3966_vm12, %v3937_v8, %v7683_v34  ;;  %v2210_v1 = vrot.slane %v16992_v17, 1  ;;  %v16994_v2 = vld [vmem:[#allocation74_spill] sm:$0xff]  ;;  %v16996_v17 = vld [vmem:[#allocation123_spill] sm:$0xff] }
 0x541   :  { %v7914_v6 = vpack.i.bf16 %v2206_v26, %v12054_v35  ;;  %v12186_v7 = vpack.i.bf16 %v12170_v22, %v2206_v26  ;;  %v7673_v34 = vunpack.i.h.bf16 %v12049_v50  ;;  %v7692_v44 = vunpack.i.l.bf16 %v12160_v36  ;;  %v16997_v50 = vld [vmem:[#allocation58_spill] sm:$0xff] }
 0x542   :  { %v4066_v35 = vsel %vm4031_vm13, %v4001_v38, %v7687_v23  ;;  %v4067_v42 = vsel %vm4031_vm13, %v4002_v54, %v7688_v4  ;;  %v908_v26 = vadd.f32 %v907_v33, %v906_v51  ;;  %v7183_v8 = vunpack.i.h.bf16 %v16974_v45 }
 0x543   :  { %v12181_v25 = vpop.f32.mrf.mxu1  ;;  %v7217_v29 = vunpack.i.l.bf16 %v16996_v17  ;;  %v793_v62 = vmul.f32 %v12156_v24, %v12156_v24  ;;  %v12215_v45 = vsel %vm2079_vm9, %v2208_v3, %v2210_v1  ;;  %v16999_v23 = vrot.slane %v16994_v2, 1 }
 0x544   :  { %6927 = vmatmul.msk.bf16.gmra.mxu2 %vm1092_vm2, %v4303_v37  ;;  %16993 = vst [vmem:[#allocation192_spill] sm:$0xff] %v12181_v25  ;;  %v2212_v37 = vrot.slane %v16863_v52, 1  ;;  %v909_v24 = vsel %vm539_vm7, %v792_v12, 0.0  ;;  %v3811_v21 = vsel %vm1092_vm2, %v16769_v55, %v7673_v34  ;;  %v7663_v3 = vunpack.i.h.bf16 %v12095_v19  ;;  %v17000_v19 = vld [vmem:[#allocation59_spill] sm:$0xff] }
 0x545   :  { %7915 = vrot.lane.b32.xlu2 %v7914_v6, %s8121_s20  ;;  %v12205_v6 = vsub.f32 %v16997_v50, %v10787_v20  ;;  %v4131_v50 = vsel %vm4096_vm14, %v4066_v35, %v7183_v8  ;;  %v4132_v27 = vsel %vm4096_vm14, %v4067_v42, %v7217_v29  ;;  %v910_v25 = vadd.f32 %v909_v24, %v908_v26  ;;  %v12248_v24 = vpop.f32.mrf.mxu2  ;;  %v17003_v42 = vld [vmem:[#allocation105_spill] sm:$0xff] }
 0x546   :  { %7920 = vrot.lane.b32.xlu0 %v16995_v41, %s8119_s18  ;;  %v7697_v41 = vunpack.i.l.bf16 %v12000_v14  ;;  %v12212_v54 = vpop.permute.xlu0 %7700  ;;  %v12223_v33 = vsel %vm2079_vm9, %v2212_v37, %v16999_v23  ;;  %v4197_v1 = vsel %vm4161_vm15, %v4132_v27, %v7692_v44  ;;  %v7678_v46 = vunpack.i.h.bf16 %v11898_v16  ;;  %17002 = vst [vmem:[#allocation215_spill] sm:$0xff] %v12248_v24 }
 0x547   :  { %7900 = vrot.lane.b32.xlu1 %v12186_v7, %s8123_s24  ;;  %16998 = vst [vmem:[#allocation37_spill] sm:$0xff] %v12205_v6  ;;  %v12210_v38 = vpop.permute.xlu2 %7770  ;;  %v12217_v51 = vpop.permute.xlu1 %7725  ;;  %v7702_v4 = vunpack.i.l.bf16 %v12212_v54  ;;  %v12239_v29 = vpack.i.bf16 %v12223_v33, %v12215_v45  ;;  %v7934_v12 = vpack.i.bf16 %v16994_v2, %v16863_v52  ;;  %v4196_v55 = vsel %vm4161_vm15, %v4131_v50, %v7663_v3 }
 0x548   :  { %v3812_v37 = vsel %vm1092_vm2, %v16770_v43, %v7697_v41  ;;  %v12246_v27 = vsub.f32 %v17000_v19, %v10787_v20  ;;  %v3873_v16 = vsel %vm3839_vm10, %v3811_v21, %v7678_v46  ;;  %v4278_v34 = vpack.c.bf16 %v4197_v1, %v4196_v55  ;;  %v17005_v55 = vld [vmem:[#allocation60_spill] sm:$0xff] }
 0x549   :  { %v3874_v43 = vsel %vm3839_vm10, %v3812_v37, %v7702_v4  ;;  %v794_v44 = vmul.f32 %v12205_v6, %v12205_v6  ;;  %v911_v35 = vsel %vm539_vm7, %v793_v62, 0.0  ;;  %v7223_v26 = vunpack.i.h.bf16 %v17003_v42 }
 0x54a   :  { %17001 = vst [vmem:[#allocation38_spill] sm:$0xff] %v12246_v27  ;;  %v7222_v8 = vunpack.i.l.bf16 %v17003_v42  ;;  %v912_v41 = vadd.f32 %v911_v35, %v910_v25  ;;  %v17004_v46 = vpack.i.bf16 %v16899_v63, %v16873_v9  ;;  %v7708_v3 = vunpack.i.h.bf16 %v12044_v53 }
 0x54b   :  { %v12235_v23 = vpop.f32.mrf.mxu1  ;;  %v3939_v21 = vsel %vm3901_vm11, %v3874_v43, %v7223_v26  ;;  %v7707_v1 = vunpack.i.l.bf16 %v12044_v53  ;;  %v12274_v9 = vsub.f32 %v17005_v55, %v10787_v20  ;;  %v795_v19 = vmul.f32 %v12246_v27, %v12246_v27  ;;  %v17011_v55 = vld [vmem:[#allocation68_spill] sm:$0xff] }
 0x54c   :  { %v3938_v62 = vsel %vm3901_vm11, %v3873_v16, %v7222_v8  ;;  %v913_v43 = vsel %vm539_vm7, %v794_v44, 0.0  ;;  %v17008_v16 = vld [vmem:[#allocation200_spill] sm:$0xff]  ;;  %v4004_v26 = vsel %vm3966_vm12, %v3939_v21, %v7708_v3  ;;  %v7929_v27 = vpack.i.bf16 %v17011_v55, %v16994_v2  ;;  %v17012_v44 = vld [vmem:[#allocation61_spill] sm:$0xff] }
 0x54d   :  { %7925 = vrot.lane.b32.xlu2 %v12239_v29, %s8123_s24  ;;  %17006 = vst [vmem:[#allocation39_spill] sm:$0xff] %v12274_v9  ;;  %v914_v42 = vadd.f32 %v913_v43, %v912_v41  ;;  %v4003_v53 = vsel %vm3966_vm12, %v3938_v62, %v7707_v1  ;;  %v12293_v6 = vsub.f32 %v17012_v44, %v10787_v20  ;;  %v17014_v41 = vld [vmem:[#allocation3_spill] sm:$0xff]  ;;  %v915_v62 = vsel %vm539_vm7, %v795_v19, 0.0  ;;  %v12303_v1 = vpop.f32.mrf.mxu2 }
 0x54e   :  { %7935 = vrot.lane.b32.xlu0 %v7934_v12, %s8116_s2  ;;  %4547 = vmatmul.bf16.gmra.mxu1 %v4278_v34  ;;  %v7711_v50 = vpop.permute.xlu0 %7710  ;;  %v17007_v34 = vld [vmem:[#allocation202_spill] sm:$0xff]  ;;  %v7252_v43 = vunpack.i.l.bf16 %v17014_v41  ;;  %v796_v21 = vmul.f32 %v12274_v9, %v12274_v9  ;;  %17015 = vst [vmem:[#allocation90_spill] sm:$0xff] %v12303_v1  ;;  %v7693_v19 = vunpack.i.h.bf16 %v12160_v36 }
 0x54f   :  { %7945 = vrot.lane.b32.xlu1 %v17004_v46, %s8122_s21  ;;  %v12265_v4 = vpop.permute.xlu2 %7780  ;;  %v12270_v37 = vpop.permute.xlu1 %7735  ;;  %v7713_v25 = vunpack.i.h.bf16 %v7711_v50  ;;  %v7712_v12 = vunpack.i.l.bf16 %v7711_v50  ;;  %v17009_v35 = vpack.c.bf16 %v17007_v34, %v17008_v16  ;;  %17013 = vst [vmem:[#allocation41_spill] sm:$0xff] %v12293_v6  ;;  %v916_v3 = vadd.f32 %v915_v62, %v914_v42 }
 0x551   :  { %v4068_v8 = vsel %vm4031_vm13, %v4003_v53, %v7712_v12  ;;  %v4069_v46 = vsel %vm4031_vm13, %v4004_v26, %v7713_v25  ;;  %v17016_v25 = vpack.i.bf16 %v16900_v30, %v16899_v63  ;;  %v7717_v53 = vunpack.i.l.bf16 %v12093_v61 }
 0x552   :  { %v4134_v12 = vsel %vm4096_vm14, %v4069_v46, %v7252_v43  ;;  %v797_v63 = vmul.f32 %v12293_v6, %v12293_v6  ;;  %v917_v46 = vsel %vm539_vm7, %v796_v21, 0.0  ;;  %v17021_v6 = vld [vmem:[#allocation67_spill] sm:$0xff] }
 0x553   :  { %v12287_v50 = vpop.f32.mrf.mxu1  ;;  %v4199_v43 = vsel %vm4161_vm15, %v4134_v12, %v7717_v53  ;;  %v918_v62 = vadd.f32 %v917_v46, %v916_v3  ;;  %v2215_v1 = vrot.slane %v17021_v6, 1  ;;  %v17025_v46 = vld [vmem:[#allocation149_spill] sm:$0xff] }
 0x554   :  { %6928 = vmatmul.msk.bf16.gmra.mxu2 %vm1092_vm2, %v17009_v35  ;;  %17010 = vst [vmem:[#allocation40_spill] sm:$0xff] %v12287_v50  ;;  %v7218_v35 = vunpack.i.h.bf16 %v16996_v17  ;;  %v17023_v50 = vld [vmem:[#allocation97_spill] sm:$0xff]  ;;  %v919_v6 = vsel %vm539_vm7, %v797_v63, 0.0 }
 0x555   :  { %7930 = vrot.lane.b32.xlu2 %v7929_v27, %s8117_s3  ;;  %v7969_v21 = vpack.i.bf16 %v17023_v50, %v17011_v55  ;;  %v16120_v53 = vrot.slane %v17023_v50, 1 }
 0x556   :  { %7940 = vrot.lane.b32.xlu0 %v12186_v7, %s8120_s19  ;;  %v4133_v17 = vsel %vm4096_vm14, %v4068_v8, %v7218_v35  ;;  %v12315_v26 = vpop.permute.xlu0 %7720  ;;  %v17017_v7 = vld [vmem:[#allocation62_spill] sm:$0xff]  ;;  %v7698_v35 = vunpack.i.h.bf16 %v12000_v14  ;;  %v7949_v14 = vpack.i.bf16 %v12215_v45, %v12170_v22  ;;  %v17026_v22 = vpack.i.bf16 %v16921_v56, %v16900_v30 }
 0x557   :  { %7955 = vrot.lane.b32.xlu1 %v17016_v25, %s8119_s18  ;;  %v12313_v27 = vpop.permute.xlu2 %7790  ;;  %v12319_v42 = vsub.f32 %v17017_v7, %v10787_v20  ;;  %v7722_v8 = vunpack.i.l.bf16 %v12315_v26  ;;  %v4198_v36 = vsel %vm4161_vm15, %v4133_v17, %v7693_v19  ;;  %v7703_v25 = vunpack.i.h.bf16 %v12212_v54  ;;  %v17019_v7 = vld [vmem:[#allocation63_spill] sm:$0xff]  ;;  %v17024_v17 = vld [vmem:[#allocation124_spill] sm:$0xff] }
 0x558   :  { %v12333_v9 = vsub.f32 %v17019_v7, %v10787_v20  ;;  %v4280_v3 = vpack.c.bf16 %v4199_v43, %v4198_v36  ;;  %v2217_v54 = vrot.slane %v17011_v55, 1  ;;  %v3813_v7 = vsel %vm1092_vm2, %v17025_v46, %v7698_v35  ;;  %v17027_v36 = vld [vmem:[#allocation127_spill] sm:$0xff] }
 0x559   :  { %17018 = vst [vmem:[#allocation110_spill] sm:$0xff] %v12319_v42  ;;  %v12323_v44 = vpop.permute.xlu1 %7750  ;;  %v3814_v12 = vsel %vm1092_vm2, %v17024_v17, %v7722_v8  ;;  %v798_v19 = vmul.f32 %v12319_v42, %v12319_v42  ;;  %v920_v45 = vadd.f32 %v919_v6, %v918_v62  ;;  %v3875_v8 = vsel %vm3839_vm10, %v3813_v7, %v7703_v25  ;;  %v12381_v6 = vpop.f32.mrf.mxu2 }
 0x55a   :  { %17020 = vst [vmem:[#allocation133_spill] sm:$0xff] %v12333_v9  ;;  %v7282_v63 = vunpack.i.l.bf16 %v17027_v36  ;;  %v17028_v46 = vrot.slane %v16994_v2, 1 }
 0x55b   :  { %v12336_v24 = vpop.f32.mrf.mxu1  ;;  %17031 = vst [vmem:[#allocation88_spill] sm:$0xff] %v12381_v6  ;;  %v17040_v6 = vld [vmem:[#allocation159_spill] sm:$0xff] }
 0x55c   :  { %17022 = vst [vmem:[#allocation42_spill] sm:$0xff] %v12336_v24  ;;  %v7727_v24 = vunpack.i.l.bf16 %v12217_v51  ;;  %v2216_v30 = vsel %vm2079_vm9, %v17028_v46, %v2215_v1  ;;  %v921_v1 = vsel %vm539_vm7, %v798_v19, 0.0  ;;  %v3940_v7 = vsel %vm3901_vm11, %v3875_v8, %v7282_v63  ;;  %v17033_v19 = vld [vmem:[#allocation65_spill] sm:$0xff] }
 0x55d   :  { %7980 = vrot.lane.b32.xlu2 %v17026_v22, %s8122_s21  ;;  %v7283_v22 = vunpack.i.h.bf16 %v17027_v36  ;;  %v17032_v36 = vld [vmem:[#allocation81_spill] sm:$0xff]  ;;  %v7738_v8 = vunpack.i.h.bf16 %v12270_v37 }
 0x55e   :  { %7950 = vrot.lane.b32.xlu0 %v7949_v14, %s8121_s20  ;;  %4552 = vmatmul.bf16.gmra.mxu1 %v4280_v3  ;;  %v3876_v43 = vsel %vm3839_vm10, %v3814_v12, %v7727_v24  ;;  %v7731_v17 = vpop.permute.xlu0 %7730  ;;  %v17029_v24 = vld [vmem:[#allocation64_spill] sm:$0xff]  ;;  %v799_v3 = vmul.f32 %v12333_v9, %v12333_v9  ;;  %v12393_v9 = vsub.f32 %v17033_v19, %v10787_v20 }
 0x55f   :  { %7970 = vrot.lane.b32.xlu1 %v7969_v21, %s8116_s2  ;;  %v12361_v35 = vpop.permute.xlu2 %7800  ;;  %v7733_v62 = vunpack.i.h.bf16 %v7731_v17  ;;  %v7732_v25 = vunpack.i.l.bf16 %v7731_v17  ;;  %v12372_v21 = vsel %vm2079_vm9, %v2217_v54, %v16120_v53  ;;  %v12376_v12 = vsub.f32 %v17029_v24, %v10787_v20 }
 0x560   :  { %v922_v17 = vadd.f32 %v921_v1, %v920_v45  ;;  %v7737_v54 = vunpack.i.l.bf16 %v12270_v37  ;;  %v3941_v46 = vsel %vm3901_vm11, %v3876_v43, %v7283_v22  ;;  %v7959_v42 = vpack.i.bf16 %v12372_v21, %v2216_v30  ;;  %17034 = vst [vmem:[#allocation190_spill] sm:$0xff] %v12393_v9 }
 0x561   :  { %v12367_v14 = vpop.permute.xlu1 %7755  ;;  %17030 = vst [vmem:[#allocation194_spill] sm:$0xff] %v12376_v12  ;;  %v4005_v24 = vsel %vm3966_vm12, %v3940_v7, %v7732_v25  ;;  %v4006_v53 = vsel %vm3966_vm12, %v3941_v46, %v7733_v62  ;;  %v800_v45 = vmul.f32 %v12376_v12, %v12376_v12  ;;  %v923_v43 = vsel %vm539_vm7, %v799_v3, 0.0  ;;  %v17037_v25 = vld [vmem:[#allocation79_spill] sm:$0xff] }
 0x562   :  { %v4070_v63 = vsel %vm4031_vm13, %v4005_v24, %v7737_v54  ;;  %v7253_v22 = vunpack.i.h.bf16 %v17014_v41  ;;  %v17036_v62 = vpack.i.bf16 %v16922_v5, %v16921_v56  ;;  %v924_v20 = vadd.f32 %v923_v43, %v922_v17 }
 0x563   :  { %v4071_v37 = vsel %vm4031_vm13, %v4006_v53, %v7738_v8  ;;  %v7362_v1 = vunpack.i.l.bf16 %v17037_v25  ;;  %v801_v56 = vmul.f32 %v12393_v9, %v12393_v9  ;;  %v7718_v54 = vunpack.i.h.bf16 %v12093_v61  ;;  %v17039_v9 = vld [vmem:[#allocation69_spill] sm:$0xff] }
 0x564   :  { %6929 = vmatmul.msk.bf16.gmra.mxu2 %vm1092_vm2, %v17032_v36  ;;  %v12397_v36 = vpop.f32.mrf.mxu1  ;;  %v4135_v41 = vsel %vm4096_vm14, %v4070_v63, %v7253_v22  ;;  %v7723_v17 = vunpack.i.h.bf16 %v12315_v26  ;;  %v17038_v22 = vld [vmem:[#allocation70_spill] sm:$0xff]  ;;  %v2220_v12 = vrot.slane %v17039_v9, 1  ;;  %v7772_v9 = vunpack.i.l.bf16 %v12210_v38 }
 0x565   :  { %17035 = vst [vmem:[#allocation167_spill] sm:$0xff] %v12397_v36  ;;  %7990 = vrot.lane.b32.xlu2 %v17036_v62, %s8119_s18  ;;  %v4136_v19 = vsel %vm4096_vm14, %v4071_v37, %v7362_v1  ;;  %v4200_v63 = vsel %vm4161_vm15, %v4135_v41, %v7718_v54  ;;  %v7964_v61 = vpack.i.bf16 %v17038_v22, %v17023_v50  ;;  %v927_v26 = vsel %vm539_vm7, %v801_v56, 0.0  ;;  %v17042_v54 = vld [vmem:[#allocation98_spill] sm:$0xff] }
 0x566   :  { %7960 = vrot.lane.b32.xlu0 %v7959_v42, %s8123_s24  ;;  %v12414_v3 = vpop.permute.xlu0 %7740  ;;  %v7984_v36 = vpack.i.bf16 %v2216_v30, %v12223_v33  ;;  %v7728_v37 = vunpack.i.h.bf16 %v12217_v51  ;;  %v2222_v41 = vrot.slane %v17038_v22, 1  ;;  %v2223_v56 = vrot.slane %v17042_v54, 1 }
 0x567   :  { %7975 = vrot.lane.b32.xlu1 %v12239_v29, %s8120_s19  ;;  %v12412_v7 = vpop.permute.xlu2 %7810  ;;  %v7742_v53 = vunpack.i.l.bf16 %v12414_v3  ;;  %v925_v29 = vsel %vm539_vm7, %v800_v45, 0.0  ;;  %v3815_v45 = vsel %vm1092_vm2, %v17040_v6, %v7723_v17  ;;  %vm5707_vm7 = vcmask 64512  }
 0x568   :  { %v926_v8 = vadd.f32 %v925_v29, %v924_v20  ;;  %v17041_v20 = vld [vmem:[#allocation132_spill] sm:$0xff]  ;;  %v3877_v51 = vsel %vm3839_vm10, %v3815_v45, %v7728_v37 }
 0x569   :  { %v12421_v46 = vpop.permute.xlu1 %7765  ;;  %v4201_v43 = vsel %vm4161_vm15, %v4136_v19, %v7742_v53  ;;  %v17045_v19 = vrot.slane %v17023_v50, 1 }
 0x56a   :  { %v7767_v24 = vunpack.i.l.bf16 %v12421_v46  ;;  %v4282_v62 = vpack.c.bf16 %v4201_v43, %v4200_v63  ;;  %v928_v53 = vadd.f32 %v927_v26, %v926_v8  ;;  %v17046_v26 = vld [vmem:[#allocation71_spill] sm:$0xff] }
 0x56b   :  { %v2221_v8 = vsel %vm2079_vm9, %v17045_v19, %v2220_v12  ;;  %v2225_v45 = vrot.slane %v17046_v26, 1  ;;  %v17047_v19 = vld [vmem:[#allocation72_spill] sm:$0xff]  ;;  %v7768_v26 = vunpack.i.h.bf16 %v12421_v46 }
 0x56c   :  { %v3816_v1 = vsel %vm1092_vm2, %v17041_v20, %v7767_v24  ;;  %v12444_v29 = vpop.f32.mrf.mxu1  ;;  %v7782_v20 = vunpack.i.l.bf16 %v12265_v4  ;;  %v8014_v12 = vpack.i.bf16 %v2221_v8, %v12372_v21 }
 0x56d   :  { %8005 = vrot.lane.b32.xlu2 %v7959_v42, %s8120_s19  ;;  %17043 = vst [vmem:[#allocation43_spill] sm:$0xff] %v12444_v29  ;;  %v17044_v42 = vld [vmem:[#allocation10_spill] sm:$0xff]  ;;  %v3878_v17 = vsel %vm3839_vm10, %v3816_v1, %v7772_v9  ;;  %v7783_v29 = vunpack.i.h.bf16 %v12265_v4 }
 0x56e   :  { %7965 = vrot.lane.b32.xlu0 %v7964_v61, %s8117_s3  ;;  %4557 = vmatmul.bf16.gmra.mxu1 %v4282_v62  ;;  %v12450_v30 = vpop.permute.xlu0 %7745  ;;  %v7367_v6 = vunpack.i.l.bf16 %v17044_v42  ;;  %v7368_v63 = vunpack.i.h.bf16 %v17044_v42  ;;  %v12459_v61 = vsel %vm2079_vm9, %v2222_v41, %v2223_v56  ;;  %v929_v62 = vrot.slane %v928_v53, 4 }
 0x56f   :  { %7985 = vrot.lane.b32.xlu1 %v7984_v36, %s8121_s20  ;;  %v12448_v33 = vpop.permute.xlu2 %7845  ;;  %v2227_v41 = vrot.slane %v17047_v19, 1 }
 0x570   :  { %v3942_v37 = vsel %vm3901_vm11, %v3877_v51, %v7367_v6  ;;  %v3943_v1 = vsel %vm3901_vm11, %v3878_v17, %v7368_v63  ;;  %v17048_v6 = vpack.i.bf16 %v16942_v49, %v16922_v5  ;;  %v930_v21 = vadd.f32 %v929_v62, %v928_v53 }
 0x571   :  { %v7776_v24 = vpop.permute.xlu1 %7775  ;;  %v7363_v17 = vunpack.i.h.bf16 %v17037_v25  ;;  %v17051_v62 = vrot.slane %v16983_v18, 1 }
 0x572   :  { %v7778_v43 = vunpack.i.h.bf16 %v7776_v24  ;;  %v7777_v36 = vunpack.i.l.bf16 %v7776_v24  ;;  %v7994_v24 = vpack.i.bf16 %v12459_v61, %v2221_v8  ;;  %v7792_v8 = vunpack.i.l.bf16 %v12313_v27 }
 0x574   :  { %v4007_v9 = vsel %vm3966_vm12, %v3942_v37, %v7777_v36  ;;  %v4008_v42 = vsel %vm3966_vm12, %v3943_v1, %v7778_v43  ;;  %v12487_v43 = vsel %vm2079_vm9, %v2223_v56, %v2225_v45  ;;  %v17049_v36 = vld [vmem:[#allocation155_spill] sm:$0xff]  ;;  %v12490_v5 = vpop.f32.mrf.mxu1  ;;  %v17052_v1 = vld [vmem:[#allocation92_spill] sm:$0xff]  ;;  %v7743_v56 = vunpack.i.h.bf16 %v12414_v3 }
 0x575   :  { %v4072_v51 = vsel %vm4031_vm13, %v4007_v9, %v7782_v20  ;;  %8015 = vrot.lane.b32.xlu2 %v8014_v12, %s8121_s20  ;;  %v4073_v4 = vsel %vm4031_vm13, %v4008_v42, %v7783_v29  ;;  %v7397_v37 = vunpack.i.l.bf16 %v17049_v36  ;;  %17050 = vst [vmem:[#allocation197_spill] sm:$0xff] %v12490_v5  ;;  %v12496_v20 = vsel %vm2079_vm9, %v2227_v41, %v17051_v62 }
 0x576   :  { %8010 = vrot.lane.b32.xlu0 %v17048_v6, %s8122_s21  ;;  %v12484_v46 = vpop.permute.xlu0 %7795  ;;  %v4137_v29 = vsel %vm4096_vm14, %v4072_v51, %v7363_v17  ;;  %v3817_v9 = vsel %vm1092_vm2, %v17052_v1, %v7768_v26  ;;  %v931_v12 = vrot.slane %v930_v21, 2  ;;  %v7773_v42 = vunpack.i.h.bf16 %v12210_v38 }
 0x577   :  { %7995 = vrot.lane.b32.xlu1 %v7994_v24, %s8123_s24  ;;  %v12482_v63 = vpop.permute.xlu2 %7855  ;;  %v7797_v25 = vunpack.i.l.bf16 %v12484_v46  ;;  %v4138_v6 = vsel %vm4096_vm14, %v4073_v4, %v7397_v37  ;;  %v3818_v5 = vsel %vm1092_vm2, %v16831_v47, %v7792_v8  ;;  %v12508_v41 = vpack.i.bf16 %v12496_v20, %v12487_v43  ;;  %v17053_v4 = vld [vmem:[#allocation100_spill] sm:$0xff] }
 0x578   :  { %v4202_v51 = vsel %vm4161_vm15, %v4137_v29, %v7743_v56  ;;  %v3879_v26 = vsel %vm3839_vm10, %v3817_v9, %v7773_v42  ;;  %v7999_v38 = vpack.i.bf16 %v17047_v19, %v17042_v54  ;;  %v7403_v37 = vunpack.i.h.bf16 %v17053_v4 }
 0x579   :  { %v7786_v53 = vpop.permute.xlu1 %7785  ;;  %v3880_v3 = vsel %vm3839_vm10, %v3818_v5, %v7797_v25  ;;  %v7402_v47 = vunpack.i.l.bf16 %v17053_v4  ;;  %v17054_v8 = vpack.i.bf16 %v16943_v39, %v16942_v49  ;;  %v932_v5 = vadd.f32 %v931_v12, %v930_v21 }
 0x57a   :  { %v7787_v45 = vunpack.i.l.bf16 %v7786_v53  ;;  %v3945_v25 = vsel %vm3901_vm11, %v3880_v3, %v7403_v37  ;;  %v7803_v56 = vunpack.i.h.bf16 %v12361_v35  ;;  %v17056_v37 = vpack.i.bf16 %v16964_v10, %v16943_v39 }
 0x57b   :  { %v3944_v1 = vsel %vm3901_vm11, %v3879_v26, %v7402_v47  ;;  %v933_v12 = vrot.slane %v932_v5, 1 }
 0x57c   :  { %v4203_v17 = vsel %vm4161_vm15, %v4138_v6, %v7787_v45  ;;  %v7802_v45 = vunpack.i.l.bf16 %v12361_v35  ;;  %v4010_v21 = vsel %vm3966_vm12, %v3945_v25, %v7803_v56  ;;  %v7398_v35 = vunpack.i.h.bf16 %v17049_v36 }
 0x57d   :  { %v4284_v62 = vpack.c.bf16 %v4203_v17, %v4202_v51  ;;  %8025 = vrot.lane.b32.xlu2 %v12508_v41, %s8123_s24  ;;  %v12533_v51 = vpop.f32.mrf.mxu1  ;;  %v934_v25 = vadd.f32 %v933_v12, %v932_v5 }
 0x57e   :  { %8020 = vrot.lane.b32.xlu0 %v17054_v8, %s8119_s18  ;;  %v7806_v9 = vpop.permute.xlu0 %7805  ;;  %v4009_v17 = vsel %vm3966_vm12, %v3944_v1, %v7802_v45  ;;  %v7812_v1 = vunpack.i.l.bf16 %v12412_v7 }
 0x57f   :  { %8000 = vrot.lane.b32.xlu1 %v7999_v38, %s8117_s3  ;;  %4562 = vmatmul.bf16.gmra.mxu1 %v4284_v62  ;;  %v12526_v29 = vpop.permute.xlu2 %7860  ;;  %v7808_v6 = vunpack.i.h.bf16 %v7806_v9  ;;  %v7807_v49 = vunpack.i.l.bf16 %v7806_v9  ;;  %v8029_v38 = vpack.i.bf16 %v17042_v54, %v17038_v22  ;;  %v17055_v62 = vld [vmem:[#allocation83_spill] sm:$0xff]  ;;  %v7788_v9 = vunpack.i.h.bf16 %v7786_v53 }
 0x580   :  { %v7432_v4 = vunpack.i.l.bf16 %v17055_v62  ;;  %v8049_v53 = vpack.i.bf16 %v12487_v43, %v12459_v61  ;;  %v17058_v61 = vpack.i.bf16 %v16965_v11, %v16964_v10 }
 0x581   :  { %v12531_v42 = vpop.permute.xlu1 %7820  ;;  %v4074_v3 = vsel %vm4031_vm13, %v4009_v17, %v7807_v49  ;;  %v4075_v26 = vsel %vm4031_vm13, %v4010_v21, %v7808_v6  ;;  %v7798_v17 = vunpack.i.h.bf16 %v12484_v46  ;;  %v935_v21 = vmul.f32 0.001953125, %v934_v25 }
 0x582   :  { %v4139_v47 = vsel %vm4096_vm14, %v4074_v3, %v7398_v35  ;;  %v4140_v8 = vsel %vm4096_vm14, %v4075_v26, %v7432_v4  ;;  %v17057_v3 = vld [vmem:[#allocation87_spill] sm:$0xff]  ;;  %v7822_v35 = vunpack.i.l.bf16 %v12531_v42 }
 0x583   :  { %v4204_v49 = vsel %vm4161_vm15, %v4139_v47, %v7788_v9  ;;  %v4205_v39 = vsel %vm4161_vm15, %v4140_v8, %v7812_v1  ;;  %v8034_v5 = vpack.i.bf16 %v17057_v3, %v16983_v18  ;;  %v12576_v43 = vadd.f32 1e-05, %v935_v21 }
 0x585   :  { %8030 = vrot.lane.b32.xlu2 %v8029_v38, %s8116_s2  ;;  %v12562_v12 = vpop.f32.mrf.mxu1  ;;  %v4286_v38 = vpack.c.bf16 %v4205_v39, %v4204_v49  ;;  %8110 = vrsqrt.f32 %v12576_v43  ;;  %vm943_vm1 = vweird.f32 %v12576_v43 }
 0x586   :  { %8040 = vrot.lane.b32.xlu0 %v7994_v24, %s8120_s19  ;;  %v7816_v56 = vpop.permute.xlu0 %7815  ;;  %v7793_v24 = vunpack.i.h.bf16 %v12313_v27 }
 0x587   :  { %8045 = vrot.lane.b32.xlu1 %v17056_v37, %s8122_s21  ;;  %v12552_v36 = vpop.permute.xlu2 %7885  ;;  %v7817_v6 = vunpack.i.l.bf16 %v7816_v56 }
 0x588   :  { %v3819_v27 = vsel %vm1092_vm2, %v16865_v32, %v7793_v24 }
 0x589   :  { %v7831_v45 = vpop.permute.xlu1 %7830  ;;  %v3820_v26 = vsel %vm1092_vm2, %v16869_v48, %v7817_v6  ;;  %v3881_v46 = vsel %vm3839_vm10, %v3819_v27, %v7798_v17  ;;  %v17059_v48 = vld [vmem:[#allocation15_spill] sm:$0xff] }
 0x58a   :  { %v7462_v4 = vunpack.i.l.bf16 %v17059_v48  ;;  %v3882_v32 = vsel %vm3839_vm10, %v3820_v26, %v7822_v35  ;;  %v7463_v8 = vunpack.i.h.bf16 %v17059_v48  ;;  %v7832_v10 = vunpack.i.l.bf16 %v7831_v45  ;;  %v17061_v26 = vld [vmem:[#allocation210_spill] sm:$0xff] }
 0x58b   :  { %v7833_v17 = vunpack.i.h.bf16 %v7831_v45  ;;  %v7818_v35 = vunpack.i.h.bf16 %v7816_v56  ;;  %v7813_v56 = vunpack.i.h.bf16 %v12412_v7 }
 0x58c   :  { %v3946_v6 = vsel %vm3901_vm11, %v3881_v46, %v7462_v4  ;;  %v3947_v24 = vsel %vm3901_vm11, %v3882_v32, %v7463_v8 }
 0x58d   :  { %8035 = vrot.lane.b32.xlu2 %v8034_v5, %s8117_s3  ;;  %v7433_v5 = vunpack.i.h.bf16 %v17055_v62  ;;  %v12600_v46 = vpop.f32.mrf.mxu1  ;;  %v17064_v62 = vld [vmem:[#allocation144_spill] sm:$0xff] }
 0x58e   :  { %8050 = vrot.lane.b32.xlu0 %v8049_v53, %s8121_s20  ;;  %v7826_v47 = vpop.permute.xlu0 %7825  ;;  %v17060_v53 = vpack.i.bf16 %v16987_v59, %v16965_v11  ;;  %v7542_v48 = vunpack.i.l.bf16 %v17064_v62 }
 0x58f   :  { %8055 = vrot.lane.b32.xlu1 %v17058_v61, %s8119_s18  ;;  %4567 = vmatmul.bf16.gmra.mxu1 %v4286_v38  ;;  %v12580_v37 = vpop.permute.xlu2 %7895  ;;  %v7828_v1 = vunpack.i.h.bf16 %v7826_v47  ;;  %v7827_v9 = vunpack.i.l.bf16 %v7826_v47  ;;  %v17062_v38 = vld [vmem:[#allocation111_spill] sm:$0xff]  ;;  %v12612_v47 = vpop.eup %8110 }
 0x590   :  { %v17063_v27 = vpack.i.bf16 %v17061_v26, %v17062_v38  ;;  %vm944_vm0 = vweird.f32 %v12612_v47 }
 0x591   :  { %v12583_v25 = vpop.permute.xlu1 %7840  ;;  %v4011_v49 = vsel %vm3966_vm12, %v3946_v6, %v7827_v9  ;;  %v4012_v39 = vsel %vm3966_vm12, %v3947_v24, %v7828_v1  ;;  %v8084_v9 = vpack.i.bf16 %v12132_v13, %v16987_v59  ;;  %vm945_vm3 = vmor %vm943_vm1, %vm944_vm0 }
 0x592   :  { %v4076_v21 = vsel %vm4031_vm13, %v4011_v49, %v7832_v10  ;;  %v7842_v61 = vunpack.i.l.bf16 %v12583_v25  ;;  %v4077_v45 = vsel %vm4031_vm13, %v4012_v39, %v7833_v17  ;;  %v17065_v10 = vld [vmem:[#allocation168_spill] sm:$0xff]  ;;  %v17066_v49 = vld [vmem:[#allocation169_spill] sm:$0xff] }
 0x593   :  { %v4141_v32 = vsel %vm4096_vm14, %v4076_v21, %v7433_v5  ;;  %v4142_v6 = vsel %vm4096_vm14, %v4077_v45, %v7542_v48  ;;  %v3821_v24 = vsel %vm1092_vm2, %v17065_v10, %v7818_v35  ;;  %v7847_v21 = vunpack.i.l.bf16 %v12448_v33 }
 0x594   :  { %v3822_v39 = vsel %vm1092_vm2, %v17066_v49, %v7842_v61  ;;  %v4206_v17 = vsel %vm4161_vm15, %v4141_v32, %v7813_v56  ;;  %v7823_v5 = vunpack.i.h.bf16 %v12531_v42  ;;  %v17067_v32 = vld [vmem:[#allocation189_spill] sm:$0xff]  ;;  %v7858_v10 = vunpack.i.h.bf16 %v12482_v63 }
 0x595   :  { %8075 = vrot.lane.b32.xlu2 %v17060_v53, %s8122_s21  ;;  %v938_v53 = vmul.f32 %v12612_v47, %v12576_v43  ;;  %v3884_v45 = vsel %vm3839_vm10, %v3822_v39, %v7847_v21  ;;  %v7548_v56 = vunpack.i.h.bf16 %v17067_v32  ;;  %v7547_v42 = vunpack.i.l.bf16 %v17067_v32  ;;  %v12644_v49 = vpop.f32.mrf.mxu1 }
 0x596   :  { %8060 = vrot.lane.b32.xlu0 %v17063_v27, %s8123_s24  ;;  %v12609_v11 = vpop.permute.xlu0 %7835  ;;  %v8079_v27 = vpack.i.bf16 %v17062_v38, %v12496_v20  ;;  %v3883_v35 = vsel %vm3839_vm10, %v3821_v24, %v7823_v5  ;;  %v7638_v43 = vunpack.i.h.bf16 %v11847_v31 }
 0x597   :  { %8070 = vrot.lane.b32.xlu1 %v12508_v41, %s8120_s19  ;;  %v12607_v4 = vpop.permute.xlu2 %7905  ;;  %v7837_v1 = vunpack.i.l.bf16 %v12609_v11  ;;  %v8064_v41 = vpack.i.bf16 %v16983_v18, %v17047_v19 }
 0x599   :  { %v7851_v8 = vpop.permute.xlu1 %7850  ;;  %v4207_v7 = vsel %vm4161_vm15, %v4142_v6, %v7837_v1  ;;  %v17068_v1 = vld [vmem:[#allocation28_spill] sm:$0xff] }
 0x59a   :  { %v4288_v59 = vpack.c.bf16 %v4207_v7, %v4206_v17  ;;  %v7853_v61 = vunpack.i.h.bf16 %v7851_v8  ;;  %v7852_v48 = vunpack.i.l.bf16 %v7851_v8  ;;  %v7583_v6 = vunpack.i.h.bf16 %v17068_v1 }
 0x59b   :  { %v7582_v20 = vunpack.i.l.bf16 %v17068_v1  ;;  %v939_v8 = vmul.f32 %v12612_v47, %v938_v53  ;;  %v7857_v53 = vunpack.i.l.bf16 %v12482_v63  ;;  %v7577_v63 = vunpack.i.l.bf16 %v11849_v60 }
 0x59d   :  { %8085 = vrot.lane.b32.xlu2 %v8084_v9, %s8119_s18  ;;  %v3948_v9 = vsel %vm3901_vm11, %v3883_v35, %v7547_v42  ;;  %v3902_v32 = vsel %vm3901_vm11, %v12036_v57, %v7582_v20  ;;  %v3903_v35 = vsel %vm3901_vm11, %v12036_v57, %v7583_v6  ;;  %v7578_v20 = vunpack.i.h.bf16 %v11849_v60  ;;  %v17069_v57 = vld [vmem:[#allocation89_spill] sm:$0xff] }
 0x59e   :  { %8065 = vrot.lane.b32.xlu0 %v8064_v41, %s8116_s2  ;;  %v7866_v24 = vpop.permute.xlu0 %7865  ;;  %v3949_v41 = vsel %vm3901_vm11, %v3884_v45, %v7548_v56  ;;  %v4013_v21 = vsel %vm3966_vm12, %v3948_v9, %v7852_v48  ;;  %v7637_v6 = vunpack.i.l.bf16 %v11847_v31 }
 0x59f   :  { %8080 = vrot.lane.b32.xlu1 %v8079_v27, %s8121_s20  ;;  %4572 = vmatmul.bf16.gmra.mxu1 %v4288_v59  ;;  %v7868_v17 = vunpack.i.h.bf16 %v7866_v24  ;;  %v7867_v7 = vunpack.i.l.bf16 %v7866_v24  ;;  %v4014_v5 = vsel %vm3966_vm12, %v3949_v41, %v7853_v61  ;;  %v12650_v59 = vpop.permute.xlu2 %7915  ;;  %v4078_v48 = vsel %vm4031_vm13, %v4013_v21, %v7857_v53 }
 0x5a0   :  { %v4079_v61 = vsel %vm4031_vm13, %v4014_v5, %v7858_v10  ;;  %v7543_v24 = vunpack.i.h.bf16 %v17064_v62  ;;  %v17070_v10 = vld [vmem:[#allocation212_spill] sm:$0xff]  ;;  %v940_v41 = vmul.f32 0.5, %v939_v8  ;;  %v7863_v62 = vunpack.i.h.bf16 %v12526_v29 }
 0x5a1   :  { %v7871_v39 = vpop.permute.xlu1 %7870  ;;  %v3967_v45 = vsel %vm3966_vm12, %v3902_v32, %v7867_v7  ;;  %v3968_v56 = vsel %vm3966_vm12, %v3903_v35, %v7868_v17  ;;  %v7862_v7 = vunpack.i.l.bf16 %v12526_v29  ;;  %v7843_v21 = vunpack.i.h.bf16 %v12583_v25 }
 0x5a2   :  { %v7872_v27 = vunpack.i.l.bf16 %v7871_v39  ;;  %v7873_v1 = vunpack.i.h.bf16 %v7871_v39  ;;  %v4143_v17 = vsel %vm4096_vm14, %v4078_v48, %v7543_v24  ;;  %v7838_v5 = vunpack.i.h.bf16 %v12609_v11 }
 0x5a3   :  { %v941_v11 = vsub.f32 1.5, %v940_v41 }
 0x5a4   :  { %v4032_v42 = vsel %vm4031_vm13, %v3967_v45, %v7872_v27  ;;  %v4033_v9 = vsel %vm4031_vm13, %v3968_v56, %v7873_v1  ;;  %v12684_v1 = vpop.f32.mrf.mxu1  ;;  %v4208_v56 = vsel %vm4161_vm15, %v4143_v17, %v7838_v5  ;;  %v7907_v17 = vunpack.i.l.bf16 %v12607_v4 }
 0x5a5   :  { %2590 = vrot.lane.b32.xlu2 %v17062_v38, %s8120_s19  ;;  %v4097_v60 = vsel %vm4096_vm14, %v4032_v42, %v7578_v20  ;;  %v4144_v38 = vsel %vm4096_vm14, %v4079_v61, %v7577_v63  ;;  %v4098_v53 = vsel %vm4096_vm14, %v4033_v9, %v7637_v6  ;;  %v17071_v61 = vld [vmem:[#allocation171_spill] sm:$0xff]  ;;  %v8089_v20 = vpack.i.bf16 %v17069_v57, %v17057_v3  ;;  %v17072_v6 = vld [vmem:[#allocation172_spill] sm:$0xff] }
 0x5a6   :  { %3532 = vrot.lane.b32.xlu0 %v17069_v57, %s8117_s3  ;;  %v4162_v35 = vsel %vm4161_vm15, %v4097_v60, %v7863_v62  ;;  %v4209_v29 = vsel %vm4161_vm15, %v4144_v38, %v7862_v7  ;;  %v3823_v42 = vsel %vm1092_vm2, %v17071_v61, %v7843_v21  ;;  %v7848_v63 = vunpack.i.h.bf16 %v12448_v33 }
 0x5a7   :  { %3715 = vrot.lane.b32.xlu1 %v17070_v10, %s8123_s24  ;;  %v12690_v48 = vpop.permute.xlu2 %7925  ;;  %v17073_v62 = vpack.i.bf16 %v17070_v10, %v17061_v26  ;;  %v4290_v41 = vpack.c.bf16 %v4209_v29, %v4208_v56  ;;  %v7887_v60 = vunpack.i.l.bf16 %v12552_v36  ;;  %v942_v57 = vmul.f32 %v12612_v47, %v941_v11 }
 0x5a8   :  { %v12674_v39 = vpop.permute.xlu0 %7875  ;;  %v3885_v33 = vsel %vm3839_vm10, %v3823_v42, %v7848_v63  ;;  %v7667_v26 = vunpack.i.l.bf16 %v12150_v15  ;;  %v7668_v5 = vunpack.i.h.bf16 %v12150_v15  ;;  %v7752_v61 = vunpack.i.l.bf16 %v12323_v44 }
 0x5a9   :  { %v7881_v27 = vpop.permute.xlu1 %7880  ;;  %v7877_v32 = vunpack.i.l.bf16 %v12674_v39 }
 0x5aa   :  { %v7882_v8 = vunpack.i.l.bf16 %v7881_v27  ;;  %v7883_v24 = vunpack.i.h.bf16 %v7881_v27  ;;  %v7888_v27 = vunpack.i.h.bf16 %v12552_v36  ;;  %v3950_v56 = vsel %vm3901_vm11, %v3885_v33, %v7667_v26 }
 0x5ab   :  { %v4163_v45 = vsel %vm4161_vm15, %v4098_v53, %v7877_v32  ;;  %v7897_v53 = vunpack.i.l.bf16 %v12580_v37  ;;  %v7753_v36 = vunpack.i.h.bf16 %v12323_v44  ;;  %v946_v44 = vsel %vm945_vm3, %v12612_v47, %v942_v57 }
 0x5ac   :  { %v4244_v25 = vpack.c.bf16 %v4163_v45, %v4162_v35  ;;  %v3824_v9 = vsel %vm1092_vm2, %v17072_v6, %v7882_v8  ;;  %v17075_v35 = vld [vmem:[#allocation175_spill] sm:$0xff]  ;;  %v12731_v42 = vpop.f32.mrf.mxu1  ;;  %v7917_v33 = vunpack.i.l.bf16 %v12650_v59  ;;  %v7927_v47 = vunpack.i.l.bf16 %v12690_v48 }
 0x5ad   :  { %8095 = vrot.lane.b32.xlu2 %v17073_v62, %s8121_s20  ;;  %v3886_v38 = vsel %vm3839_vm10, %v3824_v9, %v7887_v60  ;;  %v3826_v45 = vsel %vm1092_vm2, %v17075_v35, %v7907_v17  ;;  %v17076_v9 = vpack.i.bf16 %v17007_v34, %v17008_v16  ;;  %v7757_v62 = vunpack.i.l.bf16 %v12367_v14 }
 0x5ae   :  { %2773 = vrot.lane.b32.xlu0 %v12132_v13, %s8122_s21  ;;  %4462 = vmatmul.bf16.vlgmr.msrb.gmra.mxu0 %v4244_v25  ;;  %v17074_v13 = vld [vmem:[#allocation174_spill] sm:$0xff]  ;;  %v3951_v25 = vsel %vm3901_vm11, %v3886_v38, %v7668_v5  ;;  %v7918_v17 = vunpack.i.h.bf16 %v12650_v59  ;;  %v7878_v38 = vunpack.i.h.bf16 %v12674_v39 }
 0x5af   :  { %8090 = vrot.lane.b32.xlu1 %v8089_v20, %s8116_s2  ;;  %4577 = vmatmul.bf16.gmra.mxu1 %v4290_v41  ;;  %v3825_v10 = vsel %vm1092_vm2, %v17074_v13, %v7883_v24  ;;  %v7898_v20 = vunpack.i.h.bf16 %v12580_v37  ;;  %v12738_v63 = vpop.permute.xlu2 %7930  ;;  %v7748_v41 = vunpack.i.h.bf16 %v12450_v30  ;;  %v7747_v37 = vunpack.i.l.bf16 %v12450_v30 }
 0x5b0   :  { %v12709_v3 = vpop.permute.xlu0 %7910  ;;  %v3887_v29 = vsel %vm3839_vm10, %v3825_v10, %v7888_v27 }
 0x5b1   :  { %v7891_v7 = vpop.permute.xlu1 %7890  ;;  %v7912_v21 = vunpack.i.l.bf16 %v12709_v3  ;;  %v3952_v31 = vsel %vm3901_vm11, %v3887_v29, %v7752_v61 }
 0x5b2   :  { %v7893_v32 = vunpack.i.h.bf16 %v7891_v7  ;;  %v7892_v8 = vunpack.i.l.bf16 %v7891_v7 }
 0x5b3   :  { %v3888_v15 = vsel %vm3839_vm10, %v3826_v45, %v7912_v21  ;;  %v4017_v21 = vsel %vm3966_vm12, %v3952_v31, %v7917_v33  ;;  %v7762_v33 = vunpack.i.l.bf16 %v12148_v28 }
 0x5b4   :  { %v4015_v11 = vsel %vm3966_vm12, %v3950_v56, %v7892_v8  ;;  %v4016_v24 = vsel %vm3966_vm12, %v3951_v25, %v7893_v32  ;;  %v3953_v60 = vsel %vm3901_vm11, %v3888_v15, %v7753_v36 }
 0x5b5   :  { %v4080_v6 = vsel %vm4031_vm13, %v4015_v11, %v7897_v53  ;;  %v4081_v34 = vsel %vm4031_vm13, %v4016_v24, %v7898_v20  ;;  %v4018_v30 = vsel %vm3966_vm12, %v3953_v60, %v7918_v17  ;;  %v12769_v11 = vpop.f32.mrf.mxu1  ;;  %v17077_v60 = vld [vmem:[#allocation184_spill] sm:$0xff] }
 0x5b6   :  { %8100 = vrot.lane.b32.xlu0 %v17076_v9, %s8119_s18  ;;  %v4145_v10 = vsel %vm4096_vm14, %v4080_v6, %v7638_v43  ;;  %v4146_v32 = vsel %vm4096_vm14, %v4081_v34, %v7747_v37  ;;  %v7908_v9 = vunpack.i.h.bf16 %v12607_v4  ;;  %v7763_v4 = vunpack.i.h.bf16 %v12148_v28 }
 0x5b7   :  { %948 = vrot.lane.b32.xlu1 %v946_v44, %s8123_s24  ;;  %v4210_v8 = vsel %vm4161_vm15, %v4145_v10, %v7878_v38  ;;  %v12771_v15 = vpop.permute.xlu2 %7980 }
 0x5b8   :  { %v7921_v16 = vpop.permute.xlu0 %7920  ;;  %v3827_v31 = vsel %vm1092_vm2, %v17077_v60, %v7908_v9 }
 0x5b9   :  { %v7901_v57 = vpop.permute.xlu1 %7900  ;;  %v7923_v26 = vunpack.i.h.bf16 %v7921_v16  ;;  %v7922_v13 = vunpack.i.l.bf16 %v7921_v16 }
 0x5ba   :  { %v7902_v7 = vunpack.i.l.bf16 %v7901_v57  ;;  %v7903_v5 = vunpack.i.h.bf16 %v7901_v57 }
 0x5bb   :  { %v4082_v59 = vsel %vm4031_vm13, %v4017_v21, %v7922_v13  ;;  %v4083_v27 = vsel %vm4031_vm13, %v4018_v30, %v7923_v26  ;;  %v7758_v13 = vunpack.i.h.bf16 %v12367_v14 }
 0x5bc   :  { %v4211_v53 = vsel %vm4161_vm15, %v4146_v32, %v7902_v7  ;;  %v4147_v35 = vsel %vm4096_vm14, %v4082_v59, %v7748_v41  ;;  %v4148_v39 = vsel %vm4096_vm14, %v4083_v27, %v7757_v62  ;;  %v7913_v62 = vunpack.i.h.bf16 %v12709_v3 }
 0x5bd   :  { %v4292_v45 = vpack.c.bf16 %v4211_v53, %v4210_v8  ;;  %v4212_v56 = vsel %vm4161_vm15, %v4147_v35, %v7903_v5  ;;  %v4213_v29 = vsel %vm4161_vm15, %v4148_v39, %v7927_v47  ;;  %v12775_v43 = vpop.f32.mrf.mxu1  ;;  %v7932_v32 = vunpack.i.l.bf16 %v12738_v63 }
 0x5be   :  { %v4294_v25 = vpack.c.bf16 %v4213_v29, %v4212_v56  ;;  %v3889_v17 = vsel %vm3839_vm10, %v3827_v31, %v7913_v62  ;;  %v7928_v8 = vunpack.i.h.bf16 %v12690_v48 }
 0x5bf   :  { %4582 = vmatmul.bf16.gmra.mxu1 %v4292_v45  ;;  %v12778_v44 = vpop.permute.xlu2 %7990 }
 0x5c0   :  { %v12773_v36 = vpop.permute.xlu0 %7935 }
 0x5c1   :  { %v7946_v61 = vpop.permute.xlu1 %7945 }
 0x5c2   :  { %v7947_v37 = vunpack.i.l.bf16 %v7946_v61  ;;  %v7948_v62 = vunpack.i.h.bf16 %v7946_v61 }
 0x5c5   :  { %v12793_v10 = vpop.f32.mrf.mxu1 }
 0x5c7   :  { %v12797_v21 = vpop.permute.xlu2 %8005 }
 0x5c8   :  { %v7941_v24 = vpop.permute.xlu0 %7940 }
 0x5c9   :  { %v7956_v20 = vpop.permute.xlu1 %7955  ;;  %v7942_v6 = vunpack.i.l.bf16 %v7941_v24  ;;  %v7943_v53 = vunpack.i.h.bf16 %v7941_v24  ;;  %v7982_v24 = vunpack.i.l.bf16 %v12771_v15 }
 0x5ca   :  { %v7957_v26 = vunpack.i.l.bf16 %v7956_v20  ;;  %v7958_v5 = vunpack.i.h.bf16 %v7956_v20 }
 0x5cb   :  { %v3828_v41 = vsel %vm1092_vm2, %v16856_v40, %v7942_v6  ;;  %v3954_v40 = vsel %vm3901_vm11, %v3889_v17, %v7762_v33  ;;  %v3829_v9 = vsel %vm1092_vm2, %v16854_v0, %v7943_v53 }
 0x5cc   :  { %v3890_v34 = vsel %vm3839_vm10, %v3828_v41, %v7947_v37  ;;  %v3891_v60 = vsel %vm3839_vm10, %v3829_v9, %v7948_v62  ;;  %v7937_v37 = vunpack.i.l.bf16 %v12773_v36 }
 0x5cd   :  { %v3955_v38 = vsel %vm3901_vm11, %v3890_v34, %v7763_v4  ;;  %v12808_v6 = vpop.f32.mrf.mxu1  ;;  %v7938_v34 = vunpack.i.h.bf16 %v12773_v36  ;;  %v7992_v4 = vunpack.i.l.bf16 %v12778_v44 }
 0x5ce   :  { %v3956_v61 = vsel %vm3901_vm11, %v3891_v60, %v7937_v37 }
 0x5cf   :  { %4587 = vmatmul.bf16.gmra.mxu1 %v4294_v25  ;;  %v8016_v41 = vpop.permute.xlu2 %8015 }
 0x5d0   :  { %v7951_v16 = vpop.permute.xlu0 %7950 }
 0x5d1   :  { %v12789_v47 = vpop.permute.xlu1 %7970  ;;  %v7953_v3 = vunpack.i.h.bf16 %v7951_v16  ;;  %v7952_v57 = vunpack.i.l.bf16 %v7951_v16 }
 0x5d2   :  { %v7973_v9 = vunpack.i.h.bf16 %v12789_v47 }
 0x5d3   :  { %v4019_v7 = vsel %vm3966_vm12, %v3954_v40, %v7952_v57  ;;  %v4020_v30 = vsel %vm3966_vm12, %v3955_v38, %v7953_v3 }
 0x5d4   :  { %v4084_v28 = vsel %vm4031_vm13, %v4019_v7, %v7957_v26  ;;  %v4085_v27 = vsel %vm4031_vm13, %v4020_v30, %v7958_v5  ;;  %v7993_v26 = vunpack.i.h.bf16 %v12778_v44  ;;  %v8007_v5 = vunpack.i.l.bf16 %v12797_v21 }
 0x5d5   :  { %v4149_v59 = vsel %vm4096_vm14, %v4084_v28, %v7758_v13  ;;  %v4150_v56 = vsel %vm4096_vm14, %v4085_v27, %v7932_v32  ;;  %v7933_v13 = vunpack.i.h.bf16 %v12738_v63  ;;  %v12827_v38 = vpop.f32.mrf.mxu1 }
 0x5d6   :  { %v4214_v29 = vsel %vm4161_vm15, %v4149_v59, %v7928_v8 }
 0x5d7   :  { %v12829_v7 = vpop.permute.xlu2 %8025 }
 0x5d8   :  { %v7961_v14 = vpop.permute.xlu0 %7960 }
 0x5d9   :  { %v7976_v35 = vpop.permute.xlu1 %7975  ;;  %v7962_v39 = vunpack.i.l.bf16 %v7961_v14  ;;  %v7963_v8 = vunpack.i.h.bf16 %v7961_v14 }
 0x5da   :  { %v7977_v45 = vunpack.i.l.bf16 %v7976_v35  ;;  %v7978_v36 = vunpack.i.h.bf16 %v7976_v35  ;;  %v7983_v35 = vunpack.i.h.bf16 %v12771_v15 }
 0x5db   :  { %v4215_v25 = vsel %vm4161_vm15, %v4150_v56, %v7962_v39 }
 0x5dc   :  { %v4296_v20 = vpack.c.bf16 %v4215_v25, %v4214_v29  ;;  %v3830_v48 = vsel %vm1092_vm2, %v16855_v58, %v7977_v45  ;;  %v3831_v63 = vsel %vm1092_vm2, %v16863_v52, %v7978_v36  ;;  %v3832_v29 = vsel %vm1092_vm2, %v16994_v2, %v8007_v5 }
 0x5dd   :  { %v3892_v17 = vsel %vm3839_vm10, %v3830_v48, %v7982_v24  ;;  %v7972_v52 = vunpack.i.l.bf16 %v12789_v47  ;;  %v12846_v48 = vpop.f32.mrf.mxu1  ;;  %v8008_v5 = vunpack.i.h.bf16 %v12797_v21 }
 0x5de   :  { %v3957_v58 = vsel %vm3901_vm11, %v3892_v17, %v7938_v34  ;;  %v8018_v17 = vunpack.i.h.bf16 %v8016_v41 }
 0x5df   :  { %4592 = vmatmul.bf16.gmra.mxu1 %v4296_v20  ;;  %v3893_v20 = vsel %vm3839_vm10, %v3831_v63, %v7983_v35  ;;  %v8031_v34 = vpop.permute.xlu2 %8030  ;;  %v3833_v63 = vsel %vm1092_vm2, %v17011_v55, %v8008_v5 }
 0x5e0   :  { %v7966_v31 = vpop.permute.xlu0 %7965  ;;  %v3958_v60 = vsel %vm3901_vm11, %v3893_v20, %v7972_v52  ;;  %v8032_v35 = vunpack.i.l.bf16 %v8031_v34 }
 0x5e1   :  { %v7986_v33 = vpop.permute.xlu1 %7985  ;;  %v7967_v59 = vunpack.i.l.bf16 %v7966_v31 }
 0x5e2   :  { %v7988_v16 = vunpack.i.h.bf16 %v7986_v33  ;;  %v7987_v0 = vunpack.i.l.bf16 %v7986_v33  ;;  %v8017_v33 = vunpack.i.l.bf16 %v8016_v41 }
 0x5e4   :  { %v4021_v3 = vsel %vm3966_vm12, %v3956_v61, %v7987_v0  ;;  %v4022_v57 = vsel %vm3966_vm12, %v3957_v58, %v7988_v16  ;;  %v4023_v0 = vsel %vm3966_vm12, %v3958_v60, %v8017_v33  ;;  %v7968_v58 = vunpack.i.h.bf16 %v7966_v31  ;;  %v12887_v33 = vpop.f32.mrf.mxu2 }
 0x5e5   :  { %v4086_v40 = vsel %vm4031_vm13, %v4021_v3, %v7992_v4  ;;  %v4087_v30 = vsel %vm4031_vm13, %v4022_v57, %v7993_v26  ;;  %v8106_v3 = vld [vmem:[%s15625_s11] ss:$0 sm:$0xff]  ;;  %v12864_v31 = vpop.f32.mrf.mxu1 }
 0x5e6   :  { %v4151_v32 = vsel %vm4096_vm14, %v4086_v40, %v7933_v13  ;;  %v4152_v39 = vsel %vm4096_vm14, %v4087_v30, %v7967_v59  ;;  %v8027_v40 = vunpack.i.l.bf16 %v12829_v7  ;;  %1023 = vrot.lane.b32.xlu0 %v8106_v3, %s8120_s19 }
 0x5e7   :  { %v4216_v45 = vsel %vm4161_vm15, %v4151_v32, %v7963_v8 }
 0x5e8   :  { %v8011_v28 = vpop.permute.xlu0 %8010 }
 0x5e9   :  { %v7996_v27 = vpop.permute.xlu1 %7995  ;;  %v8012_v53 = vunpack.i.l.bf16 %v8011_v28  ;;  %v8013_v59 = vunpack.i.h.bf16 %v8011_v28 }
 0x5ea   :  { %v7997_v44 = vunpack.i.l.bf16 %v7996_v27  ;;  %v7998_v13 = vunpack.i.h.bf16 %v7996_v27 }
 0x5eb   :  { %v3894_v14 = vsel %vm3839_vm10, %v3832_v29, %v8012_v53  ;;  %v3895_v21 = vsel %vm3839_vm10, %v3833_v63, %v8013_v59 }
 0x5ec   :  { %v4217_v56 = vsel %vm4161_vm15, %v4152_v39, %v7997_v44  ;;  %v3959_v15 = vsel %vm3901_vm11, %v3894_v14, %v7973_v9  ;;  %v12868_v44 = vpop.permute.xlu2 %8035  ;;  %v3960_v9 = vsel %vm3901_vm11, %v3895_v21, %v8032_v35  ;;  %v12903_v63 = vpop.f32.mrf.mxu2 }
 0x5ed   :  { %v4298_v25 = vpack.c.bf16 %v4217_v56, %v4216_v45  ;;  %v4024_v61 = vsel %vm3966_vm12, %v3959_v15, %v8018_v17  ;;  %v8033_v56 = vunpack.i.h.bf16 %v8031_v34  ;;  %v12881_v15 = vpop.f32.mrf.mxu1  ;;  %v8037_v34 = vunpack.i.l.bf16 %v12868_v44 }
 0x5ef   :  { %4597 = vmatmul.bf16.gmra.mxu1 %v4298_v25 }
 0x5f0   :  { %v8021_v62 = vpop.permute.xlu0 %8020 }
 0x5f1   :  { %v8001_v24 = vpop.permute.xlu1 %8000  ;;  %v8023_v37 = vunpack.i.h.bf16 %v8021_v62  ;;  %v8022_v2 = vunpack.i.l.bf16 %v8021_v62 }
 0x5f2   :  { %v8002_v16 = vunpack.i.l.bf16 %v8001_v24 }
 0x5f3   :  { %v4088_v47 = vsel %vm4031_vm13, %v4023_v0, %v8022_v2  ;;  %v4089_v4 = vsel %vm4031_vm13, %v4024_v61, %v8023_v37  ;;  %v8003_v2 = vunpack.i.h.bf16 %v8001_v24  ;;  %v8028_v61 = vunpack.i.h.bf16 %v12829_v7 }
 0x5f4   :  { %v4153_v26 = vsel %vm4096_vm14, %v4088_v47, %v7968_v58  ;;  %v4154_v41 = vsel %vm4096_vm14, %v4089_v4, %v8002_v16  ;;  %v12884_v37 = vpop.permute.xlu2 %8075 }
 0x5f5   :  { %v4218_v32 = vsel %vm4161_vm15, %v4153_v26, %v7998_v13  ;;  %v4219_v8 = vsel %vm4161_vm15, %v4154_v41, %v8027_v40  ;;  %v8077_v59 = vunpack.i.l.bf16 %v12884_v37 }
 0x5f6   :  { %v4300_v39 = vpack.c.bf16 %v4219_v8, %v4218_v32 }
 0x5f8   :  { %v8041_v57 = vpop.permute.xlu0 %8040 }
 0x5f9   :  { %v12860_v36 = vpop.permute.xlu1 %8045  ;;  %v8042_v30 = vunpack.i.l.bf16 %v8041_v57  ;;  %v8043_v3 = vunpack.i.h.bf16 %v8041_v57 }
 0x5fa   :  { %v8047_v53 = vunpack.i.l.bf16 %v12860_v36  ;;  %v8048_v13 = vunpack.i.h.bf16 %v12860_v36 }
 0x5fb   :  { %v3834_v27 = vsel %vm1092_vm2, %v17023_v50, %v8042_v30  ;;  %v12896_v30 = vpop.f32.mrf.mxu1  ;;  %v3835_v5 = vsel %vm1092_vm2, %v17038_v22, %v8043_v3 }
 0x5fc   :  { %v3896_v28 = vsel %vm3839_vm10, %v3834_v27, %v8047_v53  ;;  %v8086_v32 = vpop.permute.xlu2 %8085  ;;  %v3897_v35 = vsel %vm3839_vm10, %v3835_v5, %v8048_v13 }
 0x5fd   :  { %v3961_v50 = vsel %vm3901_vm11, %v3896_v28, %v8033_v56  ;;  %v8087_v22 = vunpack.i.l.bf16 %v8086_v32 }
 0x5ff   :  { %4602 = vmatmul.bf16.gmra.mxu1 %v4300_v39 }
 0x600   :  { %v8051_v45 = vpop.permute.xlu0 %8050 }
 0x601   :  { %v8056_v29 = vpop.permute.xlu1 %8055  ;;  %v8053_v25 = vunpack.i.h.bf16 %v8051_v45  ;;  %v8052_v20 = vunpack.i.l.bf16 %v8051_v45 }
 0x602   :  { %v8057_v14 = vunpack.i.l.bf16 %v8056_v29  ;;  %v8058_v52 = vunpack.i.h.bf16 %v8056_v29 }
 0x603   :  { %v4025_v55 = vsel %vm3966_vm12, %v3960_v9, %v8052_v20  ;;  %v4026_v62 = vsel %vm3966_vm12, %v3961_v50, %v8053_v25  ;;  %v8038_v25 = vunpack.i.h.bf16 %v12868_v44  ;;  %v8088_v20 = vunpack.i.h.bf16 %v8086_v32 }
 0x604   :  { %v4090_v60 = vsel %vm4031_vm13, %v4025_v55, %v8057_v14  ;;  %v4091_v17 = vsel %vm4031_vm13, %v4026_v62, %v8058_v52 }
 0x605   :  { %v4155_v0 = vsel %vm4096_vm14, %v4090_v60, %v8003_v2  ;;  %v4156_v58 = vsel %vm4096_vm14, %v4091_v17, %v8037_v34  ;;  %v12916_v60 = vpop.f32.mrf.mxu1  ;;  %v2591_v17 = vpop.permute.xlu2 %2590 }
 0x606   :  { %v4220_v41 = vsel %vm4161_vm15, %v4155_v0, %v8028_v61  ;;  %v12920_v0 = vpop.f32.mrf.mxu2 }
 0x608   :  { %v8061_v16 = vpop.permute.xlu0 %8060 }
 0x609   :  { %v8071_v47 = vpop.permute.xlu1 %8070  ;;  %v8062_v4 = vunpack.i.l.bf16 %v8061_v16  ;;  %v8063_v50 = vunpack.i.h.bf16 %v8061_v16  ;;  %v3838_v16 = vsel %vm1092_vm2, %v16983_v18, %v2591_v17  ;;  %v17081_v17 = vld [vmem:[#allocation19_spill] sm:$0xff] }
 0x60a   :  { %v8072_v26 = vunpack.i.l.bf16 %v8071_v47  ;;  %v8073_v61 = vunpack.i.h.bf16 %v8071_v47 }
 0x60b   :  { %v4221_v24 = vsel %vm4161_vm15, %v4156_v58, %v8062_v4 }
 0x60c   :  { %v4302_v40 = vpack.c.bf16 %v4221_v24, %v4220_v41  ;;  %v3836_v7 = vsel %vm1092_vm2, %v17042_v54, %v8072_v26  ;;  %v3837_v3 = vsel %vm1092_vm2, %v17047_v19, %v8073_v61  ;;  %v8078_v24 = vunpack.i.h.bf16 %v12884_v37  ;;  %v537_v19 = vld [vmem:[%s15626_s10] sm:$0x1]  ;;  %v17083_v61 = vld [vmem:[#allocation188_spill] sm:$0xff] }
 0x60d   :  { %v3898_v21 = vsel %vm3839_vm10, %v3836_v7, %v8077_v59  ;;  %v8096_v5 = vpop.permute.xlu2 %8095 }
 0x60e   :  { %v12930_v7 = vpop.f32.mrf.mxu2  ;;  %v3899_v47 = vsel %vm3839_vm10, %v3837_v3, %v8078_v24  ;;  %v8098_v32 = vunpack.i.h.bf16 %v8096_v5 }
 0x60f   :  { %4607 = vmatmul.bf16.gmra.mxu1 %v4302_v40  ;;  %v12927_v40 = vpop.f32.mrf.mxu1 }
 0x610   :  { %v8066_v57 = vpop.permute.xlu0 %8065 }
 0x611   :  { %v8081_v8 = vpop.permute.xlu1 %8080  ;;  %v8068_v53 = vunpack.i.h.bf16 %v8066_v57  ;;  %v8067_v27 = vunpack.i.l.bf16 %v8066_v57  ;;  %v8097_v57 = vunpack.i.l.bf16 %v8096_v5 }
 0x612   :  { %v8083_v39 = vunpack.i.h.bf16 %v8081_v8  ;;  %v8082_v36 = vunpack.i.l.bf16 %v8081_v8 }
 0x613   :  { %v3963_v28 = vsel %vm3901_vm11, %v3898_v21, %v8068_v53  ;;  %v3962_v54 = vsel %vm3901_vm11, %v3897_v35, %v8067_v27 }
 0x614   :  { %v4027_v45 = vsel %vm3966_vm12, %v3962_v54, %v8082_v36  ;;  %v4028_v56 = vsel %vm3966_vm12, %v3963_v28, %v8083_v39 }
 0x615   :  { %v4092_v29 = vsel %vm4031_vm13, %v4027_v45, %v8087_v22  ;;  %v4093_v9 = vsel %vm4031_vm13, %v4028_v56, %v8088_v20  ;;  %v17078_v45 = vld [vmem:[#allocation187_spill] sm:$0xff] }
 0x616   :  { %v4157_v52 = vsel %vm4096_vm14, %v4092_v29, %v8038_v25  ;;  %v17079_v25 = vld [vmem:[#allocation103_spill] sm:$0xff] }
 0x617   :  { %v4222_v34 = vsel %vm4161_vm15, %v4157_v52, %v8063_v50  ;;  %v12953_v50 = vpop.f32.mrf.mxu2 }
 0x618   :  { %v3533_v14 = vpop.permute.xlu0 %3532 }
 0x619   :  { %v3716_v55 = vpop.permute.xlu1 %3715  ;;  %v4158_v62 = vsel %vm4096_vm14, %v4093_v9, %v3533_v14  ;;  %v12950_v9 = vpop.f32.mrf.mxu1 }
 0x61a   :  { %v4223_v2 = vsel %vm4161_vm15, %v4158_v62, %v3716_v55  ;;  %v17080_v55 = vld [vmem:[#allocation182_spill] sm:$0xff] }
 0x61b   :  { %v4304_v44 = vpack.c.bf16 %v4223_v2, %v4222_v34  ;;  %v17082_v34 = vld [vmem:[#allocation193_spill] sm:$0xff] }
 0x61f   :  { %4612 = vmatmul.bf16.gmra.mxu1 %v4304_v44  ;;  %v12960_v44 = vadd.f32 %v17082_v34, %v17081_v17  ;;  %v17096_v34 = vld [vmem:[#allocation125_spill] sm:$0xff] }
 0x620   :  { %v2774_v4 = vpop.permute.xlu0 %2773 }
 0x621   :  { %v8091_v58 = vpop.permute.xlu1 %8090  ;;  %v3900_v13 = vsel %vm3839_vm10, %v3838_v16, %v2774_v4  ;;  %v17085_v16 = vld [vmem:[#allocation203_spill] sm:$0xff]  ;;  %v12973_v24 = vpop.f32.mrf.mxu1  ;;  %v4797_v5 = vsel %vm1092_vm2, %v12960_v44, 0.0 }
 0x622   :  { %v8093_v26 = vunpack.i.h.bf16 %v8091_v58  ;;  %v8092_v41 = vunpack.i.l.bf16 %v8091_v58  ;;  %v17084_v58 = vld [vmem:[#allocation20_spill] sm:$0xff] }
 0x623   :  { %v12967_v3 = vadd.f32 %v17085_v16, %v17084_v58 }
 0x624   :  { %v3964_v59 = vsel %vm3901_vm11, %v3899_v47, %v8092_v41  ;;  %v3965_v18 = vsel %vm3901_vm11, %v3900_v13, %v8093_v26  ;;  %v17086_v47 = vld [vmem:[#allocation21_spill] sm:$0xff] }
 0x625   :  { %v4030_v39 = vsel %vm3966_vm12, %v3965_v18, %v8098_v32  ;;  %v4029_v36 = vsel %vm3966_vm12, %v3964_v59, %v8097_v57  ;;  %v17087_v59 = vld [vmem:[#allocation112_spill] sm:$0xff]  ;;  %v4799_v57 = vsel %vm1092_vm2, %v12967_v3, 0.0 }
 0x626   :  { %v12979_v18 = vadd.f32 %v17087_v59, %v17086_v47 }
 0x628   :  { %v8101_v37 = vpop.permute.xlu0 %8100 }
 0x629   :  { %v8103_v8 = vunpack.i.h.bf16 %v8101_v37  ;;  %v8102_v53 = vunpack.i.l.bf16 %v8101_v37  ;;  %v949_v27 = vpop.permute.xlu1 %948  ;;  %v17088_v37 = vld [vmem:[#allocation22_spill] sm:$0xff] }
 0x62a   :  { %v951_v21 = vmul.f32 %v949_v27, %v537_v19  ;;  %v12981_v19 = vpop.f32.mrf.mxu2 }
 0x62b   :  { %v4095_v35 = vsel %vm4031_vm13, %v4030_v39, %v8103_v8  ;;  %v4094_v22 = vsel %vm4031_vm13, %v4029_v36, %v8102_v53  ;;  %v4463_v54 = vpop.f32.mrf.mxu0  ;;  %v17089_v8 = vld [vmem:[#allocation213_spill] sm:$0xff]  ;;  %v4801_v39 = vsel %vm1092_vm2, %v12979_v18, 0.0  ;;  %v17090_v36 = vld [vmem:[#allocation176_spill] sm:$0xff] }
 0x62c   :  { %v953_v28 = vperm.slane %v951_v21, 0  ;;  %v4159_v56 = vsel %vm4096_vm14, %v4094_v22, %v17078_v45  ;;  %v4160_v29 = vsel %vm4096_vm14, %v4095_v35, %v17078_v45  ;;  %v12956_v62 = vadd.f32 %v17080_v55, %v4463_v54  ;;  %v17091_v21 = vld [vmem:[#allocation216_spill] sm:$0xff]  ;;  %v17093_v45 = vld [vmem:[#allocation218_spill] sm:$0xff]  ;;  %v13007_v55 = vpop.f32.mrf.mxu1 }
 0x62d   :  { %v4224_v20 = vsel %vm4161_vm15, %v4159_v56, %v17079_v25  ;;  %v4225_v14 = vsel %vm4161_vm15, %v4160_v29, %v17079_v25  ;;  %v12987_v53 = vadd.f32 %v17089_v8, %v17088_v37  ;;  %v12993_v35 = vadd.f32 %v17091_v21, %v17090_v36  ;;  %v17092_v54 = vld [vmem:[#allocation196_spill] sm:$0xff]  ;;  %v17101_v37 = vld [vmem:[#allocation147_spill] sm:$0xff]  ;;  %v17102_v36 = vld [vmem:[#allocation33_spill] sm:$0xff] }
 0x62e   :  { %954 = vrot.lane.b32.xlu2 %v953_v28, %s8120_s19  ;;  %v4306_v52 = vpack.c.bf16 %v4225_v14, %v4224_v20  ;;  %v4794_v26 = vsel %vm1092_vm2, %v12956_v62, 0.0  ;;  %v12999_v56 = vadd.f32 %v17093_v45, %v17092_v54  ;;  %v17094_v20 = vld [vmem:[#allocation179_spill] sm:$0xff]  ;;  %v17095_v14 = vld [vmem:[#allocation136_spill] sm:$0xff]  ;;  %v17103_v21 = vld [vmem:[#allocation150_spill] sm:$0xff] }
 0x62f   :  { %v4803_v28 = vsel %vm1092_vm2, %v12987_v53, 0.0  ;;  %v4805_v25 = vsel %vm1092_vm2, %v12993_v35, 0.0  ;;  %v17104_v45 = vld [vmem:[#allocation185_spill] sm:$0xff] }
 0x630   :  { %4617 = vmatmul.bf16.gmra.mxu1 %v4306_v52  ;;  %v13005_v52 = vadd.f32 %v17095_v14, %v17094_v20  ;;  %v4807_v17 = vsel %vm1092_vm2, %v12999_v56, 0.0 }
 0x632   :  { %v13015_v16 = vpop.f32.mrf.mxu2 }
 0x633   :  { %v4465_v2 = vpop.f32.mrf.mxu0 }
 0x634   :  { %v12963_v4 = vadd.f32 %v17083_v61, %v4465_v2  ;;  %v17097_v61 = vld [vmem:[#allocation146_spill] sm:$0xff]  ;;  %v13041_v20 = vpop.f32.mrf.mxu1 }
 0x635   :  { %v13013_v58 = vadd.f32 %v17097_v61, %v17096_v34  ;;  %v17107_v34 = vld [vmem:[#allocation96_spill] sm:$0xff] }
 0x636   :  { %v4795_v41 = vsel %vm1092_vm2, %v12963_v4, 0.0 }
 0x637   :  { %v4796_v13 = vadd.f32 %v4795_v41, %v4794_v26  ;;  %v4809_v41 = vsel %vm1092_vm2, %v13005_v52, 0.0 }
 0x639   :  { %v4798_v32 = vadd.f32 %v4797_v5, %v4796_v13  ;;  %v17098_v13 = vld [vmem:[#allocation180_spill] sm:$0xff]  ;;  %v17099_v5 = vld [vmem:[#allocation145_spill] sm:$0xff] }
 0x63a   :  { %v13021_v47 = vadd.f32 %v17099_v5, %v17098_v13  ;;  %v17108_v5 = vld [vmem:[#allocation66_spill] sm:$0xff] }
 0x63b   :  { %v4800_v27 = vadd.f32 %v4799_v57, %v4798_v32  ;;  %v4811_v32 = vsel %vm1092_vm2, %v13013_v58, 0.0  ;;  %v17100_v57 = vld [vmem:[#allocation139_spill] sm:$0xff] }
 0x63c   :  { %v13027_v8 = vadd.f32 %v17101_v37, %v17100_v57 }
 0x63d   :  { %v4802_v22 = vadd.f32 %v4801_v39, %v4800_v27  ;;  %v4813_v39 = vsel %vm1092_vm2, %v13021_v47, 0.0 }
 0x63e   :  { %v4815_v54 = vsel %vm1092_vm2, %v13027_v8, 0.0 }
 0x63f   :  { %v4804_v29 = vadd.f32 %v4803_v28, %v4802_v22  ;;  %v13033_v22 = vadd.f32 %v17103_v21, %v17102_v36 }
 0x641   :  { %v4806_v2 = vadd.f32 %v4805_v25, %v4804_v29  ;;  %v17105_v29 = vld [vmem:[#allocation158_spill] sm:$0xff] }
 0x642   :  { %v13039_v25 = vadd.f32 %v17105_v29, %v17104_v45  ;;  %v17114_v45 = vld [vmem:[#allocation9_spill] sm:$0xff] }
 0x643   :  { %v4808_v26 = vadd.f32 %v4807_v17, %v4806_v2  ;;  %v4817_v2 = vsel %vm1092_vm2, %v13033_v22, 0.0  ;;  %v17106_v17 = vld [vmem:[#allocation164_spill] sm:$0xff] }
 0x644   :  { %v13047_v61 = vadd.f32 %v17107_v34, %v17106_v17  ;;  %v4819_v13 = vsel %vm1092_vm2, %v13039_v25, 0.0  ;;  %v17116_v17 = vld [vmem:[#allocation156_spill] sm:$0xff] }
 0x645   :  { %v4810_v59 = vadd.f32 %v4809_v41, %v4808_v26  ;;  %v13049_v26 = vpop.f32.mrf.mxu2  ;;  %v13073_v34 = vadd.f32 %v17116_v17, %v12235_v23  ;;  %v17124_v17 = vld [vmem:[#allocation14_spill] sm:$0xff] }
 0x646   :  { %v4821_v37 = vsel %vm1092_vm2, %v13047_v61, 0.0 }
 0x647   :  { %v4812_v27 = vadd.f32 %v4811_v32, %v4810_v59  ;;  %v17109_v59 = vld [vmem:[#allocation5_spill] sm:$0xff]  ;;  %17117 = vst [vmem:[#allocation134_spill] sm:$0xff] %v13073_v34 }
 0x648   :  { %v13055_v32 = vadd.f32 %v17109_v59, %v17108_v5  ;;  %v17118_v59 = vld [vmem:[#allocation40_spill] sm:$0xff] }
 0x649   :  { %v4814_v28 = vadd.f32 %v4813_v39, %v4812_v27  ;;  %v17110_v27 = vld [vmem:[#allocation166_spill] sm:$0xff]  ;;  %v17111_v39 = vld [vmem:[#allocation7_spill] sm:$0xff] }
 0x64a   :  { %v13061_v36 = vadd.f32 %v17111_v39, %v17110_v27 }
 0x64b   :  { %v4816_v14 = vadd.f32 %v4815_v54, %v4814_v28  ;;  %v4823_v28 = vsel %vm1092_vm2, %v13055_v32, 0.0  ;;  %v17113_v54 = vld [vmem:[#allocation192_spill] sm:$0xff] }
 0x64c   :  { %17112 = vst [vmem:[#allocation44_spill] sm:$0xff] %v13061_v36  ;;  %v13067_v29 = vadd.f32 %v17114_v45, %v17113_v54  ;;  %v17122_v54 = vld [vmem:[#allocation13_spill] sm:$0xff] }
 0x64d   :  { %v4818_v41 = vadd.f32 %v4817_v2, %v4816_v14  ;;  %v4825_v2 = vsel %vm1092_vm2, %v13061_v36, 0.0  ;;  %v13083_v27 = vpop.f32.mrf.mxu2 }
 0x64e   :  { %17115 = vst [vmem:[#allocation113_spill] sm:$0xff] %v13067_v29  ;;  %v4827_v5 = vsel %vm1092_vm2, %v13067_v29, 0.0 }
 0x64f   :  { %v4820_v57 = vadd.f32 %v4819_v13, %v4818_v41  ;;  %v13075_v41 = vpop.f32.mrf.mxu1 }
 0x651   :  { %v4822_v21 = vadd.f32 %v4821_v37, %v4820_v57  ;;  %v17119_v57 = vld [vmem:[#allocation11_spill] sm:$0xff] }
 0x652   :  { %v13081_v37 = vadd.f32 %v17119_v57, %v17118_v59 }
 0x653   :  { %v4824_v14 = vadd.f32 %v4823_v28, %v4822_v21  ;;  %v4829_v21 = vsel %vm1092_vm2, %v13073_v34, 0.0  ;;  %v17121_v28 = vld [vmem:[#allocation42_spill] sm:$0xff] }
 0x654   :  { %17120 = vst [vmem:[#allocation45_spill] sm:$0xff] %v13081_v37  ;;  %v13089_v23 = vadd.f32 %v17122_v54, %v17121_v28 }
 0x655   :  { %v4826_v13 = vadd.f32 %v4825_v2, %v4824_v14  ;;  %v4831_v14 = vsel %vm1092_vm2, %v13081_v37, 0.0  ;;  %v17123_v2 = vld [vmem:[#allocation167_spill] sm:$0xff] }
 0x656   :  { %v13095_v29 = vadd.f32 %v17124_v17, %v17123_v2  ;;  %v4833_v57 = vsel %vm1092_vm2, %v13089_v23, 0.0 }
 0x657   :  { %v4828_v39 = vadd.f32 %v4827_v5, %v4826_v13  ;;  %v17125_v13 = vld [vmem:[#allocation43_spill] sm:$0xff]  ;;  %v17126_v5 = vld [vmem:[#allocation109_spill] sm:$0xff]  ;;  %v13109_v37 = vpop.f32.mrf.mxu1 }
 0x658   :  { %v13101_v36 = vadd.f32 %v17126_v5, %v17125_v13  ;;  %v4835_v28 = vsel %vm1092_vm2, %v13095_v29, 0.0  ;;  %v13117_v13 = vpop.f32.mrf.mxu2  ;;  %v17132_v5 = vld [vmem:[#allocation86_spill] sm:$0xff] }
 0x659   :  { %v4830_v45 = vadd.f32 %v4829_v21, %v4828_v39  ;;  %v17128_v39 = vld [vmem:[#allocation197_spill] sm:$0xff]  ;;  %v17129_v21 = vld [vmem:[#allocation91_spill] sm:$0xff] }
 0x65a   :  { %17127 = vst [vmem:[#allocation195_spill] sm:$0xff] %v13101_v36  ;;  %v13107_v54 = vadd.f32 %v17129_v21, %v17128_v39  ;;  %v13123_v39 = vadd.f32 %v17132_v5, %v12562_v12 }
 0x65b   :  { %v4832_v59 = vadd.f32 %v4831_v14, %v4830_v45  ;;  %v4837_v45 = vsel %vm1092_vm2, %v13101_v36, 0.0  ;;  %v17131_v14 = vld [vmem:[#allocation18_spill] sm:$0xff] }
 0x65c   :  { %17130 = vst [vmem:[#allocation199_spill] sm:$0xff] %v13107_v54  ;;  %v13115_v17 = vadd.f32 %v17131_v14, %v12533_v51  ;;  %v4843_v14 = vsel %vm1092_vm2, %v13123_v39, 0.0 }
 0x65d   :  { %v4834_v34 = vadd.f32 %v4833_v57, %v4832_v59  ;;  %v4839_v57 = vsel %vm1092_vm2, %v13107_v54, 0.0 }
 0x65f   :  { %v4836_v2 = vadd.f32 %v4835_v28, %v4834_v34  ;;  %v4841_v34 = vsel %vm1092_vm2, %v13115_v17, 0.0  ;;  %v17133_v28 = vld [vmem:[#allocation118_spill] sm:$0xff]  ;;  %v13143_v5 = vpop.f32.mrf.mxu1 }
 0x660   :  { %v13129_v36 = vadd.f32 %v17133_v28, %v12600_v46 }
 0x661   :  { %v4838_v59 = vadd.f32 %v4837_v45, %v4836_v2  ;;  %v17134_v2 = vld [vmem:[#allocation23_spill] sm:$0xff] }
 0x662   :  { %v13135_v45 = vadd.f32 %v17134_v2, %v12644_v49  ;;  %v4845_v12 = vsel %vm1092_vm2, %v13129_v36, 0.0  ;;  %v13151_v49 = vpop.f32.mrf.mxu2  ;;  %v17139_v2 = vld [vmem:[#allocation30_spill] sm:$0xff] }
 0x663   :  { %v4840_v21 = vadd.f32 %v4839_v57, %v4838_v59  ;;  %v17136_v59 = vld [vmem:[#allocation25_spill] sm:$0xff] }
 0x664   :  { %17135 = vst [vmem:[#allocation214_spill] sm:$0xff] %v13135_v45  ;;  %v13141_v57 = vadd.f32 %v17136_v59, %v12684_v1  ;;  %v13157_v1 = vadd.f32 %v17139_v2, %v12769_v11 }
 0x665   :  { %v4842_v51 = vadd.f32 %v4841_v34, %v4840_v21  ;;  %v4847_v21 = vsel %vm1092_vm2, %v13135_v45, 0.0  ;;  %v17138_v34 = vld [vmem:[#allocation27_spill] sm:$0xff] }
 0x666   :  { %17137 = vst [vmem:[#allocation46_spill] sm:$0xff] %v13141_v57  ;;  %v13149_v28 = vadd.f32 %v17138_v34, %v12731_v42  ;;  %v4853_v34 = vsel %vm1092_vm2, %v13157_v1, 0.0 }
 0x667   :  { %v4844_v54 = vadd.f32 %v4843_v14, %v4842_v51  ;;  %v4849_v14 = vsel %vm1092_vm2, %v13141_v57, 0.0 }
 0x669   :  { %v4846_v46 = vadd.f32 %v4845_v12, %v4844_v54  ;;  %v4851_v54 = vsel %vm1092_vm2, %v13149_v28, 0.0  ;;  %v17140_v12 = vld [vmem:[#allocation31_spill] sm:$0xff] }
 0x66a   :  { %v13163_v45 = vadd.f32 %v17140_v12, %v12775_v43  ;;  %v17144_v43 = vld [vmem:[#allocation205_spill] sm:$0xff] }
 0x66b   :  { %v4848_v51 = vadd.f32 %v4847_v21, %v4846_v46  ;;  %v17142_v46 = vld [vmem:[#allocation183_spill] sm:$0xff] }
 0x66c   :  { %17141 = vst [vmem:[#allocation47_spill] sm:$0xff] %v13163_v45  ;;  %v13169_v21 = vadd.f32 %v17142_v46, %v12793_v10  ;;  %v4855_v11 = vsel %vm1092_vm2, %v13163_v45, 0.0 }
 0x66d   :  { %v4850_v59 = vadd.f32 %v4849_v14, %v4848_v51  ;;  %v13173_v14 = vpop.f32.mrf.mxu1 }
 0x66e   :  { %17143 = vst [vmem:[#allocation170_spill] sm:$0xff] %v13169_v21  ;;  %v4857_v2 = vsel %vm1092_vm2, %v13169_v21, 0.0  ;;  %v17148_v21 = vld [vmem:[#allocation165_spill] sm:$0xff] }
 0x66f   :  { %v4852_v42 = vadd.f32 %v4851_v54, %v4850_v59  ;;  %v13179_v59 = vadd.f32 %v17144_v43, %v12808_v6  ;;  %v13181_v54 = vpop.f32.mrf.mxu2  ;;  %v13195_v6 = vadd.f32 %v17148_v21, %v12846_v48 }
 0x671   :  { %v4854_v57 = vadd.f32 %v4853_v34, %v4852_v42  ;;  %17145 = vst [vmem:[#allocation141_spill] sm:$0xff] %v13179_v59  ;;  %v4859_v10 = vsel %vm1092_vm2, %v13179_v59, 0.0  ;;  %v17146_v42 = vld [vmem:[#allocation36_spill] sm:$0xff] }
 0x672   :  { %v13187_v34 = vadd.f32 %v17146_v42, %v12827_v38  ;;  %v17151_v42 = vld [vmem:[#allocation215_spill] sm:$0xff] }
 0x673   :  { %v4856_v51 = vadd.f32 %v4855_v11, %v4854_v57 }
 0x674   :  { %17147 = vst [vmem:[#allocation178_spill] sm:$0xff] %v13187_v34  ;;  %v4861_v11 = vsel %vm1092_vm2, %v13187_v34, 0.0  ;;  %v13209_v34 = vadd.f32 %v17151_v42, %v12881_v15 }
 0x675   :  { %v4858_v12 = vadd.f32 %v4857_v2, %v4856_v51  ;;  %v13189_v46 = vpop.f32.mrf.mxu1  ;;  %v4863_v51 = vsel %vm1092_vm2, %v13195_v6, 0.0  ;;  %v17149_v2 = vld [vmem:[#allocation191_spill] sm:$0xff] }
 0x676   :  { %v13201_v59 = vadd.f32 %v17149_v2, %v12864_v31  ;;  %v4867_v21 = vsel %vm1092_vm2, %v13209_v34, 0.0 }
 0x677   :  { %v4860_v57 = vadd.f32 %v4859_v10, %v4858_v12  ;;  %v4762_v45 = vpop.f32.mrf.mxu2 }
 0x678   :  { %17150 = vst [vmem:[#allocation48_spill] sm:$0xff] %v13201_v59  ;;  %v4865_v10 = vsel %vm1092_vm2, %v13201_v59, 0.0  ;;  %v17154_v59 = vld [vmem:[#allocation88_spill] sm:$0xff] }
 0x679   :  { %v4862_v43 = vadd.f32 %v4861_v11, %v4860_v57  ;;  %v17152_v57 = vld [vmem:[#allocation90_spill] sm:$0xff]  ;;  %v13225_v15 = vadd.f32 %v17154_v59, %v12916_v60 }
 0x67a   :  { %v13215_v11 = vadd.f32 %v17152_v57, %v12896_v30  ;;  %v13231_v30 = vadd.f32 %v12887_v33, %v12927_v40  ;;  %v13247_v33 = vadd.f32 %v12920_v0, %v12973_v24  ;;  %v13263_v0 = vadd.f32 %v12953_v50, %v13041_v20  ;;  %v17158_v20 = vld [vmem:[#allocation75_spill] sm:$0xff] }
 0x67b   :  { %v4864_v38 = vadd.f32 %v4863_v51, %v4862_v43 }
 0x67c   :  { %17153 = vst [vmem:[#allocation217_spill] sm:$0xff] %v13215_v11  ;;  %v4869_v2 = vsel %vm1092_vm2, %v13215_v11, 0.0  ;;  %v13239_v11 = vadd.f32 %v12903_v63, %v12950_v9  ;;  %v13255_v63 = vadd.f32 %v12930_v7, %v13007_v55  ;;  %v13271_v7 = vadd.f32 %v12981_v19, %v13075_v41 }
 0x67d   :  { %v13203_v12 = vpop.f32.mrf.mxu1  ;;  %v4866_v48 = vadd.f32 %v4865_v10, %v4864_v38  ;;  %v4871_v10 = vsel %vm1092_vm2, %v13225_v15, 0.0  ;;  %17156 = vst [vmem:[#allocation204_spill] sm:$0xff] %v13263_v0  ;;  %v13289_v41 = vadd.f32 %v13015_v16, %v13109_v37  ;;  %v13302_v16 = vadd.f32 %v13049_v26, %v13143_v5 }
 0x67e   :  { %17155 = vst [vmem:[#allocation201_spill] sm:$0xff] %v13255_v63  ;;  %v4883_v19 = vsel %vm1092_vm2, %v13271_v7, 0.0 }
 0x67f   :  { %v13217_v31 = vpop.f32.mrf.mxu2  ;;  %v4868_v43 = vadd.f32 %v4867_v21, %v4866_v48  ;;  %v4873_v21 = vsel %vm1092_vm2, %v13231_v30, 0.0 }
 0x681   :  { %v4870_v38 = vadd.f32 %v4869_v2, %v4868_v43  ;;  %v4875_v43 = vsel %vm1092_vm2, %v13239_v11, 0.0 }
 0x683   :  { %v4872_v42 = vadd.f32 %v4871_v10, %v4870_v38  ;;  %v4877_v38 = vsel %vm1092_vm2, %v13247_v33, 0.0  ;;  %v4879_v10 = vsel %vm1092_vm2, %v13255_v63, 0.0 }
 0x685   :  { %v13219_v51 = vpop.f32.mrf.mxu1  ;;  %v4874_v59 = vadd.f32 %v4873_v21, %v4872_v42 }
 0x687   :  { %v13233_v57 = vpop.f32.mrf.mxu2  ;;  %v4876_v40 = vadd.f32 %v4875_v43, %v4874_v59  ;;  %v13275_v59 = vpop.permute.xlu0 %1023 }
 0x688   :  { %v13273_v55 = vpop.permute.xlu2 %954 }
 0x68d   :  { %v4593_v48 = vpop.f32.mrf.mxu1 }
 0x68e   :  { %v13241_v60 = vadd.f32 %v4762_v45, %v4593_v48  ;;  %v4878_v45 = vadd.f32 %v4877_v38, %v4876_v40  ;;  %v4881_v48 = vsel %vm1092_vm2, %v13263_v0, 0.0  ;;  %v17157_v40 = vld [vmem:[#allocation157_spill] sm:$0xff]  ;;  %v958_v38 = vmul.f32 %v13273_v55, %v17158_v20 }
 0x68f   :  { %v13257_v9 = vpop.f32.mrf.mxu2  ;;  %v959_v50 = vmul.f32 %v13273_v55, %v17157_v40  ;;  %v4885_v20 = vsel %vm1092_vm2, %v13289_v41, 0.0 }
 0x690   :  { %v4880_v24 = vadd.f32 %v4879_v10, %v4878_v45  ;;  %v17159_v45 = vld [vmem:[#allocation76_spill] sm:$0xff]  ;;  %v1027_v0 = vadd.f32 %v13275_v59, %v958_v38 }
 0x691   :  { %v957_v10 = vmul.f32 %v13273_v55, %v17159_v45  ;;  %v17161_v38 = vld [vmem:[#allocation4_spill] sm:$0xff] }
 0x692   :  { %v4882_v21 = vadd.f32 %v4881_v48, %v4880_v24  ;;  %v1028_v48 = vadd.f32 %v13275_v59, %v959_v50  ;;  %6316 = vrot.lane.b32.xlu2 %v1027_v0, %s8123_s24  ;;  %v961_v45 = vmul.f32 %v13273_v55, %v17161_v38  ;;  %v4887_v0 = vsel %vm1092_vm2, %v13302_v16, 0.0 }
 0x693   :  { %v1026_v40 = vadd.f32 %v13275_v59, %v957_v10  ;;  %v17162_v10 = vld [vmem:[#allocation2_spill] sm:$0xff] }
 0x694   :  { %v4884_v24 = vadd.f32 %v4883_v19, %v4882_v21  ;;  %6318 = vrot.lane.b32.xlu0 %v1028_v48, %s8123_s24  ;;  %v17160_v21 = vld [vmem:[#allocation148_spill] sm:$0xff]  ;;  %v960_v19 = vmul.f32 %v13273_v55, %v17162_v10  ;;  %v13315_v48 = vadd.f32 %v13083_v27, %v13173_v14  ;;  %v13328_v27 = vadd.f32 %v13117_v13, %v13189_v46 }
 0x695   :  { %v13249_v2 = vpop.f32.mrf.mxu1  ;;  %6314 = vrot.lane.b32.xlu1 %v1026_v40, %s8123_s24  ;;  %v962_v50 = vmul.f32 %v13273_v55, %v17160_v21  ;;  %v1030_v40 = vadd.f32 %v13275_v59, %v961_v45  ;;  %v17164_v45 = vld [vmem:[#allocation77_spill] sm:$0xff] }
 0x696   :  { %v4886_v37 = vadd.f32 %v4885_v20, %v4884_v24  ;;  %v1029_v20 = vadd.f32 %v13275_v59, %v960_v19  ;;  %v4889_v38 = vsel %vm1092_vm2, %v13315_v48, 0.0  ;;  %v964_v10 = vmul.f32 %v13273_v55, %v17164_v45  ;;  %v17165_v19 = vld [vmem:[#allocation95_spill] sm:$0xff] }
 0x697   :  { %v13277_v43 = vpop.f32.mrf.mxu2  ;;  %v1031_v24 = vadd.f32 %v13275_v59, %v962_v50 }
 0x698   :  { %v4888_v5 = vadd.f32 %v4887_v0, %v4886_v37  ;;  %v17163_v37 = vld [vmem:[#allocation6_spill] sm:$0xff]  ;;  %v963_v0 = vmul.f32 %v13273_v55, %v17165_v19 }
 0x699   :  { %v965_v50 = vmul.f32 %v13273_v55, %v17163_v37 }
 0x69a   :  { %6322 = vrot.lane.b32.xlu2 %v1030_v40, %s8123_s24  ;;  %v4890_v14 = vadd.f32 %v4889_v38, %v4888_v5  ;;  %v13341_v40 = vadd.f32 %v13151_v49, %v13203_v12  ;;  %v1033_v5 = vadd.f32 %v13275_v59, %v964_v10  ;;  %v13352_v49 = vadd.f32 %v13181_v54, %v13219_v51  ;;  %v17168_v10 = vld [vmem:[#allocation104_spill] sm:$0xff] }
 0x69b   :  { %v1034_v46 = vadd.f32 %v13275_v59, %v965_v50  ;;  %v967_v19 = vmul.f32 %v13273_v55, %v17168_v10 }
 0x69c   :  { %6324 = vrot.lane.b32.xlu0 %v1031_v24, %s8123_s24  ;;  %v4891_v24 = vsel %vm1092_vm2, %v13328_v27, 0.0  ;;  %17166 = vst [vmem:[#allocation49_spill] sm:$0xff] %v13341_v40  ;;  %v4893_v45 = vsel %vm1092_vm2, %v13341_v40, 0.0 }
 0x69d   :  { %v13265_v42 = vpop.f32.mrf.mxu1  ;;  %6320 = vrot.lane.b32.xlu1 %v1029_v20, %s8123_s24  ;;  %v4892_v13 = vadd.f32 %v4891_v24, %v4890_v14  ;;  %v1032_v20 = vadd.f32 %v13275_v59, %v963_v0  ;;  %v17167_v14 = vld [vmem:[#allocation78_spill] sm:$0xff]  ;;  %v17169_v0 = vld [vmem:[#allocation151_spill] sm:$0xff]  ;;  %v1036_v54 = vadd.f32 %v13275_v59, %v967_v19  ;;  %v17171_v19 = vld [vmem:[#allocation161_spill] sm:$0xff] }
 0x69e   :  { %v968_v50 = vmul.f32 %v13273_v55, %v17167_v14  ;;  %v966_v24 = vmul.f32 %v13273_v55, %v17169_v0  ;;  %v970_v0 = vmul.f32 %v13273_v55, %v17171_v19 }
 0x69f   :  { %v13317_v26 = vpop.f32.mrf.mxu2  ;;  %v4894_v12 = vadd.f32 %v4893_v45, %v4892_v13  ;;  %v13372_v45 = vadd.f32 %v13217_v31, %v13249_v2  ;;  %v13385_v31 = vadd.f32 %v13233_v57, %v13265_v42  ;;  %v17175_v42 = vld [vmem:[#allocation160_spill] sm:$0xff] }
 0x6a0   :  { %v1037_v40 = vadd.f32 %v13275_v59, %v968_v50  ;;  %v1035_v51 = vadd.f32 %v13275_v59, %v966_v24  ;;  %v17170_v50 = vld [vmem:[#allocation162_spill] sm:$0xff] }
 0x6a1   :  { %v971_v10 = vmul.f32 %v13273_v55, %v17170_v50  ;;  %17173 = vst [vmem:[#allocation152_spill] sm:$0xff] %v13385_v31  ;;  %v4901_v50 = vsel %vm1092_vm2, %v13385_v31, 0.0 }
 0x6a2   :  { %6328 = vrot.lane.b32.xlu2 %v1033_v5, %s8123_s24 }
 0x6a4   :  { %6330 = vrot.lane.b32.xlu0 %v1034_v46, %s8123_s24  ;;  %v4895_v46 = vsel %vm1092_vm2, %v13352_v49, 0.0 }
 0x6a5   :  { %v13294_v63 = vpop.f32.mrf.mxu1  ;;  %6326 = vrot.lane.b32.xlu1 %v1032_v20, %s8123_s24  ;;  %v4896_v5 = vadd.f32 %v4895_v46, %v4894_v12  ;;  %v4897_v20 = vsel %vm1092_vm2, %v13241_v60, 0.0  ;;  %v4899_v46 = vsel %vm1092_vm2, %v13372_v45, 0.0 }
 0x6a6   :  { %v13396_v19 = vadd.f32 %v13257_v9, %v13294_v63 }
 0x6a7   :  { %v4777_v38 = vpop.f32.mrf.mxu2  ;;  %v4898_v14 = vadd.f32 %v4897_v20, %v4896_v5  ;;  %v1039_v5 = vadd.f32 %v13275_v59, %v970_v0 }
 0x6a8   :  { %17174 = vst [vmem:[#allocation120_spill] sm:$0xff] %v13396_v19 }
 0x6a9   :  { %v4900_v2 = vadd.f32 %v4899_v46, %v4898_v14  ;;  %v974_v14 = vmul.f32 %v13273_v55, %v17175_v42 }
 0x6aa   :  { %6334 = vrot.lane.b32.xlu2 %v1036_v54, %s8123_s24  ;;  %v1040_v54 = vadd.f32 %v13275_v59, %v971_v10  ;;  %v17176_v10 = vld [vmem:[#allocation154_spill] sm:$0xff] }
 0x6ab   :  { %v4902_v57 = vadd.f32 %v4901_v50, %v4900_v2  ;;  %v973_v0 = vmul.f32 %v13273_v55, %v17176_v10  ;;  %v1043_v9 = vadd.f32 %v13275_v59, %v974_v14 }
 0x6ac   :  { %6336 = vrot.lane.b32.xlu0 %v1037_v40, %s8123_s24  ;;  %v17172_v40 = vld [vmem:[#allocation8_spill] sm:$0xff] }
 0x6ad   :  { %v4603_v21 = vpop.f32.mrf.mxu1  ;;  %6332 = vrot.lane.b32.xlu1 %v1035_v51, %s8123_s24  ;;  %v969_v24 = vmul.f32 %v13273_v55, %v17172_v40  ;;  %v17177_v40 = vld [vmem:[#allocation108_spill] sm:$0xff]  ;;  %v1042_v2 = vadd.f32 %v13275_v59, %v973_v0 }
 0x6af   :  { %v4779_v12 = vpop.f32.mrf.mxu2  ;;  %v1038_v51 = vadd.f32 %v13275_v59, %v969_v24  ;;  %v972_v24 = vmul.f32 %v13273_v55, %v17177_v40 }
 0x6b2   :  { %6340 = vrot.lane.b32.xlu2 %v1039_v5, %s8123_s24  ;;  %v13408_v5 = vadd.f32 %v13277_v43, %v4603_v21 }
 0x6b4   :  { %6342 = vrot.lane.b32.xlu0 %v1040_v54, %s8123_s24  ;;  %v4903_v54 = vsel %vm1092_vm2, %v13396_v19, 0.0  ;;  %17178 = vst [vmem:[#allocation50_spill] sm:$0xff] %v13408_v5  ;;  %v4905_v42 = vsel %vm1092_vm2, %v13408_v5, 0.0 }
 0x6b5   :  { %v4605_v37 = vpop.f32.mrf.mxu1  ;;  %6338 = vrot.lane.b32.xlu1 %v1038_v51, %s8123_s24  ;;  %v4904_v63 = vadd.f32 %v4903_v54, %v4902_v57  ;;  %v1041_v51 = vadd.f32 %v13275_v59, %v972_v24 }
 0x6b6   :  { %v13418_v10 = vadd.f32 %v13317_v26, %v4605_v37 }
 0x6b7   :  { %v4782_v46 = vpop.f32.mrf.mxu2  ;;  %v4906_v43 = vadd.f32 %v4905_v42, %v4904_v63 }
 0x6b8   :  { %17179 = vst [vmem:[#allocation51_spill] sm:$0xff] %v13418_v10  ;;  %v4907_v21 = vsel %vm1092_vm2, %v13418_v10, 0.0 }
 0x6b9   :  { %v4908_v0 = vadd.f32 %v4907_v21, %v4906_v43 }
 0x6ba   :  { %6346 = vrot.lane.b32.xlu2 %v1042_v2, %s8123_s24 }
 0x6bc   :  { %6348 = vrot.lane.b32.xlu0 %v1043_v9, %s8123_s24 }
 0x6bd   :  { %v4608_v13 = vpop.f32.mrf.mxu1  ;;  %6344 = vrot.lane.b32.xlu1 %v1041_v51, %s8123_s24 }
 0x6be   :  { %v13423_v57 = vadd.f32 %v4777_v38, %v4608_v13 }
 0x6bf   :  { %v4784_v14 = vpop.f32.mrf.mxu2 }
 0x6c0   :  { %17180 = vst [vmem:[#allocation128_spill] sm:$0xff] %v13423_v57  ;;  %v4909_v24 = vsel %vm1092_vm2, %v13423_v57, 0.0 }
 0x6c1   :  { %v4910_v9 = vadd.f32 %v4909_v24, %v4908_v0 }
 0x6c5   :  { %v4610_v20 = vpop.f32.mrf.mxu1 }
 0x6c6   :  { %v4780_v54 = vadd.f32 %v4779_v12, %v4610_v20 }
 0x6c7   :  { %v4787_v5 = vpop.f32.mrf.mxu2 }
 0x6c8   :  { %v4911_v2 = vsel %vm1092_vm2, %v4780_v54, 0.0 }
 0x6c9   :  { %v4912_v37 = vadd.f32 %v4911_v2, %v4910_v9 }
 0x6cd   :  { %v4613_v50 = vpop.f32.mrf.mxu1 }
 0x6ce   :  { %v4783_v26 = vadd.f32 %v4782_v46, %v4613_v50 }
 0x6cf   :  { %v4789_v19 = vpop.f32.mrf.mxu2 }
 0x6d0   :  { %v4913_v63 = vsel %vm1092_vm2, %v4783_v26, 0.0 }
 0x6d1   :  { %v4914_v10 = vadd.f32 %v4913_v63, %v4912_v37 }
 0x6d5   :  { %v4615_v40 = vpop.f32.mrf.mxu1 }
 0x6d6   :  { %v4785_v42 = vadd.f32 %v4784_v14, %v4615_v40 }
 0x6d8   :  { %v4915_v13 = vsel %vm1092_vm2, %v4785_v42, 0.0 }
 0x6d9   :  { %v4916_v43 = vadd.f32 %v4915_v13, %v4914_v10 }
 0x6dd   :  { %v4618_v51 = vpop.f32.mrf.mxu1 }
 0x6de   :  { %v4788_v38 = vadd.f32 %v4787_v5, %v4618_v51 }
 0x6e0   :  { %v4917_v21 = vsel %vm1092_vm2, %v4788_v38, 0.0 }
 0x6e1   :  { %v4918_v20 = vadd.f32 %v4917_v21, %v4916_v43 }
 0x6e5   :  { %v4620_v57 = vpop.f32.mrf.mxu1 }
 0x6e6   :  { %v4790_v12 = vadd.f32 %v4789_v19, %v4620_v57 }
 0x6e8   :  { %v4919_v0 = vsel %vm1092_vm2, %v4790_v12, 0.0 }
 0x6e9   :  { %v4920_v46 = vadd.f32 %v4919_v0, %v4918_v20 }
 0x6eb   :  { %v4921_v50 = vrot.slane %v4920_v46, 4 }
 0x6ed   :  { %v4922_v24 = vadd.f32 %v4921_v50, %v4920_v46 }
 0x6ef   :  { %v4923_v9 = vrot.slane %v4922_v24, 2 }
 0x6f1   :  { %v4924_v2 = vadd.f32 %v4923_v9, %v4922_v24 }
 0x6f3   :  { %v4925_v31 = vrot.slane %v4924_v2, 1 }
 0x6f5   :  { %v4926_v14 = vadd.f32 %v4925_v31, %v4924_v2 }
 0x6f7   :  { %v13432_v40 = vmul.f32 0.001953125, %v4926_v14 }
 0x6f9   :  { %v13435_v5 = vsub.f32 %v4780_v54, %v13432_v40  ;;  %v13438_v10 = vsub.f32 %v4783_v26, %v13432_v40  ;;  %v13441_v19 = vsub.f32 %v4785_v42, %v13432_v40  ;;  %v13444_v57 = vsub.f32 %v4788_v38, %v13432_v40 }
 0x6fa   :  { %v13447_v37 = vsub.f32 %v4790_v12, %v13432_v40  ;;  %v13451_v31 = vsub.f32 %v12956_v62, %v13432_v40  ;;  %v13455_v54 = vsub.f32 %v12963_v4, %v13432_v40  ;;  %v13459_v26 = vsub.f32 %v12960_v44, %v13432_v40 }
 0x6fb   :  { %17181 = vst [vmem:[#allocation52_spill] sm:$0xff] %v13444_v57  ;;  %v13463_v51 = vsub.f32 %v12967_v3, %v13432_v40  ;;  %v13471_v62 = vsub.f32 %v12979_v18, %v13432_v40  ;;  %v13477_v44 = vsub.f32 %v12987_v53, %v13432_v40  ;;  %v13485_v21 = vsub.f32 %v12993_v35, %v13432_v40 }
 0x6fc   :  { %17182 = vst [vmem:[#allocation129_spill] sm:$0xff] %v13447_v37  ;;  %v4992_v63 = vmul.f32 %v13451_v31, %v13451_v31  ;;  %v4993_v42 = vmul.f32 %v13455_v54, %v13455_v54  ;;  %v4994_v4 = vmul.f32 %v13459_v26, %v13459_v26  ;;  %v13492_v53 = vsub.f32 %v12999_v56, %v13432_v40 }
 0x6fd   :  { %v4995_v3 = vmul.f32 %v13463_v51, %v13463_v51  ;;  %v4996_v18 = vmul.f32 %v13471_v62, %v13471_v62  ;;  %v4997_v0 = vmul.f32 %v13477_v44, %v13477_v44  ;;  %v13499_v35 = vsub.f32 %v13005_v52, %v13432_v40 }
 0x6fe   :  { %v5056_v38 = vsel %vm1092_vm2, %v4992_v63, 0.0  ;;  %v5057_v13 = vsel %vm1092_vm2, %v4993_v42, 0.0  ;;  %v5059_v12 = vsel %vm1092_vm2, %v4994_v4, 0.0  ;;  %v4998_v24 = vmul.f32 %v13485_v21, %v13485_v21 }
 0x6ff   :  { %v5058_v43 = vadd.f32 %v5057_v13, %v5056_v38  ;;  %v5061_v46 = vsel %vm1092_vm2, %v4995_v3, 0.0  ;;  %v5063_v9 = vsel %vm1092_vm2, %v4996_v18, 0.0  ;;  %v13506_v56 = vsub.f32 %v13013_v58, %v13432_v40 }
 0x700   :  { %v4999_v14 = vmul.f32 %v13492_v53, %v13492_v53  ;;  %v5065_v63 = vsel %vm1092_vm2, %v4997_v0, 0.0  ;;  %v13513_v52 = vsub.f32 %v13021_v47, %v13432_v40  ;;  %v5000_v4 = vmul.f32 %v13499_v35, %v13499_v35 }
 0x701   :  { %v5060_v20 = vadd.f32 %v5059_v12, %v5058_v43  ;;  %v5067_v3 = vsel %vm1092_vm2, %v4998_v24, 0.0  ;;  %v13520_v58 = vsub.f32 %v13027_v8, %v13432_v40  ;;  %v5001_v13 = vmul.f32 %v13506_v56, %v13506_v56 }
 0x702   :  { %v5069_v43 = vsel %vm1092_vm2, %v4999_v14, 0.0  ;;  %v13527_v47 = vsub.f32 %v13033_v22, %v13432_v40  ;;  %v5002_v12 = vmul.f32 %v13513_v52, %v13513_v52  ;;  %v13534_v8 = vsub.f32 %v13039_v25, %v13432_v40 }
 0x703   :  { %v5062_v50 = vadd.f32 %v5061_v46, %v5060_v20  ;;  %v5071_v20 = vsel %vm1092_vm2, %v5000_v4, 0.0  ;;  %v5003_v46 = vmul.f32 %v13520_v58, %v13520_v58  ;;  %v13541_v22 = vsub.f32 %v13047_v61, %v13432_v40 }
 0x704   :  { %v13548_v25 = vsub.f32 %v13055_v32, %v13432_v40 }
 0x705   :  { %v5064_v2 = vadd.f32 %v5063_v9, %v5062_v50  ;;  %v5073_v50 = vsel %vm1092_vm2, %v5001_v13, 0.0  ;;  %v5004_v9 = vmul.f32 %v13527_v47, %v13527_v47 }
 0x707   :  { %v5066_v42 = vadd.f32 %v5065_v63, %v5064_v2  ;;  %v5075_v2 = vsel %vm1092_vm2, %v5002_v12, 0.0  ;;  %v5005_v63 = vmul.f32 %v13534_v8, %v13534_v8  ;;  %v5079_v13 = vsel %vm1092_vm2, %v5004_v9, 0.0 }
 0x708   :  { %v5007_v12 = vmul.f32 %v13548_v25, %v13548_v25 }
 0x709   :  { %v5068_v38 = vadd.f32 %v5067_v3, %v5066_v42  ;;  %v5077_v42 = vsel %vm1092_vm2, %v5003_v46, 0.0  ;;  %v17183_v3 = vld [vmem:[#allocation44_spill] sm:$0xff]  ;;  %v17185_v46 = vld [vmem:[#allocation134_spill] sm:$0xff] }
 0x70a   :  { %v13555_v61 = vsub.f32 %v17183_v3, %v13432_v40  ;;  %v13583_v3 = vsub.f32 %v13089_v23, %v13432_v40 }
 0x70b   :  { %v5070_v18 = vadd.f32 %v5069_v43, %v5068_v38  ;;  %v5006_v38 = vmul.f32 %v13541_v22, %v13541_v22 }
 0x70c   :  { %17189 = vst [vmem:[#allocation208_spill] sm:$0xff] %v13583_v3 }
 0x70d   :  { %v5072_v0 = vadd.f32 %v5071_v20, %v5070_v18  ;;  %v17184_v18 = vld [vmem:[#allocation113_spill] sm:$0xff]  ;;  %v5081_v20 = vsel %vm1092_vm2, %v5005_v63, 0.0  ;;  %v5083_v9 = vsel %vm1092_vm2, %v5006_v38, 0.0  ;;  %v5085_v63 = vsel %vm1092_vm2, %v5007_v12, 0.0 }
 0x70e   :  { %v13562_v32 = vsub.f32 %v17184_v18, %v13432_v40 }
 0x70f   :  { %v5074_v24 = vadd.f32 %v5073_v50, %v5072_v0  ;;  %v13569_v50 = vsub.f32 %v17185_v46, %v13432_v40  ;;  %v17190_v46 = vld [vmem:[#allocation195_spill] sm:$0xff] }
 0x710   :  { %v13597_v23 = vsub.f32 %v17190_v46, %v13432_v40 }
 0x711   :  { %v5076_v14 = vadd.f32 %v5075_v2, %v5074_v24  ;;  %17186 = vst [vmem:[#allocation206_spill] sm:$0xff] %v13569_v50  ;;  %v5008_v24 = vmul.f32 %v13555_v61, %v13555_v61 }
 0x713   :  { %v5078_v4 = vadd.f32 %v5077_v42, %v5076_v14  ;;  %v17187_v14 = vld [vmem:[#allocation45_spill] sm:$0xff]  ;;  %v5087_v38 = vsel %vm1092_vm2, %v5008_v24, 0.0 }
 0x714   :  { %v13576_v42 = vsub.f32 %v17187_v14, %v13432_v40  ;;  %v17191_v14 = vld [vmem:[#allocation93_spill] sm:$0xff] }
 0x715   :  { %v5080_v43 = vadd.f32 %v5079_v13, %v5078_v4  ;;  %v5009_v4 = vmul.f32 %v13562_v32, %v13562_v32 }
 0x716   :  { %17188 = vst [vmem:[#allocation207_spill] sm:$0xff] %v13576_v42 }
 0x717   :  { %v5082_v0 = vadd.f32 %v5081_v20, %v5080_v43  ;;  %v5010_v43 = vmul.f32 %v13569_v50, %v13569_v50  ;;  %v13590_v20 = vsub.f32 %v13095_v29, %v13432_v40  ;;  %v5089_v12 = vsel %vm1092_vm2, %v5009_v4, 0.0  ;;  %v17192_v29 = vld [vmem:[#allocation101_spill] sm:$0xff]  ;;  %v17194_v4 = vld [vmem:[#allocation199_spill] sm:$0xff] }
 0x718   :  { %v13610_v50 = vsub.f32 %v17194_v4, %v13432_v40  ;;  %v5014_v4 = vmul.f32 %v13597_v23, %v13597_v23 }
 0x719   :  { %v5084_v2 = vadd.f32 %v5083_v9, %v5082_v0  ;;  %v5011_v0 = vmul.f32 %v13576_v42, %v13576_v42  ;;  %v5012_v9 = vmul.f32 %v13583_v3, %v13583_v3  ;;  %v5091_v24 = vsel %vm1092_vm2, %v5010_v43, 0.0 }
 0x71a   :  { %17195 = vst [vmem:[#allocation53_spill] sm:$0xff] %v13610_v50  ;;  %v5013_v3 = vmul.f32 %v13590_v20, %v13590_v20 }
 0x71b   :  { %v5086_v13 = vadd.f32 %v5085_v63, %v5084_v2  ;;  %v977_v63 = vmul.f32 %v13273_v55, %v17191_v14 }
 0x71d   :  { %v5088_v18 = vadd.f32 %v5087_v38, %v5086_v13  ;;  %v976_v13 = vmul.f32 %v13273_v55, %v17192_v29  ;;  %v17193_v38 = vld [vmem:[#allocation12_spill] sm:$0xff]  ;;  %v1046_v43 = vadd.f32 %v13275_v59, %v977_v63 }
 0x71e   :  { %v975_v42 = vmul.f32 %v13273_v55, %v17193_v38  ;;  %v13620_v38 = vsub.f32 %v13115_v17, %v13432_v40  ;;  %v5015_v17 = vmul.f32 %v13610_v50, %v13610_v50  ;;  %v17197_v63 = vld [vmem:[#allocation116_spill] sm:$0xff] }
 0x71f   :  { %v5090_v2 = vadd.f32 %v5089_v12, %v5088_v18  ;;  %v5093_v18 = vsel %vm1092_vm2, %v5011_v0, 0.0  ;;  %v1045_v12 = vadd.f32 %v13275_v59, %v976_v13  ;;  %6354 = vrot.lane.b32.xlu0 %v1046_v43, %s8123_s24  ;;  %v13629_v0 = vsub.f32 %v13123_v39, %v13432_v40  ;;  %v17199_v43 = vld [vmem:[#allocation82_spill] sm:$0xff] }
 0x720   :  { %v1044_v29 = vadd.f32 %v13275_v59, %v975_v42  ;;  %17196 = vst [vmem:[#allocation153_spill] sm:$0xff] %v13620_v38  ;;  %v5097_v42 = vsel %vm1092_vm2, %v5013_v3, 0.0  ;;  %v980_v13 = vmul.f32 %v13273_v55, %v17197_v63  ;;  %v13643_v39 = vsub.f32 %v13129_v36, %v13432_v40  ;;  %v17200_v3 = vld [vmem:[#allocation214_spill] sm:$0xff] }
 0x721   :  { %v5092_v46 = vadd.f32 %v5091_v24, %v5090_v2  ;;  %v5095_v2 = vsel %vm1092_vm2, %v5012_v9, 0.0  ;;  %6352 = vrot.lane.b32.xlu2 %v1045_v12, %s8123_s24  ;;  %v17198_v9 = vld [vmem:[#allocation137_spill] sm:$0xff]  ;;  %v978_v12 = vmul.f32 %v13273_v55, %v17199_v43 }
 0x722   :  { %6350 = vrot.lane.b32.xlu1 %v1044_v29, %s8123_s24  ;;  %v5099_v29 = vsel %vm1092_vm2, %v5014_v4, 0.0 }
 0x723   :  { %v5094_v14 = vadd.f32 %v5093_v18, %v5092_v46  ;;  %v979_v46 = vmul.f32 %v13273_v55, %v17198_v9  ;;  %v1049_v9 = vadd.f32 %v13275_v59, %v980_v13  ;;  %v1047_v50 = vadd.f32 %v13275_v59, %v978_v12  ;;  %v17204_v12 = vld [vmem:[#allocation119_spill] sm:$0xff] }
 0x725   :  { %v5096_v24 = vadd.f32 %v5095_v2, %v5094_v14  ;;  %v5016_v14 = vmul.f32 %v13620_v38, %v13620_v38  ;;  %v13650_v2 = vsub.f32 %v17200_v3, %v13432_v40  ;;  %v1048_v36 = vadd.f32 %v13275_v59, %v979_v46  ;;  %v17202_v38 = vld [vmem:[#allocation46_spill] sm:$0xff] }
 0x726   :  { %v13660_v4 = vsub.f32 %v17202_v38, %v13432_v40  ;;  %v5018_v3 = vmul.f32 %v13643_v39, %v13643_v39 }
 0x727   :  { %v5098_v18 = vadd.f32 %v5097_v42, %v5096_v24  ;;  %17201 = vst [vmem:[#allocation54_spill] sm:$0xff] %v13650_v2  ;;  %v5017_v24 = vmul.f32 %v13629_v0, %v13629_v0  ;;  %v5101_v42 = vsel %vm1092_vm2, %v5015_v17, 0.0  ;;  %6360 = vrot.lane.b32.xlu0 %v1049_v9, %s8123_s24  ;;  %v13669_v17 = vsub.f32 %v13149_v28, %v13432_v40  ;;  %v17206_v9 = vld [vmem:[#allocation16_spill] sm:$0xff] }
 0x728   :  { %17203 = vst [vmem:[#allocation138_spill] sm:$0xff] %v13660_v4  ;;  %v5019_v38 = vmul.f32 %v13650_v2, %v13650_v2  ;;  %v13683_v28 = vsub.f32 %v13157_v1, %v13432_v40 }
 0x729   :  { %v5100_v63 = vadd.f32 %v5099_v29, %v5098_v18  ;;  %v5103_v18 = vsel %vm1092_vm2, %v5016_v14, 0.0  ;;  %6358 = vrot.lane.b32.xlu2 %v1048_v36, %s8123_s24  ;;  %v5105_v46 = vsel %vm1092_vm2, %v5017_v24, 0.0  ;;  %v983_v29 = vmul.f32 %v13273_v55, %v17204_v12  ;;  %v17205_v14 = vld [vmem:[#allocation17_spill] sm:$0xff]  ;;  %v17208_v24 = vld [vmem:[#allocation47_spill] sm:$0xff] }
 0x72a   :  { %6356 = vrot.lane.b32.xlu1 %v1047_v50, %s8123_s24  ;;  %v981_v36 = vmul.f32 %v13273_v55, %v17206_v9  ;;  %17207 = vst [vmem:[#allocation73_spill] sm:$0xff] %v13683_v28  ;;  %v5020_v50 = vmul.f32 %v13660_v4, %v13660_v4  ;;  %v17210_v4 = vld [vmem:[#allocation170_spill] sm:$0xff] }
 0x72b   :  { %v5102_v43 = vadd.f32 %v5101_v42, %v5100_v63  ;;  %v982_v63 = vmul.f32 %v13273_v55, %v17205_v14  ;;  %v1052_v14 = vadd.f32 %v13275_v59, %v983_v29 }
 0x72c   :  { %v1050_v2 = vadd.f32 %v13275_v59, %v981_v36 }
 0x72d   :  { %v5104_v13 = vadd.f32 %v5103_v18, %v5102_v43  ;;  %v5107_v43 = vsel %vm1092_vm2, %v5018_v3, 0.0  ;;  %v13690_v18 = vsub.f32 %v17208_v24, %v13432_v40  ;;  %v1051_v1 = vadd.f32 %v13275_v59, %v982_v63 }
 0x72e   :  { %v13700_v3 = vsub.f32 %v17210_v4, %v13432_v40  ;;  %v5022_v24 = vmul.f32 %v13683_v28, %v13683_v28 }
 0x72f   :  { %v5106_v42 = vadd.f32 %v5105_v46, %v5104_v13  ;;  %17209 = vst [vmem:[#allocation55_spill] sm:$0xff] %v13690_v18  ;;  %v5021_v13 = vmul.f32 %v13669_v17, %v13669_v17  ;;  %v5109_v46 = vsel %vm1092_vm2, %v5019_v38, 0.0  ;;  %6366 = vrot.lane.b32.xlu0 %v1052_v14, %s8123_s24  ;;  %v17212_v38 = vld [vmem:[#allocation141_spill] sm:$0xff]  ;;  %v5023_v4 = vmul.f32 %v13690_v18, %v13690_v18 }
 0x730   :  { %17211 = vst [vmem:[#allocation56_spill] sm:$0xff] %v13700_v3  ;;  %v13709_v29 = vsub.f32 %v17212_v38, %v13432_v40  ;;  %v17216_v38 = vld [vmem:[#allocation178_spill] sm:$0xff] }
 0x731   :  { %v5108_v12 = vadd.f32 %v5107_v43, %v5106_v42  ;;  %v5111_v42 = vsel %vm1092_vm2, %v5020_v50, 0.0  ;;  %6364 = vrot.lane.b32.xlu2 %v1051_v1, %s8123_s24  ;;  %v5113_v36 = vsel %vm1092_vm2, %v5021_v13, 0.0  ;;  %v17213_v43 = vld [vmem:[#allocation102_spill] sm:$0xff]  ;;  %v13730_v13 = vsub.f32 %v13195_v6, %v13432_v40 }
 0x732   :  { %6362 = vrot.lane.b32.xlu1 %v1050_v2, %s8123_s24  ;;  %v17214_v50 = vld [vmem:[#allocation122_spill] sm:$0xff]  ;;  %v5024_v2 = vmul.f32 %v13700_v3, %v13700_v3  ;;  %v17218_v3 = vld [vmem:[#allocation48_spill] sm:$0xff] }
 0x733   :  { %v5110_v9 = vadd.f32 %v5109_v46, %v5108_v12  ;;  %v986_v12 = vmul.f32 %v13273_v55, %v17213_v43  ;;  %v985_v46 = vmul.f32 %v13273_v55, %v17214_v50  ;;  %v17215_v1 = vld [vmem:[#allocation142_spill] sm:$0xff]  ;;  %17217 = vst [vmem:[#allocation186_spill] sm:$0xff] %v13730_v13 }
 0x734   :  { %v984_v28 = vmul.f32 %v13273_v55, %v17215_v1 }
 0x735   :  { %v5112_v63 = vadd.f32 %v5111_v42, %v5110_v9  ;;  %v13723_v9 = vsub.f32 %v17216_v38, %v13432_v40  ;;  %v5115_v42 = vsel %vm1092_vm2, %v5022_v24, 0.0  ;;  %v1055_v50 = vadd.f32 %v13275_v59, %v986_v12 }
 0x736   :  { %v1054_v1 = vadd.f32 %v13275_v59, %v985_v46  ;;  %v1053_v18 = vadd.f32 %v13275_v59, %v984_v28  ;;  %v13740_v24 = vsub.f32 %v17218_v3, %v13432_v40  ;;  %v5027_v28 = vmul.f32 %v13730_v13, %v13730_v13  ;;  %v17219_v46 = vld [vmem:[#allocation143_spill] sm:$0xff] }
 0x737   :  { %v5114_v14 = vadd.f32 %v5113_v36, %v5112_v63  ;;  %v5025_v63 = vmul.f32 %v13709_v29, %v13709_v29  ;;  %v5117_v36 = vsel %vm1092_vm2, %v5023_v4, 0.0  ;;  %v5026_v6 = vmul.f32 %v13723_v9, %v13723_v9  ;;  %6372 = vrot.lane.b32.xlu0 %v1055_v50, %s8123_s24  ;;  %v17221_v50 = vld [vmem:[#allocation117_spill] sm:$0xff] }
 0x738   :  { %v13749_v4 = vsub.f32 %v13209_v34, %v13432_v40  ;;  %v17222_v34 = vld [vmem:[#allocation217_spill] sm:$0xff] }
 0x739   :  { %v5116_v43 = vadd.f32 %v5115_v42, %v5114_v14  ;;  %v5119_v14 = vsel %vm1092_vm2, %v5024_v2, 0.0  ;;  %6370 = vrot.lane.b32.xlu2 %v1054_v1, %s8123_s24  ;;  %v5121_v3 = vsel %vm1092_vm2, %v5025_v63, 0.0  ;;  %v989_v42 = vmul.f32 %v13273_v55, %v17219_v46  ;;  %v17220_v2 = vld [vmem:[#allocation114_spill] sm:$0xff] }
 0x73a   :  { %6368 = vrot.lane.b32.xlu1 %v1053_v18, %s8123_s24  ;;  %v987_v1 = vmul.f32 %v13273_v55, %v17221_v50  ;;  %v5028_v18 = vmul.f32 %v13740_v24, %v13740_v24  ;;  %v13770_v63 = vsub.f32 %v13225_v15, %v13432_v40 }
 0x73b   :  { %v5118_v38 = vadd.f32 %v5117_v36, %v5116_v43  ;;  %v988_v43 = vmul.f32 %v13273_v55, %v17220_v2  ;;  %v1058_v2 = vadd.f32 %v13275_v59, %v989_v42 }
 0x73c   :  { %17223 = vst [vmem:[#allocation99_spill] sm:$0xff] %v13770_v63  ;;  %v1056_v13 = vadd.f32 %v13275_v59, %v987_v1  ;;  %v17225_v1 = vld [vmem:[#allocation24_spill] sm:$0xff] }
 0x73d   :  { %v5120_v12 = vadd.f32 %v5119_v14, %v5118_v38  ;;  %v13763_v38 = vsub.f32 %v17222_v34, %v13432_v40  ;;  %v5123_v14 = vsel %vm1092_vm2, %v5026_v6, 0.0  ;;  %v1057_v50 = vadd.f32 %v13275_v59, %v988_v43 }
 0x73e   :  { %v13780_v6 = vsub.f32 %v13231_v30, %v13432_v40  ;;  %v5031_v30 = vmul.f32 %v13770_v63, %v13770_v63 }
 0x73f   :  { %v5122_v36 = vadd.f32 %v5121_v3, %v5120_v12  ;;  %v5029_v12 = vmul.f32 %v13749_v4, %v13749_v4  ;;  %v5125_v3 = vsel %vm1092_vm2, %v5027_v28, 0.0  ;;  %v5030_v15 = vmul.f32 %v13763_v38, %v13763_v38  ;;  %6378 = vrot.lane.b32.xlu0 %v1058_v2, %s8123_s24  ;;  %v17227_v2 = vld [vmem:[#allocation85_spill] sm:$0xff] }
 0x740   :  { %17224 = vst [vmem:[#allocation121_spill] sm:$0xff] %v13780_v6  ;;  %v13789_v28 = vsub.f32 %v13239_v11, %v13432_v40  ;;  %v13803_v11 = vsub.f32 %v13247_v33, %v13432_v40 }
 0x741   :  { %v5124_v46 = vadd.f32 %v5123_v14, %v5122_v36  ;;  %v5127_v36 = vsel %vm1092_vm2, %v5028_v18, 0.0  ;;  %6376 = vrot.lane.b32.xlu2 %v1057_v50, %s8123_s24  ;;  %v5129_v43 = vsel %vm1092_vm2, %v5029_v12, 0.0  ;;  %v992_v14 = vmul.f32 %v13273_v55, %v17225_v1  ;;  %v17226_v18 = vld [vmem:[#allocation140_spill] sm:$0xff]  ;;  %v17228_v12 = vld [vmem:[#allocation201_spill] sm:$0xff] }
 0x742   :  { %6374 = vrot.lane.b32.xlu1 %v1056_v13, %s8123_s24  ;;  %v990_v50 = vmul.f32 %v13273_v55, %v17227_v2  ;;  %v5032_v13 = vmul.f32 %v13780_v6, %v13780_v6  ;;  %v17229_v6 = vld [vmem:[#allocation204_spill] sm:$0xff] }
 0x743   :  { %v5126_v34 = vadd.f32 %v5125_v3, %v5124_v46  ;;  %v991_v46 = vmul.f32 %v13273_v55, %v17226_v18  ;;  %v1061_v18 = vadd.f32 %v13275_v59, %v992_v14 }
 0x744   :  { %v1059_v63 = vadd.f32 %v13275_v59, %v990_v50  ;;  %v17231_v50 = vld [vmem:[#allocation198_spill] sm:$0xff] }
 0x745   :  { %v5128_v42 = vadd.f32 %v5127_v36, %v5126_v34  ;;  %v5131_v34 = vsel %vm1092_vm2, %v5030_v15, 0.0  ;;  %v13810_v36 = vsub.f32 %v17228_v12, %v13432_v40  ;;  %v1060_v33 = vadd.f32 %v13275_v59, %v991_v46 }
 0x746   :  { %v13820_v15 = vsub.f32 %v17229_v6, %v13432_v40  ;;  %v5034_v12 = vmul.f32 %v13803_v11, %v13803_v11 }
 0x747   :  { %v5130_v3 = vadd.f32 %v5129_v43, %v5128_v42  ;;  %v5033_v42 = vmul.f32 %v13789_v28, %v13789_v28  ;;  %v5133_v43 = vsel %vm1092_vm2, %v5031_v30, 0.0  ;;  %6384 = vrot.lane.b32.xlu0 %v1061_v18, %s8123_s24  ;;  %v13829_v30 = vsub.f32 %v13271_v7, %v13432_v40  ;;  %v17233_v18 = vld [vmem:[#allocation115_spill] sm:$0xff] }
 0x748   :  { %17230 = vst [vmem:[#allocation209_spill] sm:$0xff] %v13820_v15  ;;  %v5035_v6 = vmul.f32 %v13810_v36, %v13810_v36  ;;  %v5036_v7 = vmul.f32 %v13820_v15, %v13820_v15 }
 0x749   :  { %v5132_v1 = vadd.f32 %v5131_v34, %v5130_v3  ;;  %v5135_v3 = vsel %vm1092_vm2, %v5032_v13, 0.0  ;;  %6382 = vrot.lane.b32.xlu2 %v1060_v33, %s8123_s24  ;;  %v5137_v46 = vsel %vm1092_vm2, %v5033_v42, 0.0  ;;  %v995_v34 = vmul.f32 %v13273_v55, %v17231_v50  ;;  %v17232_v13 = vld [vmem:[#allocation26_spill] sm:$0xff] }
 0x74a   :  { %6380 = vrot.lane.b32.xlu1 %v1059_v63, %s8123_s24  ;;  %v993_v33 = vmul.f32 %v13273_v55, %v17233_v18  ;;  %v5139_v63 = vsel %vm1092_vm2, %v5034_v12, 0.0  ;;  %v5141_v50 = vsel %vm1092_vm2, %v5035_v6, 0.0  ;;  %v5143_v15 = vsel %vm1092_vm2, %v5036_v7, 0.0 }
 0x74b   :  { %v5134_v2 = vadd.f32 %v5133_v43, %v5132_v1  ;;  %v994_v1 = vmul.f32 %v13273_v55, %v17232_v13 }
 0x74c   :  { %v1062_v18 = vadd.f32 %v13275_v59, %v993_v33  ;;  %v17235_v33 = vld [vmem:[#allocation163_spill] sm:$0xff] }
 0x74d   :  { %v5136_v14 = vadd.f32 %v5135_v3, %v5134_v2  ;;  %v13846_v2 = vsub.f32 %v13289_v41, %v13432_v40  ;;  %v5037_v3 = vmul.f32 %v13829_v30, %v13829_v30  ;;  %v13859_v41 = vsub.f32 %v13302_v16, %v13432_v40 }
 0x74e   :  { %v997_v7 = vmul.f32 %v13273_v55, %v17235_v33  ;;  %v13873_v16 = vsub.f32 %v13315_v48, %v13432_v40  ;;  %v13885_v48 = vsub.f32 %v13328_v27, %v13432_v40  ;;  %v17240_v27 = vld [vmem:[#allocation49_spill] sm:$0xff] }
 0x74f   :  { %v5138_v43 = vadd.f32 %v5137_v46, %v5136_v14  ;;  %v1064_v14 = vadd.f32 %v13275_v59, %v995_v34  ;;  %v1063_v46 = vadd.f32 %v13275_v59, %v994_v1  ;;  %v5038_v6 = vmul.f32 %v13846_v2, %v13846_v2  ;;  %v17234_v1 = vld [vmem:[#allocation29_spill] sm:$0xff] }
 0x750   :  { %v5145_v34 = vsel %vm1092_vm2, %v5037_v3, 0.0 }
 0x751   :  { %v5140_v42 = vadd.f32 %v5139_v63, %v5138_v43  ;;  %6390 = vrot.lane.b32.xlu0 %v1064_v14, %s8123_s24  ;;  %6388 = vrot.lane.b32.xlu2 %v1063_v46, %s8123_s24  ;;  %v998_v43 = vmul.f32 %v13273_v55, %v17234_v1  ;;  %v5147_v14 = vsel %vm1092_vm2, %v5038_v6, 0.0  ;;  %v1066_v46 = vadd.f32 %v13275_v59, %v997_v7 }
 0x752   :  { %6386 = vrot.lane.b32.xlu1 %v1062_v18, %s8123_s24 }
 0x753   :  { %v5142_v13 = vadd.f32 %v5141_v50, %v5140_v42  ;;  %v17236_v42 = vld [vmem:[#allocation177_spill] sm:$0xff]  ;;  %v1067_v3 = vadd.f32 %v13275_v59, %v998_v43 }
 0x754   :  { %v996_v50 = vmul.f32 %v13273_v55, %v17236_v42  ;;  %v17238_v43 = vld [vmem:[#allocation173_spill] sm:$0xff] }
 0x755   :  { %v5144_v12 = vadd.f32 %v5143_v15, %v5142_v13  ;;  %v5039_v15 = vmul.f32 %v13859_v41, %v13859_v41  ;;  %v1000_v33 = vmul.f32 %v13273_v55, %v17238_v43 }
 0x756   :  { %v1065_v18 = vadd.f32 %v13275_v59, %v996_v50  ;;  %v13899_v50 = vsub.f32 %v17240_v27, %v13432_v40 }
 0x757   :  { %v5146_v63 = vadd.f32 %v5145_v34, %v5144_v12  ;;  %v5040_v12 = vmul.f32 %v13873_v16, %v13873_v16  ;;  %v5149_v6 = vsel %vm1092_vm2, %v5039_v15, 0.0  ;;  %v17237_v34 = vld [vmem:[#allocation80_spill] sm:$0xff] }
 0x758   :  { %v1001_v1 = vmul.f32 %v13273_v55, %v17237_v34 }
 0x759   :  { %v5148_v13 = vadd.f32 %v5147_v14, %v5146_v63  ;;  %6396 = vrot.lane.b32.xlu0 %v1067_v3, %s8123_s24  ;;  %6394 = vrot.lane.b32.xlu2 %v1066_v46, %s8123_s24  ;;  %v17239_v63 = vld [vmem:[#allocation181_spill] sm:$0xff]  ;;  %v5041_v14 = vmul.f32 %v13885_v48, %v13885_v48  ;;  %v5151_v3 = vsel %vm1092_vm2, %v5040_v12, 0.0  ;;  %v1069_v46 = vadd.f32 %v13275_v59, %v1000_v33  ;;  %v17242_v33 = vld [vmem:[#allocation106_spill] sm:$0xff] }
 0x75a   :  { %6392 = vrot.lane.b32.xlu1 %v1065_v18, %s8123_s24  ;;  %v999_v42 = vmul.f32 %v13273_v55, %v17239_v63  ;;  %v1070_v15 = vadd.f32 %v13275_v59, %v1001_v1  ;;  %v5042_v12 = vmul.f32 %v13899_v50, %v13899_v50  ;;  %v17241_v1 = vld [vmem:[#allocation126_spill] sm:$0xff] }
 0x75b   :  { %v5150_v7 = vadd.f32 %v5149_v6, %v5148_v13  ;;  %v13911_v13 = vsub.f32 %v13352_v49, %v13432_v40  ;;  %v5153_v6 = vsel %vm1092_vm2, %v5041_v14, 0.0  ;;  %v1004_v43 = vmul.f32 %v13273_v55, %v17241_v1 }
 0x75c   :  { %v1068_v34 = vadd.f32 %v13275_v59, %v999_v42  ;;  %v17243_v42 = vld [vmem:[#allocation32_spill] sm:$0xff]  ;;  %v13925_v49 = vsub.f32 %v13241_v60, %v13432_v40  ;;  %v13937_v60 = vsub.f32 %v13372_v45, %v13432_v40 }
 0x75d   :  { %v5152_v18 = vadd.f32 %v5151_v3, %v5150_v7  ;;  %v1003_v7 = vmul.f32 %v13273_v55, %v17242_v33  ;;  %v1002_v27 = vmul.f32 %v13273_v55, %v17243_v42  ;;  %v5043_v3 = vmul.f32 %v13911_v13, %v13911_v13  ;;  %v17246_v33 = vld [vmem:[#allocation94_spill] sm:$0xff]  ;;  %v17248_v45 = vld [vmem:[#allocation152_spill] sm:$0xff] }
 0x75e   :  { %v1073_v14 = vadd.f32 %v13275_v59, %v1004_v43  ;;  %17244 = vst [vmem:[#allocation57_spill] sm:$0xff] %v13937_v60  ;;  %v17247_v42 = vld [vmem:[#allocation34_spill] sm:$0xff] }
 0x75f   :  { %v5154_v63 = vadd.f32 %v5153_v6, %v5152_v18  ;;  %v1071_v1 = vadd.f32 %v13275_v59, %v1002_v27  ;;  %v5044_v18 = vmul.f32 %v13925_v49, %v13925_v49  ;;  %v17245_v6 = vld [vmem:[#allocation35_spill] sm:$0xff]  ;;  %v1005_v27 = vmul.f32 %v13273_v55, %v17247_v42 }
 0x760   :  { %v1007_v43 = vmul.f32 %v13273_v55, %v17245_v6  ;;  %v17252_v42 = vld [vmem:[#allocation107_spill] sm:$0xff] }
 0x761   :  { %6402 = vrot.lane.b32.xlu0 %v1070_v15, %s8123_s24  ;;  %6400 = vrot.lane.b32.xlu2 %v1069_v46, %s8123_s24  ;;  %v5155_v15 = vsel %vm1092_vm2, %v5042_v12, 0.0  ;;  %v1072_v46 = vadd.f32 %v13275_v59, %v1003_v7  ;;  %v5157_v12 = vsel %vm1092_vm2, %v5043_v3, 0.0  ;;  %v1006_v7 = vmul.f32 %v13273_v55, %v17246_v33 }
 0x762   :  { %6398 = vrot.lane.b32.xlu1 %v1068_v34, %s8123_s24  ;;  %v5156_v34 = vadd.f32 %v5155_v15, %v5154_v63  ;;  %v13951_v15 = vsub.f32 %v17248_v45, %v13432_v40  ;;  %v1076_v3 = vadd.f32 %v13275_v59, %v1007_v43  ;;  %v1074_v33 = vadd.f32 %v13275_v59, %v1005_v27 }
 0x764   :  { %v5158_v63 = vadd.f32 %v5157_v12, %v5156_v34  ;;  %17249 = vst [vmem:[#allocation131_spill] sm:$0xff] %v13951_v15  ;;  %v17250_v34 = vld [vmem:[#allocation120_spill] sm:$0xff] }
 0x765   :  { %v13963_v12 = vsub.f32 %v17250_v34, %v13432_v40 }
 0x767   :  { %17251 = vst [vmem:[#allocation74_spill] sm:$0xff] %v13963_v12 }
 0x769   :  { %6408 = vrot.lane.b32.xlu0 %v1073_v14, %s8123_s24  ;;  %6406 = vrot.lane.b32.xlu2 %v1072_v46, %s8123_s24  ;;  %v5045_v14 = vmul.f32 %v13937_v60, %v13937_v60  ;;  %v5159_v46 = vsel %vm1092_vm2, %v5044_v18, 0.0  ;;  %v5046_v18 = vmul.f32 %v13951_v15, %v13951_v15 }
 0x76a   :  { %6404 = vrot.lane.b32.xlu1 %v1071_v1, %s8123_s24  ;;  %v1075_v1 = vadd.f32 %v13275_v59, %v1006_v7  ;;  %v5160_v6 = vadd.f32 %v5159_v46, %v5158_v63  ;;  %v1010_v7 = vmul.f32 %v13273_v55, %v17252_v42  ;;  %v17253_v63 = vld [vmem:[#allocation84_spill] sm:$0xff]  ;;  %v17254_v46 = vld [vmem:[#allocation135_spill] sm:$0xff] }
 0x76b   :  { %v5161_v43 = vsel %vm1092_vm2, %v5045_v14, 0.0  ;;  %v1009_v27 = vmul.f32 %v13273_v55, %v17253_v63  ;;  %v5163_v15 = vsel %vm1092_vm2, %v5046_v18, 0.0 }
 0x76c   :  { %v5162_v45 = vadd.f32 %v5161_v43, %v5160_v6  ;;  %v1079_v14 = vadd.f32 %v13275_v59, %v1010_v7  ;;  %v17257_v6 = vld [vmem:[#allocation51_spill] sm:$0xff] }
 0x76d   :  { %v1078_v42 = vadd.f32 %v13275_v59, %v1009_v27  ;;  %v13989_v43 = vsub.f32 %v17257_v6, %v13432_v40  ;;  %v17259_v27 = vld [vmem:[#allocation211_spill] sm:$0xff] }
 0x76e   :  { %v5164_v60 = vadd.f32 %v5163_v15, %v5162_v45  ;;  %v1012_v45 = vmul.f32 %v13273_v55, %v17259_v27 }
 0x771   :  { %6414 = vrot.lane.b32.xlu0 %v1076_v3, %s8123_s24  ;;  %6412 = vrot.lane.b32.xlu2 %v1075_v1, %s8123_s24  ;;  %v1008_v3 = vmul.f32 %v13273_v55, %v17254_v46  ;;  %v17255_v1 = vld [vmem:[#allocation50_spill] sm:$0xff]  ;;  %v17258_v46 = vld [vmem:[#allocation37_spill] sm:$0xff] }
 0x772   :  { %6410 = vrot.lane.b32.xlu1 %v1074_v33, %s8123_s24  ;;  %v13977_v34 = vsub.f32 %v17255_v1, %v13432_v40  ;;  %v5047_v33 = vmul.f32 %v13963_v12, %v13963_v12  ;;  %v1013_v15 = vmul.f32 %v13273_v55, %v17258_v46  ;;  %v17260_v1 = vld [vmem:[#allocation130_spill] sm:$0xff]  ;;  %v1081_v46 = vadd.f32 %v13275_v59, %v1012_v45 }
 0x773   :  { %v1077_v63 = vadd.f32 %v13275_v59, %v1008_v3 }
 0x774   :  { %17256 = vst [vmem:[#allocation123_spill] sm:$0xff] %v13977_v34  ;;  %v5048_v18 = vmul.f32 %v13977_v34, %v13977_v34  ;;  %v5165_v7 = vsel %vm1092_vm2, %v5047_v33, 0.0  ;;  %v1082_v33 = vadd.f32 %v13275_v59, %v1013_v15  ;;  %v17263_v15 = vld [vmem:[#allocation39_spill] sm:$0xff] }
 0x775   :  { %v5166_v3 = vadd.f32 %v5165_v7, %v5164_v60  ;;  %v17262_v7 = vld [vmem:[#allocation41_spill] sm:$0xff]  ;;  %v1015_v45 = vmul.f32 %v13273_v55, %v17263_v15 }
 0x776   :  { %v5167_v34 = vsel %vm1092_vm2, %v5048_v18, 0.0  ;;  %v1016_v18 = vmul.f32 %v13273_v55, %v17262_v7  ;;  %v17265_v7 = vld [vmem:[#allocation194_spill] sm:$0xff] }
 0x777   :  { %v5168_v12 = vadd.f32 %v5167_v34, %v5166_v3  ;;  %v17264_v3 = vld [vmem:[#allocation38_spill] sm:$0xff] }
 0x779   :  { %6420 = vrot.lane.b32.xlu0 %v1079_v14, %s8123_s24  ;;  %6418 = vrot.lane.b32.xlu2 %v1078_v42, %s8123_s24  ;;  %v1011_v14 = vmul.f32 %v13273_v55, %v17260_v1  ;;  %v17261_v42 = vld [vmem:[#allocation128_spill] sm:$0xff]  ;;  %v1014_v1 = vmul.f32 %v13273_v55, %v17264_v3 }
 0x77a   :  { %6416 = vrot.lane.b32.xlu1 %v1077_v63, %s8123_s24  ;;  %v14003_v6 = vsub.f32 %v17261_v42, %v13432_v40  ;;  %v5049_v63 = vmul.f32 %v13989_v43, %v13989_v43 }
 0x77b   :  { %v1080_v27 = vadd.f32 %v13275_v59, %v1011_v14  ;;  %v5051_v14 = vmul.f32 %v13435_v5, %v13435_v5 }
 0x77c   :  { %v5050_v40 = vmul.f32 %v14003_v6, %v14003_v6  ;;  %v5169_v60 = vsel %vm1092_vm2, %v5049_v63, 0.0 }
 0x77d   :  { %v5170_v34 = vadd.f32 %v5169_v60, %v5168_v12  ;;  %v5052_v12 = vmul.f32 %v13438_v10, %v13438_v10  ;;  %v5173_v60 = vsel %vm1092_vm2, %v5051_v14, 0.0 }
 0x77e   :  { %v5171_v42 = vsel %vm1092_vm2, %v5050_v40, 0.0  ;;  %v1019_v40 = vmul.f32 %v13273_v55, %v17265_v7 }
 0x77f   :  { %v5172_v63 = vadd.f32 %v5171_v42, %v5170_v34  ;;  %v17267_v34 = vld [vmem:[#allocation110_spill] sm:$0xff]  ;;  %v5175_v42 = vsel %vm1092_vm2, %v5052_v12, 0.0 }
 0x780   :  { %v1017_v3 = vmul.f32 %v13273_v55, %v17267_v34  ;;  %v17268_v12 = vld [vmem:[#allocation190_spill] sm:$0xff] }
 0x781   :  { %6426 = vrot.lane.b32.xlu0 %v1082_v33, %s8123_s24  ;;  %6424 = vrot.lane.b32.xlu2 %v1081_v46, %s8123_s24  ;;  %v1085_v33 = vadd.f32 %v13275_v59, %v1016_v18  ;;  %v1084_v46 = vadd.f32 %v13275_v59, %v1015_v45  ;;  %v17266_v18 = vld [vmem:[#allocation133_spill] sm:$0xff]  ;;  %v5174_v45 = vadd.f32 %v5173_v60, %v5172_v63 }
 0x782   :  { %6422 = vrot.lane.b32.xlu1 %v1080_v27, %s8123_s24  ;;  %v1083_v27 = vadd.f32 %v13275_v59, %v1014_v1  ;;  %v1018_v15 = vmul.f32 %v13273_v55, %v17266_v18  ;;  %v5053_v1 = vmul.f32 %v13441_v19, %v13441_v19  ;;  %v5054_v63 = vmul.f32 %v13444_v57, %v13444_v57 }
 0x783   :  { %v5176_v14 = vadd.f32 %v5175_v42, %v5174_v45  ;;  %v5055_v18 = vmul.f32 %v13447_v37, %v13447_v37 }
 0x784   :  { %v5177_v60 = vsel %vm1092_vm2, %v5053_v1, 0.0 }
 0x785   :  { %v5178_v7 = vadd.f32 %v5177_v60, %v5176_v14 }
 0x789   :  { %6432 = vrot.lane.b32.xlu0 %v1085_v33, %s8123_s24  ;;  %6430 = vrot.lane.b32.xlu2 %v1084_v46, %s8123_s24  ;;  %v1088_v33 = vadd.f32 %v13275_v59, %v1019_v40  ;;  %v1087_v46 = vadd.f32 %v13275_v59, %v1018_v15  ;;  %v1020_v40 = vmul.f32 %v13273_v55, %v17268_v12  ;;  %v5179_v15 = vsel %vm1092_vm2, %v5054_v63, 0.0 }
 0x78a   :  { %6428 = vrot.lane.b32.xlu1 %v1083_v27, %s8123_s24  ;;  %v1086_v27 = vadd.f32 %v13275_v59, %v1017_v3  ;;  %v5180_v45 = vadd.f32 %v5179_v15, %v5178_v7  ;;  %v5181_v3 = vsel %vm1092_vm2, %v5055_v18, 0.0 }
 0x78b   :  { %v1089_v34 = vadd.f32 %v13275_v59, %v1020_v40  ;;  %v4792_v40 = vld [vmem:[%s15627_s5] sm:$0x1] }
 0x78c   :  { %v5182_v42 = vadd.f32 %v5181_v3, %v5180_v45  ;;  %v14069_v3 = vld [vmem:[%s15624_s6] ss:$0 sm:$0xff] }
 0x791   :  { %6438 = vrot.lane.b32.xlu0 %v1088_v33, %s8123_s24  ;;  %6436 = vrot.lane.b32.xlu2 %v1087_v46, %s8123_s24  ;;  %v5183_v33 = vrot.slane %v5182_v42, 4 }
 0x792   :  { %6434 = vrot.lane.b32.xlu1 %v1086_v27, %s8123_s24 }
 0x793   :  { %v5184_v46 = vadd.f32 %v5183_v33, %v5182_v42  ;;  %v7007_v33 = vld [vmem:[%s15628_s7] sm:$0xff] }
 0x794   :  { %5543 = vmatpush.bf16.msra.mxu3 %v7007_v33 }
 0x795   :  { %v5185_v1 = vrot.slane %v5184_v46, 2 }
 0x797   :  { %v5186_v14 = vadd.f32 %v5185_v1, %v5184_v46 }
 0x799   :  { %v5187_v27 = vrot.slane %v5186_v14, 1 }
 0x79a   :  { %6440 = vrot.lane.b32.xlu1 %v1089_v34, %s8123_s24 }
 0x79b   :  { %v5188_v60 = vadd.f32 %v5187_v27, %v5186_v14 }
 0x79d   :  { %v5189_v55 = vmul.f32 0.001953125, %v5188_v60 }
 0x79f   :  { %v5190_v12 = vadd.f32 1e-05, %v5189_v55 }
 0x7a1   :  { %8112 = vrsqrt.f32 %v5190_v12  ;;  %vm5197_vm5 = vweird.f32 %v5190_v12 }
 0x7a7   :  { %v8113_v57 = vpop.eup %8112 }
 0x7a8   :  { %v5192_v37 = vmul.f32 %v8113_v57, %v5190_v12  ;;  %vm5198_vm4 = vweird.f32 %v8113_v57 }
 0x7a9   :  { %vm5199_vm6 = vmor %vm5197_vm5, %vm5198_vm4 }
 0x7aa   :  { %v5193_v63 = vmul.f32 %v8113_v57, %v5192_v37 }
 0x7ac   :  { %v5194_v7 = vmul.f32 0.5, %v5193_v63 }
 0x7ae   :  { %v5195_v15 = vsub.f32 1.5, %v5194_v7 }
 0x7b0   :  { %v5196_v59 = vmul.f32 %v8113_v57, %v5195_v15 }
 0x7b2   :  { %v5200_v18 = vsel %vm5199_vm6, %v8113_v57, %v5196_v59 }
 0x7b3   :  { %v5201_v45 = vmul.f32 %v5200_v18, %v4792_v40 }
 0x7b5   :  { %v14064_v34 = vperm.slane %v5201_v45, 0 }
 0x7b7   :  { %v5205_v37 = vmul.f32 %v14064_v34, %v13451_v31  ;;  %v5206_v42 = vmul.f32 %v14064_v34, %v13455_v54  ;;  %v5207_v31 = vmul.f32 %v14064_v34, %v13459_v26  ;;  %v5208_v54 = vmul.f32 %v14064_v34, %v13463_v51 }
 0x7b8   :  { %v5209_v15 = vmul.f32 %v14064_v34, %v13471_v62  ;;  %v5210_v59 = vmul.f32 %v14064_v34, %v13477_v44 }
 0x7b9   :  { %v5272_v57 = vadd.f32 %v14069_v3, %v5205_v37  ;;  %v5273_v46 = vadd.f32 %v14069_v3, %v5206_v42  ;;  %v5274_v60 = vadd.f32 %v14069_v3, %v5207_v31  ;;  %v5275_v55 = vadd.f32 %v14069_v3, %v5208_v54 }
 0x7ba   :  { %v5276_v26 = vadd.f32 %v14069_v3, %v5209_v15  ;;  %v5277_v40 = vadd.f32 %v14069_v3, %v5210_v59  ;;  %v5211_v37 = vmul.f32 %v14064_v34, %v13485_v21  ;;  %v5212_v42 = vmul.f32 %v14064_v34, %v13492_v53 }
 0x7bb   :  { %v5336_v1 = vmax.f32 %v5272_v57, 0.0  ;;  %v5337_v14 = vmax.f32 %v5273_v46, 0.0  ;;  %v5338_v12 = vmax.f32 %v5274_v60, 0.0  ;;  %v5339_v63 = vmax.f32 %v5275_v55, 0.0 }
 0x7bc   :  { %v5340_v51 = vmax.f32 %v5276_v26, 0.0  ;;  %v5341_v18 = vmax.f32 %v5277_v40, 0.0  ;;  %v5278_v62 = vadd.f32 %v14069_v3, %v5211_v37  ;;  %v5279_v33 = vadd.f32 %v14069_v3, %v5212_v42 }
 0x7bd   :  { %v5402_v27 = vpack.c.bf16 %v5337_v14, %v5336_v1  ;;  %v5403_v7 = vpack.c.bf16 %v5339_v63, %v5338_v12  ;;  %v5213_v1 = vmul.f32 %v14064_v34, %v13499_v35  ;;  %v5214_v14 = vmul.f32 %v14064_v34, %v13506_v56 }
 0x7be   :  { %v5404_v45 = vpack.c.bf16 %v5341_v18, %v5340_v51  ;;  %v5342_v44 = vmax.f32 %v5278_v62, 0.0  ;;  %v5343_v57 = vmax.f32 %v5279_v33, 0.0  ;;  %v5215_v60 = vmul.f32 %v14064_v34, %v13513_v52 }
 0x7bf   :  { %6934 = vmatmul.msk.bf16.vlgmr.msra.gmra.mxu3 %vm1092_vm2, %v5402_v27  ;;  %v5280_v21 = vadd.f32 %v14069_v3, %v5213_v1  ;;  %v5281_v27 = vadd.f32 %v14069_v3, %v5214_v14  ;;  %v5216_v55 = vmul.f32 %v14064_v34, %v13520_v58  ;;  %v5217_v15 = vmul.f32 %v14064_v34, %v13527_v47  ;;  %v17269_v14 = vld [vmem:[#allocation206_spill] sm:$0xff] }
 0x7c0   :  { %v5405_v46 = vpack.c.bf16 %v5343_v57, %v5342_v44  ;;  %v5282_v35 = vadd.f32 %v14069_v3, %v5215_v60  ;;  %v5218_v59 = vmul.f32 %v14064_v34, %v13534_v8  ;;  %v5219_v18 = vmul.f32 %v14064_v34, %v13541_v22 }
 0x7c1   :  { %v5344_v53 = vmax.f32 %v5280_v21, 0.0  ;;  %v5345_v31 = vmax.f32 %v5281_v27, 0.0  ;;  %v5283_v12 = vadd.f32 %v14069_v3, %v5216_v55  ;;  %v5284_v52 = vadd.f32 %v14069_v3, %v5217_v15  ;;  %v17270_v27 = vld [vmem:[#allocation207_spill] sm:$0xff] }
 0x7c2   :  { %v5346_v56 = vmax.f32 %v5282_v35, 0.0  ;;  %v5285_v26 = vadd.f32 %v14069_v3, %v5218_v59  ;;  %v5286_v47 = vadd.f32 %v14069_v3, %v5219_v18  ;;  %v5221_v33 = vmul.f32 %v14064_v34, %v13555_v61  ;;  %v17272_v18 = vld [vmem:[#allocation53_spill] sm:$0xff] }
 0x7c3   :  { %v5406_v54 = vpack.c.bf16 %v5345_v31, %v5344_v53  ;;  %v5347_v63 = vmax.f32 %v5283_v12, 0.0  ;;  %v5348_v58 = vmax.f32 %v5284_v52, 0.0  ;;  %v5222_v44 = vmul.f32 %v14064_v34, %v13562_v32  ;;  %v17271_v12 = vld [vmem:[#allocation208_spill] sm:$0xff] }
 0x7c4   :  { %v5349_v40 = vmax.f32 %v5285_v26, 0.0  ;;  %v5350_v8 = vmax.f32 %v5286_v47, 0.0  ;;  %v5288_v22 = vadd.f32 %v14069_v3, %v5221_v33  ;;  %v5223_v21 = vmul.f32 %v14064_v34, %v17269_v14 }
 0x7c5   :  { %v5289_v57 = vadd.f32 %v14069_v3, %v5222_v44  ;;  %v5224_v53 = vmul.f32 %v14064_v34, %v17270_v27  ;;  %v17273_v44 = vld [vmem:[#allocation153_spill] sm:$0xff] }
 0x7c6   :  { %v5408_v51 = vpack.c.bf16 %v5349_v40, %v5348_v58  ;;  %v5290_v61 = vadd.f32 %v14069_v3, %v5223_v21 }
 0x7c7   :  { %v5291_v32 = vadd.f32 %v14069_v3, %v5224_v53  ;;  %v5231_v53 = vmul.f32 %v14064_v34, %v13643_v39  ;;  %v5234_v39 = vmul.f32 %v14064_v34, %v13669_v17 }
 0x7c9   :  { %v5355_v60 = vmax.f32 %v5291_v32, 0.0 }
 0x7cf   :  { %6935 = vmatmul.msk.bf16.gmra.mxu3 %vm1092_vm2, %v5403_v7  ;;  %v5407_v7 = vpack.c.bf16 %v5347_v63, %v5346_v56  ;;  %v5225_v56 = vmul.f32 %v14064_v34, %v17271_v12  ;;  %v5226_v63 = vmul.f32 %v14064_v34, %v13590_v20 }
 0x7d1   :  { %v5292_v15 = vadd.f32 %v14069_v3, %v5225_v56  ;;  %v5293_v59 = vadd.f32 %v14069_v3, %v5226_v63 }
 0x7d3   :  { %v5356_v52 = vmax.f32 %v5292_v15, 0.0  ;;  %v5357_v26 = vmax.f32 %v5293_v59, 0.0  ;;  %v17275_v15 = vld [vmem:[#allocation138_spill] sm:$0xff] }
 0x7d4   :  { %v5233_v59 = vmul.f32 %v14064_v34, %v17275_v15  ;;  %v5239_v15 = vmul.f32 %v14064_v34, %v13723_v9  ;;  %v5242_v9 = vmul.f32 %v14064_v34, %v13749_v4 }
 0x7d5   :  { %v5412_v40 = vpack.c.bf16 %v5357_v26, %v5356_v52 }
 0x7d6   :  { %v5300_v26 = vadd.f32 %v14069_v3, %v5233_v59  ;;  %v17280_v59 = vld [vmem:[#allocation186_spill] sm:$0xff] }
 0x7df   :  { %6936 = vmatmul.msk.bf16.gmra.mxu3 %vm1092_vm2, %v5404_v45  ;;  %v5220_v45 = vmul.f32 %v14064_v34, %v13548_v25  ;;  %v5352_v25 = vmax.f32 %v5288_v22, 0.0  ;;  %v5229_v22 = vmul.f32 %v14064_v34, %v17273_v44 }
 0x7e1   :  { %v5287_v37 = vadd.f32 %v14069_v3, %v5220_v45  ;;  %v5228_v45 = vmul.f32 %v14064_v34, %v17272_v18 }
 0x7e3   :  { %v5351_v42 = vmax.f32 %v5287_v37, 0.0  ;;  %v5295_v37 = vadd.f32 %v14069_v3, %v5228_v45 }
 0x7e5   :  { %v5409_v62 = vpack.c.bf16 %v5351_v42, %v5350_v8  ;;  %v5359_v42 = vmax.f32 %v5295_v37, 0.0  ;;  %v17276_v37 = vld [vmem:[#allocation73_spill] sm:$0xff] }
 0x7ef   :  { %6937 = vmatmul.msk.bf16.gmra.mxu3 %vm1092_vm2, %v5405_v46  ;;  %v5353_v46 = vmax.f32 %v5289_v57, 0.0 }
 0x7f1   :  { %v5410_v1 = vpack.c.bf16 %v5353_v46, %v5352_v25  ;;  %v5296_v25 = vadd.f32 %v14069_v3, %v5229_v22 }
 0x7ff   :  { %6938 = vmatmul.msk.bf16.gmra.mxu3 %vm1092_vm2, %v5406_v54  ;;  %v5354_v54 = vmax.f32 %v5290_v61, 0.0  ;;  %v17274_v61 = vld [vmem:[#allocation54_spill] sm:$0xff] }
 0x800   :  { %v5232_v32 = vmul.f32 %v14064_v34, %v17274_v61 }
 0x801   :  { %v5411_v35 = vpack.c.bf16 %v5355_v60, %v5354_v54  ;;  %v5298_v54 = vadd.f32 %v14069_v3, %v5231_v53  ;;  %v5238_v53 = vmul.f32 %v14064_v34, %v13709_v29 }
 0x802   :  { %v5299_v60 = vadd.f32 %v14069_v3, %v5232_v32 }
 0x804   :  { %v5363_v12 = vmax.f32 %v5299_v60, 0.0 }
 0x80f   :  { %6939 = vmatmul.msk.bf16.gmra.mxu3 %vm1092_vm2, %v5407_v7 }
 0x81f   :  { %6940 = vmatmul.msk.bf16.gmra.mxu3 %vm1092_vm2, %v5408_v51  ;;  %v5227_v51 = vmul.f32 %v14064_v34, %v13597_v23  ;;  %v5230_v23 = vmul.f32 %v14064_v34, %v13629_v0 }
 0x821   :  { %v5294_v47 = vadd.f32 %v14069_v3, %v5227_v51  ;;  %v5297_v46 = vadd.f32 %v14069_v3, %v5230_v23  ;;  %v5364_v51 = vmax.f32 %v5300_v26, 0.0  ;;  %v5306_v26 = vadd.f32 %v14069_v3, %v5239_v15  ;;  %v17283_v15 = vld [vmem:[#allocation121_spill] sm:$0xff] }
 0x823   :  { %v5358_v8 = vmax.f32 %v5294_v47, 0.0  ;;  %v5361_v14 = vmax.f32 %v5297_v46, 0.0 }
 0x825   :  { %v5413_v33 = vpack.c.bf16 %v5359_v42, %v5358_v8  ;;  %v5235_v8 = vmul.f32 %v14064_v34, %v17276_v37  ;;  %v17277_v42 = vld [vmem:[#allocation55_spill] sm:$0xff] }
 0x827   :  { %v5302_v44 = vadd.f32 %v14069_v3, %v5235_v8  ;;  %v5241_v8 = vmul.f32 %v14064_v34, %v13740_v24  ;;  %v17282_v24 = vld [vmem:[#allocation99_spill] sm:$0xff] }
 0x829   :  { %v5366_v23 = vmax.f32 %v5302_v44, 0.0  ;;  %v5309_v44 = vadd.f32 %v14069_v3, %v5242_v9  ;;  %v5247_v9 = vmul.f32 %v14064_v34, %v13803_v11  ;;  %v5250_v11 = vmul.f32 %v14064_v34, %v13829_v30 }
 0x82f   :  { %6941 = vmatmul.msk.bf16.gmra.mxu3 %vm1092_vm2, %v5409_v62 }
 0x83f   :  { %6942 = vmatmul.msk.bf16.gmra.mxu3 %vm1092_vm2, %v5410_v1  ;;  %v5360_v1 = vmax.f32 %v5296_v25, 0.0 }
 0x841   :  { %v5414_v27 = vpack.c.bf16 %v5361_v14, %v5360_v1  ;;  %v17278_v14 = vld [vmem:[#allocation56_spill] sm:$0xff] }
 0x842   :  { %v14141_v31 = vpop.f32.mrf.mxu3 }
 0x84a   :  { %v14145_v55 = vpop.f32.mrf.mxu3 }
 0x84f   :  { %6943 = vmatmul.msk.bf16.gmra.mxu3 %vm1092_vm2, %v5411_v35  ;;  %v5362_v35 = vmax.f32 %v5298_v54, 0.0  ;;  %v5305_v54 = vadd.f32 %v14069_v3, %v5238_v53 }
 0x851   :  { %v5415_v63 = vpack.c.bf16 %v5363_v12, %v5362_v35  ;;  %v5369_v35 = vmax.f32 %v5305_v54, 0.0 }
 0x852   :  { %v14152_v7 = vpop.f32.mrf.mxu3 }
 0x85a   :  { %v14156_v58 = vpop.f32.mrf.mxu3 }
 0x85f   :  { %6944 = vmatmul.msk.bf16.gmra.mxu3 %vm1092_vm2, %v5412_v40  ;;  %v5301_v40 = vadd.f32 %v14069_v3, %v5234_v39  ;;  %v5240_v39 = vmul.f32 %v14064_v34, %v17280_v59  ;;  %v5245_v59 = vmul.f32 %v14064_v34, %v17283_v15 }
 0x861   :  { %v5365_v18 = vmax.f32 %v5301_v40, 0.0  ;;  %v5307_v40 = vadd.f32 %v14069_v3, %v5240_v39 }
 0x862   :  { %v14163_v20 = vpop.f32.mrf.mxu3 }
 0x863   :  { %v5416_v47 = vpack.c.bf16 %v5365_v18, %v5364_v51  ;;  %v5370_v51 = vmax.f32 %v5306_v26, 0.0  ;;  %v5371_v18 = vmax.f32 %v5307_v40, 0.0  ;;  %v5312_v26 = vadd.f32 %v14069_v3, %v5245_v59 }
 0x865   :  { %v5419_v37 = vpack.c.bf16 %v5371_v18, %v5370_v51  ;;  %v5376_v51 = vmax.f32 %v5312_v26, 0.0  ;;  %v5252_v26 = vmul.f32 %v14064_v34, %v13859_v41 }
 0x86a   :  { %v14167_v62 = vpop.f32.mrf.mxu3 }
 0x86f   :  { %6945 = vmatmul.msk.bf16.gmra.mxu3 %vm1092_vm2, %v5413_v33  ;;  %v5236_v33 = vmul.f32 %v14064_v34, %v17277_v42 }
 0x871   :  { %v5303_v22 = vadd.f32 %v14069_v3, %v5236_v33  ;;  %v5308_v33 = vadd.f32 %v14069_v3, %v5241_v8 }
 0x872   :  { %v14174_v57 = vpop.f32.mrf.mxu3 }
 0x873   :  { %v5367_v25 = vmax.f32 %v5303_v22, 0.0  ;;  %v5372_v22 = vmax.f32 %v5308_v33, 0.0  ;;  %v5248_v33 = vmul.f32 %v14064_v34, %v13810_v36 }
 0x875   :  { %v5417_v1 = vpack.c.bf16 %v5367_v25, %v5366_v23  ;;  %v5373_v23 = vmax.f32 %v5309_v44, 0.0  ;;  %v5314_v44 = vadd.f32 %v14069_v3, %v5247_v9 }
 0x87a   :  { %v14178_v21 = vpop.f32.mrf.mxu3 }
 0x87f   :  { %6946 = vmatmul.msk.bf16.gmra.mxu3 %vm1092_vm2, %v5414_v27  ;;  %v5237_v27 = vmul.f32 %v14064_v34, %v17278_v14  ;;  %v5243_v14 = vmul.f32 %v14064_v34, %v13763_v38  ;;  %v5246_v38 = vmul.f32 %v14064_v34, %v13789_v28 }
 0x881   :  { %v5304_v32 = vadd.f32 %v14069_v3, %v5237_v27  ;;  %v5244_v27 = vmul.f32 %v14064_v34, %v17282_v24  ;;  %v5310_v53 = vadd.f32 %v14069_v3, %v5243_v14  ;;  %v5313_v40 = vadd.f32 %v14069_v3, %v5246_v38 }
 0x882   :  { %v14185_v0 = vpop.f32.mrf.mxu3  ;;  %v5251_v38 = vmul.f32 %v14064_v34, %v13846_v2  ;;  %v5254_v2 = vmul.f32 %v14064_v34, %v13885_v48 }
 0x883   :  { %v5368_v60 = vmax.f32 %v5304_v32, 0.0  ;;  %v5311_v32 = vadd.f32 %v14069_v3, %v5244_v27  ;;  %v5374_v54 = vmax.f32 %v5310_v53, 0.0  ;;  %v5377_v18 = vmax.f32 %v5313_v40, 0.0  ;;  %v17285_v27 = vld [vmem:[#allocation209_spill] sm:$0xff] }
 0x884   :  { %v5249_v53 = vmul.f32 %v14064_v34, %v17285_v27  ;;  %v5318_v40 = vadd.f32 %v14069_v3, %v5251_v38 }
 0x885   :  { %v5422_v8 = vpack.c.bf16 %v5377_v18, %v5376_v51  ;;  %v5319_v51 = vadd.f32 %v14069_v3, %v5252_v26  ;;  %v5257_v26 = vmul.f32 %v14064_v34, %v13925_v49  ;;  %v17291_v49 = vld [vmem:[#allocation74_spill] sm:$0xff] }
 0x886   :  { %v5382_v18 = vmax.f32 %v5318_v40, 0.0 }
 0x88a   :  { %v14189_v56 = vpop.f32.mrf.mxu3 }
 0x88f   :  { %6947 = vmatmul.msk.bf16.gmra.mxu3 %vm1092_vm2, %v5415_v63  ;;  %v5418_v63 = vpack.c.bf16 %v5369_v35, %v5368_v60  ;;  %v5375_v60 = vmax.f32 %v5311_v32, 0.0  ;;  %v5316_v32 = vadd.f32 %v14069_v3, %v5249_v53 }
 0x892   :  { %v14196_v52 = vpop.f32.mrf.mxu3 }
 0x89a   :  { %v14200_v45 = vpop.f32.mrf.mxu3 }
 0x89f   :  { %6948 = vmatmul.msk.bf16.gmra.mxu3 %vm1092_vm2, %v5416_v47 }
 0x8a2   :  { %v14207_v17 = vpop.f32.mrf.mxu3 }
 0x8aa   :  { %v14211_v46 = vpop.f32.mrf.mxu3 }
 0x8af   :  { %6949 = vmatmul.msk.bf16.gmra.mxu3 %vm1092_vm2, %v5417_v1  ;;  %v5420_v1 = vpack.c.bf16 %v5373_v23, %v5372_v22  ;;  %v5315_v22 = vadd.f32 %v14069_v3, %v5248_v33  ;;  %v5378_v23 = vmax.f32 %v5314_v44, 0.0  ;;  %v5253_v44 = vmul.f32 %v14064_v34, %v13873_v16 }
 0x8b0   :  { %v5256_v16 = vmul.f32 %v14064_v34, %v13911_v13 }
 0x8b2   :  { %v14218_v61 = vpop.f32.mrf.mxu3 }
 0x8ba   :  { %v14222_v12 = vpop.f32.mrf.mxu3 }
 0x8bb   :  { %17279 = vst [vmem:[#allocation58_spill] sm:$0xff] %v14222_v12 }
 0x8bf   :  { %6950 = vmatmul.msk.bf16.gmra.mxu3 %vm1092_vm2, %v5418_v63  ;;  %v5421_v63 = vpack.c.bf16 %v5375_v60, %v5374_v54  ;;  %v5317_v54 = vadd.f32 %v14069_v3, %v5250_v11  ;;  %v5380_v60 = vmax.f32 %v5316_v32, 0.0  ;;  %v5255_v11 = vmul.f32 %v14064_v34, %v13899_v50  ;;  %v17288_v50 = vld [vmem:[#allocation57_spill] sm:$0xff] }
 0x8c0   :  { %v5258_v40 = vmul.f32 %v14064_v34, %v17288_v50 }
 0x8c1   :  { %v5322_v32 = vadd.f32 %v14069_v3, %v5255_v11 }
 0x8c2   :  { %v14229_v29 = vpop.f32.mrf.mxu3 }
 0x8ca   :  { %v14233_v47 = vpop.f32.mrf.mxu3 }
 0x8cf   :  { %6951 = vmatmul.msk.bf16.gmra.mxu3 %vm1092_vm2, %v5419_v37 }
 0x8d2   :  { %v14240_v42 = vpop.f32.mrf.mxu3 }
 0x8da   :  { %v14244_v25 = vpop.f32.mrf.mxu3 }
 0x8db   :  { %17281 = vst [vmem:[#allocation59_spill] sm:$0xff] %v14244_v25 }
 0x8df   :  { %6952 = vmatmul.msk.bf16.gmra.mxu3 %vm1092_vm2, %v5420_v1  ;;  %v5379_v1 = vmax.f32 %v5315_v22, 0.0  ;;  %v5320_v22 = vadd.f32 %v14069_v3, %v5253_v44 }
 0x8e1   :  { %v5423_v24 = vpack.c.bf16 %v5379_v1, %v5378_v23  ;;  %v5321_v23 = vadd.f32 %v14069_v3, %v5254_v2  ;;  %v5384_v1 = vmax.f32 %v5320_v22, 0.0  ;;  %v17290_v22 = vld [vmem:[#allocation131_spill] sm:$0xff] }
 0x8e2   :  { %v14251_v4 = vpop.f32.mrf.mxu3 }
 0x8ea   :  { %v14255_v35 = vpop.f32.mrf.mxu3 }
 0x8ef   :  { %6953 = vmatmul.msk.bf16.gmra.mxu3 %vm1092_vm2, %v5421_v63  ;;  %v5381_v63 = vmax.f32 %v5317_v54, 0.0  ;;  %v5323_v54 = vadd.f32 %v14069_v3, %v5256_v16 }
 0x8f1   :  { %v5424_v59 = vpack.c.bf16 %v5381_v63, %v5380_v60  ;;  %v5386_v60 = vmax.f32 %v5322_v32, 0.0  ;;  %v5387_v63 = vmax.f32 %v5323_v54, 0.0 }
 0x8f2   :  { %v14262_v39 = vpop.f32.mrf.mxu3 }
 0x8f3   :  { %v5427_v38 = vpack.c.bf16 %v5387_v63, %v5386_v60  ;;  %v17292_v63 = vld [vmem:[#allocation123_spill] sm:$0xff] }
 0x8fa   :  { %v14266_v37 = vpop.f32.mrf.mxu3 }
 0x8fb   :  { %17284 = vst [vmem:[#allocation105_spill] sm:$0xff] %v14266_v37 }
 0x8ff   :  { %6954 = vmatmul.msk.bf16.gmra.mxu3 %vm1092_vm2, %v5422_v8  ;;  %v5383_v8 = vmax.f32 %v5319_v51, 0.0  ;;  %v5324_v51 = vadd.f32 %v14069_v3, %v5257_v26  ;;  %v5262_v26 = vmul.f32 %v14064_v34, %v13989_v43 }
 0x901   :  { %v5425_v33 = vpack.c.bf16 %v5383_v8, %v5382_v18  ;;  %v5325_v18 = vadd.f32 %v14069_v3, %v5258_v40  ;;  %v5388_v8 = vmax.f32 %v5324_v51, 0.0  ;;  %v5329_v51 = vadd.f32 %v14069_v3, %v5262_v26 }
 0x902   :  { %v14273_v28 = vpop.f32.mrf.mxu3 }
 0x90a   :  { %v14277_v14 = vpop.f32.mrf.mxu3 }
 0x90f   :  { %6955 = vmatmul.msk.bf16.gmra.mxu3 %vm1092_vm2, %v5423_v24  ;;  %v5385_v24 = vmax.f32 %v5321_v23, 0.0  ;;  %v5259_v23 = vmul.f32 %v14064_v34, %v17290_v22  ;;  %v5263_v22 = vmul.f32 %v14064_v34, %v14003_v6  ;;  %v5266_v6 = vmul.f32 %v14064_v34, %v13441_v19 }
 0x911   :  { %v5426_v53 = vpack.c.bf16 %v5385_v24, %v5384_v1  ;;  %v5260_v1 = vmul.f32 %v14064_v34, %v17291_v49  ;;  %v5330_v49 = vadd.f32 %v14069_v3, %v5263_v22 }
 0x912   :  { %v14284_v36 = vpop.f32.mrf.mxu3 }
 0x913   :  { %v5327_v11 = vadd.f32 %v14069_v3, %v5260_v1 }
 0x915   :  { %v5391_v32 = vmax.f32 %v5327_v11, 0.0 }
 0x91a   :  { %v14288_v15 = vpop.f32.mrf.mxu3 }
 0x91b   :  { %17286 = vst [vmem:[#allocation60_spill] sm:$0xff] %v14288_v15 }
 0x91f   :  { %6956 = vmatmul.msk.bf16.gmra.mxu3 %vm1092_vm2, %v5424_v59 }
 0x922   :  { %v14295_v30 = vpop.f32.mrf.mxu3 }
 0x92a   :  { %v14299_v9 = vpop.f32.mrf.mxu3 }
 0x92f   :  { %6957 = vmatmul.msk.bf16.gmra.mxu3 %vm1092_vm2, %v5425_v33  ;;  %v5389_v33 = vmax.f32 %v5325_v18, 0.0 }
 0x931   :  { %v5428_v2 = vpack.c.bf16 %v5389_v33, %v5388_v8  ;;  %v5393_v8 = vmax.f32 %v5329_v51, 0.0 }
 0x932   :  { %v14306_v41 = vpop.f32.mrf.mxu3 }
 0x93a   :  { %v14310_v27 = vpop.f32.mrf.mxu3 }
 0x93b   :  { %17287 = vst [vmem:[#allocation202_spill] sm:$0xff] %v14310_v27 }
 0x93f   :  { %6958 = vmatmul.msk.bf16.gmra.mxu3 %vm1092_vm2, %v5426_v53  ;;  %v5326_v53 = vadd.f32 %v14069_v3, %v5259_v23  ;;  %v5264_v23 = vmul.f32 %v14064_v34, %v13435_v5 }
 0x941   :  { %v5390_v16 = vmax.f32 %v5326_v53, 0.0  ;;  %v5331_v1 = vadd.f32 %v14069_v3, %v5264_v23  ;;  %v5394_v53 = vmax.f32 %v5330_v49, 0.0 }
 0x942   :  { %v14317_v48 = vpop.f32.mrf.mxu3 }
 0x943   :  { %v5429_v60 = vpack.c.bf16 %v5391_v32, %v5390_v16  ;;  %v5395_v11 = vmax.f32 %v5331_v1, 0.0 }
 0x945   :  { %v5431_v32 = vpack.c.bf16 %v5395_v11, %v5394_v53 }
 0x94a   :  { %v14321_v59 = vpop.f32.mrf.mxu3 }
 0x94f   :  { %6959 = vmatmul.msk.bf16.gmra.mxu3 %vm1092_vm2, %v5427_v38  ;;  %v5261_v38 = vmul.f32 %v14064_v34, %v17292_v63 }
 0x951   :  { %v5328_v40 = vadd.f32 %v14069_v3, %v5261_v38  ;;  %v5333_v38 = vadd.f32 %v14069_v3, %v5266_v6 }
 0x952   :  { %v14328_v13 = vpop.f32.mrf.mxu3 }
 0x953   :  { %v5392_v18 = vmax.f32 %v5328_v40, 0.0  ;;  %v5397_v40 = vmax.f32 %v5333_v38, 0.0 }
 0x95a   :  { %v14332_v44 = vpop.f32.mrf.mxu3 }
 0x95b   :  { %17289 = vst [vmem:[#allocation200_spill] sm:$0xff] %v14332_v44 }
 0x95f   :  { %6960 = vmatmul.msk.bf16.gmra.mxu3 %vm1092_vm2, %v5428_v2  ;;  %v5430_v2 = vpack.c.bf16 %v5393_v8, %v5392_v18  ;;  %v17295_v8 = vld [vmem:[#allocation129_spill] sm:$0xff] }
 0x962   :  { %v14339_v24 = vpop.f32.mrf.mxu3 }
 0x96a   :  { %v14343_v54 = vpop.f32.mrf.mxu3 }
 0x96f   :  { %6961 = vmatmul.msk.bf16.gmra.mxu3 %vm1092_vm2, %v5429_v60  ;;  %v5265_v60 = vmul.f32 %v14064_v34, %v13438_v10  ;;  %v17296_v10 = vld [vmem:[#allocation52_spill] sm:$0xff] }
 0x970   :  { %v5267_v22 = vmul.f32 %v14064_v34, %v17296_v10  ;;  %v5717_v10 = vsel %vm5707_vm7, %v14167_v62, 0.0 }
 0x971   :  { %v5332_v63 = vadd.f32 %v14069_v3, %v5265_v60 }
 0x972   :  { %v14350_v50 = vpop.f32.mrf.mxu3  ;;  %v5334_v49 = vadd.f32 %v14069_v3, %v5267_v22 }
 0x973   :  { %v5396_v26 = vmax.f32 %v5332_v63, 0.0  ;;  %v5708_v63 = vsel %vm5707_vm7, %v14141_v31, 0.0 }
 0x974   :  { %v5398_v53 = vmax.f32 %v5334_v49, 0.0 }
 0x975   :  { %v5432_v18 = vpack.c.bf16 %v5397_v40, %v5396_v26  ;;  %v5713_v26 = vsel %vm5707_vm7, %v14156_v58, 0.0 }
 0x97a   :  { %v14354_v33 = vpop.f32.mrf.mxu3 }
 0x97b   :  { %17293 = vst [vmem:[#allocation68_spill] sm:$0xff] %v14354_v33 }
 0x97f   :  { %6962 = vmatmul.msk.bf16.gmra.mxu3 %vm1092_vm2, %v5430_v2  ;;  %v5268_v2 = vmul.f32 %v14064_v34, %v17295_v8  ;;  %v5709_v34 = vsel %vm5707_vm7, %v14145_v55, 0.0  ;;  %v5715_v8 = vsel %vm5707_vm7, %v14163_v20, 0.0 }
 0x980   :  { %v5710_v38 = vadd.f32 %v5709_v34, %v5708_v63  ;;  %v5723_v34 = vsel %vm5707_vm7, %v14185_v0, 0.0 }
 0x981   :  { %v5335_v23 = vadd.f32 %v14069_v3, %v5268_v2  ;;  %v5711_v3 = vsel %vm5707_vm7, %v14152_v7, 0.0 }
 0x982   :  { %v14361_v43 = vpop.f32.mrf.mxu3  ;;  %v5712_v40 = vadd.f32 %v5711_v3, %v5710_v38  ;;  %v5725_v3 = vsel %vm5707_vm7, %v14189_v56, 0.0 }
 0x983   :  { %v5399_v1 = vmax.f32 %v5335_v23, 0.0  ;;  %v5719_v23 = vsel %vm5707_vm7, %v14174_v57, 0.0 }
 0x984   :  { %v5714_v2 = vadd.f32 %v5713_v26, %v5712_v40  ;;  %v5727_v26 = vsel %vm5707_vm7, %v14196_v52, 0.0 }
 0x986   :  { %v5716_v22 = vadd.f32 %v5715_v8, %v5714_v2  ;;  %v5729_v8 = vsel %vm5707_vm7, %v14200_v45, 0.0 }
 0x988   :  { %v5718_v49 = vadd.f32 %v5717_v10, %v5716_v22  ;;  %v5731_v22 = vsel %vm5707_vm7, %v14207_v17, 0.0 }
 0x98a   :  { %v14365_v16 = vpop.f32.mrf.mxu3 }
 0x98f   :  { %6963 = vmatmul.msk.bf16.gmra.mxu3 %vm1092_vm2, %v5431_v32  ;;  %v5433_v32 = vpack.c.bf16 %v5399_v1, %v5398_v53  ;;  %v5721_v1 = vsel %vm5707_vm7, %v14178_v21, 0.0  ;;  %v5720_v53 = vadd.f32 %v5719_v23, %v5718_v49  ;;  %v5733_v49 = vsel %vm5707_vm7, %v14211_v46, 0.0 }
 0x991   :  { %v5722_v63 = vadd.f32 %v5721_v1, %v5720_v53  ;;  %v5735_v53 = vsel %vm5707_vm7, %v14218_v61, 0.0 }
 0x992   :  { %v14372_v5 = vpop.f32.mrf.mxu3 }
 0x993   :  { %v5724_v38 = vadd.f32 %v5723_v34, %v5722_v63  ;;  %v5737_v63 = vsel %vm5707_vm7, %v14222_v12, 0.0 }
 0x995   :  { %v5726_v40 = vadd.f32 %v5725_v3, %v5724_v38 }
 0x997   :  { %v5728_v2 = vadd.f32 %v5727_v26, %v5726_v40  ;;  %v5739_v26 = vsel %vm5707_vm7, %v14229_v29, 0.0 }
 0x999   :  { %v5730_v23 = vadd.f32 %v5729_v8, %v5728_v2  ;;  %v5741_v8 = vsel %vm5707_vm7, %v14233_v47, 0.0 }
 0x99a   :  { %v14376_v51 = vpop.f32.mrf.mxu3 }
 0x99b   :  { %17294 = vst [vmem:[#allocation61_spill] sm:$0xff] %v14376_v51  ;;  %v5732_v1 = vadd.f32 %v5731_v22, %v5730_v23  ;;  %v5743_v22 = vsel %vm5707_vm7, %v14240_v42, 0.0 }
 0x99d   :  { %v5734_v34 = vadd.f32 %v5733_v49, %v5732_v1  ;;  %v5745_v49 = vsel %vm5707_vm7, %v14244_v25, 0.0 }
 0x99f   :  { %6964 = vmatmul.msk.bf16.gmra.mxu3 %vm1092_vm2, %v5432_v18  ;;  %v5736_v3 = vadd.f32 %v5735_v53, %v5734_v34  ;;  %v5747_v53 = vsel %vm5707_vm7, %v14251_v4, 0.0 }
 0x9a1   :  { %v5738_v40 = vadd.f32 %v5737_v63, %v5736_v3  ;;  %v5749_v63 = vsel %vm5707_vm7, %v14255_v35, 0.0 }
 0x9a2   :  { %v14383_v19 = vpop.f32.mrf.mxu3 }
 0x9a3   :  { %v5740_v2 = vadd.f32 %v5739_v26, %v5738_v40  ;;  %v5751_v26 = vsel %vm5707_vm7, %v14262_v39, 0.0 }
 0x9a5   :  { %v5742_v23 = vadd.f32 %v5741_v8, %v5740_v2  ;;  %v5753_v8 = vsel %vm5707_vm7, %v14266_v37, 0.0 }
 0x9a7   :  { %v5744_v1 = vadd.f32 %v5743_v22, %v5742_v23  ;;  %v5755_v22 = vsel %vm5707_vm7, %v14273_v28, 0.0 }
 0x9a9   :  { %v5746_v34 = vadd.f32 %v5745_v49, %v5744_v1  ;;  %v5757_v49 = vsel %vm5707_vm7, %v14277_v14, 0.0 }
 0x9aa   :  { %v14387_v11 = vpop.f32.mrf.mxu3 }
 0x9ab   :  { %v5748_v3 = vadd.f32 %v5747_v53, %v5746_v34  ;;  %v5759_v53 = vsel %vm5707_vm7, %v14284_v36, 0.0 }
 0x9ad   :  { %v5750_v40 = vadd.f32 %v5749_v63, %v5748_v3  ;;  %v5761_v63 = vsel %vm5707_vm7, %v14288_v15, 0.0 }
 0x9af   :  { %6965 = vmatmul.msk.bf16.gmra.mxu3 %vm1092_vm2, %v5433_v32  ;;  %v5752_v2 = vadd.f32 %v5751_v26, %v5750_v40  ;;  %v5763_v26 = vsel %vm5707_vm7, %v14295_v30, 0.0 }
 0x9b1   :  { %v5754_v23 = vadd.f32 %v5753_v8, %v5752_v2  ;;  %v5765_v8 = vsel %vm5707_vm7, %v14299_v9, 0.0 }
 0x9b2   :  { %v14390_v60 = vpop.f32.mrf.mxu3 }
 0x9b3   :  { %17297 = vst [vmem:[#allocation3_spill] sm:$0xff] %v14390_v60  ;;  %v5756_v1 = vadd.f32 %v5755_v22, %v5754_v23  ;;  %v5767_v22 = vsel %vm5707_vm7, %v14306_v41, 0.0 }
 0x9b5   :  { %v5758_v34 = vadd.f32 %v5757_v49, %v5756_v1  ;;  %v5769_v49 = vsel %vm5707_vm7, %v14310_v27, 0.0 }
 0x9b7   :  { %v5760_v3 = vadd.f32 %v5759_v53, %v5758_v34  ;;  %v5771_v53 = vsel %vm5707_vm7, %v14317_v48, 0.0 }
 0x9b9   :  { %v5762_v40 = vadd.f32 %v5761_v63, %v5760_v3  ;;  %v5773_v63 = vsel %vm5707_vm7, %v14321_v59, 0.0 }
 0x9ba   :  { %v14392_v6 = vpop.f32.mrf.mxu3 }
 0x9bb   :  { %v5764_v2 = vadd.f32 %v5763_v26, %v5762_v40  ;;  %v5775_v26 = vsel %vm5707_vm7, %v14328_v13, 0.0 }
 0x9bd   :  { %v5766_v23 = vadd.f32 %v5765_v8, %v5764_v2  ;;  %v5777_v8 = vsel %vm5707_vm7, %v14332_v44, 0.0 }
 0x9bf   :  { %v5768_v1 = vadd.f32 %v5767_v22, %v5766_v23  ;;  %v5779_v22 = vsel %vm5707_vm7, %v14339_v24, 0.0 }
 0x9c1   :  { %v5770_v34 = vadd.f32 %v5769_v49, %v5768_v1  ;;  %v5781_v49 = vsel %vm5707_vm7, %v14343_v54, 0.0 }
 0x9c2   :  { %v14402_v18 = vpop.f32.mrf.mxu3 }
 0x9c3   :  { %v5772_v3 = vadd.f32 %v5771_v53, %v5770_v34  ;;  %v5783_v53 = vsel %vm5707_vm7, %v14350_v50, 0.0 }
 0x9c5   :  { %v5774_v40 = vadd.f32 %v5773_v63, %v5772_v3  ;;  %v5785_v63 = vsel %vm5707_vm7, %v14354_v33, 0.0 }
 0x9c7   :  { %v5776_v2 = vadd.f32 %v5775_v26, %v5774_v40  ;;  %v5787_v26 = vsel %vm5707_vm7, %v14361_v43, 0.0 }
 0x9c9   :  { %v5778_v23 = vadd.f32 %v5777_v8, %v5776_v2  ;;  %v5789_v8 = vsel %vm5707_vm7, %v14365_v16, 0.0 }
 0x9ca   :  { %v14412_v32 = vpop.f32.mrf.mxu3 }
 0x9cb   :  { %v5780_v1 = vadd.f32 %v5779_v22, %v5778_v23  ;;  %v5791_v22 = vsel %vm5707_vm7, %v14372_v5, 0.0 }
 0x9cd   :  { %v5782_v34 = vadd.f32 %v5781_v49, %v5780_v1  ;;  %v5793_v49 = vsel %vm5707_vm7, %v14376_v51, 0.0 }
 0x9cf   :  { %v5784_v3 = vadd.f32 %v5783_v53, %v5782_v34  ;;  %v5795_v53 = vsel %vm5707_vm7, %v14383_v19, 0.0 }
 0x9d1   :  { %v5786_v40 = vadd.f32 %v5785_v63, %v5784_v3  ;;  %v5797_v63 = vsel %vm5707_vm7, %v14387_v11, 0.0 }
 0x9d2   :  { %v14422_v10 = vpop.f32.mrf.mxu3 }
 0x9d3   :  { %17298 = vst [vmem:[#allocation62_spill] sm:$0xff] %v14422_v10  ;;  %v5788_v2 = vadd.f32 %v5787_v26, %v5786_v40  ;;  %v5799_v26 = vsel %vm5707_vm7, %v14390_v60, 0.0 }
 0x9d5   :  { %v5790_v23 = vadd.f32 %v5789_v8, %v5788_v2  ;;  %v5801_v8 = vsel %vm5707_vm7, %v14392_v6, 0.0 }
 0x9d7   :  { %v5792_v1 = vadd.f32 %v5791_v22, %v5790_v23  ;;  %v5803_v22 = vsel %vm5707_vm7, %v14402_v18, 0.0 }
 0x9d9   :  { %v5794_v34 = vadd.f32 %v5793_v49, %v5792_v1  ;;  %v5805_v49 = vsel %vm5707_vm7, %v14412_v32, 0.0 }
 0x9da   :  { %v14432_v38 = vpop.f32.mrf.mxu3 }
 0x9db   :  { %17299 = vst [vmem:[#allocation63_spill] sm:$0xff] %v14432_v38  ;;  %v5796_v3 = vadd.f32 %v5795_v53, %v5794_v34  ;;  %v5807_v53 = vsel %vm5707_vm7, %v14422_v10, 0.0 }
 0x9dd   :  { %v5798_v40 = vadd.f32 %v5797_v63, %v5796_v3  ;;  %v5809_v63 = vsel %vm5707_vm7, %v14432_v38, 0.0 }
 0x9df   :  { %v5800_v2 = vadd.f32 %v5799_v26, %v5798_v40 }
 0x9e1   :  { %v5802_v23 = vadd.f32 %v5801_v8, %v5800_v2 }
 0x9e2   :  { %v14442_v12 = vpop.f32.mrf.mxu3 }
 0x9e3   :  { %17300 = vst [vmem:[#allocation67_spill] sm:$0xff] %v14442_v12  ;;  %v5804_v1 = vadd.f32 %v5803_v22, %v5802_v23  ;;  %v5811_v26 = vsel %vm5707_vm7, %v14442_v12, 0.0 }
 0x9e5   :  { %v5806_v34 = vadd.f32 %v5805_v49, %v5804_v1 }
 0x9e7   :  { %v5808_v3 = vadd.f32 %v5807_v53, %v5806_v34 }
 0x9e9   :  { %v5810_v40 = vadd.f32 %v5809_v63, %v5808_v3 }
 0x9ea   :  { %v14452_v25 = vpop.f32.mrf.mxu3 }
 0x9eb   :  { %17301 = vst [vmem:[#allocation97_spill] sm:$0xff] %v14452_v25  ;;  %v5813_v8 = vsel %vm5707_vm7, %v14452_v25, 0.0  ;;  %v5812_v2 = vadd.f32 %v5811_v26, %v5810_v40 }
 0x9ed   :  { %v5814_v23 = vadd.f32 %v5813_v8, %v5812_v2 }
 0x9f2   :  { %v14462_v37 = vpop.f32.mrf.mxu3 }
 0x9f3   :  { %17302 = vst [vmem:[#allocation124_spill] sm:$0xff] %v14462_v37  ;;  %v5815_v22 = vsel %vm5707_vm7, %v14462_v37, 0.0 }
 0x9f4   :  { %v5816_v1 = vadd.f32 %v5815_v22, %v5814_v23 }
 0x9fa   :  { %v14472_v15 = vpop.f32.mrf.mxu3 }
 0x9fb   :  { %17303 = vst [vmem:[#allocation149_spill] sm:$0xff] %v14472_v15  ;;  %v5817_v49 = vsel %vm5707_vm7, %v14472_v15, 0.0 }
 0x9fc   :  { %v5818_v34 = vadd.f32 %v5817_v49, %v5816_v1 }
 0xa02   :  { %v14482_v27 = vpop.f32.mrf.mxu3 }
 0xa03   :  { %17304 = vst [vmem:[#allocation127_spill] sm:$0xff] %v14482_v27  ;;  %v5819_v53 = vsel %vm5707_vm7, %v14482_v27, 0.0 }
 0xa04   :  { %v5820_v3 = vadd.f32 %v5819_v53, %v5818_v34 }
 0xa0a   :  { %v14492_v44 = vpop.f32.mrf.mxu3 }
 0xa0b   :  { %17305 = vst [vmem:[#allocation64_spill] sm:$0xff] %v14492_v44  ;;  %v5821_v63 = vsel %vm5707_vm7, %v14492_v44, 0.0 }
 0xa0c   :  { %v5822_v40 = vadd.f32 %v5821_v63, %v5820_v3 }
 0xa12   :  { %v14502_v33 = vpop.f32.mrf.mxu3 }
 0xa13   :  { %17306 = vst [vmem:[#allocation81_spill] sm:$0xff] %v14502_v33  ;;  %v5823_v26 = vsel %vm5707_vm7, %v14502_v33, 0.0 }
 0xa14   :  { %v5824_v8 = vadd.f32 %v5823_v26, %v5822_v40 }
 0xa1a   :  { %v5692_v51 = vpop.f32.mrf.mxu3 }
 0xa1b   :  { %v5825_v37 = vsel %vm5707_vm7, %v5692_v51, 0.0 }
 0xa1c   :  { %v5826_v22 = vadd.f32 %v5825_v37, %v5824_v8 }
 0xa22   :  { %v5695_v60 = vpop.f32.mrf.mxu3 }
 0xa23   :  { %v5827_v15 = vsel %vm5707_vm7, %v5695_v60, 0.0 }
 0xa24   :  { %v5828_v25 = vadd.f32 %v5827_v15, %v5826_v22 }
 0xa2a   :  { %v5697_v10 = vpop.f32.mrf.mxu3 }
 0xa2b   :  { %v5829_v23 = vsel %vm5707_vm7, %v5697_v10, 0.0 }
 0xa2c   :  { %v5830_v1 = vadd.f32 %v5829_v23, %v5828_v25 }
 0xa32   :  { %v5700_v2 = vpop.f32.mrf.mxu3 }
 0xa33   :  { %v5831_v49 = vsel %vm5707_vm7, %v5700_v2, 0.0 }
 0xa34   :  { %v5832_v27 = vadd.f32 %v5831_v49, %v5830_v1 }
 0xa3a   :  { %v5702_v44 = vpop.f32.mrf.mxu3 }
 0xa3b   :  { %v5833_v53 = vsel %vm5707_vm7, %v5702_v44, 0.0 }
 0xa3c   :  { %v5834_v34 = vadd.f32 %v5833_v53, %v5832_v27 }
 0xa3e   :  { %v5835_v33 = vrot.slane %v5834_v34, 4 }
 0xa40   :  { %v5836_v63 = vadd.f32 %v5835_v33, %v5834_v34 }
 0xa42   :  { %v5837_v3 = vrot.slane %v5836_v63, 2 }
 0xa44   :  { %v5838_v12 = vadd.f32 %v5837_v3, %v5836_v63 }
 0xa46   :  { %v5839_v26 = vrot.slane %v5838_v12, 1 }
 0xa48   :  { %v5840_v40 = vadd.f32 %v5839_v26, %v5838_v12 }
 0xa4a   :  { %v14539_v38 = vmul.f32 0.001953125, %v5840_v40 }
 0xa4c   :  { %v14542_v37 = vsub.f32 %v5692_v51, %v14539_v38  ;;  %v14545_v15 = vsub.f32 %v5695_v60, %v14539_v38  ;;  %v14548_v25 = vsub.f32 %v5697_v10, %v14539_v38  ;;  %v14551_v8 = vsub.f32 %v5700_v2, %v14539_v38 }
 0xa4d   :  { %v14554_v27 = vsub.f32 %v5702_v44, %v14539_v38  ;;  %v14558_v12 = vsub.f32 %v14141_v31, %v14539_v38  ;;  %v14562_v33 = vsub.f32 %v14145_v55, %v14539_v38  ;;  %v14566_v51 = vsub.f32 %v14152_v7, %v14539_v38 }
 0xa4e   :  { %17307 = vst [vmem:[#allocation65_spill] sm:$0xff] %v14542_v37  ;;  %v14570_v60 = vsub.f32 %v14156_v58, %v14539_v38  ;;  %v14578_v31 = vsub.f32 %v14163_v20, %v14539_v38  ;;  %v14584_v7 = vsub.f32 %v14167_v62, %v14539_v38  ;;  %v14592_v49 = vsub.f32 %v14174_v57, %v14539_v38 }
 0xa4f   :  { %17308 = vst [vmem:[#allocation79_spill] sm:$0xff] %v14545_v15  ;;  %v5906_v44 = vmul.f32 %v14558_v12, %v14558_v12  ;;  %v5907_v10 = vmul.f32 %v14562_v33, %v14562_v33  ;;  %v5908_v55 = vmul.f32 %v14566_v51, %v14566_v51  ;;  %v14599_v62 = vsub.f32 %v14178_v21, %v14539_v38 }
 0xa50   :  { %17309 = vst [vmem:[#allocation70_spill] sm:$0xff] %v14548_v25  ;;  %v5909_v58 = vmul.f32 %v14570_v60, %v14570_v60  ;;  %v5910_v20 = vmul.f32 %v14578_v31, %v14578_v31  ;;  %v5911_v34 = vmul.f32 %v14584_v7, %v14584_v7  ;;  %v14606_v57 = vsub.f32 %v14185_v0, %v14539_v38 }
 0xa51   :  { %17310 = vst [vmem:[#allocation69_spill] sm:$0xff] %v14551_v8  ;;  %v5970_v2 = vsel %vm5707_vm7, %v5906_v44, 0.0  ;;  %v5971_v22 = vsel %vm5707_vm7, %v5907_v10, 0.0  ;;  %v5973_v1 = vsel %vm5707_vm7, %v5908_v55, 0.0  ;;  %v5912_v26 = vmul.f32 %v14592_v49, %v14592_v49 }
 0xa52   :  { %v5972_v23 = vadd.f32 %v5971_v22, %v5970_v2  ;;  %v5975_v63 = vsel %vm5707_vm7, %v5909_v58, 0.0  ;;  %v5977_v40 = vsel %vm5707_vm7, %v5910_v20, 0.0  ;;  %v14613_v21 = vsub.f32 %v14189_v56, %v14539_v38 }
 0xa53   :  { %v5913_v10 = vmul.f32 %v14599_v62, %v14599_v62  ;;  %v5979_v55 = vsel %vm5707_vm7, %v5911_v34, 0.0  ;;  %v14620_v0 = vsub.f32 %v14196_v52, %v14539_v38  ;;  %v5914_v2 = vmul.f32 %v14606_v57, %v14606_v57 }
 0xa54   :  { %v5974_v53 = vadd.f32 %v5973_v1, %v5972_v23  ;;  %v5981_v22 = vsel %vm5707_vm7, %v5912_v26, 0.0  ;;  %v14627_v56 = vsub.f32 %v14200_v45, %v14539_v38  ;;  %v5915_v20 = vmul.f32 %v14613_v21, %v14613_v21 }
 0xa55   :  { %v5983_v1 = vsel %vm5707_vm7, %v5913_v10, 0.0  ;;  %v14634_v52 = vsub.f32 %v14207_v17, %v14539_v38  ;;  %v5916_v34 = vmul.f32 %v14620_v0, %v14620_v0  ;;  %v14641_v45 = vsub.f32 %v14211_v46, %v14539_v38 }
 0xa56   :  { %v5976_v3 = vadd.f32 %v5975_v63, %v5974_v53  ;;  %v5985_v63 = vsel %vm5707_vm7, %v5914_v2, 0.0  ;;  %v5917_v26 = vmul.f32 %v14627_v56, %v14627_v56  ;;  %v14648_v17 = vsub.f32 %v14218_v61, %v14539_v38  ;;  %v17311_v2 = vld [vmem:[#allocation58_spill] sm:$0xff] }
 0xa57   :  { %v5918_v10 = vmul.f32 %v14634_v52, %v14634_v52  ;;  %v14655_v46 = vsub.f32 %v17311_v2, %v14539_v38  ;;  %v14662_v61 = vsub.f32 %v14229_v29, %v14539_v38  ;;  %v14676_v29 = vsub.f32 %v14240_v42, %v14539_v38 }
 0xa58   :  { %v5978_v44 = vadd.f32 %v5977_v40, %v5976_v3  ;;  %v5987_v40 = vsel %vm5707_vm7, %v5915_v20, 0.0  ;;  %v14690_v42 = vsub.f32 %v14251_v4, %v14539_v38  ;;  %v14704_v4 = vsub.f32 %v14262_v39, %v14539_v38 }
 0xa59   :  { %v14718_v39 = vsub.f32 %v14273_v28, %v14539_v38  ;;  %v14732_v28 = vsub.f32 %v14284_v36, %v14539_v38  ;;  %v14746_v36 = vsub.f32 %v14295_v30, %v14539_v38  ;;  %v14760_v30 = vsub.f32 %v14306_v41, %v14539_v38 }
 0xa5a   :  { %v5980_v58 = vadd.f32 %v5979_v55, %v5978_v44  ;;  %v5989_v55 = vsel %vm5707_vm7, %v5916_v34, 0.0  ;;  %v14774_v41 = vsub.f32 %v14317_v48, %v14539_v38  ;;  %v14788_v48 = vsub.f32 %v14328_v13, %v14539_v38 }
 0xa5b   :  { %17314 = vst [vmem:[#allocation159_spill] sm:$0xff] %v14732_v28  ;;  %v14804_v13 = vsub.f32 %v14339_v24, %v14539_v38  ;;  %v14818_v24 = vsub.f32 %v14350_v50, %v14539_v38 }
 0xa5c   :  { %v5982_v23 = vadd.f32 %v5981_v22, %v5980_v58  ;;  %v5919_v22 = vmul.f32 %v14641_v45, %v14641_v45  ;;  %17317 = vst [vmem:[#allocation98_spill] sm:$0xff] %v14746_v36 }
 0xa5d   :  { %17319 = vst [vmem:[#allocation71_spill] sm:$0xff] %v14760_v30 }
 0xa5e   :  { %v5984_v53 = vadd.f32 %v5983_v1, %v5982_v23  ;;  %v5991_v23 = vsel %vm5707_vm7, %v5917_v26, 0.0  ;;  %v5920_v1 = vmul.f32 %v14648_v17, %v14648_v17  ;;  %v5995_v26 = vsel %vm5707_vm7, %v5919_v22, 0.0  ;;  %17322 = vst [vmem:[#allocation155_spill] sm:$0xff] %v14774_v41 }
 0xa5f   :  { %17324 = vst [vmem:[#allocation100_spill] sm:$0xff] %v14788_v48 }
 0xa60   :  { %v5986_v3 = vadd.f32 %v5985_v63, %v5984_v53  ;;  %v5993_v53 = vsel %vm5707_vm7, %v5918_v10, 0.0  ;;  %v14669_v63 = vsub.f32 %v14233_v47, %v14539_v38  ;;  %v5997_v10 = vsel %vm5707_vm7, %v5920_v1, 0.0  ;;  %17327 = vst [vmem:[#allocation87_spill] sm:$0xff] %v14804_v13 }
 0xa61   :  { %17329 = vst [vmem:[#allocation210_spill] sm:$0xff] %v14818_v24 }
 0xa62   :  { %v5988_v44 = vadd.f32 %v5987_v40, %v5986_v3  ;;  %v5921_v3 = vmul.f32 %v14655_v46, %v14655_v46  ;;  %v5923_v2 = vmul.f32 %v14669_v63, %v14669_v63 }
 0xa64   :  { %v5990_v58 = vadd.f32 %v5989_v55, %v5988_v44  ;;  %v5922_v44 = vmul.f32 %v14662_v61, %v14662_v61  ;;  %v5999_v22 = vsel %vm5707_vm7, %v5921_v3, 0.0  ;;  %v6003_v3 = vsel %vm5707_vm7, %v5923_v2, 0.0 }
 0xa66   :  { %v5992_v20 = vadd.f32 %v5991_v23, %v5990_v58  ;;  %v17312_v58 = vld [vmem:[#allocation59_spill] sm:$0xff]  ;;  %v6001_v1 = vsel %vm5707_vm7, %v5922_v44, 0.0 }
 0xa67   :  { %v14683_v47 = vsub.f32 %v17312_v58, %v14539_v38  ;;  %v17313_v58 = vld [vmem:[#allocation105_spill] sm:$0xff] }
 0xa68   :  { %v5994_v34 = vadd.f32 %v5993_v53, %v5992_v20  ;;  %v5924_v20 = vmul.f32 %v14676_v29, %v14676_v29 }
 0xa6a   :  { %v5996_v40 = vadd.f32 %v5995_v26, %v5994_v34  ;;  %v14697_v34 = vsub.f32 %v14255_v35, %v14539_v38  ;;  %v5925_v26 = vmul.f32 %v14683_v47, %v14683_v47  ;;  %v6005_v44 = vsel %vm5707_vm7, %v5924_v20, 0.0 }
 0xa6b   :  { %v14711_v35 = vsub.f32 %v17313_v58, %v14539_v38 }
 0xa6c   :  { %v5998_v55 = vadd.f32 %v5997_v10, %v5996_v40  ;;  %v5926_v10 = vmul.f32 %v14690_v42, %v14690_v42  ;;  %v6007_v2 = vsel %vm5707_vm7, %v5925_v26, 0.0 }
 0xa6e   :  { %v6000_v23 = vadd.f32 %v5999_v22, %v5998_v55  ;;  %v5927_v22 = vmul.f32 %v14697_v34, %v14697_v34  ;;  %v6009_v20 = vsel %vm5707_vm7, %v5926_v10, 0.0 }
 0xa70   :  { %v6002_v53 = vadd.f32 %v6001_v1, %v6000_v23  ;;  %v5928_v1 = vmul.f32 %v14704_v4, %v14704_v4  ;;  %v6011_v26 = vsel %vm5707_vm7, %v5927_v22, 0.0 }
 0xa72   :  { %v6004_v40 = vadd.f32 %v6003_v3, %v6002_v53  ;;  %v14725_v3 = vsub.f32 %v14277_v14, %v14539_v38  ;;  %v6013_v10 = vsel %vm5707_vm7, %v5928_v1, 0.0 }
 0xa74   :  { %v6006_v55 = vadd.f32 %v6005_v44, %v6004_v40  ;;  %v5929_v40 = vmul.f32 %v14711_v35, %v14711_v35 }
 0xa76   :  { %v6008_v23 = vadd.f32 %v6007_v2, %v6006_v55  ;;  %v5930_v55 = vmul.f32 %v14718_v39, %v14718_v39  ;;  %v17315_v2 = vld [vmem:[#allocation60_spill] sm:$0xff]  ;;  %v6015_v22 = vsel %vm5707_vm7, %v5929_v40, 0.0 }
 0xa77   :  { %v14739_v14 = vsub.f32 %v17315_v2, %v14539_v38  ;;  %v5934_v2 = vmul.f32 %v14746_v36, %v14746_v36 }
 0xa78   :  { %v6010_v53 = vadd.f32 %v6009_v20, %v6008_v23  ;;  %v5931_v23 = vmul.f32 %v14725_v3, %v14725_v3  ;;  %v6017_v1 = vsel %vm5707_vm7, %v5930_v55, 0.0 }
 0xa79   :  { %17316 = vst [vmem:[#allocation132_spill] sm:$0xff] %v14739_v14 }
 0xa7a   :  { %v6012_v44 = vadd.f32 %v6011_v26, %v6010_v53  ;;  %v5932_v53 = vmul.f32 %v14732_v28, %v14732_v28  ;;  %v6019_v40 = vsel %vm5707_vm7, %v5931_v23, 0.0 }
 0xa7c   :  { %v6014_v58 = vadd.f32 %v6013_v10, %v6012_v44  ;;  %v14753_v44 = vsub.f32 %v14299_v9, %v14539_v38  ;;  %v5933_v10 = vmul.f32 %v14739_v14, %v14739_v14  ;;  %v6021_v55 = vsel %vm5707_vm7, %v5932_v53, 0.0 }
 0xa7d   :  { %v6025_v53 = vsel %vm5707_vm7, %v5934_v2, 0.0 }
 0xa7e   :  { %v6016_v20 = vadd.f32 %v6015_v22, %v6014_v58  ;;  %17318 = vst [vmem:[#allocation10_spill] sm:$0xff] %v14753_v44  ;;  %v6023_v23 = vsel %vm5707_vm7, %v5933_v10, 0.0 }
 0xa80   :  { %v6018_v26 = vadd.f32 %v6017_v1, %v6016_v20  ;;  %v17320_v20 = vld [vmem:[#allocation202_spill] sm:$0xff]  ;;  %v5935_v1 = vmul.f32 %v14753_v44, %v14753_v44 }
 0xa81   :  { %v14767_v9 = vsub.f32 %v17320_v20, %v14539_v38 }
 0xa82   :  { %v6020_v58 = vadd.f32 %v6019_v40, %v6018_v26  ;;  %v5936_v40 = vmul.f32 %v14760_v30, %v14760_v30  ;;  %v6027_v10 = vsel %vm5707_vm7, %v5935_v1, 0.0 }
 0xa83   :  { %17321 = vst [vmem:[#allocation72_spill] sm:$0xff] %v14767_v9  ;;  %v5937_v20 = vmul.f32 %v14767_v9, %v14767_v9 }
 0xa84   :  { %v6022_v22 = vadd.f32 %v6021_v55, %v6020_v58  ;;  %v14781_v55 = vsub.f32 %v14321_v59, %v14539_v38  ;;  %v6029_v2 = vsel %vm5707_vm7, %v5936_v40, 0.0  ;;  %v17325_v59 = vld [vmem:[#allocation200_spill] sm:$0xff]  ;;  %v5940_v40 = vmul.f32 %v14788_v48, %v14788_v48 }
 0xa85   :  { %v14797_v30 = vsub.f32 %v17325_v59, %v14539_v38  ;;  %v17330_v48 = vld [vmem:[#allocation68_spill] sm:$0xff] }
 0xa86   :  { %v6024_v26 = vadd.f32 %v6023_v23, %v6022_v22  ;;  %17323 = vst [vmem:[#allocation92_spill] sm:$0xff] %v14781_v55  ;;  %v5938_v23 = vmul.f32 %v14774_v41, %v14774_v41  ;;  %v5939_v1 = vmul.f32 %v14781_v55, %v14781_v55  ;;  %v17352_v55 = vld [vmem:[#allocation124_spill] sm:$0xff] }
 0xa87   :  { %17326 = vst [vmem:[#allocation83_spill] sm:$0xff] %v14797_v30  ;;  %v5941_v59 = vmul.f32 %v14797_v30, %v14797_v30  ;;  %v14829_v30 = vsub.f32 %v17330_v48, %v14539_v38  ;;  %v14845_v48 = vsub.f32 %v14365_v16, %v14539_v38 }
 0xa88   :  { %v6026_v58 = vadd.f32 %v6025_v53, %v6024_v26  ;;  %v14793_v26 = vpop.permute.xlu1 %6314  ;;  %v6033_v41 = vsel %vm5707_vm7, %v5938_v23, 0.0  ;;  %v6037_v23 = vsel %vm5707_vm7, %v5940_v40, 0.0  ;;  %v14838_v40 = vsub.f32 %v14361_v43, %v14539_v38 }
 0xa89   :  { %17331 = vst [vmem:[#allocation111_spill] sm:$0xff] %v14829_v30  ;;  %v6039_v50 = vsel %vm5707_vm7, %v5941_v59, 0.0  ;;  %v5945_v59 = vmul.f32 %v14829_v30, %v14829_v30  ;;  %v14852_v43 = vsub.f32 %v14372_v5, %v14539_v38  ;;  %v5947_v30 = vmul.f32 %v14845_v48, %v14845_v48 }
 0xa8a   :  { %v6028_v22 = vadd.f32 %v6027_v10, %v6026_v58  ;;  %v6031_v58 = vsel %vm5707_vm7, %v5937_v20, 0.0  ;;  %v6035_v20 = vsel %vm5707_vm7, %v5939_v1, 0.0  ;;  %17332 = vst [vmem:[#allocation144_spill] sm:$0xff] %v14838_v40 }
 0xa8b   :  { %17333 = vst [vmem:[#allocation168_spill] sm:$0xff] %v14845_v48 }
 0xa8c   :  { %v6030_v53 = vadd.f32 %v6029_v2, %v6028_v22  ;;  %v14811_v2 = vsub.f32 %v14343_v54, %v14539_v38  ;;  %v14825_v54 = vpop.permute.xlu0 %6318  ;;  %17334 = vst [vmem:[#allocation169_spill] sm:$0xff] %v14852_v43 }
 0xa8e   :  { %v6032_v10 = vadd.f32 %v6031_v58, %v6030_v53  ;;  %17328 = vst [vmem:[#allocation15_spill] sm:$0xff] %v14811_v2  ;;  %v5942_v58 = vmul.f32 %v14804_v13, %v14804_v13  ;;  %v5943_v1 = vmul.f32 %v14811_v2, %v14811_v2 }
 0xa90   :  { %v6034_v22 = vadd.f32 %v6033_v41, %v6032_v10  ;;  %v14823_v41 = vpop.permute.xlu2 %6316  ;;  %v6043_v2 = vsel %vm5707_vm7, %v5943_v1, 0.0  ;;  %v6047_v1 = vsel %vm5707_vm7, %v5945_v59, 0.0  ;;  %v14879_v59 = vsub.f32 %v14387_v11, %v14539_v38 }
 0xa91   :  { %v14893_v11 = vsub.f32 %v14392_v6, %v14539_v38 }
 0xa92   :  { %v6036_v53 = vadd.f32 %v6035_v20, %v6034_v22  ;;  %v14834_v22 = vpop.permute.xlu1 %6320  ;;  %17338 = vst [vmem:[#allocation89_spill] sm:$0xff] %v14879_v59 }
 0xa93   :  { %17341 = vst [vmem:[#allocation171_spill] sm:$0xff] %v14893_v11 }
 0xa94   :  { %v6038_v10 = vadd.f32 %v6037_v23, %v6036_v53  ;;  %v5944_v53 = vmul.f32 %v14818_v24, %v14818_v24  ;;  %v6041_v23 = vsel %vm5707_vm7, %v5942_v58, 0.0  ;;  %v14866_v5 = vpop.permute.xlu0 %6324 }
 0xa96   :  { %v6040_v20 = vadd.f32 %v6039_v50, %v6038_v10  ;;  %v5946_v50 = vmul.f32 %v14838_v40, %v14838_v40  ;;  %v6045_v58 = vsel %vm5707_vm7, %v5944_v53, 0.0  ;;  %v14870_v40 = vsub.f32 %v14383_v19, %v14539_v38  ;;  %v17339_v19 = vld [vmem:[#allocation3_spill] sm:$0xff] }
 0xa97   :  { %v5948_v53 = vmul.f32 %v14852_v43, %v14852_v43  ;;  %v14886_v24 = vsub.f32 %v17339_v19, %v14539_v38 }
 0xa98   :  { %v6042_v13 = vadd.f32 %v6041_v23, %v6040_v20  ;;  %v17335_v23 = vld [vmem:[#allocation61_spill] sm:$0xff]  ;;  %17337 = vst [vmem:[#allocation28_spill] sm:$0xff] %v14870_v40 }
 0xa99   :  { %v14859_v16 = vsub.f32 %v17335_v23, %v14539_v38  ;;  %17340 = vst [vmem:[#allocation212_spill] sm:$0xff] %v14886_v24  ;;  %v6053_v43 = vsel %vm5707_vm7, %v5948_v53, 0.0  ;;  %v5952_v19 = vmul.f32 %v14886_v24, %v14886_v24  ;;  %v17344_v24 = vld [vmem:[#allocation62_spill] sm:$0xff] }
 0xa9a   :  { %v6044_v10 = vadd.f32 %v6043_v2, %v6042_v13  ;;  %v14864_v13 = vpop.permute.xlu2 %6322 }
 0xa9b   :  { %17336 = vst [vmem:[#allocation189_spill] sm:$0xff] %v14859_v16 }
 0xa9c   :  { %v6046_v20 = vadd.f32 %v6045_v58, %v6044_v10  ;;  %v6049_v10 = vsel %vm5707_vm7, %v5946_v50, 0.0  ;;  %v14875_v58 = vpop.permute.xlu1 %6326  ;;  %v5950_v50 = vmul.f32 %v14870_v40, %v14870_v40  ;;  %v14907_v6 = vpop.permute.xlu0 %6330 }
 0xa9e   :  { %v6048_v2 = vadd.f32 %v6047_v1, %v6046_v20  ;;  %v5949_v20 = vmul.f32 %v14859_v16, %v14859_v16  ;;  %v6051_v1 = vsel %vm5707_vm7, %v5947_v30, 0.0  ;;  %v6057_v53 = vsel %vm5707_vm7, %v5950_v50, 0.0 }
 0xa9f   :  { %v14920_v50 = vsub.f32 %v17344_v24, %v14539_v38 }
 0xaa0   :  { %v6050_v23 = vadd.f32 %v6049_v10, %v6048_v2  ;;  %v5951_v10 = vmul.f32 %v14879_v59, %v14879_v59  ;;  %v6055_v30 = vsel %vm5707_vm7, %v5949_v20, 0.0  ;;  %v14911_v59 = vsub.f32 %v14412_v32, %v14539_v38  ;;  %v17346_v32 = vld [vmem:[#allocation63_spill] sm:$0xff] }
 0xaa1   :  { %v5953_v20 = vmul.f32 %v14893_v11, %v14893_v11  ;;  %17345 = vst [vmem:[#allocation175_spill] sm:$0xff] %v14920_v50  ;;  %v14927_v16 = vsub.f32 %v17346_v32, %v14539_v38 }
 0xaa2   :  { %v6052_v48 = vadd.f32 %v6051_v1, %v6050_v23  ;;  %v14900_v1 = vsub.f32 %v14402_v18, %v14539_v38  ;;  %17343 = vst [vmem:[#allocation174_spill] sm:$0xff] %v14911_v59  ;;  %v6059_v18 = vsel %vm5707_vm7, %v5951_v10, 0.0  ;;  %v5955_v10 = vmul.f32 %v14911_v59, %v14911_v59 }
 0xaa3   :  { %17347 = vst [vmem:[#allocation184_spill] sm:$0xff] %v14927_v16  ;;  %v6063_v11 = vsel %vm5707_vm7, %v5953_v20, 0.0  ;;  %v5957_v59 = vmul.f32 %v14927_v16, %v14927_v16  ;;  %v17354_v16 = vld [vmem:[#allocation149_spill] sm:$0xff] }
 0xaa4   :  { %v6054_v2 = vadd.f32 %v6053_v43, %v6052_v48  ;;  %17342 = vst [vmem:[#allocation172_spill] sm:$0xff] %v14900_v1  ;;  %v14905_v48 = vpop.permute.xlu2 %6328  ;;  %v6067_v20 = vsel %vm5707_vm7, %v5955_v10, 0.0  ;;  %v14961_v10 = vsub.f32 %v17354_v16, %v14539_v38 }
 0xaa6   :  { %v6056_v23 = vadd.f32 %v6055_v30, %v6054_v2  ;;  %v14916_v2 = vpop.permute.xlu1 %6332  ;;  %17355 = vst [vmem:[#allocation19_spill] sm:$0xff] %v14961_v10 }
 0xaa8   :  { %v6058_v43 = vadd.f32 %v6057_v53, %v6056_v23  ;;  %v5954_v23 = vmul.f32 %v14900_v1, %v14900_v1  ;;  %v6061_v53 = vsel %vm5707_vm7, %v5952_v19, 0.0  ;;  %v5956_v1 = vmul.f32 %v14920_v50, %v14920_v50 }
 0xaa9   :  { %v14952_v50 = vsub.f32 %v17352_v55, %v14539_v38  ;;  %v17356_v55 = vld [vmem:[#allocation127_spill] sm:$0xff] }
 0xaaa   :  { %v6060_v30 = vadd.f32 %v6059_v18, %v6058_v43  ;;  %v17348_v18 = vld [vmem:[#allocation67_spill] sm:$0xff]  ;;  %v6065_v19 = vsel %vm5707_vm7, %v5954_v23, 0.0  ;;  %v14968_v44 = vsub.f32 %v17356_v55, %v14539_v38 }
 0xaab   :  { %v14934_v24 = vsub.f32 %v17348_v18, %v14539_v38  ;;  %v14948_v18 = vpop.permute.xlu0 %6336  ;;  %17353 = vst [vmem:[#allocation182_spill] sm:$0xff] %v14952_v50 }
 0xaac   :  { %v6062_v40 = vadd.f32 %v6061_v53, %v6060_v30  ;;  %v17350_v53 = vld [vmem:[#allocation97_spill] sm:$0xff]  ;;  %17357 = vst [vmem:[#allocation193_spill] sm:$0xff] %v14968_v44 }
 0xaad   :  { %17349 = vst [vmem:[#allocation187_spill] sm:$0xff] %v14934_v24  ;;  %v14941_v32 = vsub.f32 %v17350_v53, %v14539_v38  ;;  %v5958_v23 = vmul.f32 %v14934_v24, %v14934_v24 }
 0xaae   :  { %v6064_v43 = vadd.f32 %v6063_v11, %v6062_v40  ;;  %v14946_v40 = vpop.permute.xlu2 %6334 }
 0xaaf   :  { %17351 = vst [vmem:[#allocation103_spill] sm:$0xff] %v14941_v32  ;;  %v6073_v24 = vsel %vm5707_vm7, %v5958_v23, 0.0 }
 0xab0   :  { %v6066_v30 = vadd.f32 %v6065_v19, %v6064_v43  ;;  %v6069_v43 = vsel %vm5707_vm7, %v5956_v1, 0.0  ;;  %v14957_v19 = vpop.permute.xlu1 %6338  ;;  %v5960_v1 = vmul.f32 %v14952_v50, %v14952_v50  ;;  %v5962_v50 = vmul.f32 %v14968_v44, %v14968_v44 }
 0xab2   :  { %v6068_v11 = vadd.f32 %v6067_v20, %v6066_v30  ;;  %v5959_v30 = vmul.f32 %v14941_v32, %v14941_v32  ;;  %v6071_v20 = vsel %vm5707_vm7, %v5957_v59, 0.0  ;;  %v5961_v32 = vmul.f32 %v14961_v10, %v14961_v10 }
 0xab3   :  { %v6077_v23 = vsel %vm5707_vm7, %v5960_v1, 0.0  ;;  %v5965_v1 = vmul.f32 %v14542_v37, %v14542_v37 }
 0xab4   :  { %v6070_v53 = vadd.f32 %v6069_v43, %v6068_v11  ;;  %v17358_v43 = vld [vmem:[#allocation64_spill] sm:$0xff]  ;;  %v6075_v59 = vsel %vm5707_vm7, %v5959_v30, 0.0  ;;  %v6079_v30 = vsel %vm5707_vm7, %v5961_v32, 0.0 }
 0xab5   :  { %v14975_v16 = vsub.f32 %v17358_v43, %v14539_v38  ;;  %v14989_v43 = vpop.permute.xlu0 %6342 }
 0xab6   :  { %v6072_v9 = vadd.f32 %v6071_v20, %v6070_v53  ;;  %v17360_v20 = vld [vmem:[#allocation81_spill] sm:$0xff] }
 0xab7   :  { %17359 = vst [vmem:[#allocation188_spill] sm:$0xff] %v14975_v16  ;;  %v14982_v55 = vsub.f32 %v17360_v20, %v14539_v38  ;;  %v5963_v10 = vmul.f32 %v14975_v16, %v14975_v16  ;;  %v6081_v20 = vsel %vm5707_vm7, %v5962_v50, 0.0  ;;  %v5966_v16 = vmul.f32 %v14545_v15, %v14545_v15 }
 0xab8   :  { %v6074_v11 = vadd.f32 %v6073_v24, %v6072_v9  ;;  %v14987_v9 = vpop.permute.xlu2 %6340 }
 0xab9   :  { %17361 = vst [vmem:[#allocation20_spill] sm:$0xff] %v14982_v55  ;;  %v5964_v38 = vmul.f32 %v14982_v55, %v14982_v55 }
 0xaba   :  { %v6076_v53 = vadd.f32 %v6075_v59, %v6074_v11  ;;  %v14994_v11 = vpop.permute.xlu1 %6344 }
 0xabb   :  { %v6085_v32 = vsel %vm5707_vm7, %v5964_v38, 0.0  ;;  %v5969_v38 = vmul.f32 %v14554_v27, %v14554_v27 }
 0xabc   :  { %v6078_v24 = vadd.f32 %v6077_v23, %v6076_v53  ;;  %v6083_v53 = vsel %vm5707_vm7, %v5963_v10, 0.0  ;;  %v5968_v10 = vmul.f32 %v14551_v8, %v14551_v8 }
 0xabe   :  { %v6080_v59 = vadd.f32 %v6079_v30, %v6078_v24  ;;  %v5967_v24 = vmul.f32 %v14548_v25, %v14548_v25  ;;  %v6087_v30 = vsel %vm5707_vm7, %v5965_v1, 0.0  ;;  %v6093_v1 = vsel %vm5707_vm7, %v5968_v10, 0.0 }
 0xac0   :  { %v6082_v44 = vadd.f32 %v6081_v20, %v6080_v59  ;;  %v15008_v55 = vpop.permute.xlu2 %6346  ;;  %v15010_v59 = vpop.permute.xlu0 %6348 }
 0xac2   :  { %v6084_v23 = vadd.f32 %v6083_v53, %v6082_v44  ;;  %v6089_v44 = vsel %vm5707_vm7, %v5966_v16, 0.0  ;;  %v15015_v20 = vpop.permute.xlu1 %6350 }
 0xac3   :  { %17362 = vst [vmem:[#allocation203_spill] sm:$0xff] %v15015_v20 }
 0xac4   :  { %v6086_v36 = vadd.f32 %v6085_v32, %v6084_v23  ;;  %v6091_v23 = vsel %vm5707_vm7, %v5967_v24, 0.0 }
 0xac6   :  { %v6088_v50 = vadd.f32 %v6087_v30, %v6086_v36  ;;  %v6095_v36 = vsel %vm5707_vm7, %v5969_v38, 0.0 }
 0xac8   :  { %v6090_v53 = vadd.f32 %v6089_v44, %v6088_v50  ;;  %v15022_v15 = vpop.permute.xlu2 %6352  ;;  %v15024_v37 = vpop.permute.xlu0 %6354 }
 0xaca   :  { %v6092_v32 = vadd.f32 %v6091_v23, %v6090_v53  ;;  %v15026_v16 = vpop.permute.xlu1 %6356 }
 0xacc   :  { %v6094_v25 = vadd.f32 %v6093_v1, %v6092_v32 }
 0xace   :  { %v6096_v30 = vadd.f32 %v6095_v36, %v6094_v25 }
 0xad0   :  { %v6097_v8 = vrot.slane %v6096_v30, 4  ;;  %v15028_v28 = vpop.permute.xlu2 %6358  ;;  %v15030_v24 = vpop.permute.xlu0 %6360 }
 0xad1   :  { %17363 = vst [vmem:[#allocation21_spill] sm:$0xff] %v15030_v24 }
 0xad2   :  { %v6098_v50 = vadd.f32 %v6097_v8, %v6096_v30  ;;  %v15032_v10 = vpop.permute.xlu1 %6362 }
 0xad3   :  { %17364 = vst [vmem:[#allocation112_spill] sm:$0xff] %v15032_v10 }
 0xad4   :  { %v6099_v44 = vrot.slane %v6098_v50, 2 }
 0xad6   :  { %v6100_v14 = vadd.f32 %v6099_v44, %v6098_v50 }
 0xad8   :  { %v6101_v20 = vrot.slane %v6100_v14, 1  ;;  %v15034_v25 = vpop.permute.xlu2 %6364  ;;  %v15036_v23 = vpop.permute.xlu0 %6366 }
 0xad9   :  { %17365 = vst [vmem:[#allocation22_spill] sm:$0xff] %v15034_v25 }
 0xada   :  { %v6102_v53 = vadd.f32 %v6101_v20, %v6100_v14  ;;  %17366 = vst [vmem:[#allocation213_spill] sm:$0xff] %v15036_v23  ;;  %v15038_v1 = vpop.permute.xlu1 %6368 }
 0xadb   :  { %17367 = vst [vmem:[#allocation176_spill] sm:$0xff] %v15038_v1 }
 0xadc   :  { %v6103_v38 = vmul.f32 0.001953125, %v6102_v53 }
 0xade   :  { %v6104_v32 = vadd.f32 1e-05, %v6103_v38 }
 0xae0   :  { %8114 = vrsqrt.f32 %v6104_v32  ;;  %v15040_v8 = vpop.permute.xlu2 %6370  ;;  %v15042_v30 = vpop.permute.xlu0 %6372  ;;  %vm6111_vm8 = vweird.f32 %v6104_v32 }
 0xae1   :  { %17368 = vst [vmem:[#allocation216_spill] sm:$0xff] %v15040_v8 }
 0xae2   :  { %v15044_v50 = vpop.permute.xlu1 %6374 }
 0xae3   :  { %17369 = vst [vmem:[#allocation196_spill] sm:$0xff] %v15044_v50 }
 0xae6   :  { %v8115_v36 = vpop.eup %8114 }
 0xae7   :  { %v6106_v44 = vmul.f32 %v8115_v36, %v6104_v32  ;;  %vm6112_vm2 = vweird.f32 %v8115_v36  ;;  %v15074_v32 = vld [vmem:[%s15629_s9] ss:$0 sm:$0xff] }
 0xae8   :  { %v15046_v10 = vpop.permute.xlu2 %6376  ;;  %v15048_v14 = vpop.permute.xlu0 %6378  ;;  %vm6113_vm9 = vmor %vm6111_vm8, %vm6112_vm2 }
 0xae9   :  { %v6107_v24 = vmul.f32 %v8115_v36, %v6106_v44  ;;  %17370 = vst [vmem:[#allocation218_spill] sm:$0xff] %v15046_v10  ;;  %v5705_v44 = vld [vmem:[%s15630_s8] sm:$0x1] }
 0xaea   :  { %17371 = vst [vmem:[#allocation179_spill] sm:$0xff] %v15048_v14  ;;  %v15050_v20 = vpop.permute.xlu1 %6380 }
 0xaeb   :  { %v6108_v53 = vmul.f32 0.5, %v6107_v24 }
 0xaed   :  { %v6109_v38 = vsub.f32 1.5, %v6108_v53 }
 0xaef   :  { %v6110_v1 = vmul.f32 %v8115_v36, %v6109_v38 }
 0xaf0   :  { %v15052_v23 = vpop.permute.xlu2 %6382  ;;  %v15054_v8 = vpop.permute.xlu0 %6384 }
 0xaf1   :  { %17372 = vst [vmem:[#allocation136_spill] sm:$0xff] %v15054_v8  ;;  %v6114_v10 = vsel %vm6113_vm9, %v8115_v36, %v6110_v1 }
 0xaf2   :  { %v15056_v25 = vpop.permute.xlu1 %6386  ;;  %v6115_v14 = vmul.f32 %v6114_v10, %v5705_v44 }
 0xaf3   :  { %17373 = vst [vmem:[#allocation125_spill] sm:$0xff] %v15056_v25 }
 0xaf4   :  { %v15065_v53 = vperm.slane %v6115_v14, 0 }
 0xaf6   :  { %v6182_v8 = vmul.f32 %v15065_v53, %v14554_v27  ;;  %v6119_v14 = vmul.f32 %v15065_v53, %v14558_v12  ;;  %v6120_v27 = vmul.f32 %v15065_v53, %v14562_v33  ;;  %v6121_v44 = vmul.f32 %v15065_v53, %v14566_v51 }
 0xaf7   :  { %v6126_v51 = vmul.f32 %v15065_v53, %v14599_v62 }
 0xaf8   :  { %v15061_v50 = vpop.permute.xlu2 %6388  ;;  %v15063_v24 = vpop.permute.xlu0 %6390  ;;  %v15077_v25 = vadd.f32 %v15074_v32, %v6182_v8  ;;  %v6123_v8 = vmul.f32 %v15065_v53, %v14578_v31  ;;  %v6186_v12 = vadd.f32 %v15074_v32, %v6119_v14  ;;  %v6188_v33 = vadd.f32 %v15074_v32, %v6121_v44 }
 0xaf9   :  { %17374 = vst [vmem:[#allocation146_spill] sm:$0xff] %v15063_v24  ;;  %v6127_v31 = vmul.f32 %v15065_v53, %v14606_v57  ;;  %v6129_v14 = vmul.f32 %v15065_v53, %v14620_v0  ;;  %v6131_v0 = vmul.f32 %v15065_v53, %v14634_v52 }
 0xafa   :  { %v15067_v38 = vpop.permute.xlu1 %6392  ;;  %17376 = vst [vmem:[#allocation145_spill] sm:$0xff] %v15077_v25  ;;  %v6124_v25 = vmul.f32 %v15065_v53, %v14584_v7  ;;  %v6190_v7 = vadd.f32 %v15074_v32, %v6123_v8  ;;  %v6506_v44 = vadd.f32 %v14793_v26, %v6186_v12  ;;  %v6508_v8 = vadd.f32 %v14825_v54, %v6188_v33 }
 0xafb   :  { %17375 = vst [vmem:[#allocation180_spill] sm:$0xff] %v15067_v38  ;;  %v6122_v38 = vmul.f32 %v15065_v53, %v14570_v60 }
 0xafc   :  { %v6510_v26 = vadd.f32 %v14864_v13, %v6190_v7  ;;  %v6570_v12 = vmax.f32 %v6506_v44, 0.0  ;;  %v6572_v33 = vmax.f32 %v6508_v8, 0.0  ;;  %v6139_v44 = vmul.f32 %v15065_v53, %v14690_v42 }
 0xafd   :  { %v6189_v60 = vadd.f32 %v15074_v32, %v6122_v38  ;;  %v6141_v42 = vmul.f32 %v15065_v53, %v14704_v4  ;;  %v6143_v4 = vmul.f32 %v15065_v53, %v14718_v39  ;;  %v17382_v39 = vld [vmem:[#allocation159_spill] sm:$0xff] }
 0xafe   :  { %v6574_v7 = vmax.f32 %v6510_v26, 0.0  ;;  %6634 = vst.msk [vmem:[%s15631_s12] sm:$0xff] %vm5707_vm7, %v6570_v12 }
 0xaff   :  { %6636 = vst.msk [vmem:[%s15631_s12 + $0x10] sm:$0xff] %vm5707_vm7, %v6572_v33  ;;  %v17383_v33 = vld [vmem:[#allocation203_spill] sm:$0xff] }
 0xb00   :  { %v15079_v10 = vpop.permute.xlu2 %6394  ;;  %v15081_v1 = vpop.permute.xlu0 %6396  ;;  %6638 = vst.msk [vmem:[%s15631_s12 + $0x20] sm:$0xff] %vm5707_vm7, %v6574_v7 }
 0xb01   :  { %17377 = vst [vmem:[#allocation139_spill] sm:$0xff] %v15079_v10 }
 0xb02   :  { %17378 = vst [vmem:[#allocation147_spill] sm:$0xff] %v15081_v1  ;;  %v15083_v36 = vpop.permute.xlu1 %6398  ;;  %v6187_v1 = vadd.f32 %v15074_v32, %v6120_v27  ;;  %v6191_v27 = vadd.f32 %v15074_v32, %v6124_v25  ;;  %v6132_v25 = vmul.f32 %v15065_v53, %v14641_v45  ;;  %v6134_v45 = vmul.f32 %v15065_v53, %v14655_v46 }
 0xb03   :  { %17379 = vst [vmem:[#allocation33_spill] sm:$0xff] %v15083_v36  ;;  %v6125_v36 = vmul.f32 %v15065_v53, %v14592_v49  ;;  %v6128_v49 = vmul.f32 %v15065_v53, %v14613_v21  ;;  %v6193_v21 = vadd.f32 %v15074_v32, %v6126_v51  ;;  %v6136_v46 = vmul.f32 %v15065_v53, %v14669_v63 }
 0xb04   :  { %v6507_v57 = vadd.f32 %v14823_v41, %v6187_v1  ;;  %v6133_v41 = vmul.f32 %v15065_v53, %v14648_v17  ;;  %v6511_v1 = vadd.f32 %v14866_v5, %v6191_v27  ;;  %v6135_v17 = vmul.f32 %v15065_v53, %v14662_v61 }
 0xb05   :  { %v6192_v38 = vadd.f32 %v15074_v32, %v6125_v36  ;;  %v6194_v36 = vadd.f32 %v15074_v32, %v6127_v31  ;;  %v6195_v54 = vadd.f32 %v15074_v32, %v6128_v49  ;;  %v6513_v13 = vadd.f32 %v14905_v48, %v6193_v21 }
 0xb06   :  { %v6571_v52 = vmax.f32 %v6507_v57, 0.0  ;;  %v6198_v31 = vadd.f32 %v15074_v32, %v6131_v0  ;;  %v6201_v27 = vadd.f32 %v15074_v32, %v6134_v45  ;;  %v6202_v57 = vadd.f32 %v15074_v32, %v6135_v17 }
 0xb07   :  { %v6514_v5 = vadd.f32 %v14907_v6, %v6194_v36  ;;  %v6515_v48 = vadd.f32 %v14916_v2, %v6195_v54  ;;  %v6137_v6 = vmul.f32 %v15065_v53, %v14676_v29  ;;  %v6577_v29 = vmax.f32 %v6513_v13, 0.0 }
 0xb08   :  { %v15105_v10 = vpop.permute.xlu2 %6400  ;;  %v15110_v24 = vpop.permute.xlu0 %6402  ;;  %6635 = vst.msk [vmem:[%s15631_s12 + $0x8] sm:$0xff] %vm5707_vm7, %v6571_v52  ;;  %v6518_v8 = vadd.f32 %v14957_v19, %v6198_v31  ;;  %v6203_v21 = vadd.f32 %v15074_v32, %v6136_v46  ;;  %v6208_v52 = vadd.f32 %v15074_v32, %v6141_v42  ;;  %v6210_v46 = vadd.f32 %v15074_v32, %v6143_v4  ;;  %v17391_v42 = vld [vmem:[#allocation112_spill] sm:$0xff] }
 0xb09   :  { %17380 = vst [vmem:[#allocation150_spill] sm:$0xff] %v15105_v10  ;;  %v6509_v10 = vadd.f32 %v14834_v22, %v6189_v60  ;;  %v6512_v22 = vadd.f32 %v14875_v58, %v6192_v38  ;;  %v6199_v58 = vadd.f32 %v15074_v32, %v6132_v25  ;;  %v6579_v25 = vmax.f32 %v6515_v48, 0.0 }
 0xb0a   :  { %17381 = vst [vmem:[#allocation185_spill] sm:$0xff] %v15110_v24  ;;  %v15117_v62 = vpop.permute.xlu1 %6404  ;;  %v6130_v24 = vmul.f32 %v15065_v53, %v14627_v56  ;;  %v6196_v56 = vadd.f32 %v15074_v32, %v6129_v14  ;;  %v6138_v14 = vmul.f32 %v15065_v53, %v14683_v47  ;;  %v6578_v47 = vmax.f32 %v6514_v5, 0.0  ;;  %v17385_v5 = vld [vmem:[#allocation98_spill] sm:$0xff] }
 0xb0b   :  { %v6573_v60 = vmax.f32 %v6509_v10, 0.0  ;;  %v6200_v10 = vadd.f32 %v15074_v32, %v6133_v41  ;;  %v6576_v63 = vmax.f32 %v6512_v22, 0.0  ;;  %v6519_v0 = vadd.f32 %v14987_v9, %v6199_v58  ;;  %6641 = vst.msk [vmem:[%s15631_s12 + $0x38] sm:$0xff] %vm5707_vm7, %v6577_v29 }
 0xb0c   :  { %v6197_v51 = vadd.f32 %v15074_v32, %v6130_v24  ;;  %v6575_v24 = vmax.f32 %v6511_v1, 0.0  ;;  %v6516_v49 = vadd.f32 %v14946_v40, %v6196_v56  ;;  %v6204_v19 = vadd.f32 %v15074_v32, %v6137_v6  ;;  %6642 = vst.msk [vmem:[%s15631_s12 + $0x40] sm:$0xff] %vm5707_vm7, %v6578_v47  ;;  %v17389_v47 = vld [vmem:[#allocation21_spill] sm:$0xff] }
 0xb0d   :  { %6637 = vst.msk [vmem:[%s15631_s12 + $0x18] sm:$0xff] %vm5707_vm7, %v6573_v60  ;;  %v6520_v36 = vadd.f32 %v14989_v43, %v6200_v10  ;;  %v6205_v9 = vadd.f32 %v15074_v32, %v6138_v14  ;;  %v6521_v41 = vadd.f32 %v14994_v11, %v6201_v27  ;;  %v6206_v43 = vadd.f32 %v15074_v32, %v6139_v44  ;;  %v17387_v14 = vld [vmem:[#allocation71_spill] sm:$0xff] }
 0xb0e   :  { %v6517_v38 = vadd.f32 %v14948_v18, %v6197_v51  ;;  %v6140_v18 = vmul.f32 %v15065_v53, %v14697_v34  ;;  %6639 = vst.msk [vmem:[%s15631_s12 + $0x28] sm:$0xff] %vm5707_vm7, %v6575_v24  ;;  %v6580_v26 = vmax.f32 %v6516_v49, 0.0  ;;  %v6142_v34 = vmul.f32 %v15065_v53, %v14711_v35  ;;  %v17386_v24 = vld [vmem:[#allocation10_spill] sm:$0xff] }
 0xb0f   :  { %6640 = vst.msk [vmem:[%s15631_s12 + $0x30] sm:$0xff] %vm5707_vm7, %v6576_v63  ;;  %v6522_v56 = vadd.f32 %v15008_v55, %v6202_v57  ;;  %v6582_v1 = vmax.f32 %v6518_v8, 0.0  ;;  %v6144_v35 = vmul.f32 %v15065_v53, %v14725_v3  ;;  %v6523_v22 = vadd.f32 %v15010_v59, %v6203_v21  ;;  %v17384_v3 = vld [vmem:[#allocation132_spill] sm:$0xff] }
 0xb10   :  { %v15159_v61 = vpop.permute.xlu2 %6406  ;;  %v15169_v2 = vpop.permute.xlu0 %6408  ;;  %v6581_v54 = vmax.f32 %v6517_v38, 0.0  ;;  %v6207_v11 = vadd.f32 %v15074_v32, %v6140_v18  ;;  %v6583_v12 = vmax.f32 %v6519_v0, 0.0  ;;  %6643 = vst.msk [vmem:[%s15631_s12 + $0x48] sm:$0xff] %vm5707_vm7, %v6579_v25  ;;  %v6145_v55 = vmul.f32 %v15065_v53, %v17382_v39 }
 0xb11   :  { %v6524_v45 = vadd.f32 %v17383_v33, %v6204_v19  ;;  %v6584_v51 = vmax.f32 %v6520_v36, 0.0  ;;  %6644 = vst.msk [vmem:[%s15631_s12 + $0x50] sm:$0xff] %vm5707_vm7, %v6580_v26  ;;  %v6146_v59 = vmul.f32 %v15065_v53, %v17384_v3  ;;  %v6209_v13 = vadd.f32 %v15074_v32, %v6142_v34  ;;  %v17392_v26 = vld [vmem:[#allocation92_spill] sm:$0xff] }
 0xb12   :  { %v15179_v40 = vpop.permute.xlu1 %6410  ;;  %v6525_v60 = vadd.f32 %v15022_v15, %v6205_v9  ;;  %v6585_v17 = vmax.f32 %v6521_v41, 0.0  ;;  %6645 = vst.msk [vmem:[%s15631_s12 + $0x58] sm:$0xff] %vm5707_vm7, %v6581_v54  ;;  %v6147_v7 = vmul.f32 %v15065_v53, %v17385_v5  ;;  %v6526_v58 = vadd.f32 %v15024_v37, %v6206_v43  ;;  %v17393_v41 = vld [vmem:[#allocation22_spill] sm:$0xff]  ;;  %v17394_v43 = vld [vmem:[#allocation100_spill] sm:$0xff]  ;;  %v17400_v5 = vld [vmem:[#allocation15_spill] sm:$0xff] }
 0xb13   :  { %v6586_v48 = vmax.f32 %v6522_v56, 0.0  ;;  %6646 = vst.msk [vmem:[%s15631_s12 + $0x60] sm:$0xff] %vm5707_vm7, %v6582_v1  ;;  %v6148_v6 = vmul.f32 %v15065_v53, %v17386_v24  ;;  %v6211_v10 = vadd.f32 %v15074_v32, %v6144_v35  ;;  %v6527_v49 = vadd.f32 %v15026_v16, %v6207_v11  ;;  %v17388_v16 = vld [vmem:[#allocation72_spill] sm:$0xff]  ;;  %v17395_v35 = vld [vmem:[#allocation213_spill] sm:$0xff] }
 0xb14   :  { %v6587_v63 = vmax.f32 %v6523_v22, 0.0  ;;  %6647 = vst.msk [vmem:[%s15631_s12 + $0x68] sm:$0xff] %vm5707_vm7, %v6583_v12  ;;  %v6149_v27 = vmul.f32 %v15065_v53, %v17387_v14  ;;  %v6212_v38 = vadd.f32 %v15074_v32, %v6145_v55  ;;  %v6528_v29 = vadd.f32 %v15028_v28, %v6208_v52  ;;  %v17390_v28 = vld [vmem:[#allocation155_spill] sm:$0xff]  ;;  %v17397_v52 = vld [vmem:[#allocation176_spill] sm:$0xff] }
 0xb15   :  { %v6588_v44 = vmax.f32 %v6524_v45, 0.0  ;;  %6648 = vst.msk [vmem:[%s15631_s12 + $0x70] sm:$0xff] %vm5707_vm7, %v6584_v51  ;;  %v6150_v57 = vmul.f32 %v15065_v53, %v17388_v16  ;;  %v6213_v8 = vadd.f32 %v15074_v32, %v6146_v59  ;;  %v6529_v18 = vadd.f32 %v17389_v47, %v6209_v13  ;;  %v17396_v12 = vld [vmem:[#allocation83_spill] sm:$0xff]  ;;  %v17399_v13 = vld [vmem:[#allocation216_spill] sm:$0xff]  ;;  %v17404_v16 = vld [vmem:[#allocation218_spill] sm:$0xff] }
 0xb16   :  { %v6589_v21 = vmax.f32 %v6525_v60, 0.0  ;;  %6649 = vst.msk [vmem:[%s15631_s12 + $0x78] sm:$0xff] %vm5707_vm7, %v6585_v17  ;;  %v6151_v0 = vmul.f32 %v15065_v53, %v17390_v28  ;;  %v6214_v25 = vadd.f32 %v15074_v32, %v6147_v7  ;;  %v6530_v19 = vadd.f32 %v17391_v42, %v6210_v46  ;;  %v17398_v51 = vld [vmem:[#allocation87_spill] sm:$0xff] }
 0xb17   :  { %v6590_v36 = vmax.f32 %v6526_v58, 0.0  ;;  %6650 = vst.msk [vmem:[%s15631_s12 + $0x80] sm:$0xff] %vm5707_vm7, %v6586_v48  ;;  %v6152_v34 = vmul.f32 %v15065_v53, %v17392_v26  ;;  %v6215_v9 = vadd.f32 %v15074_v32, %v6148_v6  ;;  %v6531_v54 = vadd.f32 %v17393_v41, %v6211_v10  ;;  %v17401_v6 = vld [vmem:[#allocation210_spill] sm:$0xff]  ;;  %v17408_v41 = vld [vmem:[#allocation169_spill] sm:$0xff] }
 0xb18   :  { %v15245_v31 = vpop.permute.xlu2 %6412  ;;  %v15255_v15 = vpop.permute.xlu0 %6414  ;;  %v6591_v4 = vmax.f32 %v6527_v49, 0.0  ;;  %6651 = vst.msk [vmem:[%s15631_s12 + $0x88] sm:$0xff] %vm5707_vm7, %v6587_v63  ;;  %v6153_v56 = vmul.f32 %v15065_v53, %v17394_v43  ;;  %v6216_v1 = vadd.f32 %v15074_v32, %v6149_v27  ;;  %v6532_v11 = vadd.f32 %v17395_v35, %v6212_v38  ;;  %v17402_v63 = vld [vmem:[#allocation196_spill] sm:$0xff]  ;;  %v17403_v38 = vld [vmem:[#allocation111_spill] sm:$0xff] }
 0xb19   :  { %v6592_v22 = vmax.f32 %v6528_v29, 0.0  ;;  %6652 = vst.msk [vmem:[%s15631_s12 + $0x90] sm:$0xff] %vm5707_vm7, %v6588_v44  ;;  %v6154_v39 = vmul.f32 %v15065_v53, %v17396_v12  ;;  %v6217_v55 = vadd.f32 %v15074_v32, %v6150_v57  ;;  %v6533_v33 = vadd.f32 %v17397_v52, %v6213_v8  ;;  %v17412_v52 = vld [vmem:[#allocation125_spill] sm:$0xff] }
 0xb1a   :  { %v15265_v37 = vpop.permute.xlu1 %6416  ;;  %v6593_v45 = vmax.f32 %v6529_v18, 0.0  ;;  %6653 = vst.msk [vmem:[%s15631_s12 + $0x98] sm:$0xff] %vm5707_vm7, %v6589_v21  ;;  %v6155_v3 = vmul.f32 %v15065_v53, %v17398_v51  ;;  %v6218_v59 = vadd.f32 %v15074_v32, %v6151_v0  ;;  %v6534_v60 = vadd.f32 %v17399_v13, %v6214_v25  ;;  %v17405_v18 = vld [vmem:[#allocation144_spill] sm:$0xff]  ;;  %v17406_v0 = vld [vmem:[#allocation179_spill] sm:$0xff]  ;;  %v17413_v51 = vld [vmem:[#allocation89_spill] sm:$0xff] }
 0xb1b   :  { %v6594_v17 = vmax.f32 %v6530_v19, 0.0  ;;  %6654 = vst.msk [vmem:[%s15631_s12 + $0xa0] sm:$0xff] %vm5707_vm7, %v6590_v36  ;;  %v6156_v7 = vmul.f32 %v15065_v53, %v17400_v5  ;;  %v6219_v46 = vadd.f32 %v15074_v32, %v6152_v34  ;;  %v6535_v58 = vadd.f32 %v15042_v30, %v6215_v9  ;;  %v17407_v19 = vld [vmem:[#allocation168_spill] sm:$0xff] }
 0xb1c   :  { %v6595_v48 = vmax.f32 %v6531_v54, 0.0  ;;  %6655 = vst.msk [vmem:[%s15631_s12 + $0xa8] sm:$0xff] %vm5707_vm7, %v6591_v4  ;;  %v6157_v10 = vmul.f32 %v15065_v53, %v17401_v6  ;;  %v6220_v49 = vadd.f32 %v15074_v32, %v6153_v56  ;;  %v6536_v14 = vadd.f32 %v17402_v63, %v6216_v1 }
 0xb1d   :  { %v6596_v27 = vmax.f32 %v6532_v11, 0.0  ;;  %6656 = vst.msk [vmem:[%s15631_s12 + $0xb0] sm:$0xff] %vm5707_vm7, %v6592_v22  ;;  %v6158_v29 = vmul.f32 %v15065_v53, %v17403_v38  ;;  %v6221_v44 = vadd.f32 %v15074_v32, %v6154_v39  ;;  %v6537_v57 = vadd.f32 %v17404_v16, %v6217_v55  ;;  %v17410_v11 = vld [vmem:[#allocation136_spill] sm:$0xff]  ;;  %v17419_v16 = vld [vmem:[#allocation139_spill] sm:$0xff] }
 0xb1e   :  { %v6597_v8 = vmax.f32 %v6533_v33, 0.0  ;;  %6657 = vst.msk [vmem:[%s15631_s12 + $0xb8] sm:$0xff] %vm5707_vm7, %v6593_v45  ;;  %v6159_v21 = vmul.f32 %v15065_v53, %v17405_v18  ;;  %v6222_v28 = vadd.f32 %v15074_v32, %v6155_v3  ;;  %v6538_v25 = vadd.f32 %v17406_v0, %v6218_v59  ;;  %v17418_v38 = vld [vmem:[#allocation172_spill] sm:$0xff] }
 0xb1f   :  { %v6598_v42 = vmax.f32 %v6534_v60, 0.0  ;;  %6658 = vst.msk [vmem:[%s15631_s12 + $0xc0] sm:$0xff] %vm5707_vm7, %v6594_v17  ;;  %v6160_v36 = vmul.f32 %v15065_v53, %v17407_v19  ;;  %v6223_v26 = vadd.f32 %v15074_v32, %v6156_v7  ;;  %v6539_v34 = vadd.f32 %v15050_v20, %v6219_v46  ;;  %v17409_v20 = vld [vmem:[#allocation189_spill] sm:$0xff]  ;;  %v17414_v17 = vld [vmem:[#allocation212_spill] sm:$0xff]  ;;  %v17415_v46 = vld [vmem:[#allocation146_spill] sm:$0xff] }
 0xb20   :  { %v15331_v24 = vpop.permute.xlu2 %6418  ;;  %v15341_v30 = vpop.permute.xlu0 %6420  ;;  %v6599_v9 = vmax.f32 %v6535_v58, 0.0  ;;  %6659 = vst.msk [vmem:[%s15631_s12 + $0xc8] sm:$0xff] %vm5707_vm7, %v6595_v48  ;;  %v6161_v54 = vmul.f32 %v15065_v53, %v17408_v41  ;;  %v6224_v4 = vadd.f32 %v15074_v32, %v6157_v10  ;;  %v6540_v43 = vadd.f32 %v15052_v23, %v6220_v49  ;;  %v17411_v23 = vld [vmem:[#allocation28_spill] sm:$0xff]  ;;  %v17423_v41 = vld [vmem:[#allocation33_spill] sm:$0xff] }
 0xb21   :  { %v6600_v56 = vmax.f32 %v6536_v14, 0.0  ;;  %6660 = vst.msk [vmem:[%s15631_s12 + $0xd0] sm:$0xff] %vm5707_vm7, %v6596_v27  ;;  %v6162_v1 = vmul.f32 %v15065_v53, %v17409_v20  ;;  %v6225_v35 = vadd.f32 %v15074_v32, %v6158_v29  ;;  %v6541_v22 = vadd.f32 %v17410_v11, %v6221_v44  ;;  %v17417_v49 = vld [vmem:[#allocation180_spill] sm:$0xff] }
 0xb22   :  { %v15351_v47 = vpop.permute.xlu1 %6422  ;;  %v6601_v12 = vmax.f32 %v6537_v57, 0.0  ;;  %6661 = vst.msk [vmem:[%s15631_s12 + $0xd8] sm:$0xff] %vm5707_vm7, %v6597_v8  ;;  %v6163_v39 = vmul.f32 %v15065_v53, %v17411_v23  ;;  %v6226_v55 = vadd.f32 %v15074_v32, %v6159_v21  ;;  %v6542_v33 = vadd.f32 %v17412_v52, %v6222_v28  ;;  %v17420_v21 = vld [vmem:[#allocation174_spill] sm:$0xff] }
 0xb23   :  { %v6602_v45 = vmax.f32 %v6538_v25, 0.0  ;;  %6662 = vst.msk [vmem:[%s15631_s12 + $0xe0] sm:$0xff] %vm5707_vm7, %v6598_v42  ;;  %v6164_v3 = vmul.f32 %v15065_v53, %v17413_v51  ;;  %v6227_v59 = vadd.f32 %v15074_v32, %v6160_v36  ;;  %v6543_v13 = vadd.f32 %v15061_v50, %v6223_v26  ;;  %v17416_v50 = vld [vmem:[#allocation171_spill] sm:$0xff] }
 0xb24   :  { %v6603_v60 = vmax.f32 %v6539_v34, 0.0  ;;  %6663 = vst.msk [vmem:[%s15631_s12 + $0xe8] sm:$0xff] %vm5707_vm7, %v6599_v9  ;;  %v6165_v5 = vmul.f32 %v15065_v53, %v17414_v17  ;;  %v6228_v7 = vadd.f32 %v15074_v32, %v6161_v54  ;;  %v6544_v58 = vadd.f32 %v17415_v46, %v6224_v4  ;;  %v17421_v25 = vld [vmem:[#allocation147_spill] sm:$0xff] }
 0xb25   :  { %v6604_v48 = vmax.f32 %v6540_v43, 0.0  ;;  %6664 = vst.msk [vmem:[%s15631_s12 + $0xf0] sm:$0xff] %vm5707_vm7, %v6600_v56  ;;  %v6166_v6 = vmul.f32 %v15065_v53, %v17416_v50  ;;  %v6229_v10 = vadd.f32 %v15074_v32, %v6162_v1  ;;  %v6545_v63 = vadd.f32 %v17417_v49, %v6225_v35  ;;  %v17422_v26 = vld [vmem:[#allocation175_spill] sm:$0xff]  ;;  %v17424_v43 = vld [vmem:[#allocation184_spill] sm:$0xff]  ;;  %v17425_v1 = vld [vmem:[#allocation150_spill] sm:$0xff] }
 0xb26   :  { %v6605_v14 = vmax.f32 %v6541_v22, 0.0  ;;  %6665 = vst.msk [vmem:[%s15631_s12 + $0xf8] sm:$0xff] %vm5707_vm7, %v6601_v12  ;;  %v6167_v29 = vmul.f32 %v15065_v53, %v17418_v38  ;;  %v6230_v44 = vadd.f32 %v15074_v32, %v6163_v39  ;;  %v6546_v57 = vadd.f32 %v17419_v16, %v6226_v55  ;;  %v17426_v22 = vld [vmem:[#allocation187_spill] sm:$0xff]  ;;  %v17427_v39 = vld [vmem:[#allocation185_spill] sm:$0xff]  ;;  %v17433_v16 = vld [vmem:[#allocation20_spill] sm:$0xff] }
 0xb27   :  { %v6606_v8 = vmax.f32 %v6542_v33, 0.0  ;;  %6666 = vst.msk [vmem:[%s15631_s12 + $0x100] sm:$0xff] %vm5707_vm7, %v6602_v45  ;;  %v6168_v28 = vmul.f32 %v15065_v53, %v17420_v21  ;;  %v6231_v0 = vadd.f32 %v15074_v32, %v6164_v3  ;;  %v6547_v42 = vadd.f32 %v17421_v25, %v6227_v59  ;;  %v17428_v33 = vld [vmem:[#allocation103_spill] sm:$0xff] }
 0xb28   :  { %v15417_v27 = vpop.permute.xlu2 %6424  ;;  %v15427_v18 = vpop.permute.xlu0 %6426  ;;  %v6607_v19 = vmax.f32 %v6543_v13, 0.0  ;;  %6667 = vst.msk [vmem:[%s15631_s12 + $0x108] sm:$0xff] %vm5707_vm7, %v6603_v60  ;;  %v6169_v34 = vmul.f32 %v15065_v53, %v17422_v26  ;;  %v6232_v9 = vadd.f32 %v15074_v32, %v6165_v5  ;;  %v6548_v54 = vadd.f32 %v17423_v41, %v6228_v7  ;;  %v17429_v13 = vld [vmem:[#allocation182_spill] sm:$0xff] }
 0xb29   :  { %v6608_v4 = vmax.f32 %v6544_v58, 0.0  ;;  %6668 = vst.msk [vmem:[%s15631_s12 + $0x110] sm:$0xff] %vm5707_vm7, %v6604_v48  ;;  %v6170_v56 = vmul.f32 %v15065_v53, %v17424_v43  ;;  %v6233_v20 = vadd.f32 %v15074_v32, %v6166_v6  ;;  %v6549_v35 = vadd.f32 %v17425_v1, %v6229_v10 }
 0xb2a   :  { %v15437_v36 = vpop.permute.xlu1 %6428  ;;  %v6609_v11 = vmax.f32 %v6545_v63, 0.0  ;;  %6669 = vst.msk [vmem:[%s15631_s12 + $0x118] sm:$0xff] %vm5707_vm7, %v6605_v14  ;;  %v6171_v12 = vmul.f32 %v15065_v53, %v17426_v22  ;;  %v6234_v23 = vadd.f32 %v15074_v32, %v6167_v29  ;;  %v6550_v55 = vadd.f32 %v17427_v39, %v6230_v44 }
 0xb2b   :  { %v6610_v52 = vmax.f32 %v6546_v57, 0.0  ;;  %6670 = vst.msk [vmem:[%s15631_s12 + $0x120] sm:$0xff] %vm5707_vm7, %v6606_v8  ;;  %v6172_v45 = vmul.f32 %v15065_v53, %v17428_v33  ;;  %v6235_v51 = vadd.f32 %v15074_v32, %v6168_v28  ;;  %v6551_v3 = vadd.f32 %v15117_v62, %v6231_v0  ;;  %v17430_v62 = vld [vmem:[#allocation19_spill] sm:$0xff]  ;;  %v17434_v0 = vld [vmem:[#allocation65_spill] sm:$0xff] }
 0xb2c   :  { %v6611_v59 = vmax.f32 %v6547_v42, 0.0  ;;  %6671 = vst.msk [vmem:[%s15631_s12 + $0x128] sm:$0xff] %vm5707_vm7, %v6607_v19  ;;  %v6173_v60 = vmul.f32 %v15065_v53, %v17429_v13  ;;  %v6236_v17 = vadd.f32 %v15074_v32, %v6169_v34  ;;  %v6552_v5 = vadd.f32 %v15159_v61, %v6232_v9  ;;  %v17431_v61 = vld [vmem:[#allocation193_spill] sm:$0xff]  ;;  %v17435_v34 = vld [vmem:[#allocation79_spill] sm:$0xff] }
 0xb2d   :  { %v6612_v7 = vmax.f32 %v6548_v54, 0.0  ;;  %6672 = vst.msk [vmem:[%s15631_s12 + $0x130] sm:$0xff] %vm5707_vm7, %v6608_v4  ;;  %v6174_v46 = vmul.f32 %v15065_v53, %v17430_v62  ;;  %v6237_v58 = vadd.f32 %v15074_v32, %v6170_v56  ;;  %v6553_v48 = vadd.f32 %v15169_v2, %v6233_v20  ;;  %v17432_v2 = vld [vmem:[#allocation188_spill] sm:$0xff] }
 0xb2e   :  { %v6613_v50 = vmax.f32 %v6549_v35, 0.0  ;;  %6673 = vst.msk [vmem:[%s15631_s12 + $0x138] sm:$0xff] %vm5707_vm7, %v6609_v11  ;;  %v6175_v6 = vmul.f32 %v15065_v53, %v17431_v61  ;;  %v6238_v10 = vadd.f32 %v15074_v32, %v6171_v12  ;;  %v6554_v49 = vadd.f32 %v15179_v40, %v6234_v23 }
 0xb2f   :  { %v6614_v63 = vmax.f32 %v6550_v55, 0.0  ;;  %6674 = vst.msk [vmem:[%s15631_s12 + $0x140] sm:$0xff] %vm5707_vm7, %v6610_v52  ;;  %v6176_v14 = vmul.f32 %v15065_v53, %v17432_v2  ;;  %v6239_v38 = vadd.f32 %v15074_v32, %v6172_v45  ;;  %v6555_v29 = vadd.f32 %v15245_v31, %v6235_v51 }
 0xb30   :  { %v6615_v44 = vmax.f32 %v6551_v3, 0.0  ;;  %6675 = vst.msk [vmem:[%s15631_s12 + $0x148] sm:$0xff] %vm5707_vm7, %v6611_v59  ;;  %v6431_v40 = vpop.permute.xlu2 %6430  ;;  %v6177_v57 = vmul.f32 %v15065_v53, %v17433_v16  ;;  %v6240_v8 = vadd.f32 %v15074_v32, %v6173_v60  ;;  %v6556_v21 = vadd.f32 %v15255_v15, %v6236_v17  ;;  %v6433_v31 = vpop.permute.xlu0 %6432 }
 0xb31   :  { %v6616_v28 = vmax.f32 %v6552_v5, 0.0  ;;  %6676 = vst.msk [vmem:[%s15631_s12 + $0x150] sm:$0xff] %vm5707_vm7, %v6612_v7  ;;  %v6178_v25 = vmul.f32 %v15065_v53, %v17434_v0  ;;  %v6241_v42 = vadd.f32 %v15074_v32, %v6174_v46  ;;  %v6557_v19 = vadd.f32 %v15265_v37, %v6237_v58  ;;  %v17436_v37 = vld [vmem:[#allocation70_spill] sm:$0xff]  ;;  %v17438_v58 = vld [vmem:[#allocation145_spill] sm:$0xff] }
 0xb32   :  { %v6617_v26 = vmax.f32 %v6553_v48, 0.0  ;;  %6677 = vst.msk [vmem:[%s15631_s12 + $0x158] sm:$0xff] %vm5707_vm7, %v6613_v50  ;;  %v6435_v15 = vpop.permute.xlu1 %6434  ;;  %v6179_v9 = vmul.f32 %v15065_v53, %v17435_v34  ;;  %v6242_v41 = vadd.f32 %v15074_v32, %v6175_v6  ;;  %v6558_v54 = vadd.f32 %v15331_v24, %v6238_v10  ;;  %v17437_v24 = vld [vmem:[#allocation69_spill] sm:$0xff] }
 0xb33   :  { %v6618_v4 = vmax.f32 %v6554_v49, 0.0  ;;  %6678 = vst.msk [vmem:[%s15631_s12 + $0x160] sm:$0xff] %vm5707_vm7, %v6614_v63  ;;  %v6180_v43 = vmul.f32 %v15065_v53, %v17436_v37  ;;  %v6243_v56 = vadd.f32 %v15074_v32, %v6176_v14  ;;  %v6559_v20 = vadd.f32 %v15341_v30, %v6239_v38 }
 0xb34   :  { %v6619_v1 = vmax.f32 %v6555_v29, 0.0  ;;  %6679 = vst.msk [vmem:[%s15631_s12 + $0x168] sm:$0xff] %vm5707_vm7, %v6615_v44  ;;  %v6181_v35 = vmul.f32 %v15065_v53, %v17437_v24  ;;  %v6244_v11 = vadd.f32 %v15074_v32, %v6177_v57  ;;  %v6560_v22 = vadd.f32 %v15351_v47, %v6240_v8 }
 0xb35   :  { %v6620_v12 = vmax.f32 %v6556_v21, 0.0  ;;  %6680 = vst.msk [vmem:[%s15631_s12 + $0x170] sm:$0xff] %vm5707_vm7, %v6616_v28  ;;  %v6245_v30 = vadd.f32 %v15074_v32, %v6178_v25  ;;  %v6561_v23 = vadd.f32 %v15417_v27, %v6241_v42  ;;  %v6621_v39 = vmax.f32 %v6557_v19, 0.0 }
 0xb36   :  { %6681 = vst.msk [vmem:[%s15631_s12 + $0x178] sm:$0xff] %vm5707_vm7, %v6617_v26  ;;  %v6246_v53 = vadd.f32 %v15074_v32, %v6179_v9  ;;  %v6562_v47 = vadd.f32 %v15427_v18, %v6242_v41  ;;  %v6622_v55 = vmax.f32 %v6558_v54, 0.0  ;;  %v6247_v52 = vadd.f32 %v15074_v32, %v6180_v43 }
 0xb37   :  { %6682 = vst.msk [vmem:[%s15631_s12 + $0x180] sm:$0xff] %vm5707_vm7, %v6618_v4  ;;  %v6563_v27 = vadd.f32 %v15437_v36, %v6243_v56  ;;  %v6623_v33 = vmax.f32 %v6559_v20, 0.0  ;;  %v6248_v45 = vadd.f32 %v15074_v32, %v6181_v35  ;;  %v6564_v51 = vadd.f32 %v6431_v40, %v6244_v11 }
 0xb38   :  { %6683 = vst.msk [vmem:[%s15631_s12 + $0x188] sm:$0xff] %vm5707_vm7, %v6619_v1  ;;  %v6624_v18 = vmax.f32 %v6560_v22, 0.0  ;;  %v6565_v3 = vadd.f32 %v6433_v31, %v6245_v30  ;;  %v6625_v59 = vmax.f32 %v6561_v23, 0.0  ;;  %v6437_v36 = vpop.permute.xlu2 %6436  ;;  %v6566_v13 = vadd.f32 %v6435_v15, %v6246_v53  ;;  %v6439_v32 = vpop.permute.xlu0 %6438 }
 0xb39   :  { %6684 = vst.msk [vmem:[%s15631_s12 + $0x190] sm:$0xff] %vm5707_vm7, %v6620_v12  ;;  %v6626_v60 = vmax.f32 %v6562_v47, 0.0  ;;  %v6567_v17 = vadd.f32 %v6437_v36, %v6247_v52  ;;  %v6627_v5 = vmax.f32 %v6563_v27, 0.0  ;;  %v6568_v62 = vadd.f32 %v6439_v32, %v6248_v45 }
 0xb3a   :  { %6685 = vst.msk [vmem:[%s15631_s12 + $0x198] sm:$0xff] %vm5707_vm7, %v6621_v39  ;;  %v6441_v7 = vpop.permute.xlu1 %6440  ;;  %v6628_v46 = vmax.f32 %v6564_v51, 0.0  ;;  %v6629_v50 = vmax.f32 %v6565_v3, 0.0  ;;  %v6630_v61 = vmax.f32 %v6566_v13, 0.0 }
 0xb3b   :  { %6686 = vst.msk [vmem:[%s15631_s12 + $0x1a0] sm:$0xff] %vm5707_vm7, %v6622_v55  ;;  %v6569_v48 = vadd.f32 %v6441_v7, %v17438_v58  ;;  %v6631_v6 = vmax.f32 %v6567_v17, 0.0  ;;  %v6632_v10 = vmax.f32 %v6568_v62, 0.0 }
 0xb3c   :  { %6687 = vst.msk [vmem:[%s15631_s12 + $0x1a8] sm:$0xff] %vm5707_vm7, %v6623_v33 }
 0xb3d   :  { %6688 = vst.msk [vmem:[%s15631_s12 + $0x1b0] sm:$0xff] %vm5707_vm7, %v6624_v18  ;;  %v6633_v49 = vmax.f32 %v6569_v48, 0.0 }
 0xb3e   :  { %6689 = vst.msk [vmem:[%s15631_s12 + $0x1b8] sm:$0xff] %vm5707_vm7, %v6625_v59 }
 0xb3f   :  { %6690 = vst.msk [vmem:[%s15631_s12 + $0x1c0] sm:$0xff] %vm5707_vm7, %v6626_v60 }
 0xb40   :  { %6691 = vst.msk [vmem:[%s15631_s12 + $0x1c8] sm:$0xff] %vm5707_vm7, %v6627_v5 }
 0xb41   :  { %6692 = vst.msk [vmem:[%s15631_s12 + $0x1d0] sm:$0xff] %vm5707_vm7, %v6628_v46 }
 0xb42   :  { %6693 = vst.msk [vmem:[%s15631_s12 + $0x1d8] sm:$0xff] %vm5707_vm7, %v6629_v50 }
 0xb43   :  { %6694 = vst.msk [vmem:[%s15631_s12 + $0x1e0] sm:$0xff] %vm5707_vm7, %v6630_v61 }
 0xb44   :  { %6695 = vst.msk [vmem:[%s15631_s12 + $0x1e8] sm:$0xff] %vm5707_vm7, %v6631_v6 }
 0xb45   :  { %6696 = vst.msk [vmem:[%s15631_s12 + $0x1f0] sm:$0xff] %vm5707_vm7, %v6632_v10 }
 0xb46   :  { %6697 = vst.msk [vmem:[%s15631_s12 + $0x1f8] sm:$0xff] %vm5707_vm7, %v6633_v49 }

</bundles_post_ra>
